<compile_context>
chip_gen: v7x
topology: tpu7x:2x2x1
jax: 0.10.0
libtpu: 0.0.40
codegen_flags: <defaults>
</compile_context>

<pallas_src>
import functools

import numpy as np
import jax
import jax.numpy as jnp
from jax.experimental import pallas as pl
from jax.experimental.pallas import tpu as pltpu


# ----------------------------------------------------------------------------
# Kernel A: fused  out(Cout, tn) = relu( W(Cout,K) @ patchesT(K,tn) + b )
# Lane-dense: M (=N*Ho*Wo) is the last/lane dim of both rhs and output.
# ----------------------------------------------------------------------------
def _matmul_t_bias_kernel(w_ref, p_ref, b_ref, o_ref, *, apply_relu):
    acc = jnp.dot(w_ref[...], p_ref[...], preferred_element_type=jnp.float32)
    acc = acc + b_ref[...]                        # (Cout, 1) broadcast over lanes
    if apply_relu:
        acc = jnp.maximum(acc, 0.0)
    o_ref[...] = acc.astype(o_ref.dtype)


def _pick_tn(m, *, min_tn=512, max_tn=8192, min_blocks=4):
    """Largest multiple of 512 keeping >= min_blocks grid blocks (v7x megacore)."""
    if m <= min_tn:
        return max(128, ((m + 127) // 128) * 128)
    tn = (m // min_blocks) // min_tn * min_tn
    return max(min_tn, min(max_tn, tn))


def matmul_t_bias(w_mat, patches_t, b, *, apply_relu, out_dtype, tn=None):
    """w_mat: (Cout, K) bf16, patches_t: (K, M) bf16, b: (Cout,) -> (Cout, M)."""
    Cout, K = w_mat.shape
    K2, M = patches_t.shape
    assert K == K2
    if tn is None:
        tn = _pick_tn(M)
    grid = (pl.cdiv(M, tn),)                      # ragged last block, no jnp.pad
    return pl.pallas_call(
        functools.partial(_matmul_t_bias_kernel, apply_relu=apply_relu),
        out_shape=jax.ShapeDtypeStruct((Cout, M), out_dtype),
        grid_spec=pltpu.PrefetchScalarGridSpec(
            num_scalar_prefetch=0,
            grid=grid,
            in_specs=[
                pl.BlockSpec((Cout, K), lambda i: (0, 0)),   # full weight (tiny)
                pl.BlockSpec((K, tn), lambda i: (0, i)),     # activation tile
                pl.BlockSpec((Cout, 1), lambda i: (0, 0)),   # bias column
            ],
            out_specs=pl.BlockSpec((Cout, tn), lambda i: (0, i)),
        ),
        compiler_params=pltpu.CompilerParams(
            dimension_semantics=("parallel",),               # megacore sharding
            vmem_limit_bytes=32 * 1024 * 1024,
        ),
    )(w_mat, patches_t, b.astype(jnp.float32).reshape(Cout, 1))


# ----------------------------------------------------------------------------
# Conv2d (stride 1, symmetric padding) + ReLU, activations in (C, N, H, W).
# im2col is built transposed (K on rows, M on lanes) in bf16 by XLA; K is
# zero-padded to a multiple of 16 so the bf16 tiles are cleanly (16,128)-tiled.
# ----------------------------------------------------------------------------
def conv2d_relu_cnhw(x, w_torch, b, *, padding, out_dtype):
    Cin, N, H, W = x.shape
    Cout, Cin2, kh, kw = w_torch.shape
    assert Cin == Cin2
    Ho = H + 2 * padding - kh + 1
    Wo = W + 2 * padding - kw + 1

    xp = jnp.pad(x.astype(jnp.bfloat16),
                 ((0, 0), (0, 0), (padding, padding), (padding, padding)))

    # TODO(synk): in-kernel shift-and-accumulate would remove this kh*kw
    # HBM traffic inflation entirely.
    slabs = []
    for dy in range(kh):
        for dx in range(kw):
            slabs.append(xp[:, :, dy:dy + Ho, dx:dx + Wo])   # (Cin, N, Ho, Wo)
    pt = jnp.stack(slabs, axis=1)                            # (Cin, kh*kw, N, Ho, Wo)
    pt = pt.reshape(Cin * kh * kw, N * Ho * Wo)              # K-order = (ci, dy, dx)

    K0 = Cin * kh * kw
    K = ((K0 + 15) // 16) * 16                               # bf16 sublane pack
    w_mat = w_torch.reshape(Cout, K0).astype(jnp.bfloat16)
    if K != K0:
        pt = jnp.pad(pt, ((0, K - K0), (0, 0)))              # zero rows: free
        w_mat = jnp.pad(w_mat, ((0, 0), (0, K - K0)))

    out = matmul_t_bias(w_mat, pt, b, apply_relu=True, out_dtype=out_dtype)
    return out.reshape(Cout, N, Ho, Wo)


# ----------------------------------------------------------------------------
# Non-uniform AdaptiveMaxPool2d (60->128, 126->64), PyTorch semantics.
# Kept as plain-JAX gather+mask (static indices), now operating on bf16.
# ----------------------------------------------------------------------------
def _adaptive_pool_1d_indices(in_size, out_size):
    i = np.arange(out_size)
    starts = (i * in_size) // out_size                       # floor
    ends = -((-(i + 1) * in_size) // out_size)               # ceil
    kmax = int((ends - starts).max())
    idx = starts[:, None] + np.arange(kmax)[None, :]
    mask = idx < ends[:, None]
    idx = np.minimum(idx, in_size - 1)
    return jnp.asarray(idx, jnp.int32), jnp.asarray(mask)


def adaptive_max_pool2d_cnhw(x, out_h, out_w):
    C, N, H, W = x.shape
    idx_h, mask_h = _adaptive_pool_1d_indices(H, out_h)
    idx_w, mask_w = _adaptive_pool_1d_indices(W, out_w)
    kh, kw = idx_h.shape[1], idx_w.shape[1]

    xh = jnp.take(x, idx_h.reshape(-1), axis=2).reshape(C, N, out_h, kh, W)
    xh = jnp.where(mask_h[None, None, :, :, None], xh, -jnp.inf)
    xh = jnp.max(xh, axis=3)                                 # (C, N, out_h, W)

    xw = jnp.take(xh, idx_w.reshape(-1), axis=3).reshape(C, N, out_h, out_w, kw)
    xw = jnp.where(mask_w[None, None, None, :, :], xw, -jnp.inf)
    return jnp.max(xw, axis=4)                               # (C, N, out_h, out_w)


# ----------------------------------------------------------------------------
# Kernel B: fused uniform 8x8 max-pool (64->8) + flatten (torch C,H,W order,
# absorbed into the FC weight layout) + Linear(1024 -> 15).  One grid block
# per sample ("parallel" -> both v7x cores), vectorized pooling, MXU dots,
# a single vector store per sample.
# ----------------------------------------------------------------------------
def _pool_fc_kernel(x_ref, wq_ref, b_ref, o_ref):
    # x_ref : (C, 1, H, W) f32  — one sample
    # wq_ref: (OW, n_out, C*OH) f32 — FC weight, lane-dense (128 lanes)
    # b_ref : (n_out, 1) f32
    # o_ref : (1, n_out, 1) f32
    C, _, H, W = x_ref.shape
    OH, OW = 8, 8
    ph, pw = H // OH, W // OW

    x = x_ref[:, 0, :, :]                                    # (C, H, W)
    # H-pool: group rows by (c, oh) — tile-aligned reshape (minor dim untouched)
    # then one sublane reduction over the ph window.
    xg = x.reshape(C * OH, ph, W)                            # (C*OH, ph, W)
    xh = jnp.max(xg, axis=1)                                 # (C*OH, W)

    # W-pool + FC: for each output column ow, a static lane-slice max gives the
    # pooled column (C*OH, 1); contract it with the matching (n_out, C*OH)
    # weight slab on the MXU and accumulate.
    out = b_ref[...]                                         # (n_out, 1)
    for ow in range(OW):
        col = jnp.max(xh[:, ow * pw:(ow + 1) * pw], axis=1, keepdims=True)
        out = out + jnp.dot(wq_ref[ow], col,
                            preferred_element_type=jnp.float32)
    o_ref[0] = out.astype(o_ref.dtype)                       # single store


def pool_fc_fused(x_cnhw, fc_w, fc_b):
    C, N, H, W = x_cnhw.shape                                # (16, N, 64, 64)
    OH, OW = 8, 8
    assert H % OH == 0 and W % OW == 0
    n_out, Kf = fc_w.shape
    assert Kf == C * OH * OW

    # wq[ow, o, c*OH + oh] = fc_w[o, c*OH*OW + oh*OW + ow]  (torch flatten order)
    wq = fc_w.astype(jnp.float32).reshape(n_out, C, OH, OW)
    wq = jnp.transpose(wq, (3, 0, 1, 2)).reshape(OW, n_out, C * OH)
    bias = fc_b.astype(jnp.float32).reshape(n_out, 1)

    res = pl.pallas_call(
        _pool_fc_kernel,
        out_shape=jax.ShapeDtypeStruct((N, n_out, 1), jnp.float32),
        grid_spec=pltpu.PrefetchScalarGridSpec(
            num_scalar_prefetch=0,
            grid=(N,),                                       # >=2 parallel blocks
            in_specs=[
                pl.BlockSpec((C, 1, H, W), lambda n: (0, n, 0, 0)),
                pl.BlockSpec((OW, n_out, C * OH), lambda n: (0, 0, 0)),
                pl.BlockSpec((n_out, 1), lambda n: (0, 0)),
            ],
            out_specs=pl.BlockSpec((1, n_out, 1), lambda n: (n, 0, 0)),
        ),
        compiler_params=pltpu.CompilerParams(
            dimension_semantics=("parallel",),
            vmem_limit_bytes=32 * 1024 * 1024,
        ),
    )(x_cnhw, wq, bias)
    return res.reshape(N, n_out)                             # (N, 15)


# ----------------------------------------------------------------------------
# Full forward pass (matches CNN_3_layers.forward).  Public API: NCHW f32.
# ----------------------------------------------------------------------------
def cnn_3_layers_forward(x_nchw, params):
    x = jnp.transpose(x_nchw, (1, 0, 2, 3))                  # NCHW -> (C, N, H, W)

    x = conv2d_relu_cnhw(x, params["conv1_w"], params["conv1_b"],
                         padding=1, out_dtype=jnp.bfloat16)
    x = adaptive_max_pool2d_cnhw(x, 128, 128)                # (4, N, 128, 128) bf16

    x = conv2d_relu_cnhw(x, params["conv2_w"], params["conv2_b"],
                         padding=1, out_dtype=jnp.bfloat16)
    x = adaptive_max_pool2d_cnhw(x, 64, 64)                  # (8, N, 64, 64) bf16

    x = conv2d_relu_cnhw(x, params["conv3_w"], params["conv3_b"],
                         padding=1, out_dtype=jnp.float32)   # keep f32 for FC
    # (16, N, 64, 64): uniform 64->8 pool + flatten + fc fused in one kernel.
    return pool_fc_fused(x, params["fc_w"], params["fc_b"])  # (N, 15)


def make_params(key):
    ks = jax.random.split(key, 8)
    scale = 0.05
    return {
        "conv1_w": scale * jax.random.normal(ks[0], (4, 1, 7, 7), jnp.float32),
        "conv1_b": scale * jax.random.normal(ks[1], (4,), jnp.float32),
        "conv2_w": scale * jax.random.normal(ks[2], (8, 4, 5, 5), jnp.float32),
        "conv2_b": scale * jax.random.normal(ks[3], (8,), jnp.float32),
        "conv3_w": scale * jax.random.normal(ks[4], (16, 8, 3, 3), jnp.float32),
        "conv3_b": scale * jax.random.normal(ks[5], (16,), jnp.float32),
        "fc_w": scale * jax.random.normal(ks[6], (15, 16 * 8 * 8), jnp.float32),
        "fc_b": scale * jax.random.normal(ks[7], (15,), jnp.float32),
    }


if __name__ == "__main__":
    root = jax.random.PRNGKey(0)
    pkey, xkey = jax.random.split(root)
    params = make_params(pkey)

    # Input: (batch=2, channels=1, H=64, W=64) — NCHW like PyTorch.
    x = jax.random.normal(xkey, (2, 1, 64, 64), jnp.float32)

    fwd = jax.jit(cnn_3_layers_forward)
    out = jax.block_until_ready(fwd(x, params))

    assert out.shape == (2, 15), out.shape
    assert bool(jnp.all(jnp.isfinite(out)))
    print("KERNEL_OK")
</pallas_src>

<mosaic_0001>
module attributes {stable_mosaic.version = 11 : i64} {
  func.func @_matmul_t_bias_kernel(%arg0: i32, %arg1: memref<4x64xbf16, #tpu.memory_space<vmem>>, %arg2: memref<64x1536xbf16, #tpu.memory_space<vmem>>, %arg3: memref<4x1xf32, #tpu.memory_space<vmem>>, %arg4: memref<4x1536xbf16, #tpu.memory_space<vmem>>) attributes {dimension_semantics = [#tpu.dimension_semantics<parallel>], iteration_bounds = array<i64: 5>, scalar_prefetch = 0 : i64, scratch_operands = 0 : i64, tpu.core_type = #tpu.core_type<tc>, window_params = [{pipeline_mode = #tpu.pipeline_mode<synchronous>, transform_indices = @transform_0, window_bounds = array<i64: 4, 64>}, {transform_indices = @transform_1, window_bounds = array<i64: 64, 1536>}, {pipeline_mode = #tpu.pipeline_mode<synchronous>, transform_indices = @transform_2, window_bounds = array<i64: 4, 1>}, {transform_indices = @transform_3, window_bounds = array<i64: 4, 1536>}]} {
    %c0 = arith.constant 0 : index
    %c0_0 = arith.constant 0 : index
    %0 = vector.load %arg1[%c0, %c0_0] : memref<4x64xbf16, #tpu.memory_space<vmem>>, vector<4x64xbf16>
    %c0_1 = arith.constant 0 : index
    %c0_2 = arith.constant 0 : index
    %1 = vector.load %arg2[%c0_1, %c0_2] : memref<64x1536xbf16, #tpu.memory_space<vmem>>, vector<64x1536xbf16>
    %cst = arith.constant dense<0.000000e+00> : vector<4x1536xf32>
    %2 = tpu.matmul %0, %1, %cst {dimension_numbers = #tpu.dot_dimension_numbers<[1], [0], [0], [1], [0, 0, 1, 1], [], []>} : vector<4x64xbf16>, vector<64x1536xbf16>, vector<4x1536xf32> -> vector<4x1536xf32>
    %c0_3 = arith.constant 0 : index
    %c0_4 = arith.constant 0 : index
    %3 = vector.load %arg3[%c0_3, %c0_4] : memref<4x1xf32, #tpu.memory_space<vmem>>, vector<4x1xf32>
    %4 = vector.broadcast %3 : vector<4x1xf32> to vector<4x1536xf32>
    %5 = arith.addf %2, %4 : vector<4x1536xf32>
    %cst_5 = arith.constant 0.000000e+00 : f32
    %6 = vector.broadcast %cst_5 : f32 to vector<4x1536xf32>
    %7 = arith.maximumf %5, %6 : vector<4x1536xf32>
    %8 = arith.truncf %7 : vector<4x1536xf32> to vector<4x1536xbf16>
    %c0_6 = arith.constant 0 : index
    %c0_7 = arith.constant 0 : index
    %9 = vector.load %arg4[%c0_6, %c0_7] : memref<4x1536xbf16, #tpu.memory_space<vmem>>, vector<4x1536xbf16>
    tpu.vector_store %arg4[%c0_6, %c0_7], %8 {strides = array<i32>} : memref<4x1536xbf16, #tpu.memory_space<vmem>>, vector<4x1536xbf16>,
    return
  }
  func.func @transform_0(%arg0: i32) -> (i32, i32) {
    %c0_i32 = arith.constant 0 : i32
    %c0_i32_0 = arith.constant 0 : i32
    %c0_i32_1 = arith.constant 0 : i32
    return %c0_i32, %c0_i32_0 : i32, i32
  }
  func.func @transform_1(%arg0: i32) -> (i32, i32) {
    %c0_i32 = arith.constant 0 : i32
    %c0_i32_0 = arith.constant 0 : i32
    return %c0_i32, %arg0 : i32, i32
  }
  func.func @transform_2(%arg0: i32) -> (i32, i32) {
    %c0_i32 = arith.constant 0 : i32
    %c0_i32_0 = arith.constant 0 : i32
    %c0_i32_1 = arith.constant 0 : i32
    return %c0_i32, %c0_i32_0 : i32, i32
  }
  func.func @transform_3(%arg0: i32) -> (i32, i32) {
    %c0_i32 = arith.constant 0 : i32
    %c0_i32_0 = arith.constant 0 : i32
    return %c0_i32, %arg0 : i32, i32
  }
}

module attributes {stable_mosaic.version = 11 : i64} {
  func.func @_matmul_t_bias_kernel(%arg0: i32, %arg1: memref<8x112xbf16, #tpu.memory_space<vmem>>, %arg2: memref<112x7680xbf16, #tpu.memory_space<vmem>>, %arg3: memref<8x1xf32, #tpu.memory_space<vmem>>, %arg4: memref<8x7680xbf16, #tpu.memory_space<vmem>>) attributes {dimension_semantics = [#tpu.dimension_semantics<parallel>], iteration_bounds = array<i64: 5>, scalar_prefetch = 0 : i64, scratch_operands = 0 : i64, tpu.core_type = #tpu.core_type<tc>, window_params = [{pipeline_mode = #tpu.pipeline_mode<synchronous>, transform_indices = @transform_0, window_bounds = array<i64: 8, 112>}, {transform_indices = @transform_1, window_bounds = array<i64: 112, 7680>}, {pipeline_mode = #tpu.pipeline_mode<synchronous>, transform_indices = @transform_2, window_bounds = array<i64: 8, 1>}, {transform_indices = @transform_3, window_bounds = array<i64: 8, 7680>}]} {
    %c0 = arith.constant 0 : index
    %c0_0 = arith.constant 0 : index
    %0 = vector.load %arg1[%c0, %c0_0] : memref<8x112xbf16, #tpu.memory_space<vmem>>, vector<8x112xbf16>
    %c0_1 = arith.constant 0 : index
    %c0_2 = arith.constant 0 : index
    %1 = vector.load %arg2[%c0_1, %c0_2] : memref<112x7680xbf16, #tpu.memory_space<vmem>>, vector<112x7680xbf16>
    %cst = arith.constant dense<0.000000e+00> : vector<8x7680xf32>
    %2 = tpu.matmul %0, %1, %cst {dimension_numbers = #tpu.dot_dimension_numbers<[1], [0], [0], [1], [0, 0, 1, 1], [], []>} : vector<8x112xbf16>, vector<112x7680xbf16>, vector<8x7680xf32> -> vector<8x7680xf32>
    %c0_3 = arith.constant 0 : index
    %c0_4 = arith.constant 0 : index
    %3 = vector.load %arg3[%c0_3, %c0_4] : memref<8x1xf32, #tpu.memory_space<vmem>>, vector<8x1xf32>
    %4 = vector.broadcast %3 : vector<8x1xf32> to vector<8x7680xf32>
    %5 = arith.addf %2, %4 : vector<8x7680xf32>
    %cst_5 = arith.constant 0.000000e+00 : f32
    %6 = vector.broadcast %cst_5 : f32 to vector<8x7680xf32>
    %7 = arith.maximumf %5, %6 : vector<8x7680xf32>
    %8 = arith.truncf %7 : vector<8x7680xf32> to vector<8x7680xbf16>
    %c0_6 = arith.constant 0 : index
    %c0_7 = arith.constant 0 : index
    %9 = vector.load %arg4[%c0_6, %c0_7] : memref<8x7680xbf16, #tpu.memory_space<vmem>>, vector<8x7680xbf16>
    tpu.vector_store %arg4[%c0_6, %c0_7], %8 {strides = array<i32>} : memref<8x7680xbf16, #tpu.memory_space<vmem>>, vector<8x7680xbf16>,
    return
  }
  func.func @transform_0(%arg0: i32) -> (i32, i32) {
    %c0_i32 = arith.constant 0 : i32
    %c0_i32_0 = arith.constant 0 : i32
    %c0_i32_1 = arith.constant 0 : i32
    return %c0_i32, %c0_i32_0 : i32, i32
  }
  func.func @transform_1(%arg0: i32) -> (i32, i32) {
    %c0_i32 = arith.constant 0 : i32
    %c0_i32_0 = arith.constant 0 : i32
    return %c0_i32, %arg0 : i32, i32
  }
  func.func @transform_2(%arg0: i32) -> (i32, i32) {
    %c0_i32 = arith.constant 0 : i32
    %c0_i32_0 = arith.constant 0 : i32
    %c0_i32_1 = arith.constant 0 : i32
    return %c0_i32, %c0_i32_0 : i32, i32
  }
  func.func @transform_3(%arg0: i32) -> (i32, i32) {
    %c0_i32 = arith.constant 0 : i32
    %c0_i32_0 = arith.constant 0 : i32
    return %c0_i32, %arg0 : i32, i32
  }
}

module attributes {stable_mosaic.version = 11 : i64} {
  func.func @_matmul_t_bias_kernel(%arg0: i32, %arg1: memref<16x80xbf16, #tpu.memory_space<vmem>>, %arg2: memref<80x2048xbf16, #tpu.memory_space<vmem>>, %arg3: memref<16x1xf32, #tpu.memory_space<vmem>>, %arg4: memref<16x2048xf32, #tpu.memory_space<vmem>>) attributes {dimension_semantics = [#tpu.dimension_semantics<parallel>], iteration_bounds = array<i64: 4>, scalar_prefetch = 0 : i64, scratch_operands = 0 : i64, tpu.core_type = #tpu.core_type<tc>, window_params = [{pipeline_mode = #tpu.pipeline_mode<synchronous>, transform_indices = @transform_0, window_bounds = array<i64: 16, 80>}, {transform_indices = @transform_1, window_bounds = array<i64: 80, 2048>}, {pipeline_mode = #tpu.pipeline_mode<synchronous>, transform_indices = @transform_2, window_bounds = array<i64: 16, 1>}, {transform_indices = @transform_3, window_bounds = array<i64: 16, 2048>}]} {
    %c0 = arith.constant 0 : index
    %c0_0 = arith.constant 0 : index
    %0 = vector.load %arg1[%c0, %c0_0] : memref<16x80xbf16, #tpu.memory_space<vmem>>, vector<16x80xbf16>
    %c0_1 = arith.constant 0 : index
    %c0_2 = arith.constant 0 : index
    %1 = vector.load %arg2[%c0_1, %c0_2] : memref<80x2048xbf16, #tpu.memory_space<vmem>>, vector<80x2048xbf16>
    %cst = arith.constant dense<0.000000e+00> : vector<16x2048xf32>
    %2 = tpu.matmul %0, %1, %cst {dimension_numbers = #tpu.dot_dimension_numbers<[1], [0], [0], [1], [0, 0, 1, 1], [], []>} : vector<16x80xbf16>, vector<80x2048xbf16>, vector<16x2048xf32> -> vector<16x2048xf32>
    %c0_3 = arith.constant 0 : index
    %c0_4 = arith.constant 0 : index
    %3 = vector.load %arg3[%c0_3, %c0_4] : memref<16x1xf32, #tpu.memory_space<vmem>>, vector<16x1xf32>
    %4 = vector.broadcast %3 : vector<16x1xf32> to vector<16x2048xf32>
    %5 = arith.addf %2, %4 : vector<16x2048xf32>
    %cst_5 = arith.constant 0.000000e+00 : f32
    %6 = vector.broadcast %cst_5 : f32 to vector<16x2048xf32>
    %7 = arith.maximumf %5, %6 : vector<16x2048xf32>
    %c0_6 = arith.constant 0 : index
    %c0_7 = arith.constant 0 : index
    %8 = vector.load %arg4[%c0_6, %c0_7] : memref<16x2048xf32, #tpu.memory_space<vmem>>, vector<16x2048xf32>
    tpu.vector_store %arg4[%c0_6, %c0_7], %7 {strides = array<i32>} : memref<16x2048xf32, #tpu.memory_space<vmem>>, vector<16x2048xf32>,
    return
  }
  func.func @transform_0(%arg0: i32) -> (i32, i32) {
    %c0_i32 = arith.constant 0 : i32
    %c0_i32_0 = arith.constant 0 : i32
    %c0_i32_1 = arith.constant 0 : i32
    return %c0_i32, %c0_i32_0 : i32, i32
  }
  func.func @transform_1(%arg0: i32) -> (i32, i32) {
    %c0_i32 = arith.constant 0 : i32
    %c0_i32_0 = arith.constant 0 : i32
    return %c0_i32, %arg0 : i32, i32
  }
  func.func @transform_2(%arg0: i32) -> (i32, i32) {
    %c0_i32 = arith.constant 0 : i32
    %c0_i32_0 = arith.constant 0 : i32
    %c0_i32_1 = arith.constant 0 : i32
    return %c0_i32, %c0_i32_0 : i32, i32
  }
  func.func @transform_3(%arg0: i32) -> (i32, i32) {
    %c0_i32 = arith.constant 0 : i32
    %c0_i32_0 = arith.constant 0 : i32
    return %c0_i32, %arg0 : i32, i32
  }
}

module attributes {stable_mosaic.version = 11 : i64} {
  func.func @_pool_fc_kernel(%arg0: i32, %arg1: memref<16x1x64x64xf32, #tpu.memory_space<vmem>>, %arg2: memref<8x15x128xf32, #tpu.memory_space<vmem>>, %arg3: memref<15x1xf32, #tpu.memory_space<vmem>>, %arg4: memref<1x15x1xf32, #tpu.memory_space<vmem>>) attributes {dimension_semantics = [#tpu.dimension_semantics<parallel>], iteration_bounds = array<i64: 2>, scalar_prefetch = 0 : i64, scratch_operands = 0 : i64, tpu.core_type = #tpu.core_type<tc>, window_params = [{transform_indices = @transform_0, window_bounds = array<i64: 16, 1, 64, 64>}, {pipeline_mode = #tpu.pipeline_mode<synchronous>, transform_indices = @transform_1, window_bounds = array<i64: 8, 15, 128>}, {pipeline_mode = #tpu.pipeline_mode<synchronous>, transform_indices = @transform_2, window_bounds = array<i64: 15, 1>}, {transform_indices = @transform_3, window_bounds = array<i64: 1, 15, 1>}]} {
    %c0 = arith.constant 0 : index
    %c0_0 = arith.constant 0 : index
    %c0_1 = arith.constant 0 : index
    %c0_2 = arith.constant 0 : index
    %0 = vector.load %arg1[%c0, %c0_0, %c0_1, %c0_2] : memref<16x1x64x64xf32, #tpu.memory_space<vmem>>, vector<16x1x64x64xf32>
    %1 = vector.shape_cast %0 : vector<16x1x64x64xf32> to vector<16x64x64xf32>
    %2 = vector.shape_cast %1 : vector<16x64x64xf32> to vector<128x8x64xf32>
    %cst = arith.constant dense<0xFF800000> : vector<128x64xf32>
    %3 = vector.multi_reduction <maximumf>, %2, %cst [1] : vector<128x8x64xf32> to vector<128x64xf32>
    %c0_3 = arith.constant 0 : index
    %c0_4 = arith.constant 0 : index
    %4 = vector.load %arg3[%c0_3, %c0_4] : memref<15x1xf32, #tpu.memory_space<vmem>>, vector<15x1xf32>
    %5 = vector.extract_strided_slice %3 {offsets = [0, 0], sizes = [128, 8], strides = [1, 1]} : vector<128x64xf32> to vector<128x8xf32>
    %cst_5 = arith.constant dense<0xFF800000> : vector<128xf32>
    %6 = vector.multi_reduction <maximumf>, %5, %cst_5 [1] : vector<128x8xf32> to vector<128xf32>
    %7 = vector.shape_cast %6 : vector<128xf32> to vector<128x1xf32>
    %c0_6 = arith.constant 0 : index
    %c0_7 = arith.constant 0 : index
    %c0_8 = arith.constant 0 : index
    %8 = vector.load %arg2[%c0_6, %c0_7, %c0_8] : memref<8x15x128xf32, #tpu.memory_space<vmem>>, vector<1x15x128xf32>
    %9 = vector.shape_cast %8 : vector<1x15x128xf32> to vector<15x128xf32>
    %cst_9 = arith.constant dense<0.000000e+00> : vector<15x1xf32>
    %10 = tpu.matmul %9, %7, %cst_9 {dimension_numbers = #tpu.dot_dimension_numbers<[1], [0], [0], [1], [0, 0, 1, 1], [], []>} : vector<15x128xf32>, vector<128x1xf32>, vector<15x1xf32> -> vector<15x1xf32>
    %11 = arith.addf %4, %10 : vector<15x1xf32>
    %12 = vector.extract_strided_slice %3 {offsets = [0, 8], sizes = [128, 8], strides = [1, 1]} : vector<128x64xf32> to vector<128x8xf32>
    %cst_10 = arith.constant dense<0xFF800000> : vector<128xf32>
    %13 = vector.multi_reduction <maximumf>, %12, %cst_10 [1] : vector<128x8xf32> to vector<128xf32>
    %14 = vector.shape_cast %13 : vector<128xf32> to vector<128x1xf32>
    %c1 = arith.constant 1 : index
    %c0_11 = arith.constant 0 : index
    %c0_12 = arith.constant 0 : index
    %15 = vector.load %arg2[%c1, %c0_11, %c0_12] : memref<8x15x128xf32, #tpu.memory_space<vmem>>, vector<1x15x128xf32>
    %16 = vector.shape_cast %15 : vector<1x15x128xf32> to vector<15x128xf32>
    %cst_13 = arith.constant dense<0.000000e+00> : vector<15x1xf32>
    %17 = tpu.matmul %16, %14, %cst_13 {dimension_numbers = #tpu.dot_dimension_numbers<[1], [0], [0], [1], [0, 0, 1, 1], [], []>} : vector<15x128xf32>, vector<128x1xf32>, vector<15x1xf32> -> vector<15x1xf32>
    %18 = arith.addf %11, %17 : vector<15x1xf32>
    %19 = vector.extract_strided_slice %3 {offsets = [0, 16], sizes = [128, 8], strides = [1, 1]} : vector<128x64xf32> to vector<128x8xf32>
    %cst_14 = arith.constant dense<0xFF800000> : vector<128xf32>
    %20 = vector.multi_reduction <maximumf>, %19, %cst_14 [1] : vector<128x8xf32> to vector<128xf32>
    %21 = vector.shape_cast %20 : vector<128xf32> to vector<128x1xf32>
    %c2 = arith.constant 2 : index
    %c0_15 = arith.constant 0 : index
    %c0_16 = arith.constant 0 : index
    %22 = vector.load %arg2[%c2, %c0_15, %c0_16] : memref<8x15x128xf32, #tpu.memory_space<vmem>>, vector<1x15x128xf32>
    %23 = vector.shape_cast %22 : vector<1x15x128xf32> to vector<15x128xf32>
    %cst_17 = arith.constant dense<0.000000e+00> : vector<15x1xf32>
    %24 = tpu.matmul %23, %21, %cst_17 {dimension_numbers = #tpu.dot_dimension_numbers<[1], [0], [0], [1], [0, 0, 1, 1], [], []>} : vector<15x128xf32>, vector<128x1xf32>, vector<15x1xf32> -> vector<15x1xf32>
    %25 = arith.addf %18, %24 : vector<15x1xf32>
    %26 = vector.extract_strided_slice %3 {offsets = [0, 24], sizes = [128, 8], strides = [1, 1]} : vector<128x64xf32> to vector<128x8xf32>
    %cst_18 = arith.constant dense<0xFF800000> : vector<128xf32>
    %27 = vector.multi_reduction <maximumf>, %26, %cst_18 [1] : vector<128x8xf32> to vector<128xf32>
    %28 = vector.shape_cast %27 : vector<128xf32> to vector<128x1xf32>
    %c3 = arith.constant 3 : index
    %c0_19 = arith.constant 0 : index
    %c0_20 = arith.constant 0 : index
    %29 = vector.load %arg2[%c3, %c0_19, %c0_20] : memref<8x15x128xf32, #tpu.memory_space<vmem>>, vector<1x15x128xf32>
    %30 = vector.shape_cast %29 : vector<1x15x128xf32> to vector<15x128xf32>
    %cst_21 = arith.constant dense<0.000000e+00> : vector<15x1xf32>
    %31 = tpu.matmul %30, %28, %cst_21 {dimension_numbers = #tpu.dot_dimension_numbers<[1], [0], [0], [1], [0, 0, 1, 1], [], []>} : vector<15x128xf32>, vector<128x1xf32>, vector<15x1xf32> -> vector<15x1xf32>
    %32 = arith.addf %25, %31 : vector<15x1xf32>
    %33 = vector.extract_strided_slice %3 {offsets = [0, 32], sizes = [128, 8], strides = [1, 1]} : vector<128x64xf32> to vector<128x8xf32>
    %cst_22 = arith.constant dense<0xFF800000> : vector<128xf32>
    %34 = vector.multi_reduction <maximumf>, %33, %cst_22 [1] : vector<128x8xf32> to vector<128xf32>
    %35 = vector.shape_cast %34 : vector<128xf32> to vector<128x1xf32>
    %c4 = arith.constant 4 : index
    %c0_23 = arith.constant 0 : index
    %c0_24 = arith.constant 0 : index
    %36 = vector.load %arg2[%c4, %c0_23, %c0_24] : memref<8x15x128xf32, #tpu.memory_space<vmem>>, vector<1x15x128xf32>
    %37 = vector.shape_cast %36 : vector<1x15x128xf32> to vector<15x128xf32>
    %cst_25 = arith.constant dense<0.000000e+00> : vector<15x1xf32>
    %38 = tpu.matmul %37, %35, %cst_25 {dimension_numbers = #tpu.dot_dimension_numbers<[1], [0], [0], [1], [0, 0, 1, 1], [], []>} : vector<15x128xf32>, vector<128x1xf32>, vector<15x1xf32> -> vector<15x1xf32>
    %39 = arith.addf %32, %38 : vector<15x1xf32>
    %40 = vector.extract_strided_slice %3 {offsets = [0, 40], sizes = [128, 8], strides = [1, 1]} : vector<128x64xf32> to vector<128x8xf32>
    %cst_26 = arith.constant dense<0xFF800000> : vector<128xf32>
    %41 = vector.multi_reduction <maximumf>, %40, %cst_26 [1] : vector<128x8xf32> to vector<128xf32>
    %42 = vector.shape_cast %41 : vector<128xf32> to vector<128x1xf32>
    %c5 = arith.constant 5 : index
    %c0_27 = arith.constant 0 : index
    %c0_28 = arith.constant 0 : index
    %43 = vector.load %arg2[%c5, %c0_27, %c0_28] : memref<8x15x128xf32, #tpu.memory_space<vmem>>, vector<1x15x128xf32>
    %44 = vector.shape_cast %43 : vector<1x15x128xf32> to vector<15x128xf32>
    %cst_29 = arith.constant dense<0.000000e+00> : vector<15x1xf32>
    %45 = tpu.matmul %44, %42, %cst_29 {dimension_numbers = #tpu.dot_dimension_numbers<[1], [0], [0], [1], [0, 0, 1, 1], [], []>} : vector<15x128xf32>, vector<128x1xf32>, vector<15x1xf32> -> vector<15x1xf32>
    %46 = arith.addf %39, %45 : vector<15x1xf32>
    %47 = vector.extract_strided_slice %3 {offsets = [0, 48], sizes = [128, 8], strides = [1, 1]} : vector<128x64xf32> to vector<128x8xf32>
    %cst_30 = arith.constant dense<0xFF800000> : vector<128xf32>
    %48 = vector.multi_reduction <maximumf>, %47, %cst_30 [1] : vector<128x8xf32> to vector<128xf32>
    %49 = vector.shape_cast %48 : vector<128xf32> to vector<128x1xf32>
    %c6 = arith.constant 6 : index
    %c0_31 = arith.constant 0 : index
    %c0_32 = arith.constant 0 : index
    %50 = vector.load %arg2[%c6, %c0_31, %c0_32] : memref<8x15x128xf32, #tpu.memory_space<vmem>>, vector<1x15x128xf32>
    %51 = vector.shape_cast %50 : vector<1x15x128xf32> to vector<15x128xf32>
    %cst_33 = arith.constant dense<0.000000e+00> : vector<15x1xf32>
    %52 = tpu.matmul %51, %49, %cst_33 {dimension_numbers = #tpu.dot_dimension_numbers<[1], [0], [0], [1], [0, 0, 1, 1], [], []>} : vector<15x128xf32>, vector<128x1xf32>, vector<15x1xf32> -> vector<15x1xf32>
    %53 = arith.addf %46, %52 : vector<15x1xf32>
    %54 = vector.extract_strided_slice %3 {offsets = [0, 56], sizes = [128, 8], strides = [1, 1]} : vector<128x64xf32> to vector<128x8xf32>
    %cst_34 = arith.constant dense<0xFF800000> : vector<128xf32>
    %55 = vector.multi_reduction <maximumf>, %54, %cst_34 [1] : vector<128x8xf32> to vector<128xf32>
    %56 = vector.shape_cast %55 : vector<128xf32> to vector<128x1xf32>
    %c7 = arith.constant 7 : index
    %c0_35 = arith.constant 0 : index
    %c0_36 = arith.constant 0 : index
    %57 = vector.load %arg2[%c7, %c0_35, %c0_36] : memref<8x15x128xf32, #tpu.memory_space<vmem>>, vector<1x15x128xf32>
    %58 = vector.shape_cast %57 : vector<1x15x128xf32> to vector<15x128xf32>
    %cst_37 = arith.constant dense<0.000000e+00> : vector<15x1xf32>
    %59 = tpu.matmul %58, %56, %cst_37 {dimension_numbers = #tpu.dot_dimension_numbers<[1], [0], [0], [1], [0, 0, 1, 1], [], []>} : vector<15x128xf32>, vector<128x1xf32>, vector<15x1xf32> -> vector<15x1xf32>
    %60 = arith.addf %53, %59 : vector<15x1xf32>
    %c0_38 = arith.constant 0 : index
    %c0_39 = arith.constant 0 : index
    %c0_40 = arith.constant 0 : index
    %61 = vector.load %arg4[%c0_38, %c0_39, %c0_40] : memref<1x15x1xf32, #tpu.memory_space<vmem>>, vector<1x15x1xf32>
    %62 = vector.shape_cast %61 : vector<1x15x1xf32> to vector<15x1xf32>
    %63 = vector.shape_cast %60 : vector<15x1xf32> to vector<1x15x1xf32>
    tpu.vector_store %arg4[%c0_38, %c0_39, %c0_40], %63 {strides = array<i32>} : memref<1x15x1xf32, #tpu.memory_space<vmem>>, vector<1x15x1xf32>,
    return
  }
  func.func @transform_0(%arg0: i32) -> (i32, i32, i32, i32) {
    %c0_i32 = arith.constant 0 : i32
    %c0_i32_0 = arith.constant 0 : i32
    %c0_i32_1 = arith.constant 0 : i32
    %c0_i32_2 = arith.constant 0 : i32
    return %c0_i32, %arg0, %c0_i32_0, %c0_i32_1 : i32, i32, i32, i32
  }
  func.func @transform_1(%arg0: i32) -> (i32, i32, i32) {
    %c0_i32 = arith.constant 0 : i32
    %c0_i32_0 = arith.constant 0 : i32
    %c0_i32_1 = arith.constant 0 : i32
    %c0_i32_2 = arith.constant 0 : i32
    return %c0_i32, %c0_i32_0, %c0_i32_1 : i32, i32, i32
  }
  func.func @transform_2(%arg0: i32) -> (i32, i32) {
    %c0_i32 = arith.constant 0 : i32
    %c0_i32_0 = arith.constant 0 : i32
    %c0_i32_1 = arith.constant 0 : i32
    return %c0_i32, %c0_i32_0 : i32, i32
  }
  func.func @transform_3(%arg0: i32) -> (i32, i32, i32) {
    %c0_i32 = arith.constant 0 : i32
    %c0_i32_0 = arith.constant 0 : i32
    %c0_i32_1 = arith.constant 0 : i32
    return %arg0, %c0_i32, %c0_i32_0 : i32, i32, i32
  }
}

</mosaic_0001>

<bundles_post_ra>
// kernel: cnn_3_layers_forward.4
= control target key start
LH: loop header
LB: loop body
LE: loop exit
PB: predicated region body
PF: predicated region fallthrough
CT: control target
= control target key end

     0   :  { %s2710_s12 = smov 0   ;;  %s2712_s13 = smov 0   ;;  %s3700_s0 = inlined_call_operand.vmem [shape: bf16[4,64], index: 0, kind: input, shape index: {}]   ;;  %s3701_s1 = inlined_call_operand.vmem [shape: bf16[64,7200], index: 1, kind: input, shape index: {}]   ;;  %s3702_s2 = inlined_call_operand.vmem [shape: f32[4,1], index: 2, kind: input, shape index: {}]   ;;  %s3703_s3 = inlined_call_operand.vmem [shape: bf16[4,7200], index: 3, kind: output, shape index: {}]  }
   0x1   :  { %s2714_s14 = smov 0  }
   0x2 LB: > { %s2726_s15 = sadd.s32 4294967295, %s2554_s14   ;;  %s2729_s16 = sadd.s32 1, %s2554_s14   ;;  %s2554_s14 = sphi %s2714_s14, %s3733_s14   ;;  %s2550_s13 = sphi %s2712_s13, %s3732_s13   ;;  %s2546_s12 = sphi %s2710_s12, %s3731_s12  }
   0x3   : > { %s38_s17 = ssub.s32 %s2554_s14, %s2729_s16  ;;  %s41_s18 = sadd.s32 1, %s2550_s13 }
   0x4   : > { %p39_p0 = scmp.eq.s32.totalorder %s38_s17, 0  ;;  %p48_p1 = scmp.ne.s32.totalorder %s2550_s13, %s2546_s12 }
   0x5   : > { %p49_p2 = scmp.eq.s32.totalorder %s2554_s14, 0  ;;  %p99_p3 = scmp.eq.s32.totalorder %s2726_s15, 4 }
   0x6   : > { %s2739_s19 = scalar_select %p39_p0, %s2550_s13, %s41_s18  }
   0x7   : > { %p50_p4 = por %p49_p2, %p48_p1  ;;  %p2741_p5 = por %p99_p3, %p48_p1 }
   0x8   : > { %p1918_p6 = scmp.ge.s32.totalorder %s2554_s14, 5 }
   0xa   : > { %127 = sbr.rel (%p1918_p6) target bundleno = 183 (0xb7), region = 24 }
  0x11   : > { %130 = sbr.rel (!%p50_p4) target bundleno = 183 (0xb7), region = 28  ;;  %s132_s21 = sand.u32 (%p50_p4), 1, %s2550_s13  }
  0x12   : > { %s135_s22 = smul.u32 (%p50_p4), 12, %s2554_s14 }
  0x13   : > { %s2042_s23 = smul.u32 (%p50_p4), 384, %s132_s21 }
  0x14   : > { %s136_s24 = ssub.s32 (%p50_p4), 57, %s135_s22  ;;  %s2032_s25 = smul.u32 (%p50_p4), 48, %s2554_s14 }
  0x15   : > { %p137_p7 = scmp.lt.s32.totalorder (%p50_p4), %s136_s24, 12  ;;  %s2756_s4 = scalar_lea.vmem (%p50_p4), [#allocation2], %s2042_s23  }
  0x16   : > { %s2752_s28 = scalar_lea.vmem (%p50_p4), %s3701_s1, %s2032_s25  }
  0x18   : > { %s3735_s24 = smov (!%p137_p7, %s136_s24), 12 }
  0x19   : > { %s1919_s29 = sshll.u32 %s3735_s24, 9  ;;  %s2754_s30 = sshll.u32 %s3735_s24, 2 }
  0x1a   : > { %p1923_p8 = scmp.eq.s32.totalorder %s1919_s29, 0 }
  0x1b   : > { %p147_p9 = scmp.lt.u32.totalorder (!%p1923_p8), %s2754_s30, 8 }
  0x1c   : > { %146 = sbr.rel (%p1923_p8) target bundleno = 183 (0xb7), region = 32 }
  0x23   : > { %150 = sbr.rel (%p147_p9) target bundleno = 172 (0xac), region = 36  ;;  %s2760_s5 = sand.u32 (!%p147_p9), 7, %s2754_s30  }
  0x24   : > { %p180_p10 = scmp.eq.s32.totalorder (!%p147_p9), %s2760_s5, 0  ;;  %p1924_p11 = scmp.ne.s32.totalorder (!%p147_p9), %s2760_s5, 0 }
  0x2a   : > { %183 = sbr.rel (%p1924_p11) target bundleno = 102 (0x66), region = 51  ;;  %s184_s6 = sshrl.u32 (!%p1924_p11), %s2754_s30, 3 }
  0x2b   : > { %s2767_s7 = sshrl.u32 (!%p1924_p11), %s184_s6, 3 }
  0x2c   : > { %p1925_p12 = scmp.le.s32.totalorder (!%p1924_p11), %s2767_s7, 0 }
  0x31   : > { %1788 = sbr.rel (%p1925_p12) target bundleno = 82 (0x52), region = 229  ;;  %s3705_s8 = smov (!%p1925_p12), %s2756_s4 }
  0x32   : > { %s3706_s9 = smov (!%p1925_p12), %s2752_s28  ;;  %s2776_s10 = smov (!%p1925_p12), 0  }
  0x33   : > { %s2778_s11 = smov (!%p1925_p12), 0  }
  0x38 LB: >> { %v197_v0 = vld [vmem:[%s2562_s9] sm:$0xff]  ;;  %v199_v1 = vld [vmem:[%s2562_s9 + $0x8] sm:$0xff]  ;;  %v201_v2 = vld [vmem:[%s2562_s9 + $0x10] sm:$0xff]  ;;  %s325_s17 = sadd.s32 1, %s2566_s10  ;;  %s191_s11 = sadd.s32 1, %s2570_s11   ;;  %s2570_s11 = sphi %s2778_s11, %s191_s11   ;;  %s2566_s10 = sphi %s2776_s10, %s3709_s10   ;;  %s2562_s9 = sphi %s3706_s9, %s3708_s9   ;;  %s2558_s8 = sphi %s3705_s8, %s3707_s8  }
  0x39   : >> { %198 = vst [vmem:[%s2558_s8] sm:$0xff] %v197_v0  ;;  %200 = vst [vmem:[%s2558_s8 + $0x8] sm:$0xff] %v199_v1  ;;  %v203_v3 = vld [vmem:[%s2562_s9 + $0x18] sm:$0xff]  ;;  %v205_v4 = vld [vmem:[%s2562_s9 + $0x20] sm:$0xff]  ;;  %p326_p13 = scmp.ge.s32.totalorder %s325_s17, %s2767_s7  ;;  %p190_p0 = scmp.ge.s32.totalorder %s191_s11, %s2767_s7 }
  0x3a   : >> { %202 = vst [vmem:[%s2558_s8 + $0x10] sm:$0xff] %v201_v2  ;;  %v207_v5 = vld [vmem:[%s2562_s9 + $0x28] sm:$0xff]  ;;  %204 = vst [vmem:[%s2558_s8 + $0x18] sm:$0xff] %v203_v3  ;;  %v217_v8 = vld [vmem:[%s2562_s9 + $0xf4] sm:$0xff] }
  0x3b   : >> { %206 = vst [vmem:[%s2558_s8 + $0x20] sm:$0xff] %v205_v4  ;;  %208 = vst [vmem:[%s2558_s8 + $0x28] sm:$0xff] %v207_v5  ;;  %v213_v6 = vld [vmem:[%s2562_s9 + $0xe4] sm:$0xff]  ;;  %v215_v7 = vld [vmem:[%s2562_s9 + $0xec] sm:$0xff]  ;;  %s3737_s17 = smov (%p326_p13, %s325_s17), 0 }
  0x3c   : >> { %214 = vst [vmem:[%s2558_s8 + $0x30] sm:$0xff] %v213_v6  ;;  %216 = vst [vmem:[%s2558_s8 + $0x38] sm:$0xff] %v215_v7  ;;  %v219_v9 = vld [vmem:[%s2562_s9 + $0xfc] sm:$0xff]  ;;  %v221_v10 = vld [vmem:[%s2562_s9 + $0x104] sm:$0xff]  ;;  %s1926_s18 = sshll.u32 %s3737_s17, 6  ;;  %s3709_s10 = smov %s3737_s17 }
  0x3d   : >> { %218 = vst [vmem:[%s2558_s8 + $0x40] sm:$0xff] %v217_v8  ;;  %v223_v11 = vld [vmem:[%s2562_s9 + $0x10c] sm:$0xff]  ;;  %220 = vst [vmem:[%s2558_s8 + $0x48] sm:$0xff] %v219_v9  ;;  %v233_v14 = vld [vmem:[%s2562_s9 + $0x1d8] sm:$0xff]  ;;  %s2849_s21 = scalar_lea.vmem %s2752_s28, %s1926_s18   ;;  %s2852_s22 = scalar_lea.vmem %s2756_s4, %s1926_s18 [#allocation2]  }
  0x3e   : >> { %222 = vst [vmem:[%s2558_s8 + $0x50] sm:$0xff] %v221_v10  ;;  %224 = vst [vmem:[%s2558_s8 + $0x58] sm:$0xff] %v223_v11  ;;  %v229_v12 = vld [vmem:[%s2562_s9 + $0x1c8] sm:$0xff]  ;;  %v231_v13 = vld [vmem:[%s2562_s9 + $0x1d0] sm:$0xff] }
  0x3f   : >> { %230 = vst [vmem:[%s2558_s8 + $0x60] sm:$0xff] %v229_v12  ;;  %232 = vst [vmem:[%s2558_s8 + $0x68] sm:$0xff] %v231_v13  ;;  %v235_v15 = vld [vmem:[%s2562_s9 + $0x1e0] sm:$0xff]  ;;  %v237_v16 = vld [vmem:[%s2562_s9 + $0x1e8] sm:$0xff] }
  0x40   : >> { %234 = vst [vmem:[%s2558_s8 + $0x70] sm:$0xff] %v233_v14  ;;  %v239_v17 = vld [vmem:[%s2562_s9 + $0x1f0] sm:$0xff]  ;;  %236 = vst [vmem:[%s2558_s8 + $0x78] sm:$0xff] %v235_v15  ;;  %v249_v20 = vld [vmem:[%s2562_s9 + $0x2bc] sm:$0xff] }
  0x41   : >> { %238 = vst [vmem:[%s2558_s8 + $0x80] sm:$0xff] %v237_v16  ;;  %240 = vst [vmem:[%s2558_s8 + $0x88] sm:$0xff] %v239_v17  ;;  %v245_v18 = vld [vmem:[%s2562_s9 + $0x2ac] sm:$0xff]  ;;  %v247_v19 = vld [vmem:[%s2562_s9 + $0x2b4] sm:$0xff] }
  0x42   : >> { %246 = vst [vmem:[%s2558_s8 + $0x90] sm:$0xff] %v245_v18  ;;  %248 = vst [vmem:[%s2558_s8 + $0x98] sm:$0xff] %v247_v19  ;;  %v251_v21 = vld [vmem:[%s2562_s9 + $0x2c4] sm:$0xff]  ;;  %v253_v22 = vld [vmem:[%s2562_s9 + $0x2cc] sm:$0xff] }
  0x43   : >> { %250 = vst [vmem:[%s2558_s8 + $0xa0] sm:$0xff] %v249_v20  ;;  %v255_v23 = vld [vmem:[%s2562_s9 + $0x2d4] sm:$0xff]  ;;  %252 = vst [vmem:[%s2558_s8 + $0xa8] sm:$0xff] %v251_v21  ;;  %v265_v26 = vld [vmem:[%s2562_s9 + $0x3a0] sm:$0xff] }
  0x44   : >> { %254 = vst [vmem:[%s2558_s8 + $0xb0] sm:$0xff] %v253_v22  ;;  %256 = vst [vmem:[%s2558_s8 + $0xb8] sm:$0xff] %v255_v23  ;;  %v261_v24 = vld [vmem:[%s2562_s9 + $0x390] sm:$0xff]  ;;  %v263_v25 = vld [vmem:[%s2562_s9 + $0x398] sm:$0xff] }
  0x45   : >> { %262 = vst [vmem:[%s2558_s8 + $0xc0] sm:$0xff] %v261_v24  ;;  %264 = vst [vmem:[%s2558_s8 + $0xc8] sm:$0xff] %v263_v25  ;;  %v267_v27 = vld [vmem:[%s2562_s9 + $0x3a8] sm:$0xff]  ;;  %v269_v28 = vld [vmem:[%s2562_s9 + $0x3b0] sm:$0xff] }
  0x46   : >> { %266 = vst [vmem:[%s2558_s8 + $0xd0] sm:$0xff] %v265_v26  ;;  %v271_v29 = vld [vmem:[%s2562_s9 + $0x3b8] sm:$0xff]  ;;  %268 = vst [vmem:[%s2558_s8 + $0xd8] sm:$0xff] %v267_v27  ;;  %v281_v32 = vld [vmem:[%s2562_s9 + $0x484] sm:$0xff] }
  0x47   : >> { %270 = vst [vmem:[%s2558_s8 + $0xe0] sm:$0xff] %v269_v28  ;;  %272 = vst [vmem:[%s2558_s8 + $0xe8] sm:$0xff] %v271_v29  ;;  %v277_v30 = vld [vmem:[%s2562_s9 + $0x474] sm:$0xff]  ;;  %v279_v31 = vld [vmem:[%s2562_s9 + $0x47c] sm:$0xff] }
  0x48   : >> { %278 = vst [vmem:[%s2558_s8 + $0xf0] sm:$0xff] %v277_v30  ;;  %280 = vst [vmem:[%s2558_s8 + $0xf8] sm:$0xff] %v279_v31  ;;  %v283_v33 = vld [vmem:[%s2562_s9 + $0x48c] sm:$0xff]  ;;  %v285_v34 = vld [vmem:[%s2562_s9 + $0x494] sm:$0xff] }
  0x49   : >> { %282 = vst [vmem:[%s2558_s8 + $0x100] sm:$0xff] %v281_v32  ;;  %v287_v35 = vld [vmem:[%s2562_s9 + $0x49c] sm:$0xff]  ;;  %284 = vst [vmem:[%s2558_s8 + $0x108] sm:$0xff] %v283_v33  ;;  %v297_v38 = vld [vmem:[%s2562_s9 + $0x568] sm:$0xff] }
  0x4a   : >> { %286 = vst [vmem:[%s2558_s8 + $0x110] sm:$0xff] %v285_v34  ;;  %288 = vst [vmem:[%s2558_s8 + $0x118] sm:$0xff] %v287_v35  ;;  %v293_v36 = vld [vmem:[%s2562_s9 + $0x558] sm:$0xff]  ;;  %v295_v37 = vld [vmem:[%s2562_s9 + $0x560] sm:$0xff] }
  0x4b   : >> { %294 = vst [vmem:[%s2558_s8 + $0x120] sm:$0xff] %v293_v36  ;;  %296 = vst [vmem:[%s2558_s8 + $0x128] sm:$0xff] %v295_v37  ;;  %v299_v39 = vld [vmem:[%s2562_s9 + $0x570] sm:$0xff]  ;;  %v301_v40 = vld [vmem:[%s2562_s9 + $0x578] sm:$0xff]  ;;  %193 = sbr.rel (!%p190_p0) target bundleno = 56 (0x38), region = 235 }
  0x4c   : >> { %298 = vst [vmem:[%s2558_s8 + $0x130] sm:$0xff] %v297_v38  ;;  %v303_v41 = vld [vmem:[%s2562_s9 + $0x580] sm:$0xff]  ;;  %300 = vst [vmem:[%s2558_s8 + $0x138] sm:$0xff] %v299_v39  ;;  %v313_v44 = vld [vmem:[%s2562_s9 + $0x64c] sm:$0xff] }
  0x4d   : >> { %302 = vst [vmem:[%s2558_s8 + $0x140] sm:$0xff] %v301_v40  ;;  %304 = vst [vmem:[%s2558_s8 + $0x148] sm:$0xff] %v303_v41  ;;  %v309_v42 = vld [vmem:[%s2562_s9 + $0x63c] sm:$0xff]  ;;  %v311_v43 = vld [vmem:[%s2562_s9 + $0x644] sm:$0xff] }
  0x4e   : >> { %310 = vst [vmem:[%s2558_s8 + $0x150] sm:$0xff] %v309_v42  ;;  %312 = vst [vmem:[%s2558_s8 + $0x158] sm:$0xff] %v311_v43  ;;  %v315_v45 = vld [vmem:[%s2562_s9 + $0x654] sm:$0xff]  ;;  %v317_v46 = vld [vmem:[%s2562_s9 + $0x65c] sm:$0xff] }
  0x4f   : >> { %314 = vst [vmem:[%s2558_s8 + $0x160] sm:$0xff] %v313_v44  ;;  %v319_v47 = vld [vmem:[%s2562_s9 + $0x664] sm:$0xff]  ;;  %316 = vst [vmem:[%s2558_s8 + $0x168] sm:$0xff] %v315_v45  ;;  %v321_v48 = vld [vmem:[%s2562_s9 + $0x66c] sm:$0xff] }
  0x50   : >> { %318 = vst [vmem:[%s2558_s8 + $0x170] sm:$0xff] %v317_v46  ;;  %320 = vst [vmem:[%s2558_s8 + $0x178] sm:$0xff] %v319_v47  ;;  %v323_v49 = vld [vmem:[%s2562_s9 + $0x674] sm:$0xff]  ;;  %s3708_s9 = smov %s2849_s21 }
  0x51   : >> { %322 = vst [vmem:[%s2558_s8 + $0x180] sm:$0xff] %v321_v48  ;;  %324 = vst [vmem:[%s2558_s8 + $0x188] sm:$0xff] %v323_v49  ;;  %s3707_s8 = smov %s2852_s22 }
  0x52 PF: > { %s2918_s23 = sand.u32 7, %s184_s6   ;;  %s2033_s24 = sshll.u32 %s2767_s7, 10 }
  0x53   : > { %s336_s25 = sshra.s32 %s2033_s24, 4  ;;  %p1931_p1 = scmp.le.s32.totalorder %s2918_s23, 0 }
  0x54   : > { %s2922_s26 = scalar_lea.vmem %s2752_s28, %s336_s25   ;;  %s2925_s27 = scalar_lea.vmem %s2756_s4, %s336_s25 [#allocation2]  }
  0x55   : > { %1802 = sbr.rel (%p1931_p1) target bundleno = 102 (0x66), region = 240  ;;  %s3710_s29 = smov (!%p1931_p1), %s2925_s27 }
  0x56   : > { %s3711_s8 = smov (!%p1931_p1), %s2922_s26  ;;  %s2934_s9 = smov (!%p1931_p1), 0  }
  0x57   : > { %s2936_s10 = smov (!%p1931_p1), 0  }
  0x5c LB: >> { %v352_v50 = vld [vmem:[%s2578_s8] sm:$0xff]  ;;  %v356_v52 = vld [vmem:[%s2578_s8 + $0x1c8] sm:$0xff]  ;;  %s368_s6 = sadd.s32 1, %s2582_s9  ;;  %v360_v54 = vld [vmem:[%s2578_s8 + $0x390] sm:$0xff]  ;;  %s346_s10 = sadd.s32 1, %s2586_s10   ;;  %s2586_s10 = sphi %s2936_s10, %s346_s10   ;;  %s2582_s9 = sphi %s2934_s9, %s3712_s9   ;;  %s2578_s8 = sphi %s3711_s8, %s373_s8   ;;  %s2574_s29 = sphi %s3710_s29, %s374_s29  }
  0x5d   : >> { %v354_v51 = vld [vmem:[%s2578_s8 + $0xe4] sm:$0xff]  ;;  %353 = vst [vmem:[%s2574_s29] sm:$0xff] %v352_v50  ;;  %357 = vst [vmem:[%s2574_s29 + $0x60] sm:$0xff] %v356_v52  ;;  %v358_v53 = vld [vmem:[%s2578_s8 + $0x2ac] sm:$0xff]  ;;  %p369_p2 = scmp.ge.s32.totalorder %s368_s6, %s2918_s23  ;;  %p345_p3 = scmp.ge.s32.totalorder %s346_s10, %s2918_s23 }
  0x5e   : >> { %355 = vst [vmem:[%s2574_s29 + $0x30] sm:$0xff] %v354_v51  ;;  %v362_v55 = vld [vmem:[%s2578_s8 + $0x474] sm:$0xff]  ;;  %359 = vst [vmem:[%s2574_s29 + $0x90] sm:$0xff] %v358_v53  ;;  %v366_v57 = vld [vmem:[%s2578_s8 + $0x63c] sm:$0xff] }
  0x5f   : >> { %361 = vst [vmem:[%s2574_s29 + $0xc0] sm:$0xff] %v360_v54  ;;  %363 = vst [vmem:[%s2574_s29 + $0xf0] sm:$0xff] %v362_v55  ;;  %v364_v56 = vld [vmem:[%s2578_s8 + $0x558] sm:$0xff]  ;;  %s3739_s6 = smov (%p369_p2, %s368_s6), 0  ;;  %348 = sbr.rel (!%p345_p3) target bundleno = 92 (0x5c), region = 246 }
  0x60   : >> { %365 = vst [vmem:[%s2574_s29 + $0x120] sm:$0xff] %v364_v56  ;;  %367 = vst [vmem:[%s2574_s29 + $0x150] sm:$0xff] %v366_v57  ;;  %s1932_s7 = sshll.u32 %s3739_s6, 3  ;;  %s3712_s9 = smov %s3739_s6 }
  0x61   : >> { %s373_s8 = scalar_lea.vmem %s2922_s26, %s1932_s7   ;;  %s374_s29 = scalar_lea.vmem %s2925_s27, %s1932_s7 [#allocation2]  }
  0x66 PF: > { %377 = sbr.rel (%p180_p10) target bundleno = 172 (0xac), region = 69  ;;  %s379_s11 = ssub.s32 (!%p180_p10), %s2754_s30, %s2760_s5 }
  0x67   : > { %s383_s17 = sshrl.u32 (!%p180_p10), %s2754_s30, 3  ;;  %s2960_s18 = scalar_lea.vmem (!%p180_p10), %s2752_s28, %s379_s11 }
  0x68   : > { %s2963_s21 = scalar_lea.vmem (!%p180_p10), %s2756_s4, %s379_s11 [#allocation2]  ;;  %s2967_s22 = sshrl.u32 (!%p180_p10), %s383_s17, 3 }
  0x69   : > { %p1934_p4 = scmp.le.s32.totalorder (!%p180_p10), %s2967_s22, 0 }
  0x6d   : > { %1816 = sbr.rel (%p1934_p4) target bundleno = 142 (0x8e), region = 251  ;;  %s3713_s23 = smov (!%p1934_p4), %s2756_s4 }
  0x6e   : > { %s3714_s24 = smov (!%p1934_p4), %s2752_s28  ;;  %s2976_s25 = smov (!%p1934_p4), 0  }
  0x6f   : > { %s2978_s26 = smov (!%p1934_p4), 0  }
  0x74 LB: >> { %v396_v58 = vld [vmem:[%s2594_s24] sm:$0xff]  ;;  %v398_v59 = vld [vmem:[%s2594_s24 + $0x8] sm:$0xff]  ;;  %v400_v60 = vld [vmem:[%s2594_s24 + $0x10] sm:$0xff]  ;;  %s524_s27 = sadd.s32 1, %s2598_s25  ;;  %s390_s26 = sadd.s32 1, %s2602_s26   ;;  %s2602_s26 = sphi %s2978_s26, %s390_s26   ;;  %s2598_s25 = sphi %s2976_s25, %s3717_s25   ;;  %s2594_s24 = sphi %s3714_s24, %s3716_s24   ;;  %s2590_s23 = sphi %s3713_s23, %s3715_s23  }
  0x75   : >> { %397 = vst [vmem:[%s2590_s23] sm:$0xff] %v396_v58  ;;  %399 = vst [vmem:[%s2590_s23 + $0x8] sm:$0xff] %v398_v59  ;;  %v402_v61 = vld [vmem:[%s2594_s24 + $0x18] sm:$0xff]  ;;  %v404_v62 = vld [vmem:[%s2594_s24 + $0x20] sm:$0xff]  ;;  %p525_p6 = scmp.ge.s32.totalorder %s524_s27, %s2967_s22  ;;  %p389_p7 = scmp.ge.s32.totalorder %s390_s26, %s2967_s22 }
  0x76   : >> { %401 = vst [vmem:[%s2590_s23 + $0x10] sm:$0xff] %v400_v60  ;;  %v406_v63 = vld [vmem:[%s2594_s24 + $0x28] sm:$0xff]  ;;  %403 = vst [vmem:[%s2590_s23 + $0x18] sm:$0xff] %v402_v61  ;;  %v416_v2 = vld [vmem:[%s2594_s24 + $0xf4] sm:$0xff] }
  0x77   : >> { %405 = vst [vmem:[%s2590_s23 + $0x20] sm:$0xff] %v404_v62  ;;  %407 = vst [vmem:[%s2590_s23 + $0x28] sm:$0xff] %v406_v63  ;;  %v412_v0 = vld [vmem:[%s2594_s24 + $0xe4] sm:$0xff]  ;;  %v414_v1 = vld [vmem:[%s2594_s24 + $0xec] sm:$0xff]  ;;  %s3741_s27 = smov (%p525_p6, %s524_s27), 0 }
  0x78   : >> { %413 = vst [vmem:[%s2590_s23 + $0x30] sm:$0xff] %v412_v0  ;;  %415 = vst [vmem:[%s2590_s23 + $0x38] sm:$0xff] %v414_v1  ;;  %v418_v3 = vld [vmem:[%s2594_s24 + $0xfc] sm:$0xff]  ;;  %v420_v4 = vld [vmem:[%s2594_s24 + $0x104] sm:$0xff]  ;;  %s1935_s29 = sshll.u32 %s3741_s27, 6  ;;  %s3717_s25 = smov %s3741_s27 }
  0x79   : >> { %417 = vst [vmem:[%s2590_s23 + $0x40] sm:$0xff] %v416_v2  ;;  %v422_v5 = vld [vmem:[%s2594_s24 + $0x10c] sm:$0xff]  ;;  %419 = vst [vmem:[%s2590_s23 + $0x48] sm:$0xff] %v418_v3  ;;  %v432_v8 = vld [vmem:[%s2594_s24 + $0x1d8] sm:$0xff]  ;;  %s3049_s8 = scalar_lea.vmem %s2752_s28, %s1935_s29   ;;  %s3052_s9 = scalar_lea.vmem %s2756_s4, %s1935_s29 [#allocation2]  }
  0x7a   : >> { %421 = vst [vmem:[%s2590_s23 + $0x50] sm:$0xff] %v420_v4  ;;  %423 = vst [vmem:[%s2590_s23 + $0x58] sm:$0xff] %v422_v5  ;;  %v428_v6 = vld [vmem:[%s2594_s24 + $0x1c8] sm:$0xff]  ;;  %v430_v7 = vld [vmem:[%s2594_s24 + $0x1d0] sm:$0xff] }
  0x7b   : >> { %429 = vst [vmem:[%s2590_s23 + $0x60] sm:$0xff] %v428_v6  ;;  %431 = vst [vmem:[%s2590_s23 + $0x68] sm:$0xff] %v430_v7  ;;  %v434_v9 = vld [vmem:[%s2594_s24 + $0x1e0] sm:$0xff]  ;;  %v436_v10 = vld [vmem:[%s2594_s24 + $0x1e8] sm:$0xff] }
  0x7c   : >> { %433 = vst [vmem:[%s2590_s23 + $0x70] sm:$0xff] %v432_v8  ;;  %v438_v11 = vld [vmem:[%s2594_s24 + $0x1f0] sm:$0xff]  ;;  %435 = vst [vmem:[%s2590_s23 + $0x78] sm:$0xff] %v434_v9  ;;  %v448_v14 = vld [vmem:[%s2594_s24 + $0x2bc] sm:$0xff] }
  0x7d   : >> { %437 = vst [vmem:[%s2590_s23 + $0x80] sm:$0xff] %v436_v10  ;;  %439 = vst [vmem:[%s2590_s23 + $0x88] sm:$0xff] %v438_v11  ;;  %v444_v12 = vld [vmem:[%s2594_s24 + $0x2ac] sm:$0xff]  ;;  %v446_v13 = vld [vmem:[%s2594_s24 + $0x2b4] sm:$0xff] }
  0x7e   : >> { %445 = vst [vmem:[%s2590_s23 + $0x90] sm:$0xff] %v444_v12  ;;  %447 = vst [vmem:[%s2590_s23 + $0x98] sm:$0xff] %v446_v13  ;;  %v450_v15 = vld [vmem:[%s2594_s24 + $0x2c4] sm:$0xff]  ;;  %v452_v16 = vld [vmem:[%s2594_s24 + $0x2cc] sm:$0xff] }
  0x7f   : >> { %449 = vst [vmem:[%s2590_s23 + $0xa0] sm:$0xff] %v448_v14  ;;  %v454_v17 = vld [vmem:[%s2594_s24 + $0x2d4] sm:$0xff]  ;;  %451 = vst [vmem:[%s2590_s23 + $0xa8] sm:$0xff] %v450_v15  ;;  %v464_v20 = vld [vmem:[%s2594_s24 + $0x3a0] sm:$0xff] }
  0x80   : >> { %453 = vst [vmem:[%s2590_s23 + $0xb0] sm:$0xff] %v452_v16  ;;  %455 = vst [vmem:[%s2590_s23 + $0xb8] sm:$0xff] %v454_v17  ;;  %v460_v18 = vld [vmem:[%s2594_s24 + $0x390] sm:$0xff]  ;;  %v462_v19 = vld [vmem:[%s2594_s24 + $0x398] sm:$0xff] }
  0x81   : >> { %461 = vst [vmem:[%s2590_s23 + $0xc0] sm:$0xff] %v460_v18  ;;  %463 = vst [vmem:[%s2590_s23 + $0xc8] sm:$0xff] %v462_v19  ;;  %v466_v21 = vld [vmem:[%s2594_s24 + $0x3a8] sm:$0xff]  ;;  %v468_v22 = vld [vmem:[%s2594_s24 + $0x3b0] sm:$0xff] }
  0x82   : >> { %465 = vst [vmem:[%s2590_s23 + $0xd0] sm:$0xff] %v464_v20  ;;  %v470_v23 = vld [vmem:[%s2594_s24 + $0x3b8] sm:$0xff]  ;;  %467 = vst [vmem:[%s2590_s23 + $0xd8] sm:$0xff] %v466_v21  ;;  %v480_v26 = vld [vmem:[%s2594_s24 + $0x484] sm:$0xff] }
  0x83   : >> { %469 = vst [vmem:[%s2590_s23 + $0xe0] sm:$0xff] %v468_v22  ;;  %471 = vst [vmem:[%s2590_s23 + $0xe8] sm:$0xff] %v470_v23  ;;  %v476_v24 = vld [vmem:[%s2594_s24 + $0x474] sm:$0xff]  ;;  %v478_v25 = vld [vmem:[%s2594_s24 + $0x47c] sm:$0xff] }
  0x84   : >> { %477 = vst [vmem:[%s2590_s23 + $0xf0] sm:$0xff] %v476_v24  ;;  %479 = vst [vmem:[%s2590_s23 + $0xf8] sm:$0xff] %v478_v25  ;;  %v482_v27 = vld [vmem:[%s2594_s24 + $0x48c] sm:$0xff]  ;;  %v484_v28 = vld [vmem:[%s2594_s24 + $0x494] sm:$0xff] }
  0x85   : >> { %481 = vst [vmem:[%s2590_s23 + $0x100] sm:$0xff] %v480_v26  ;;  %v486_v29 = vld [vmem:[%s2594_s24 + $0x49c] sm:$0xff]  ;;  %483 = vst [vmem:[%s2590_s23 + $0x108] sm:$0xff] %v482_v27  ;;  %v496_v32 = vld [vmem:[%s2594_s24 + $0x568] sm:$0xff] }
  0x86   : >> { %485 = vst [vmem:[%s2590_s23 + $0x110] sm:$0xff] %v484_v28  ;;  %487 = vst [vmem:[%s2590_s23 + $0x118] sm:$0xff] %v486_v29  ;;  %v492_v30 = vld [vmem:[%s2594_s24 + $0x558] sm:$0xff]  ;;  %v494_v31 = vld [vmem:[%s2594_s24 + $0x560] sm:$0xff] }
  0x87   : >> { %493 = vst [vmem:[%s2590_s23 + $0x120] sm:$0xff] %v492_v30  ;;  %495 = vst [vmem:[%s2590_s23 + $0x128] sm:$0xff] %v494_v31  ;;  %v498_v33 = vld [vmem:[%s2594_s24 + $0x570] sm:$0xff]  ;;  %v500_v34 = vld [vmem:[%s2594_s24 + $0x578] sm:$0xff]  ;;  %392 = sbr.rel (!%p389_p7) target bundleno = 116 (0x74), region = 257 }
  0x88   : >> { %497 = vst [vmem:[%s2590_s23 + $0x130] sm:$0xff] %v496_v32  ;;  %v502_v35 = vld [vmem:[%s2594_s24 + $0x580] sm:$0xff]  ;;  %499 = vst [vmem:[%s2590_s23 + $0x138] sm:$0xff] %v498_v33  ;;  %v512_v38 = vld [vmem:[%s2594_s24 + $0x64c] sm:$0xff] }
  0x89   : >> { %501 = vst [vmem:[%s2590_s23 + $0x140] sm:$0xff] %v500_v34  ;;  %503 = vst [vmem:[%s2590_s23 + $0x148] sm:$0xff] %v502_v35  ;;  %v508_v36 = vld [vmem:[%s2594_s24 + $0x63c] sm:$0xff]  ;;  %v510_v37 = vld [vmem:[%s2594_s24 + $0x644] sm:$0xff] }
  0x8a   : >> { %509 = vst [vmem:[%s2590_s23 + $0x150] sm:$0xff] %v508_v36  ;;  %511 = vst [vmem:[%s2590_s23 + $0x158] sm:$0xff] %v510_v37  ;;  %v514_v39 = vld [vmem:[%s2594_s24 + $0x654] sm:$0xff]  ;;  %v516_v40 = vld [vmem:[%s2594_s24 + $0x65c] sm:$0xff] }
  0x8b   : >> { %513 = vst [vmem:[%s2590_s23 + $0x160] sm:$0xff] %v512_v38  ;;  %v518_v41 = vld [vmem:[%s2594_s24 + $0x664] sm:$0xff]  ;;  %515 = vst [vmem:[%s2590_s23 + $0x168] sm:$0xff] %v514_v39  ;;  %v520_v42 = vld [vmem:[%s2594_s24 + $0x66c] sm:$0xff] }
  0x8c   : >> { %517 = vst [vmem:[%s2590_s23 + $0x170] sm:$0xff] %v516_v40  ;;  %519 = vst [vmem:[%s2590_s23 + $0x178] sm:$0xff] %v518_v41  ;;  %v522_v43 = vld [vmem:[%s2594_s24 + $0x674] sm:$0xff]  ;;  %s3716_s24 = smov %s3049_s8 }
  0x8d   : >> { %521 = vst [vmem:[%s2590_s23 + $0x180] sm:$0xff] %v520_v42  ;;  %523 = vst [vmem:[%s2590_s23 + $0x188] sm:$0xff] %v522_v43  ;;  %s3715_s23 = smov %s3052_s9 }
  0x8e PF: > { %s3118_s10 = sand.u32 7, %s383_s17   ;;  %s2035_s6 = sshll.u32 %s2967_s22, 10 }
  0x8f   : > { %s535_s7 = sshra.s32 %s2035_s6, 4  ;;  %p1940_p8 = scmp.le.s32.totalorder %s3118_s10, 0 }
  0x90   : > { %s3122_s11 = scalar_lea.vmem %s2752_s28, %s535_s7   ;;  %s3125_s29 = scalar_lea.vmem %s2756_s4, %s535_s7 [#allocation2]  }
  0x91   : > { %1830 = sbr.rel (%p1940_p8) target bundleno = 162 (0xa2), region = 262  ;;  %s3718_s23 = smov (!%p1940_p8), %s3125_s29 }
  0x92   : > { %s3719_s24 = smov (!%p1940_p8), %s3122_s11  ;;  %s3134_s25 = smov (!%p1940_p8), 0  }
  0x93   : > { %s3136_s26 = smov (!%p1940_p8), 0  }
  0x98 LB: >> { %v551_v44 = vld [vmem:[%s2610_s24] sm:$0xff]  ;;  %v555_v46 = vld [vmem:[%s2610_s24 + $0x1c8] sm:$0xff]  ;;  %s567_s17 = sadd.s32 1, %s2614_s25  ;;  %v559_v48 = vld [vmem:[%s2610_s24 + $0x390] sm:$0xff]  ;;  %s545_s26 = sadd.s32 1, %s2618_s26   ;;  %s2618_s26 = sphi %s3136_s26, %s545_s26   ;;  %s2614_s25 = sphi %s3134_s25, %s3720_s25   ;;  %s2610_s24 = sphi %s3719_s24, %s572_s24   ;;  %s2606_s23 = sphi %s3718_s23, %s573_s23  }
  0x99   : >> { %v553_v45 = vld [vmem:[%s2610_s24 + $0xe4] sm:$0xff]  ;;  %552 = vst [vmem:[%s2606_s23] sm:$0xff] %v551_v44  ;;  %556 = vst [vmem:[%s2606_s23 + $0x60] sm:$0xff] %v555_v46  ;;  %v557_v47 = vld [vmem:[%s2610_s24 + $0x2ac] sm:$0xff]  ;;  %p568_p9 = scmp.ge.s32.totalorder %s567_s17, %s3118_s10  ;;  %p544_p10 = scmp.ge.s32.totalorder %s545_s26, %s3118_s10 }
  0x9a   : >> { %554 = vst [vmem:[%s2606_s23 + $0x30] sm:$0xff] %v553_v45  ;;  %v561_v49 = vld [vmem:[%s2610_s24 + $0x474] sm:$0xff]  ;;  %558 = vst [vmem:[%s2606_s23 + $0x90] sm:$0xff] %v557_v47  ;;  %v565_v51 = vld [vmem:[%s2610_s24 + $0x63c] sm:$0xff] }
  0x9b   : >> { %560 = vst [vmem:[%s2606_s23 + $0xc0] sm:$0xff] %v559_v48  ;;  %562 = vst [vmem:[%s2606_s23 + $0xf0] sm:$0xff] %v561_v49  ;;  %v563_v50 = vld [vmem:[%s2610_s24 + $0x558] sm:$0xff]  ;;  %s3743_s17 = smov (%p568_p9, %s567_s17), 0  ;;  %547 = sbr.rel (!%p544_p10) target bundleno = 152 (0x98), region = 268 }
  0x9c   : >> { %564 = vst [vmem:[%s2606_s23 + $0x120] sm:$0xff] %v563_v50  ;;  %566 = vst [vmem:[%s2606_s23 + $0x150] sm:$0xff] %v565_v51  ;;  %s1941_s22 = sshll.u32 %s3743_s17, 3  ;;  %s3720_s25 = smov %s3743_s17 }
  0x9d   : >> { %s572_s24 = scalar_lea.vmem %s3122_s11, %s1941_s22   ;;  %s573_s23 = scalar_lea.vmem %s3125_s29, %s1941_s22 [#allocation2]  }
  0xa2 PF: > { %s2684_s27 = smov 0  }
  0xa3   : > { %s574_s8 = sshllo.u32 %s2684_s27, %s2760_s5 }
  0xa4   : > { %v583_v52 = vld [vmem:[%s2960_s18] sm:%s574_s8]  ;;  %v587_v54 = vld [vmem:[%s2960_s18 + $0x1c8] sm:%s574_s8] }
  0xa5   : > { %v585_v53 = vld [vmem:[%s2960_s18 + $0xe4] sm:%s574_s8]  ;;  %584 = vst [vmem:[%s2963_s21] sm:%s574_s8] %v583_v52 }
  0xa6   : > { %586 = vst [vmem:[%s2963_s21 + $0x30] sm:%s574_s8] %v585_v53  ;;  %v589_v55 = vld [vmem:[%s2960_s18 + $0x2ac] sm:%s574_s8] }
  0xa7   : > { %588 = vst [vmem:[%s2963_s21 + $0x60] sm:%s574_s8] %v587_v54  ;;  %590 = vst [vmem:[%s2963_s21 + $0x90] sm:%s574_s8] %v589_v55 }
  0xa8   : > { %v591_v56 = vld [vmem:[%s2960_s18 + $0x390] sm:%s574_s8]  ;;  %v595_v58 = vld [vmem:[%s2960_s18 + $0x558] sm:%s574_s8] }
  0xa9   : > { %v593_v57 = vld [vmem:[%s2960_s18 + $0x474] sm:%s574_s8]  ;;  %592 = vst [vmem:[%s2963_s21 + $0xc0] sm:%s574_s8] %v591_v56 }
  0xaa   : > { %594 = vst [vmem:[%s2963_s21 + $0xf0] sm:%s574_s8] %v593_v57  ;;  %v597_v59 = vld [vmem:[%s2960_s18 + $0x63c] sm:%s574_s8] }
  0xab   : > { %596 = vst [vmem:[%s2963_s21 + $0x120] sm:%s574_s8] %v595_v58  ;;  %598 = vst [vmem:[%s2963_s21 + $0x150] sm:%s574_s8] %v597_v59 }
  0xac PF: > { %p1943_p11 = scmp.ge.u32.totalorder %s2754_s30, 8 }
  0xad   : > { %s2685_s5 = smov (!%p1943_p11), 0  }
  0xae   : > { %153 = sbr.rel (%p1943_p11) target bundleno = 183 (0xb7), region = 40  ;;  %s154_s18 = sshllo.u32 (!%p1943_p11), %s2685_s5, %s2754_s30 }
  0xaf   : > { %v163_v60 = vld [vmem:[%s2752_s28] sm:%s154_s18] (!%p1943_p11)  ;;  %v167_v62 = vld [vmem:[%s2752_s28 + $0x1c8] sm:%s154_s18] (!%p1943_p11) }
  0xb0   : > { %v165_v61 = vld [vmem:[%s2752_s28 + $0xe4] sm:%s154_s18] (!%p1943_p11)  ;;  %164 = vst [vmem:[%s2756_s4] sm:%s154_s18] (!%p1943_p11), %v163_v60 }
  0xb1   : > { %166 = vst [vmem:[%s2756_s4 + $0x30] sm:%s154_s18] (!%p1943_p11), %v165_v61  ;;  %v169_v63 = vld [vmem:[%s2752_s28 + $0x2ac] sm:%s154_s18] (!%p1943_p11) }
  0xb2   : > { %168 = vst [vmem:[%s2756_s4 + $0x60] sm:%s154_s18] (!%p1943_p11), %v167_v62  ;;  %170 = vst [vmem:[%s2756_s4 + $0x90] sm:%s154_s18] (!%p1943_p11), %v169_v63 }
  0xb3   : > { %v171_v0 = vld [vmem:[%s2752_s28 + $0x390] sm:%s154_s18] (!%p1943_p11)  ;;  %v175_v2 = vld [vmem:[%s2752_s28 + $0x558] sm:%s154_s18] (!%p1943_p11) }
  0xb4   : > { %v173_v1 = vld [vmem:[%s2752_s28 + $0x474] sm:%s154_s18] (!%p1943_p11)  ;;  %172 = vst [vmem:[%s2756_s4 + $0xc0] sm:%s154_s18] (!%p1943_p11), %v171_v0 }
  0xb5   : > { %174 = vst [vmem:[%s2756_s4 + $0xf0] sm:%s154_s18] %v173_v1  ;;  %v177_v3 = vld [vmem:[%s2752_s28 + $0x63c] sm:%s154_s18] }
  0xb6   : > { %176 = vst [vmem:[%s2756_s4 + $0x120] sm:%s154_s18] %v175_v2  ;;  %178 = vst [vmem:[%s2756_s4 + $0x150] sm:%s154_s18] %v177_v3 }
  0xb7 PF: > { %p1944_p12 = scmp.ge.s32.totalorder %s2554_s14, 1  ;;  %p601_p13 = scmp.lt.s32.totalorder %s2554_s14, 6 }
  0xb9   : > { %p602_p0 = pnand %p1944_p12, %p601_p13 }
  0xba   : > { %s608_s30 = sand.u32 (!%p602_p0), 1, %s2546_s12   ;;  %v2686_v4 = vmov (!%p602_p0), 0   ;;  %v690_v5 = vld [vmem:[%s3702_s2] sm:$0xf] (!%p602_p0)  ;;  %vm936_vm0 = vcmask (!%p602_p0), 523264   ;;  %v1227_v57 = vlaneseq (!%p602_p0) }
  0xbb   : > { %605 = sbr.rel (%p602_p0) target bundleno = 629 (0x275), region = 94  ;;  %972 = vmatprep.mubr.bf16.mxu0 (!%p602_p0), %v2686_v4  ;;  %1013 = vmatprep.mubr.bf16.mxu1 (!%p602_p0), %v2686_v4  ;;  %v3223_v24 = vld [vmem:[%s3700_s0] sm:$0x3] (!%p602_p0)  ;;  %v2687_v55 = vmov (!%p602_p0), 1983009808  }
  0xbc   : > { %s2043_s21 = smul.u32 (!%p602_p0), 384, %s608_s30  ;;  %2331 = vset.pattern.permute.xlu0 (!%p602_p0), %v2686_v4  ;;  %v1225_v56 = vunpack.c.l.s4 (!%p602_p0), %v2687_v55  ;;  %v1228_v62 = vshrl.u32 (!%p602_p0), %v1227_v57, 7 }
  0xbd   : > { %693 = vperm.xlu0 (!%p602_p0), %2331, %v690_v5   ;;  %s2044_s6 = smul.u32 (!%p602_p0), 24, %s608_s30 }
  0xbe   : > { %s3200_s14 = scalar_lea.vmem (!%p602_p0), [#allocation2], %s2043_s21  ;;  %v1226_v61 = vunpack.c.0.s8 (!%p602_p0), %v1225_v56 }
  0xbf   : > { %v2332_v6 = vld [vmem:[%s3200_s14 + $0x4] ss:$48 sps:$4 sm:$0xff] (!%p602_p0)   ;;  %v2334_v7 = vld [vmem:[%s3200_s14 + $0xc] ss:$48 sps:$4 sm:$0xff] (!%p602_p0)   ;;  %v2336_v8 = vld [vmem:[%s3200_s14] ss:$48 sps:$4 sm:$0xff] (!%p602_p0)  }
  0xc0   : > { %940 = vmatprep.subr.bf16.mxu0 (!%p602_p0), %v2332_v6  ;;  %v2337_v9 = vld [vmem:[%s3200_s14 + $0x8] ss:$48 sps:$4 sm:$0xff] (!%p602_p0)   ;;  %981 = vmatprep.subr.bf16.mxu1 (!%p602_p0), %v2334_v7  ;;  %v2338_v10 = vld [vmem:[%s3200_s14 + $0x64] ss:$48 sps:$4 sm:$0xff] (!%p602_p0)   ;;  %v2340_v11 = vld [vmem:[%s3200_s14 + $0x6c] ss:$48 sps:$4 sm:$0xff] (!%p602_p0)  }
  0xc1   : > { %941 = vmatpush1.bf16.msra.mxu0 (!%p602_p0), %v2336_v8  ;;  %982 = vmatpush1.bf16.msra.mxu1 (!%p602_p0), %v2337_v9  ;;  %v2342_v12 = vld [vmem:[%s3200_s14 + $0x60] ss:$48 sps:$4 sm:$0xff] (!%p602_p0)   ;;  %v2343_v13 = vld [vmem:[%s3200_s14 + $0x68] ss:$48 sps:$4 sm:$0xff] (!%p602_p0)   ;;  %v2344_v14 = vld [vmem:[%s3200_s14 + $0xc4] ss:$48 sps:$4 sm:$0xff] (!%p602_p0)  }
  0xc2   : > { %942 = vmatprep.subr.bf16.mxu0 %v2338_v10  ;;  %983 = vmatprep.subr.bf16.mxu1 %v2340_v11  ;;  %v2346_v15 = vld [vmem:[%s3200_s14 + $0xcc] ss:$48 sps:$4 sm:$0xff]   ;;  %v2348_v16 = vld [vmem:[%s3200_s14 + $0xc0] ss:$48 sps:$4 sm:$0xff]   ;;  %v2349_v17 = vld [vmem:[%s3200_s14 + $0xc8] ss:$48 sps:$4 sm:$0xff]  }
  0xc3   : > { %v2350_v18 = vld [vmem:[%s3200_s14 + $0x124] ss:$48 sps:$4 sm:$0xff]   ;;  %v2352_v19 = vld [vmem:[%s3200_s14 + $0x12c] ss:$48 sps:$4 sm:$0xff]   ;;  %v2354_v20 = vld [vmem:[%s3200_s14 + $0x120] ss:$48 sps:$4 sm:$0xff]  }
  0xc4   : > { %v2355_v21 = vld [vmem:[%s3200_s14 + $0x128] ss:$48 sps:$4 sm:$0xff]   ;;  %v2358_v22 = vld [vmem:[%s3200_s14 + $0x14] ss:$48 sps:$4 sm:$0xff]   ;;  %v2361_v23 = vld [vmem:[%s3200_s14 + $0x1c] ss:$48 sps:$4 sm:$0xff]  }
  0xc5   : > { %943 = vmatpush1.bf16.msra.mxu0 %v2342_v12  ;;  %984 = vmatpush1.bf16.msra.mxu1 %v2343_v13  ;;  %v2356_v25 = vld [vmem:[%s3200_s14 + $0x10] ss:$48 sps:$4 sm:$0xff]   ;;  %v2359_v26 = vld [vmem:[%s3200_s14 + $0x18] ss:$48 sps:$4 sm:$0xff]   ;;  %v2364_v27 = vld [vmem:[%s3200_s14 + $0x74] ss:$48 sps:$4 sm:$0xff]   ;;  %v1229_v12 = vsub.s32 %v1226_v61, %v1228_v62 }
  0xc6   : > { %944 = vmatprep.subr.bf16.mxu0 %v2344_v14  ;;  %985 = vmatprep.subr.bf16.mxu1 %v2346_v15  ;;  %v2367_v28 = vld [vmem:[%s3200_s14 + $0x7c] ss:$48 sps:$4 sm:$0xff]   ;;  %v2362_v29 = vld [vmem:[%s3200_s14 + $0x70] ss:$48 sps:$4 sm:$0xff]   ;;  %v2365_v30 = vld [vmem:[%s3200_s14 + $0x78] ss:$48 sps:$4 sm:$0xff]  }
  0xc7   : > { %v2370_v31 = vld [vmem:[%s3200_s14 + $0xd4] ss:$48 sps:$4 sm:$0xff]   ;;  %v2373_v32 = vld [vmem:[%s3200_s14 + $0xdc] ss:$48 sps:$4 sm:$0xff]   ;;  %v2368_v33 = vld [vmem:[%s3200_s14 + $0xd0] ss:$48 sps:$4 sm:$0xff]  }
  0xc8   : > { %v2371_v34 = vld [vmem:[%s3200_s14 + $0xd8] ss:$48 sps:$4 sm:$0xff]   ;;  %v2376_v35 = vld [vmem:[%s3200_s14 + $0x134] ss:$48 sps:$4 sm:$0xff]   ;;  %v2379_v36 = vld [vmem:[%s3200_s14 + $0x13c] ss:$48 sps:$4 sm:$0xff]  }
  0xc9   : > { %945 = vmatpush1.bf16.msra.mxu0 %v2348_v16  ;;  %986 = vmatpush1.bf16.msra.mxu1 %v2349_v17  ;;  %v2374_v37 = vld [vmem:[%s3200_s14 + $0x130] ss:$48 sps:$4 sm:$0xff]   ;;  %v2377_v38 = vld [vmem:[%s3200_s14 + $0x138] ss:$48 sps:$4 sm:$0xff]   ;;  %v2382_v39 = vld [vmem:[%s3200_s14 + $0x24] ss:$48 sps:$4 sm:$0xff]  }
  0xca   : > { %946 = vmatprep.subr.bf16.mxu0 %v2350_v18  ;;  %987 = vmatprep.subr.bf16.mxu1 %v2352_v19  ;;  %v2385_v40 = vld [vmem:[%s3200_s14 + $0x2c] ss:$48 sps:$4 sm:$0xff]   ;;  %v2380_v41 = vld [vmem:[%s3200_s14 + $0x20] ss:$48 sps:$4 sm:$0xff]   ;;  %v2383_v42 = vld [vmem:[%s3200_s14 + $0x28] ss:$48 sps:$4 sm:$0xff]  }
  0xcb   : > { %v2388_v43 = vld [vmem:[%s3200_s14 + $0x84] ss:$48 sps:$4 sm:$0xff]   ;;  %v2391_v44 = vld [vmem:[%s3200_s14 + $0x8c] ss:$48 sps:$4 sm:$0xff]   ;;  %v2386_v45 = vld [vmem:[%s3200_s14 + $0x80] ss:$48 sps:$4 sm:$0xff]  }
  0xcc   : > { %v2389_v46 = vld [vmem:[%s3200_s14 + $0x88] ss:$48 sps:$4 sm:$0xff]   ;;  %v2394_v47 = vld [vmem:[%s3200_s14 + $0xe4] ss:$48 sps:$4 sm:$0xff]   ;;  %v2397_v48 = vld [vmem:[%s3200_s14 + $0xec] ss:$48 sps:$4 sm:$0xff]  }
  0xcd   : > { %947 = vmatpush1.bf16.msra.mxu0 %v2354_v20  ;;  %988 = vmatpush1.bf16.msra.mxu1 %v2355_v21  ;;  %v2392_v49 = vld [vmem:[%s3200_s14 + $0xe0] ss:$48 sps:$4 sm:$0xff]   ;;  %v2395_v50 = vld [vmem:[%s3200_s14 + $0xe8] ss:$48 sps:$4 sm:$0xff]   ;;  %v2400_v51 = vld [vmem:[%s3200_s14 + $0x144] ss:$48 sps:$4 sm:$0xff]  }
  0xce   : > { %1022 = vmatprep.subr.bf16.mxu0 %v2358_v22  ;;  %1063 = vmatprep.subr.bf16.mxu1 %v2361_v23  ;;  %v2403_v52 = vld [vmem:[%s3200_s14 + $0x14c] ss:$48 sps:$4 sm:$0xff]   ;;  %v2398_v53 = vld [vmem:[%s3200_s14 + $0x140] ss:$48 sps:$4 sm:$0xff]   ;;  %v2401_v54 = vld [vmem:[%s3200_s14 + $0x148] ss:$48 sps:$4 sm:$0xff]  }
  0xcf   : > { %s3273_s7 = scalar_lea.vmem [#allocation3], %s2044_s6   ;;  %s1286_s12 = smul.u32 (%p2741_p5), 12, %s2726_s15 }
  0xd0   : > { %1993 = vmatmul.mubr.msk.bf16.vlgmr.msra.gmra.mrb[0].mxu0 %vm936_vm0, %v3223_v24  ;;  %1994 = vmatmul.mubr.msk.bf16.vlgmr.msra.gmra.mrb[0].mxu1 %vm936_vm0, %v3223_v24  ;;  %s2037_s11 = smul.u32 (%p2741_p5), 24, %s2726_s15 }
  0xd1   : > { %1023 = vmatpush1.bf16.msra.mxu0 %v2356_v25  ;;  %1064 = vmatpush1.bf16.msra.mxu1 %v2359_v26  ;;  %s1287_s29 = ssub.s32 (%p2741_p5), 57, %s1286_s12 }
  0xd2   : > { %1024 = vmatprep.subr.bf16.mxu0 %v2364_v27  ;;  %1065 = vmatprep.subr.bf16.mxu1 %v2367_v28  ;;  %p1288_p1 = scmp.lt.s32.totalorder (%p2741_p5), %s1287_s29, 12  ;;  %s3285_s25 = scalar_lea.vmem (%p2741_p5), %s3703_s3, %s2037_s11  }
  0xd3   : > { %1054 = vmatprep.mubr.bf16.mxu0 %v2686_v4  ;;  %1095 = vmatprep.mubr.bf16.mxu1 %v2686_v4 }
  0xd5   : > { %1025 = vmatpush1.bf16.msra.mxu0 %v2362_v29  ;;  %1066 = vmatpush1.bf16.msra.mxu1 %v2365_v30 }
  0xd6   : > { %1026 = vmatprep.subr.bf16.mxu0 %v2370_v31  ;;  %1067 = vmatprep.subr.bf16.mxu1 %v2373_v32 }
  0xd9   : > { %1027 = vmatpush1.bf16.msra.mxu0 %v2368_v33  ;;  %1068 = vmatpush1.bf16.msra.mxu1 %v2371_v34 }
  0xda   : > { %1028 = vmatprep.subr.bf16.mxu0 %v2376_v35  ;;  %1069 = vmatprep.subr.bf16.mxu1 %v2379_v36 }
  0xdd   : > { %1029 = vmatpush1.bf16.msra.mxu0 %v2374_v37  ;;  %1070 = vmatpush1.bf16.msra.mxu1 %v2377_v38 }
  0xde   : > { %1104 = vmatprep.subr.bf16.mxu0 %v2382_v39  ;;  %1145 = vmatprep.subr.bf16.mxu1 %v2385_v40 }
  0xe0   : > { %1995 = vmatmul.mubr.msk.bf16.vlgmr.msra.gmra.mrb[4].mxu0 %vm936_vm0, %v3223_v24  ;;  %1996 = vmatmul.mubr.msk.bf16.vlgmr.msra.gmra.mrb[4].mxu1 %vm936_vm0, %v3223_v24 }
  0xe1   : > { %1105 = vmatpush1.bf16.msra.mxu0 %v2380_v41  ;;  %1146 = vmatpush1.bf16.msra.mxu1 %v2383_v42 }
  0xe2   : > { %1106 = vmatprep.subr.bf16.mxu0 %v2388_v43  ;;  %1147 = vmatprep.subr.bf16.mxu1 %v2391_v44 }
  0xe3   : > { %1136 = vmatprep.mubr.bf16.mxu0 %v2686_v4  ;;  %1177 = vmatprep.mubr.bf16.mxu1 %v2686_v4 }
  0xe5   : > { %1107 = vmatpush1.bf16.msra.mxu0 %v2386_v45  ;;  %1148 = vmatpush1.bf16.msra.mxu1 %v2389_v46 }
  0xe6   : > { %1108 = vmatprep.subr.bf16.mxu0 %v2394_v47  ;;  %1149 = vmatprep.subr.bf16.mxu1 %v2397_v48 }
  0xe9   : > { %1109 = vmatpush1.bf16.msra.mxu0 %v2392_v49  ;;  %1150 = vmatpush1.bf16.msra.mxu1 %v2395_v50 }
  0xea   : > { %1110 = vmatprep.subr.bf16.mxu0 %v2400_v51  ;;  %1151 = vmatprep.subr.bf16.mxu1 %v2403_v52 }
  0xed   : > { %1111 = vmatpush1.bf16.msra.mxu0 %v2398_v53  ;;  %1152 = vmatpush1.bf16.msra.mxu1 %v2401_v54 }
  0xf0   : > { %1997 = vmatmul.mubr.msk.bf16.vlgmr.msra.gmra.mrb[8].mxu0 %vm936_vm0, %v3223_v24  ;;  %1998 = vmatmul.mubr.msk.bf16.vlgmr.msra.gmra.mrb[8].mxu1 %vm936_vm0, %v3223_v24 }
 0x13c   : > { %v694_v58 = vpop.permute.xlu0 %693 }
 0x1a3   : > { %v974_v59 = vpop.f32.mrb[0].mxu0  ;;  %v1015_v60 = vpop.f32.mrb[0].mxu1 }
 0x1a4   : > { %v975_v63 = vadd.f32 %v974_v59, %v694_v58  ;;  %v976_v0 = vpop.f32.mrb[1].mxu0  ;;  %v1016_v1 = vadd.f32 %v1015_v60, %v694_v58  ;;  %v1017_v2 = vpop.f32.mrb[1].mxu1 }
 0x1a5   : > { %v977_v3 = vadd.f32 %v976_v0, %v694_v58  ;;  %v1018_v4 = vadd.f32 %v1017_v2, %v694_v58  ;;  %v978_v5 = vpop.f32.mrb[2].mxu0  ;;  %v1019_v6 = vpop.f32.mrb[2].mxu1 }
 0x1a6   : > { %v1186_v7 = vmax.f32 %v975_v63, 0.0  ;;  %v1188_v8 = vmax.f32 %v1016_v1, 0.0  ;;  %v979_v9 = vpop.f32.mrb[3].mxu0  ;;  %v1020_v10 = vpop.f32.mrb[3].mxu1 }
 0x1a7   : > { %v1187_v11 = vmax.f32 %v977_v3, 0.0  ;;  %v1189_v13 = vmax.f32 %v1018_v4, 0.0 }
 0x1a9   : > { %v1999_v14 = vpack.c.bf16 %v1187_v11, %v1186_v7  ;;  %v2000_v15 = vpack.c.bf16 %v1189_v13, %v1188_v8 }
 0x1ab   : > { %v1230_v16 = vrot.slane %v1999_v14, %v1229_v12  ;;  %v1237_v17 = vrot.slane %v2000_v15, %v1229_v12 }
 0x1ad   : > { %v1238_v18 = vcombine.low %v1230_v16, %v1237_v17 }
 0x1af   : > { %1276 = vst [vmem:[%s3273_s7] sm:$0xff] %v1238_v18 }
 0x1b3   : > { %v1056_v19 = vpop.f32.mrb[4].mxu0  ;;  %v1097_v20 = vpop.f32.mrb[4].mxu1 }
 0x1b4   : > { %v1057_v21 = vadd.f32 %v1056_v19, %v694_v58  ;;  %v1098_v22 = vadd.f32 %v1097_v20, %v694_v58  ;;  %v1058_v23 = vpop.f32.mrb[5].mxu0  ;;  %v1099_v24 = vpop.f32.mrb[5].mxu1 }
 0x1b5   : > { %v1059_v25 = vadd.f32 %v1058_v23, %v694_v58  ;;  %v1100_v26 = vadd.f32 %v1099_v24, %v694_v58  ;;  %v1060_v27 = vpop.f32.mrb[6].mxu0  ;;  %v1101_v28 = vpop.f32.mrb[6].mxu1 }
 0x1b6   : > { %v1190_v29 = vmax.f32 %v1057_v21, 0.0  ;;  %v1192_v30 = vmax.f32 %v1098_v22, 0.0  ;;  %v1061_v31 = vpop.f32.mrb[7].mxu0  ;;  %v1102_v32 = vpop.f32.mrb[7].mxu1 }
 0x1b7   : > { %v1191_v33 = vmax.f32 %v1059_v25, 0.0  ;;  %v1193_v34 = vmax.f32 %v1100_v26, 0.0 }
 0x1b9   : > { %v2001_v35 = vpack.c.bf16 %v1191_v33, %v1190_v29  ;;  %v2002_v36 = vpack.c.bf16 %v1193_v34, %v1192_v30 }
 0x1bb   : > { %v1247_v37 = vrot.slane %v2001_v35, %v1229_v12  ;;  %v1254_v38 = vrot.slane %v2002_v36, %v1229_v12 }
 0x1bd   : > { %v1255_v39 = vcombine.low %v1247_v37, %v1254_v38 }
 0x1bf   : > { %1277 = vst [vmem:[%s3273_s7 + $0x8] sm:$0xff] %v1255_v39 }
 0x1c3   : > { %v1138_v40 = vpop.f32.mrb[8].mxu0  ;;  %v1179_v41 = vpop.f32.mrb[8].mxu1 }
 0x1c4   : > { %v1139_v42 = vadd.f32 %v1138_v40, %v694_v58  ;;  %v1180_v43 = vadd.f32 %v1179_v41, %v694_v58  ;;  %v1140_v44 = vpop.f32.mrb[9].mxu0  ;;  %v1181_v45 = vpop.f32.mrb[9].mxu1 }
 0x1c5   : > { %v1141_v46 = vadd.f32 %v1140_v44, %v694_v58  ;;  %v1182_v47 = vadd.f32 %v1181_v45, %v694_v58  ;;  %v1142_v48 = vpop.f32.mrb[10].mxu0  ;;  %v1183_v49 = vpop.f32.mrb[10].mxu1 }
 0x1c6   : > { %v1194_v50 = vmax.f32 %v1139_v42, 0.0  ;;  %v1196_v51 = vmax.f32 %v1180_v43, 0.0  ;;  %v1143_v52 = vpop.f32.mrb[11].mxu0  ;;  %v1184_v53 = vpop.f32.mrb[11].mxu1 }
 0x1c7   : > { %v1195_v54 = vmax.f32 %v1141_v46, 0.0  ;;  %v1197_v55 = vmax.f32 %v1182_v47, 0.0 }
 0x1c9   : > { %v2003_v56 = vpack.c.bf16 %v1195_v54, %v1194_v50  ;;  %v2004_v57 = vpack.c.bf16 %v1197_v55, %v1196_v51  ;;  %1285 = sbr.rel (!%p2741_p5) target bundleno = 629 (0x275), region = 102 }
 0x1cb   : > { %v1264_v59 = vrot.slane %v2003_v56, %v1229_v12  ;;  %v1271_v60 = vrot.slane %v2004_v57, %v1229_v12 }
 0x1cd   : > { %v1272_v61 = vcombine.low %v1264_v59, %v1271_v60 }
 0x1cf   : > { %1278 = vst [vmem:[%s3273_s7 + $0x10] sm:$0xff] %v1272_v61 }
 0x1d0   : > { %s3745_s29 = smov (!%p1288_p1, %s1287_s29), 12 }
 0x1d1   : > { %s2005_s26 = sshll.u32 %s3745_s29, 5  ;;  %s3287_s17 = sshll.u32 %s3745_s29, 1 }
 0x1d2   : > { %p2009_p2 = scmp.eq.s32.totalorder %s2005_s26, 0 }
 0x1d3   : > { %p1298_p3 = scmp.lt.u32.totalorder (!%p2009_p2), %s3287_s17, 8 }
 0x1d4   : > { %1297 = sbr.rel (%p2009_p2) target bundleno = 629 (0x275), region = 106 }
 0x1db   : > { %1301 = sbr.rel (%p1298_p3) target bundleno = 620 (0x26c), region = 110  ;;  %s3291_s20 = sand.u32 (!%p1298_p3), 7, %s3287_s17  }
 0x1dc   : > { %p1317_p5 = scmp.eq.s32.totalorder (!%p1298_p3), %s3291_s20, 0  ;;  %p2010_p4 = scmp.ne.s32.totalorder (!%p1298_p3), %s3291_s20, 0 }
 0x1e2   : > { %1320 = sbr.rel (%p2010_p4) target bundleno = 549 (0x225), region = 125  ;;  %s1321_s15 = sshrl.u32 (!%p2010_p4), %s3287_s17, 3 }
 0x1e3   : > { %s3298_s22 = sshrl.u32 (!%p2010_p4), %s1321_s15, 6 }
 0x1e4   : > { %p2011_p6 = scmp.le.s32.totalorder (!%p2010_p4), %s3298_s22, 0 }
 0x1e9   : > { %1844 = sbr.rel (%p2011_p6) target bundleno = 529 (0x211), region = 273  ;;  %s3721_s27 = smov (!%p2011_p6), %s3285_s25 }
 0x1ea   : > { %s3722_s8 = smov (!%p2011_p6), %s3273_s7  ;;  %s3307_s5 = smov (!%p2011_p6), 0  }
 0x1eb   : > { %s3309_s18 = smov (!%p2011_p6), 0  }
 0x1f0 LB: >> { %v1334_v58 = vld [vmem:[%s2626_s8] sm:$0xff]  ;;  %v1336_v62 = vld [vmem:[%s2626_s8 + $0x8] sm:$0xff]  ;;  %v1338_v63 = vld [vmem:[%s2626_s8 + $0x10] sm:$0xff]  ;;  %s1462_s30 = sadd.s32 1, %s2630_s5  ;;  %s1328_s18 = sadd.s32 1, %s2634_s18   ;;  %s2634_s18 = sphi %s3309_s18, %s1328_s18   ;;  %s2630_s5 = sphi %s3307_s5, %s3725_s5   ;;  %s2626_s8 = sphi %s3722_s8, %s3724_s8   ;;  %s2622_s27 = sphi %s3721_s27, %s3723_s27  }
 0x1f1   : >> { %1335 = vst [vmem:[%s2622_s27] sm:$0xff] %v1334_v58  ;;  %1337 = vst [vmem:[%s2622_s27 + $0x8] sm:$0xff] %v1336_v62  ;;  %v1340_v0 = vld [vmem:[%s2626_s8 + $0x18] sm:$0xff]  ;;  %v1342_v1 = vld [vmem:[%s2626_s8 + $0x20] sm:$0xff]  ;;  %p1463_p7 = scmp.ge.s32.totalorder %s1462_s30, %s3298_s22  ;;  %p1327_p8 = scmp.ge.s32.totalorder %s1328_s18, %s3298_s22 }
 0x1f2   : >> { %1339 = vst [vmem:[%s2622_s27 + $0x10] sm:$0xff] %v1338_v63  ;;  %v1344_v2 = vld [vmem:[%s2626_s8 + $0x28] sm:$0xff]  ;;  %1341 = vst [vmem:[%s2622_s27 + $0x18] sm:$0xff] %v1340_v0  ;;  %v1346_v3 = vld [vmem:[%s2626_s8 + $0x30] sm:$0xff] }
 0x1f3   : >> { %1343 = vst [vmem:[%s2622_s27 + $0x20] sm:$0xff] %v1342_v1  ;;  %1345 = vst [vmem:[%s2622_s27 + $0x28] sm:$0xff] %v1344_v2  ;;  %v1348_v4 = vld [vmem:[%s2626_s8 + $0x38] sm:$0xff]  ;;  %v1350_v5 = vld [vmem:[%s2626_s8 + $0x40] sm:$0xff]  ;;  %s3747_s30 = smov (%p1463_p7, %s1462_s30), 0 }
 0x1f4   : >> { %1347 = vst [vmem:[%s2622_s27 + $0x30] sm:$0xff] %v1346_v3  ;;  %1349 = vst [vmem:[%s2622_s27 + $0x38] sm:$0xff] %v1348_v4  ;;  %v1352_v6 = vld [vmem:[%s2626_s8 + $0x48] sm:$0xff]  ;;  %v1354_v7 = vld [vmem:[%s2626_s8 + $0x50] sm:$0xff]  ;;  %s2012_s21 = sshll.u32 %s3747_s30, 9  ;;  %s3725_s5 = smov %s3747_s30 }
 0x1f5   : >> { %1351 = vst [vmem:[%s2622_s27 + $0x40] sm:$0xff] %v1350_v5  ;;  %v1356_v8 = vld [vmem:[%s2626_s8 + $0x58] sm:$0xff]  ;;  %1353 = vst [vmem:[%s2622_s27 + $0x48] sm:$0xff] %v1352_v6  ;;  %v1358_v9 = vld [vmem:[%s2626_s8 + $0x60] sm:$0xff]  ;;  %s3365_s28 = scalar_lea.vmem %s3273_s7, %s2012_s21 [#allocation3]   ;;  %s3368_s4 = scalar_lea.vmem %s3285_s25, %s2012_s21  }
 0x1f6   : >> { %1355 = vst [vmem:[%s2622_s27 + $0x50] sm:$0xff] %v1354_v7  ;;  %1357 = vst [vmem:[%s2622_s27 + $0x58] sm:$0xff] %v1356_v8  ;;  %v1360_v10 = vld [vmem:[%s2626_s8 + $0x68] sm:$0xff]  ;;  %v1362_v11 = vld [vmem:[%s2626_s8 + $0x70] sm:$0xff] }
 0x1f7   : >> { %1359 = vst [vmem:[%s2622_s27 + $0x60] sm:$0xff] %v1358_v9  ;;  %1361 = vst [vmem:[%s2622_s27 + $0x68] sm:$0xff] %v1360_v10  ;;  %v1364_v12 = vld [vmem:[%s2626_s8 + $0x78] sm:$0xff]  ;;  %v1366_v13 = vld [vmem:[%s2626_s8 + $0x80] sm:$0xff] }
 0x1f8   : >> { %1363 = vst [vmem:[%s2622_s27 + $0x70] sm:$0xff] %v1362_v11  ;;  %v1368_v14 = vld [vmem:[%s2626_s8 + $0x88] sm:$0xff]  ;;  %1365 = vst [vmem:[%s2622_s27 + $0x78] sm:$0xff] %v1364_v12  ;;  %v1370_v15 = vld [vmem:[%s2626_s8 + $0x90] sm:$0xff] }
 0x1f9   : >> { %1367 = vst [vmem:[%s2622_s27 + $0x80] sm:$0xff] %v1366_v13  ;;  %1369 = vst [vmem:[%s2622_s27 + $0x88] sm:$0xff] %v1368_v14  ;;  %v1372_v16 = vld [vmem:[%s2626_s8 + $0x98] sm:$0xff]  ;;  %v1374_v17 = vld [vmem:[%s2626_s8 + $0xa0] sm:$0xff] }
 0x1fa   : >> { %1371 = vst [vmem:[%s2622_s27 + $0x90] sm:$0xff] %v1370_v15  ;;  %1373 = vst [vmem:[%s2622_s27 + $0x98] sm:$0xff] %v1372_v16  ;;  %v1376_v18 = vld [vmem:[%s2626_s8 + $0xa8] sm:$0xff]  ;;  %v1378_v19 = vld [vmem:[%s2626_s8 + $0xb0] sm:$0xff] }
 0x1fb   : >> { %1375 = vst [vmem:[%s2622_s27 + $0xa0] sm:$0xff] %v1374_v17  ;;  %v1380_v20 = vld [vmem:[%s2626_s8 + $0xb8] sm:$0xff]  ;;  %1377 = vst [vmem:[%s2622_s27 + $0xa8] sm:$0xff] %v1376_v18  ;;  %v1382_v21 = vld [vmem:[%s2626_s8 + $0xc0] sm:$0xff] }
 0x1fc   : >> { %1379 = vst [vmem:[%s2622_s27 + $0xb0] sm:$0xff] %v1378_v19  ;;  %1381 = vst [vmem:[%s2622_s27 + $0xb8] sm:$0xff] %v1380_v20  ;;  %v1384_v22 = vld [vmem:[%s2626_s8 + $0xc8] sm:$0xff]  ;;  %v1386_v23 = vld [vmem:[%s2626_s8 + $0xd0] sm:$0xff] }
 0x1fd   : >> { %1383 = vst [vmem:[%s2622_s27 + $0xc0] sm:$0xff] %v1382_v21  ;;  %1385 = vst [vmem:[%s2622_s27 + $0xc8] sm:$0xff] %v1384_v22  ;;  %v1388_v24 = vld [vmem:[%s2626_s8 + $0xd8] sm:$0xff]  ;;  %v1390_v25 = vld [vmem:[%s2626_s8 + $0xe0] sm:$0xff] }
 0x1fe   : >> { %1387 = vst [vmem:[%s2622_s27 + $0xd0] sm:$0xff] %v1386_v23  ;;  %v1392_v26 = vld [vmem:[%s2626_s8 + $0xe8] sm:$0xff]  ;;  %1389 = vst [vmem:[%s2622_s27 + $0xd8] sm:$0xff] %v1388_v24  ;;  %v1394_v27 = vld [vmem:[%s2626_s8 + $0xf0] sm:$0xff] }
 0x1ff   : >> { %1391 = vst [vmem:[%s2622_s27 + $0xe0] sm:$0xff] %v1390_v25  ;;  %1393 = vst [vmem:[%s2622_s27 + $0xe8] sm:$0xff] %v1392_v26  ;;  %v1396_v28 = vld [vmem:[%s2626_s8 + $0xf8] sm:$0xff]  ;;  %v1398_v29 = vld [vmem:[%s2626_s8 + $0x100] sm:$0xff] }
 0x200   : >> { %1395 = vst [vmem:[%s2622_s27 + $0xf0] sm:$0xff] %v1394_v27  ;;  %1397 = vst [vmem:[%s2622_s27 + $0xf8] sm:$0xff] %v1396_v28  ;;  %v1400_v30 = vld [vmem:[%s2626_s8 + $0x108] sm:$0xff]  ;;  %v1402_v31 = vld [vmem:[%s2626_s8 + $0x110] sm:$0xff] }
 0x201   : >> { %1399 = vst [vmem:[%s2622_s27 + $0x100] sm:$0xff] %v1398_v29  ;;  %v1404_v32 = vld [vmem:[%s2626_s8 + $0x118] sm:$0xff]  ;;  %1401 = vst [vmem:[%s2622_s27 + $0x108] sm:$0xff] %v1400_v30  ;;  %v1406_v33 = vld [vmem:[%s2626_s8 + $0x120] sm:$0xff] }
 0x202   : >> { %1403 = vst [vmem:[%s2622_s27 + $0x110] sm:$0xff] %v1402_v31  ;;  %1405 = vst [vmem:[%s2622_s27 + $0x118] sm:$0xff] %v1404_v32  ;;  %v1408_v34 = vld [vmem:[%s2626_s8 + $0x128] sm:$0xff]  ;;  %v1410_v35 = vld [vmem:[%s2626_s8 + $0x130] sm:$0xff] }
 0x203   : >> { %1407 = vst [vmem:[%s2622_s27 + $0x120] sm:$0xff] %v1406_v33  ;;  %1409 = vst [vmem:[%s2622_s27 + $0x128] sm:$0xff] %v1408_v34  ;;  %v1412_v36 = vld [vmem:[%s2626_s8 + $0x138] sm:$0xff]  ;;  %v1414_v37 = vld [vmem:[%s2626_s8 + $0x140] sm:$0xff] }
 0x204   : >> { %1411 = vst [vmem:[%s2622_s27 + $0x130] sm:$0xff] %v1410_v35  ;;  %v1416_v38 = vld [vmem:[%s2626_s8 + $0x148] sm:$0xff]  ;;  %1413 = vst [vmem:[%s2622_s27 + $0x138] sm:$0xff] %v1412_v36  ;;  %v1418_v39 = vld [vmem:[%s2626_s8 + $0x150] sm:$0xff] }
 0x205   : >> { %1415 = vst [vmem:[%s2622_s27 + $0x140] sm:$0xff] %v1414_v37  ;;  %1417 = vst [vmem:[%s2622_s27 + $0x148] sm:$0xff] %v1416_v38  ;;  %v1420_v40 = vld [vmem:[%s2626_s8 + $0x158] sm:$0xff]  ;;  %v1422_v41 = vld [vmem:[%s2626_s8 + $0x160] sm:$0xff] }
 0x206   : >> { %1419 = vst [vmem:[%s2622_s27 + $0x150] sm:$0xff] %v1418_v39  ;;  %1421 = vst [vmem:[%s2622_s27 + $0x158] sm:$0xff] %v1420_v40  ;;  %v1424_v42 = vld [vmem:[%s2626_s8 + $0x168] sm:$0xff]  ;;  %v1426_v43 = vld [vmem:[%s2626_s8 + $0x170] sm:$0xff] }
 0x207   : >> { %1423 = vst [vmem:[%s2622_s27 + $0x160] sm:$0xff] %v1422_v41  ;;  %v1428_v44 = vld [vmem:[%s2626_s8 + $0x178] sm:$0xff]  ;;  %1425 = vst [vmem:[%s2622_s27 + $0x168] sm:$0xff] %v1424_v42  ;;  %v1430_v45 = vld [vmem:[%s2626_s8 + $0x180] sm:$0xff] }
 0x208   : >> { %1427 = vst [vmem:[%s2622_s27 + $0x170] sm:$0xff] %v1426_v43  ;;  %1429 = vst [vmem:[%s2622_s27 + $0x178] sm:$0xff] %v1428_v44  ;;  %v1432_v46 = vld [vmem:[%s2626_s8 + $0x188] sm:$0xff]  ;;  %v1434_v47 = vld [vmem:[%s2626_s8 + $0x190] sm:$0xff] }
 0x209   : >> { %1431 = vst [vmem:[%s2622_s27 + $0x180] sm:$0xff] %v1430_v45  ;;  %1433 = vst [vmem:[%s2622_s27 + $0x188] sm:$0xff] %v1432_v46  ;;  %v1436_v48 = vld [vmem:[%s2626_s8 + $0x198] sm:$0xff]  ;;  %v1438_v49 = vld [vmem:[%s2626_s8 + $0x1a0] sm:$0xff] }
 0x20a   : >> { %1435 = vst [vmem:[%s2622_s27 + $0x190] sm:$0xff] %v1434_v47  ;;  %v1440_v50 = vld [vmem:[%s2626_s8 + $0x1a8] sm:$0xff]  ;;  %1437 = vst [vmem:[%s2622_s27 + $0x198] sm:$0xff] %v1436_v48  ;;  %v1442_v51 = vld [vmem:[%s2626_s8 + $0x1b0] sm:$0xff]  ;;  %1330 = sbr.rel (!%p1327_p8) target bundleno = 496 (0x1f0), region = 279 }
 0x20b   : >> { %1439 = vst [vmem:[%s2622_s27 + $0x1a0] sm:$0xff] %v1438_v49  ;;  %1441 = vst [vmem:[%s2622_s27 + $0x1a8] sm:$0xff] %v1440_v50  ;;  %v1444_v52 = vld [vmem:[%s2626_s8 + $0x1b8] sm:$0xff]  ;;  %v1446_v53 = vld [vmem:[%s2626_s8 + $0x1c0] sm:$0xff] }
 0x20c   : >> { %1443 = vst [vmem:[%s2622_s27 + $0x1b0] sm:$0xff] %v1442_v51  ;;  %1445 = vst [vmem:[%s2622_s27 + $0x1b8] sm:$0xff] %v1444_v52  ;;  %v1448_v54 = vld [vmem:[%s2626_s8 + $0x1c8] sm:$0xff]  ;;  %v1450_v55 = vld [vmem:[%s2626_s8 + $0x1d0] sm:$0xff] }
 0x20d   : >> { %1447 = vst [vmem:[%s2622_s27 + $0x1c0] sm:$0xff] %v1446_v53  ;;  %v1452_v56 = vld [vmem:[%s2626_s8 + $0x1d8] sm:$0xff]  ;;  %1449 = vst [vmem:[%s2622_s27 + $0x1c8] sm:$0xff] %v1448_v54  ;;  %v1454_v57 = vld [vmem:[%s2626_s8 + $0x1e0] sm:$0xff] }
 0x20e   : >> { %1451 = vst [vmem:[%s2622_s27 + $0x1d0] sm:$0xff] %v1450_v55  ;;  %1453 = vst [vmem:[%s2622_s27 + $0x1d8] sm:$0xff] %v1452_v56  ;;  %v1456_v59 = vld [vmem:[%s2626_s8 + $0x1e8] sm:$0xff]  ;;  %v1458_v60 = vld [vmem:[%s2626_s8 + $0x1f0] sm:$0xff] }
 0x20f   : >> { %1455 = vst [vmem:[%s2622_s27 + $0x1e0] sm:$0xff] %v1454_v57  ;;  %1457 = vst [vmem:[%s2622_s27 + $0x1e8] sm:$0xff] %v1456_v59  ;;  %v1460_v61 = vld [vmem:[%s2626_s8 + $0x1f8] sm:$0xff]  ;;  %s3724_s8 = smov %s3365_s28 }
 0x210   : >> { %1459 = vst [vmem:[%s2622_s27 + $0x1f0] sm:$0xff] %v1458_v60  ;;  %1461 = vst [vmem:[%s2622_s27 + $0x1f8] sm:$0xff] %v1460_v61  ;;  %s3723_s27 = smov %s3368_s4 }
 0x211 PF: > { %s3474_s14 = sand.u32 63, %s1321_s15   ;;  %s2038_s9 = sshll.u32 %s3298_s22, 13 }
 0x212   : > { %s1473_s10 = sshra.s32 %s2038_s9, 4  ;;  %p2017_p9 = scmp.le.s32.totalorder %s3474_s14, 0 }
 0x213   : > { %s1474_s6 = scalar_lea.vmem %s3273_s7, %s1473_s10 [#allocation3]   ;;  %s1477_s12 = scalar_lea.vmem %s3285_s25, %s1473_s10  }
 0x214   : > { %1858 = sbr.rel (%p2017_p9) target bundleno = 549 (0x225), region = 284  ;;  %s2636_s11 = smov (!%p2017_p9), %s1477_s12  }
 0x215   : > { %s2640_s29 = smov (!%p2017_p9), %s1474_s6   ;;  %s2644_s23 = smov (!%p2017_p9), 0  }
 0x216   : > { %s2648_s24 = smov (!%p2017_p9), 0  }
 0x21b LB: >> { %v1489_v58 = vld [vmem:[%s2642_s29] sm:$0xff]  ;;  %s1491_s26 = sadd.s32 1, %s2646_s23  ;;  %s1483_s24 = sadd.s32 1, %s2650_s24   ;;  %s2650_s24 = sphi %s2648_s24, %s1483_s24   ;;  %s2646_s23 = sphi %s2644_s23, %s2645_s23   ;;  %s2642_s29 = sphi %s2640_s29, %s1496_s29   ;;  %s2638_s11 = sphi %s2636_s11, %s1497_s11  }
 0x21c   : >> { %1490 = vst [vmem:[%s2638_s11] sm:$0xff] %v1489_v58  ;;  %p1492_p10 = scmp.ge.s32.totalorder %s1491_s26, %s3474_s14  ;;  %p1482_p11 = scmp.ge.s32.totalorder %s1483_s24, %s3474_s14 }
 0x21e   : >> { %s3749_s26 = smov (%p1492_p10, %s1491_s26), 0  ;;  %1485 = sbr.rel (!%p1482_p11) target bundleno = 539 (0x21b), region = 290 }
 0x21f   : >> { %s2018_s15 = sshll.u32 %s3749_s26, 3  ;;  %s2645_s23 = smov %s3749_s26  }
 0x220   : >> { %s1496_s29 = scalar_lea.vmem %s1474_s6, %s2018_s15 [#allocation3]   ;;  %s1497_s11 = scalar_lea.vmem %s1477_s12, %s2018_s15  }
 0x225 PF: > { %1500 = sbr.rel (%p1317_p5) target bundleno = 620 (0x26c), region = 143  ;;  %s3486_s22 = ssub.s32 (!%p1317_p5), %s3287_s17, %s3291_s20 }
 0x226   : > { %s1506_s27 = sshrl.u32 (!%p1317_p5), %s3287_s17, 3  ;;  %s1503_s8 = scalar_lea.vmem (!%p1317_p5), %s3273_s7, %s3486_s22 [#allocation3] }
 0x227   : > { %s1505_s5 = scalar_lea.vmem (!%p1317_p5), %s3285_s25, %s3486_s22  ;;  %s3495_s18 = sshrl.u32 (!%p1317_p5), %s1506_s27, 6 }
 0x228   : > { %p2020_p12 = scmp.le.s32.totalorder (!%p1317_p5), %s3495_s18, 0 }
 0x22c   : > { %1872 = sbr.rel (%p2020_p12) target bundleno = 596 (0x254), region = 295  ;;  %s3726_s30 = smov (!%p2020_p12), %s3285_s25 }
 0x22d   : > { %s3727_s21 = smov (!%p2020_p12), %s3273_s7  ;;  %s3504_s28 = smov (!%p2020_p12), 0  }
 0x22e   : > { %s3506_s4 = smov (!%p2020_p12), 0  }
 0x233 LB: >> { %v1519_v62 = vld [vmem:[%s2658_s21] sm:$0xff]  ;;  %v1521_v63 = vld [vmem:[%s2658_s21 + $0x8] sm:$0xff]  ;;  %v1523_v0 = vld [vmem:[%s2658_s21 + $0x10] sm:$0xff]  ;;  %s1647_s14 = sadd.s32 1, %s2662_s28  ;;  %s1513_s4 = sadd.s32 1, %s2666_s4   ;;  %s2666_s4 = sphi %s3506_s4, %s1513_s4   ;;  %s2662_s28 = sphi %s3504_s28, %s3730_s28   ;;  %s2658_s21 = sphi %s3727_s21, %s3729_s21   ;;  %s2654_s30 = sphi %s3726_s30, %s3728_s30  }
 0x234   : >> { %1520 = vst [vmem:[%s2654_s30] sm:$0xff] %v1519_v62  ;;  %1522 = vst [vmem:[%s2654_s30 + $0x8] sm:$0xff] %v1521_v63  ;;  %v1525_v1 = vld [vmem:[%s2658_s21 + $0x18] sm:$0xff]  ;;  %v1527_v2 = vld [vmem:[%s2658_s21 + $0x20] sm:$0xff]  ;;  %p1648_p13 = scmp.ge.s32.totalorder %s1647_s14, %s3495_s18  ;;  %p1512_p0 = scmp.ge.s32.totalorder %s1513_s4, %s3495_s18 }
 0x235   : >> { %1524 = vst [vmem:[%s2654_s30 + $0x10] sm:$0xff] %v1523_v0  ;;  %v1529_v3 = vld [vmem:[%s2658_s21 + $0x28] sm:$0xff]  ;;  %1526 = vst [vmem:[%s2654_s30 + $0x18] sm:$0xff] %v1525_v1  ;;  %v1531_v4 = vld [vmem:[%s2658_s21 + $0x30] sm:$0xff] }
 0x236   : >> { %1528 = vst [vmem:[%s2654_s30 + $0x20] sm:$0xff] %v1527_v2  ;;  %1530 = vst [vmem:[%s2654_s30 + $0x28] sm:$0xff] %v1529_v3  ;;  %v1533_v5 = vld [vmem:[%s2658_s21 + $0x38] sm:$0xff]  ;;  %v1535_v6 = vld [vmem:[%s2658_s21 + $0x40] sm:$0xff]  ;;  %s3751_s14 = smov (%p1648_p13, %s1647_s14), 0 }
 0x237   : >> { %1532 = vst [vmem:[%s2654_s30 + $0x30] sm:$0xff] %v1531_v4  ;;  %1534 = vst [vmem:[%s2654_s30 + $0x38] sm:$0xff] %v1533_v5  ;;  %v1537_v7 = vld [vmem:[%s2658_s21 + $0x48] sm:$0xff]  ;;  %v1539_v8 = vld [vmem:[%s2658_s21 + $0x50] sm:$0xff]  ;;  %s2021_s9 = sshll.u32 %s3751_s14, 9  ;;  %s3730_s28 = smov %s3751_s14 }
 0x238   : >> { %1536 = vst [vmem:[%s2654_s30 + $0x40] sm:$0xff] %v1535_v6  ;;  %v1541_v9 = vld [vmem:[%s2658_s21 + $0x58] sm:$0xff]  ;;  %1538 = vst [vmem:[%s2654_s30 + $0x48] sm:$0xff] %v1537_v7  ;;  %v1543_v10 = vld [vmem:[%s2658_s21 + $0x60] sm:$0xff]  ;;  %s3562_s10 = scalar_lea.vmem %s3273_s7, %s2021_s9 [#allocation3]   ;;  %s3565_s6 = scalar_lea.vmem %s3285_s25, %s2021_s9  }
 0x239   : >> { %1540 = vst [vmem:[%s2654_s30 + $0x50] sm:$0xff] %v1539_v8  ;;  %1542 = vst [vmem:[%s2654_s30 + $0x58] sm:$0xff] %v1541_v9  ;;  %v1545_v11 = vld [vmem:[%s2658_s21 + $0x68] sm:$0xff]  ;;  %v1547_v12 = vld [vmem:[%s2658_s21 + $0x70] sm:$0xff] }
 0x23a   : >> { %1544 = vst [vmem:[%s2654_s30 + $0x60] sm:$0xff] %v1543_v10  ;;  %1546 = vst [vmem:[%s2654_s30 + $0x68] sm:$0xff] %v1545_v11  ;;  %v1549_v13 = vld [vmem:[%s2658_s21 + $0x78] sm:$0xff]  ;;  %v1551_v14 = vld [vmem:[%s2658_s21 + $0x80] sm:$0xff] }
 0x23b   : >> { %1548 = vst [vmem:[%s2654_s30 + $0x70] sm:$0xff] %v1547_v12  ;;  %v1553_v15 = vld [vmem:[%s2658_s21 + $0x88] sm:$0xff]  ;;  %1550 = vst [vmem:[%s2654_s30 + $0x78] sm:$0xff] %v1549_v13  ;;  %v1555_v16 = vld [vmem:[%s2658_s21 + $0x90] sm:$0xff] }
 0x23c   : >> { %1552 = vst [vmem:[%s2654_s30 + $0x80] sm:$0xff] %v1551_v14  ;;  %1554 = vst [vmem:[%s2654_s30 + $0x88] sm:$0xff] %v1553_v15  ;;  %v1557_v17 = vld [vmem:[%s2658_s21 + $0x98] sm:$0xff]  ;;  %v1559_v18 = vld [vmem:[%s2658_s21 + $0xa0] sm:$0xff] }
 0x23d   : >> { %1556 = vst [vmem:[%s2654_s30 + $0x90] sm:$0xff] %v1555_v16  ;;  %1558 = vst [vmem:[%s2654_s30 + $0x98] sm:$0xff] %v1557_v17  ;;  %v1561_v19 = vld [vmem:[%s2658_s21 + $0xa8] sm:$0xff]  ;;  %v1563_v20 = vld [vmem:[%s2658_s21 + $0xb0] sm:$0xff] }
 0x23e   : >> { %1560 = vst [vmem:[%s2654_s30 + $0xa0] sm:$0xff] %v1559_v18  ;;  %v1565_v21 = vld [vmem:[%s2658_s21 + $0xb8] sm:$0xff]  ;;  %1562 = vst [vmem:[%s2654_s30 + $0xa8] sm:$0xff] %v1561_v19  ;;  %v1567_v22 = vld [vmem:[%s2658_s21 + $0xc0] sm:$0xff] }
 0x23f   : >> { %1564 = vst [vmem:[%s2654_s30 + $0xb0] sm:$0xff] %v1563_v20  ;;  %1566 = vst [vmem:[%s2654_s30 + $0xb8] sm:$0xff] %v1565_v21  ;;  %v1569_v23 = vld [vmem:[%s2658_s21 + $0xc8] sm:$0xff]  ;;  %v1571_v24 = vld [vmem:[%s2658_s21 + $0xd0] sm:$0xff] }
 0x240   : >> { %1568 = vst [vmem:[%s2654_s30 + $0xc0] sm:$0xff] %v1567_v22  ;;  %1570 = vst [vmem:[%s2654_s30 + $0xc8] sm:$0xff] %v1569_v23  ;;  %v1573_v25 = vld [vmem:[%s2658_s21 + $0xd8] sm:$0xff]  ;;  %v1575_v26 = vld [vmem:[%s2658_s21 + $0xe0] sm:$0xff] }
 0x241   : >> { %1572 = vst [vmem:[%s2654_s30 + $0xd0] sm:$0xff] %v1571_v24  ;;  %v1577_v27 = vld [vmem:[%s2658_s21 + $0xe8] sm:$0xff]  ;;  %1574 = vst [vmem:[%s2654_s30 + $0xd8] sm:$0xff] %v1573_v25  ;;  %v1579_v28 = vld [vmem:[%s2658_s21 + $0xf0] sm:$0xff] }
 0x242   : >> { %1576 = vst [vmem:[%s2654_s30 + $0xe0] sm:$0xff] %v1575_v26  ;;  %1578 = vst [vmem:[%s2654_s30 + $0xe8] sm:$0xff] %v1577_v27  ;;  %v1581_v29 = vld [vmem:[%s2658_s21 + $0xf8] sm:$0xff]  ;;  %v1583_v30 = vld [vmem:[%s2658_s21 + $0x100] sm:$0xff] }
 0x243   : >> { %1580 = vst [vmem:[%s2654_s30 + $0xf0] sm:$0xff] %v1579_v28  ;;  %1582 = vst [vmem:[%s2654_s30 + $0xf8] sm:$0xff] %v1581_v29  ;;  %v1585_v31 = vld [vmem:[%s2658_s21 + $0x108] sm:$0xff]  ;;  %v1587_v32 = vld [vmem:[%s2658_s21 + $0x110] sm:$0xff] }
 0x244   : >> { %1584 = vst [vmem:[%s2654_s30 + $0x100] sm:$0xff] %v1583_v30  ;;  %v1589_v33 = vld [vmem:[%s2658_s21 + $0x118] sm:$0xff]  ;;  %1586 = vst [vmem:[%s2654_s30 + $0x108] sm:$0xff] %v1585_v31  ;;  %v1591_v34 = vld [vmem:[%s2658_s21 + $0x120] sm:$0xff] }
 0x245   : >> { %1588 = vst [vmem:[%s2654_s30 + $0x110] sm:$0xff] %v1587_v32  ;;  %1590 = vst [vmem:[%s2654_s30 + $0x118] sm:$0xff] %v1589_v33  ;;  %v1593_v35 = vld [vmem:[%s2658_s21 + $0x128] sm:$0xff]  ;;  %v1595_v36 = vld [vmem:[%s2658_s21 + $0x130] sm:$0xff] }
 0x246   : >> { %1592 = vst [vmem:[%s2654_s30 + $0x120] sm:$0xff] %v1591_v34  ;;  %1594 = vst [vmem:[%s2654_s30 + $0x128] sm:$0xff] %v1593_v35  ;;  %v1597_v37 = vld [vmem:[%s2658_s21 + $0x138] sm:$0xff]  ;;  %v1599_v38 = vld [vmem:[%s2658_s21 + $0x140] sm:$0xff] }
 0x247   : >> { %1596 = vst [vmem:[%s2654_s30 + $0x130] sm:$0xff] %v1595_v36  ;;  %v1601_v39 = vld [vmem:[%s2658_s21 + $0x148] sm:$0xff]  ;;  %1598 = vst [vmem:[%s2654_s30 + $0x138] sm:$0xff] %v1597_v37  ;;  %v1603_v40 = vld [vmem:[%s2658_s21 + $0x150] sm:$0xff] }
 0x248   : >> { %1600 = vst [vmem:[%s2654_s30 + $0x140] sm:$0xff] %v1599_v38  ;;  %1602 = vst [vmem:[%s2654_s30 + $0x148] sm:$0xff] %v1601_v39  ;;  %v1605_v41 = vld [vmem:[%s2658_s21 + $0x158] sm:$0xff]  ;;  %v1607_v42 = vld [vmem:[%s2658_s21 + $0x160] sm:$0xff] }
 0x249   : >> { %1604 = vst [vmem:[%s2654_s30 + $0x150] sm:$0xff] %v1603_v40  ;;  %1606 = vst [vmem:[%s2654_s30 + $0x158] sm:$0xff] %v1605_v41  ;;  %v1609_v43 = vld [vmem:[%s2658_s21 + $0x168] sm:$0xff]  ;;  %v1611_v44 = vld [vmem:[%s2658_s21 + $0x170] sm:$0xff] }
 0x24a   : >> { %1608 = vst [vmem:[%s2654_s30 + $0x160] sm:$0xff] %v1607_v42  ;;  %v1613_v45 = vld [vmem:[%s2658_s21 + $0x178] sm:$0xff]  ;;  %1610 = vst [vmem:[%s2654_s30 + $0x168] sm:$0xff] %v1609_v43  ;;  %v1615_v46 = vld [vmem:[%s2658_s21 + $0x180] sm:$0xff] }
 0x24b   : >> { %1612 = vst [vmem:[%s2654_s30 + $0x170] sm:$0xff] %v1611_v44  ;;  %1614 = vst [vmem:[%s2654_s30 + $0x178] sm:$0xff] %v1613_v45  ;;  %v1617_v47 = vld [vmem:[%s2658_s21 + $0x188] sm:$0xff]  ;;  %v1619_v48 = vld [vmem:[%s2658_s21 + $0x190] sm:$0xff] }
 0x24c   : >> { %1616 = vst [vmem:[%s2654_s30 + $0x180] sm:$0xff] %v1615_v46  ;;  %1618 = vst [vmem:[%s2654_s30 + $0x188] sm:$0xff] %v1617_v47  ;;  %v1621_v49 = vld [vmem:[%s2658_s21 + $0x198] sm:$0xff]  ;;  %v1623_v50 = vld [vmem:[%s2658_s21 + $0x1a0] sm:$0xff] }
 0x24d   : >> { %1620 = vst [vmem:[%s2654_s30 + $0x190] sm:$0xff] %v1619_v48  ;;  %v1625_v51 = vld [vmem:[%s2658_s21 + $0x1a8] sm:$0xff]  ;;  %1622 = vst [vmem:[%s2654_s30 + $0x198] sm:$0xff] %v1621_v49  ;;  %v1627_v52 = vld [vmem:[%s2658_s21 + $0x1b0] sm:$0xff]  ;;  %1515 = sbr.rel (!%p1512_p0) target bundleno = 563 (0x233), region = 301 }
 0x24e   : >> { %1624 = vst [vmem:[%s2654_s30 + $0x1a0] sm:$0xff] %v1623_v50  ;;  %1626 = vst [vmem:[%s2654_s30 + $0x1a8] sm:$0xff] %v1625_v51  ;;  %v1629_v53 = vld [vmem:[%s2658_s21 + $0x1b8] sm:$0xff]  ;;  %v1631_v54 = vld [vmem:[%s2658_s21 + $0x1c0] sm:$0xff] }
 0x24f   : >> { %1628 = vst [vmem:[%s2654_s30 + $0x1b0] sm:$0xff] %v1627_v52  ;;  %1630 = vst [vmem:[%s2654_s30 + $0x1b8] sm:$0xff] %v1629_v53  ;;  %v1633_v55 = vld [vmem:[%s2658_s21 + $0x1c8] sm:$0xff]  ;;  %v1635_v56 = vld [vmem:[%s2658_s21 + $0x1d0] sm:$0xff] }
 0x250   : >> { %1632 = vst [vmem:[%s2654_s30 + $0x1c0] sm:$0xff] %v1631_v54  ;;  %v1637_v57 = vld [vmem:[%s2658_s21 + $0x1d8] sm:$0xff]  ;;  %1634 = vst [vmem:[%s2654_s30 + $0x1c8] sm:$0xff] %v1633_v55  ;;  %v1639_v59 = vld [vmem:[%s2658_s21 + $0x1e0] sm:$0xff] }
 0x251   : >> { %1636 = vst [vmem:[%s2654_s30 + $0x1d0] sm:$0xff] %v1635_v56  ;;  %1638 = vst [vmem:[%s2654_s30 + $0x1d8] sm:$0xff] %v1637_v57  ;;  %v1641_v60 = vld [vmem:[%s2658_s21 + $0x1e8] sm:$0xff]  ;;  %v1643_v61 = vld [vmem:[%s2658_s21 + $0x1f0] sm:$0xff] }
 0x252   : >> { %1640 = vst [vmem:[%s2654_s30 + $0x1e0] sm:$0xff] %v1639_v59  ;;  %1642 = vst [vmem:[%s2654_s30 + $0x1e8] sm:$0xff] %v1641_v60  ;;  %v1645_v58 = vld [vmem:[%s2658_s21 + $0x1f8] sm:$0xff]  ;;  %s3729_s21 = smov %s3562_s10 }
 0x253   : >> { %1644 = vst [vmem:[%s2654_s30 + $0x1f0] sm:$0xff] %v1643_v61  ;;  %1646 = vst [vmem:[%s2654_s30 + $0x1f8] sm:$0xff] %v1645_v58  ;;  %s3728_s30 = smov %s3565_s6 }
 0x254 PF: > { %s3671_s12 = sand.u32 63, %s1506_s27   ;;  %s2040_s11 = sshll.u32 %s3495_s18, 13 }
 0x255   : > { %s1658_s29 = sshra.s32 %s2040_s11, 4  ;;  %p2026_p1 = scmp.le.s32.totalorder %s3671_s12, 0 }
 0x256   : > { %s1659_s23 = scalar_lea.vmem %s3273_s7, %s1658_s29 [#allocation3]   ;;  %s1662_s24 = scalar_lea.vmem %s3285_s25, %s1658_s29  }
 0x257   : > { %1886 = sbr.rel (%p2026_p1) target bundleno = 616 (0x268), region = 306  ;;  %s2668_s26 = smov (!%p2026_p1), %s1662_s24  }
 0x258   : > { %s2672_s15 = smov (!%p2026_p1), %s1659_s23   ;;  %s2676_s14 = smov (!%p2026_p1), 0  }
 0x259   : > { %s2680_s4 = smov (!%p2026_p1), 0  }
 0x25e LB: >> { %v1674_v62 = vld [vmem:[%s2674_s15] sm:$0xff]  ;;  %s1676_s27 = sadd.s32 1, %s2678_s14  ;;  %s1668_s4 = sadd.s32 1, %s2682_s4   ;;  %s2682_s4 = sphi %s2680_s4, %s1668_s4   ;;  %s2678_s14 = sphi %s2676_s14, %s2677_s14   ;;  %s2674_s15 = sphi %s2672_s15, %s1681_s15   ;;  %s2670_s26 = sphi %s2668_s26, %s1682_s26  }
 0x25f   : >> { %1675 = vst [vmem:[%s2670_s26] sm:$0xff] %v1674_v62  ;;  %p1677_p2 = scmp.ge.s32.totalorder %s1676_s27, %s3671_s12  ;;  %p1667_p3 = scmp.ge.s32.totalorder %s1668_s4, %s3671_s12 }
 0x261   : >> { %s3753_s27 = smov (%p1677_p2, %s1676_s27), 0  ;;  %1670 = sbr.rel (!%p1667_p3) target bundleno = 606 (0x25e), region = 312 }
 0x262   : >> { %s2027_s18 = sshll.u32 %s3753_s27, 3  ;;  %s2677_s14 = smov %s3753_s27  }
 0x263   : >> { %s1681_s15 = scalar_lea.vmem %s1659_s23, %s2027_s18 [#allocation3]   ;;  %s1682_s26 = scalar_lea.vmem %s1662_s24, %s2027_s18  }
 0x268 PF: > { %s2688_s30 = smov 0  }
 0x269   : > { %s1683_s21 = sshllo.u32 %s2688_s30, %s3291_s20 }
 0x26a   : > { %v1692_v63 = vld [vmem:[%s1503_s8] sm:%s1683_s21] }
 0x26b   : > { %1693 = vst [vmem:[%s1505_s5] sm:%s1683_s21] %v1692_v63 }
 0x26c PF: > { %p2029_p5 = scmp.ge.u32.totalorder %s3287_s17, 8 }
 0x26d   : > { %s2689_s28 = smov (!%p2029_p5), 0  }
 0x26e   : > { %1304 = sbr.rel (%p2029_p5) target bundleno = 629 (0x275), region = 114  ;;  %s1305_s9 = sshllo.u32 (!%p2029_p5), %s2689_s28, %s3287_s17 }
 0x26f   : > { %v1314_v0 = vld [vmem:[%s3273_s7] sm:%s1305_s9] (!%p2029_p5) }
 0x270   : > { %1315 = vst [vmem:[%s3285_s25] sm:%s1305_s9] (!%p2029_p5), %v1314_v0 }
 0x275 PF: > { %p10_p4 = scmp.ge.s32.totalorder %s2729_s16, 7   ;;  %s3731_s12 = smov %s2550_s13 }
 0x276   : > { %s3732_s13 = smov %s2739_s19  ;;  %s3733_s14 = smov %s2729_s16 }
 0x277   :  { %12 = sbr.rel (!%p10_p4) target bundleno = 2 (0x2), region = 323 }

// kernel: cnn_3_layers_forward.5
= control target key start
LH: loop header
LB: loop body
LE: loop exit
PB: predicated region body
PF: predicated region fallthrough
CT: control target
= control target key end

     0   :  { %s7410_s12 = smov 0   ;;  %s7412_s13 = smov 0   ;;  %s9282_s0 = inlined_call_operand.vmem [shape: bf16[8,112], index: 0, kind: input, shape index: {}]   ;;  %s9283_s1 = inlined_call_operand.vmem [shape: bf16[112,31752], index: 1, kind: input, shape index: {}]   ;;  %s9284_s2 = inlined_call_operand.vmem [shape: f32[8,1], index: 2, kind: input, shape index: {}]   ;;  %s9285_s3 = inlined_call_operand.vmem [shape: bf16[8,31752], index: 3, kind: output, shape index: {}]  }
   0x1   :  { %s7414_s14 = smov 0  }
   0x2 LB: > { %s7426_s15 = sadd.s32 4294967295, %s7255_s14   ;;  %s7429_s16 = sadd.s32 1, %s7255_s14   ;;  %s7255_s14 = sphi %s7414_s14, %s9315_s14   ;;  %s7251_s13 = sphi %s7412_s13, %s9314_s13   ;;  %s7247_s12 = sphi %s7410_s12, %s9313_s12  }
   0x3   : > { %s38_s17 = ssub.s32 %s7255_s14, %s7429_s16  ;;  %s41_s18 = sadd.s32 1, %s7251_s13 }
   0x4   : > { %p39_p0 = scmp.eq.s32.totalorder %s38_s17, 0  ;;  %p48_p1 = scmp.ne.s32.totalorder %s7251_s13, %s7247_s12 }
   0x5   : > { %p49_p2 = scmp.eq.s32.totalorder %s7255_s14, 0  ;;  %p99_p3 = scmp.eq.s32.totalorder %s7426_s15, 4 }
   0x6   : > { %s7439_s19 = scalar_select %p39_p0, %s7251_s13, %s41_s18  }
   0x7   : > { %p50_p4 = por %p49_p2, %p48_p1  ;;  %p7441_p5 = por %p99_p3, %p48_p1 }
   0x8   : > { %p5611_p6 = scmp.ge.s32.totalorder %s7255_s14, 5 }
   0xa   : > { %127 = sbr.rel (%p5611_p6) target bundleno = 260 (0x104), region = 24 }
  0x11   : > { %130 = sbr.rel (!%p50_p4) target bundleno = 260 (0x104), region = 28  ;;  %s132_s21 = sand.u32 (%p50_p4), 1, %s7251_s13  }
  0x12   : > { %s135_s22 = smul.u32 (%p50_p4), 60, %s7255_s14 }
  0x13   : > { %s6184_s23 = smul.u32 (%p50_p4), 3360, %s132_s21 }
  0x14   : > { %s136_s24 = ssub.s32 (%p50_p4), 249, %s135_s22  ;;  %s6144_s25 = smul.u32 (%p50_p4), 240, %s7255_s14 }
  0x15   : > { %p137_p7 = scmp.lt.s32.totalorder (%p50_p4), %s136_s24, 60  ;;  %s7456_s4 = scalar_lea.vmem (%p50_p4), [#allocation2], %s6184_s23  }
  0x16   : > { %s7452_s28 = scalar_lea.vmem (%p50_p4), %s9283_s1, %s6144_s25  }
  0x18   : > { %s9317_s24 = smov (!%p137_p7, %s136_s24), 60 }
  0x19   : > { %s139_s29 = smul.u32 896, %s9317_s24  ;;  %s7454_s30 = sshll.u32 %s9317_s24, 2 }
  0x1b   : > { %p5615_p8 = scmp.eq.s32.totalorder %s139_s29, 0 }
  0x1c   : > { %p147_p9 = scmp.lt.u32.totalorder (!%p5615_p8), %s7454_s30, 8 }
  0x1d   : > { %146 = sbr.rel (%p5615_p8) target bundleno = 260 (0x104), region = 32 }
  0x24   : > { %150 = sbr.rel (%p147_p9) target bundleno = 242 (0xf2), region = 36  ;;  %s7460_s5 = sand.u32 (!%p147_p9), 7, %s7454_s30  }
  0x25   : > { %p192_p10 = scmp.eq.s32.totalorder (!%p147_p9), %s7460_s5, 0  ;;  %p5616_p11 = scmp.ne.s32.totalorder (!%p147_p9), %s7460_s5, 0 }
  0x2b   : > { %195 = sbr.rel (%p5616_p11) target bundleno = 134 (0x86), region = 51  ;;  %s196_s6 = sshrl.u32 (!%p5616_p11), %s7454_s30, 3 }
  0x2c   : > { %s7467_s7 = sshrl.u32 (!%p5616_p11), %s196_s6, 3 }
  0x2d   : > { %p5617_p12 = scmp.le.s32.totalorder (!%p5616_p11), %s7467_s7, 0 }
  0x32   : > { %5481 = sbr.rel (%p5617_p12) target bundleno = 114 (0x72), region = 229  ;;  %s9287_s8 = smov (!%p5617_p12), %s7456_s4 }
  0x33   : > { %s9288_s9 = smov (!%p5617_p12), %s7452_s28  ;;  %s7476_s10 = smov (!%p5617_p12), 0  }
  0x34   : > { %s7478_s11 = smov (!%p5617_p12), 0  }
  0x39 LB: >> { %v209_v0 = vld [vmem:[%s7263_s9] sm:$0xff]  ;;  %v211_v1 = vld [vmem:[%s7263_s9 + $0x8] sm:$0xff]  ;;  %v213_v2 = vld [vmem:[%s7263_s9 + $0x10] sm:$0xff]  ;;  %s433_s17 = sadd.s32 1, %s7267_s10  ;;  %s203_s11 = sadd.s32 1, %s7271_s11   ;;  %s7271_s11 = sphi %s7478_s11, %s203_s11   ;;  %s7267_s10 = sphi %s7476_s10, %s9291_s10   ;;  %s7263_s9 = sphi %s9288_s9, %s9290_s9   ;;  %s7259_s8 = sphi %s9287_s8, %s9289_s8  }
  0x3a   : >> { %210 = vst [vmem:[%s7259_s8] sm:$0xff] %v209_v0  ;;  %212 = vst [vmem:[%s7259_s8 + $0x8] sm:$0xff] %v211_v1  ;;  %v215_v3 = vld [vmem:[%s7263_s9 + $0x18] sm:$0xff]  ;;  %v217_v4 = vld [vmem:[%s7263_s9 + $0x20] sm:$0xff]  ;;  %p434_p13 = scmp.ge.s32.totalorder %s433_s17, %s7467_s7  ;;  %p202_p0 = scmp.ge.s32.totalorder %s203_s11, %s7467_s7 }
  0x3b   : >> { %214 = vst [vmem:[%s7259_s8 + $0x10] sm:$0xff] %v213_v2  ;;  %v219_v5 = vld [vmem:[%s7263_s9 + $0x28] sm:$0xff]  ;;  %216 = vst [vmem:[%s7259_s8 + $0x18] sm:$0xff] %v215_v3  ;;  %v221_v6 = vld [vmem:[%s7263_s9 + $0x30] sm:$0xff] }
  0x3c   : >> { %218 = vst [vmem:[%s7259_s8 + $0x20] sm:$0xff] %v217_v4  ;;  %220 = vst [vmem:[%s7259_s8 + $0x28] sm:$0xff] %v219_v5  ;;  %v223_v7 = vld [vmem:[%s7263_s9 + $0x38] sm:$0xff]  ;;  %v225_v8 = vld [vmem:[%s7263_s9 + $0x3e4] sm:$0xff]  ;;  %s9319_s17 = smov (%p434_p13, %s433_s17), 0 }
  0x3d   : >> { %222 = vst [vmem:[%s7259_s8 + $0x30] sm:$0xff] %v221_v6  ;;  %224 = vst [vmem:[%s7259_s8 + $0x38] sm:$0xff] %v223_v7  ;;  %v227_v9 = vld [vmem:[%s7263_s9 + $0x3ec] sm:$0xff]  ;;  %v229_v10 = vld [vmem:[%s7263_s9 + $0x3f4] sm:$0xff]  ;;  %s5618_s18 = sshll.u32 %s9319_s17, 6  ;;  %s9291_s10 = smov %s9319_s17 }
  0x3e   : >> { %226 = vst [vmem:[%s7259_s8 + $0xf0] sm:$0xff] %v225_v8  ;;  %v231_v11 = vld [vmem:[%s7263_s9 + $0x3fc] sm:$0xff]  ;;  %228 = vst [vmem:[%s7259_s8 + $0xf8] sm:$0xff] %v227_v9  ;;  %v233_v12 = vld [vmem:[%s7263_s9 + $0x404] sm:$0xff]  ;;  %s7534_s21 = scalar_lea.vmem %s7452_s28, %s5618_s18   ;;  %s7537_s22 = scalar_lea.vmem %s7456_s4, %s5618_s18 [#allocation2]  }
  0x3f   : >> { %230 = vst [vmem:[%s7259_s8 + $0x100] sm:$0xff] %v229_v10  ;;  %232 = vst [vmem:[%s7259_s8 + $0x108] sm:$0xff] %v231_v11  ;;  %v235_v13 = vld [vmem:[%s7263_s9 + $0x40c] sm:$0xff]  ;;  %v237_v14 = vld [vmem:[%s7263_s9 + $0x414] sm:$0xff] }
  0x40   : >> { %234 = vst [vmem:[%s7259_s8 + $0x110] sm:$0xff] %v233_v12  ;;  %236 = vst [vmem:[%s7259_s8 + $0x118] sm:$0xff] %v235_v13  ;;  %v239_v15 = vld [vmem:[%s7263_s9 + $0x41c] sm:$0xff]  ;;  %v241_v16 = vld [vmem:[%s7263_s9 + $0x7c8] sm:$0xff] }
  0x41   : >> { %238 = vst [vmem:[%s7259_s8 + $0x120] sm:$0xff] %v237_v14  ;;  %v243_v17 = vld [vmem:[%s7263_s9 + $0x7d0] sm:$0xff]  ;;  %240 = vst [vmem:[%s7259_s8 + $0x128] sm:$0xff] %v239_v15  ;;  %v245_v18 = vld [vmem:[%s7263_s9 + $0x7d8] sm:$0xff] }
  0x42   : >> { %242 = vst [vmem:[%s7259_s8 + $0x1e0] sm:$0xff] %v241_v16  ;;  %244 = vst [vmem:[%s7259_s8 + $0x1e8] sm:$0xff] %v243_v17  ;;  %v247_v19 = vld [vmem:[%s7263_s9 + $0x7e0] sm:$0xff]  ;;  %v249_v20 = vld [vmem:[%s7263_s9 + $0x7e8] sm:$0xff] }
  0x43   : >> { %246 = vst [vmem:[%s7259_s8 + $0x1f0] sm:$0xff] %v245_v18  ;;  %248 = vst [vmem:[%s7259_s8 + $0x1f8] sm:$0xff] %v247_v19  ;;  %v251_v21 = vld [vmem:[%s7263_s9 + $0x7f0] sm:$0xff]  ;;  %v253_v22 = vld [vmem:[%s7263_s9 + $0x7f8] sm:$0xff] }
  0x44   : >> { %250 = vst [vmem:[%s7259_s8 + $0x200] sm:$0xff] %v249_v20  ;;  %v255_v23 = vld [vmem:[%s7263_s9 + $0x800] sm:$0xff]  ;;  %252 = vst [vmem:[%s7259_s8 + $0x208] sm:$0xff] %v251_v21  ;;  %v257_v24 = vld [vmem:[%s7263_s9 + $0xbac] sm:$0xff] }
  0x45   : >> { %254 = vst [vmem:[%s7259_s8 + $0x210] sm:$0xff] %v253_v22  ;;  %256 = vst [vmem:[%s7259_s8 + $0x218] sm:$0xff] %v255_v23  ;;  %v259_v25 = vld [vmem:[%s7263_s9 + $0xbb4] sm:$0xff]  ;;  %v261_v26 = vld [vmem:[%s7263_s9 + $0xbbc] sm:$0xff] }
  0x46   : >> { %258 = vst [vmem:[%s7259_s8 + $0x2d0] sm:$0xff] %v257_v24  ;;  %260 = vst [vmem:[%s7259_s8 + $0x2d8] sm:$0xff] %v259_v25  ;;  %v263_v27 = vld [vmem:[%s7263_s9 + $0xbc4] sm:$0xff]  ;;  %v265_v28 = vld [vmem:[%s7263_s9 + $0xbcc] sm:$0xff] }
  0x47   : >> { %262 = vst [vmem:[%s7259_s8 + $0x2e0] sm:$0xff] %v261_v26  ;;  %v267_v29 = vld [vmem:[%s7263_s9 + $0xbd4] sm:$0xff]  ;;  %264 = vst [vmem:[%s7259_s8 + $0x2e8] sm:$0xff] %v263_v27  ;;  %v269_v30 = vld [vmem:[%s7263_s9 + $0xbdc] sm:$0xff] }
  0x48   : >> { %266 = vst [vmem:[%s7259_s8 + $0x2f0] sm:$0xff] %v265_v28  ;;  %268 = vst [vmem:[%s7259_s8 + $0x2f8] sm:$0xff] %v267_v29  ;;  %v271_v31 = vld [vmem:[%s7263_s9 + $0xbe4] sm:$0xff]  ;;  %v273_v32 = vld [vmem:[%s7263_s9 + $0xf90] sm:$0xff] }
  0x49   : >> { %270 = vst [vmem:[%s7259_s8 + $0x300] sm:$0xff] %v269_v30  ;;  %272 = vst [vmem:[%s7259_s8 + $0x308] sm:$0xff] %v271_v31  ;;  %v275_v33 = vld [vmem:[%s7263_s9 + $0xf98] sm:$0xff]  ;;  %v277_v34 = vld [vmem:[%s7263_s9 + $0xfa0] sm:$0xff] }
  0x4a   : >> { %274 = vst [vmem:[%s7259_s8 + $0x3c0] sm:$0xff] %v273_v32  ;;  %v279_v35 = vld [vmem:[%s7263_s9 + $0xfa8] sm:$0xff]  ;;  %276 = vst [vmem:[%s7259_s8 + $0x3c8] sm:$0xff] %v275_v33  ;;  %v281_v36 = vld [vmem:[%s7263_s9 + $0xfb0] sm:$0xff] }
  0x4b   : >> { %278 = vst [vmem:[%s7259_s8 + $0x3d0] sm:$0xff] %v277_v34  ;;  %280 = vst [vmem:[%s7259_s8 + $0x3d8] sm:$0xff] %v279_v35  ;;  %v283_v37 = vld [vmem:[%s7263_s9 + $0xfb8] sm:$0xff]  ;;  %v285_v38 = vld [vmem:[%s7263_s9 + $0xfc0] sm:$0xff] }
  0x4c   : >> { %282 = vst [vmem:[%s7259_s8 + $0x3e0] sm:$0xff] %v281_v36  ;;  %284 = vst [vmem:[%s7259_s8 + $0x3e8] sm:$0xff] %v283_v37  ;;  %v287_v39 = vld [vmem:[%s7263_s9 + $0xfc8] sm:$0xff]  ;;  %v289_v40 = vld [vmem:[%s7263_s9 + $0x1374] sm:$0xff] }
  0x4d   : >> { %286 = vst [vmem:[%s7259_s8 + $0x3f0] sm:$0xff] %v285_v38  ;;  %v291_v41 = vld [vmem:[%s7263_s9 + $0x137c] sm:$0xff]  ;;  %288 = vst [vmem:[%s7259_s8 + $0x3f8] sm:$0xff] %v287_v39  ;;  %v293_v42 = vld [vmem:[%s7263_s9 + $0x1384] sm:$0xff] }
  0x4e   : >> { %290 = vst [vmem:[%s7259_s8 + $0x4b0] sm:$0xff] %v289_v40  ;;  %292 = vst [vmem:[%s7259_s8 + $0x4b8] sm:$0xff] %v291_v41  ;;  %v295_v43 = vld [vmem:[%s7263_s9 + $0x138c] sm:$0xff]  ;;  %v297_v44 = vld [vmem:[%s7263_s9 + $0x1394] sm:$0xff] }
  0x4f   : >> { %294 = vst [vmem:[%s7259_s8 + $0x4c0] sm:$0xff] %v293_v42  ;;  %296 = vst [vmem:[%s7259_s8 + $0x4c8] sm:$0xff] %v295_v43  ;;  %v299_v45 = vld [vmem:[%s7263_s9 + $0x139c] sm:$0xff]  ;;  %v301_v46 = vld [vmem:[%s7263_s9 + $0x13a4] sm:$0xff] }
  0x50   : >> { %298 = vst [vmem:[%s7259_s8 + $0x4d0] sm:$0xff] %v297_v44  ;;  %v303_v47 = vld [vmem:[%s7263_s9 + $0x13ac] sm:$0xff]  ;;  %300 = vst [vmem:[%s7259_s8 + $0x4d8] sm:$0xff] %v299_v45  ;;  %v305_v48 = vld [vmem:[%s7263_s9 + $0x1758] sm:$0xff] }
  0x51   : >> { %302 = vst [vmem:[%s7259_s8 + $0x4e0] sm:$0xff] %v301_v46  ;;  %304 = vst [vmem:[%s7259_s8 + $0x4e8] sm:$0xff] %v303_v47  ;;  %v307_v49 = vld [vmem:[%s7263_s9 + $0x1760] sm:$0xff]  ;;  %v309_v50 = vld [vmem:[%s7263_s9 + $0x1768] sm:$0xff] }
  0x52   : >> { %306 = vst [vmem:[%s7259_s8 + $0x5a0] sm:$0xff] %v305_v48  ;;  %308 = vst [vmem:[%s7259_s8 + $0x5a8] sm:$0xff] %v307_v49  ;;  %v311_v51 = vld [vmem:[%s7263_s9 + $0x1770] sm:$0xff]  ;;  %v313_v52 = vld [vmem:[%s7263_s9 + $0x1778] sm:$0xff] }
  0x53   : >> { %310 = vst [vmem:[%s7259_s8 + $0x5b0] sm:$0xff] %v309_v50  ;;  %v315_v53 = vld [vmem:[%s7263_s9 + $0x1780] sm:$0xff]  ;;  %312 = vst [vmem:[%s7259_s8 + $0x5b8] sm:$0xff] %v311_v51  ;;  %v317_v54 = vld [vmem:[%s7263_s9 + $0x1788] sm:$0xff] }
  0x54   : >> { %314 = vst [vmem:[%s7259_s8 + $0x5c0] sm:$0xff] %v313_v52  ;;  %316 = vst [vmem:[%s7259_s8 + $0x5c8] sm:$0xff] %v315_v53  ;;  %v319_v55 = vld [vmem:[%s7263_s9 + $0x1790] sm:$0xff]  ;;  %v321_v56 = vld [vmem:[%s7263_s9 + $0x1b3c] sm:$0xff] }
  0x55   : >> { %318 = vst [vmem:[%s7259_s8 + $0x5d0] sm:$0xff] %v317_v54  ;;  %320 = vst [vmem:[%s7259_s8 + $0x5d8] sm:$0xff] %v319_v55  ;;  %v323_v57 = vld [vmem:[%s7263_s9 + $0x1b44] sm:$0xff]  ;;  %v325_v58 = vld [vmem:[%s7263_s9 + $0x1b4c] sm:$0xff] }
  0x56   : >> { %322 = vst [vmem:[%s7259_s8 + $0x690] sm:$0xff] %v321_v56  ;;  %v327_v59 = vld [vmem:[%s7263_s9 + $0x1b54] sm:$0xff]  ;;  %324 = vst [vmem:[%s7259_s8 + $0x698] sm:$0xff] %v323_v57  ;;  %v329_v60 = vld [vmem:[%s7263_s9 + $0x1b5c] sm:$0xff] }
  0x57   : >> { %326 = vst [vmem:[%s7259_s8 + $0x6a0] sm:$0xff] %v325_v58  ;;  %328 = vst [vmem:[%s7259_s8 + $0x6a8] sm:$0xff] %v327_v59  ;;  %v331_v61 = vld [vmem:[%s7263_s9 + $0x1b64] sm:$0xff]  ;;  %v333_v62 = vld [vmem:[%s7263_s9 + $0x1b6c] sm:$0xff] }
  0x58   : >> { %330 = vst [vmem:[%s7259_s8 + $0x6b0] sm:$0xff] %v329_v60  ;;  %332 = vst [vmem:[%s7259_s8 + $0x6b8] sm:$0xff] %v331_v61  ;;  %v335_v63 = vld [vmem:[%s7263_s9 + $0x1b74] sm:$0xff]  ;;  %v337_v0 = vld [vmem:[%s7263_s9 + $0x1f20] sm:$0xff] }
  0x59   : >> { %334 = vst [vmem:[%s7259_s8 + $0x6c0] sm:$0xff] %v333_v62  ;;  %v339_v1 = vld [vmem:[%s7263_s9 + $0x1f28] sm:$0xff]  ;;  %336 = vst [vmem:[%s7259_s8 + $0x6c8] sm:$0xff] %v335_v63  ;;  %v341_v2 = vld [vmem:[%s7263_s9 + $0x1f30] sm:$0xff] }
  0x5a   : >> { %338 = vst [vmem:[%s7259_s8 + $0x780] sm:$0xff] %v337_v0  ;;  %340 = vst [vmem:[%s7259_s8 + $0x788] sm:$0xff] %v339_v1  ;;  %v343_v3 = vld [vmem:[%s7263_s9 + $0x1f38] sm:$0xff]  ;;  %v345_v4 = vld [vmem:[%s7263_s9 + $0x1f40] sm:$0xff] }
  0x5b   : >> { %342 = vst [vmem:[%s7259_s8 + $0x790] sm:$0xff] %v341_v2  ;;  %344 = vst [vmem:[%s7259_s8 + $0x798] sm:$0xff] %v343_v3  ;;  %v347_v5 = vld [vmem:[%s7263_s9 + $0x1f48] sm:$0xff]  ;;  %v349_v6 = vld [vmem:[%s7263_s9 + $0x1f50] sm:$0xff] }
  0x5c   : >> { %346 = vst [vmem:[%s7259_s8 + $0x7a0] sm:$0xff] %v345_v4  ;;  %v351_v7 = vld [vmem:[%s7263_s9 + $0x1f58] sm:$0xff]  ;;  %348 = vst [vmem:[%s7259_s8 + $0x7a8] sm:$0xff] %v347_v5  ;;  %v353_v8 = vld [vmem:[%s7263_s9 + $0x2304] sm:$0xff] }
  0x5d   : >> { %350 = vst [vmem:[%s7259_s8 + $0x7b0] sm:$0xff] %v349_v6  ;;  %352 = vst [vmem:[%s7259_s8 + $0x7b8] sm:$0xff] %v351_v7  ;;  %v355_v9 = vld [vmem:[%s7263_s9 + $0x230c] sm:$0xff]  ;;  %v357_v10 = vld [vmem:[%s7263_s9 + $0x2314] sm:$0xff] }
  0x5e   : >> { %354 = vst [vmem:[%s7259_s8 + $0x870] sm:$0xff] %v353_v8  ;;  %356 = vst [vmem:[%s7259_s8 + $0x878] sm:$0xff] %v355_v9  ;;  %v359_v11 = vld [vmem:[%s7263_s9 + $0x231c] sm:$0xff]  ;;  %v361_v12 = vld [vmem:[%s7263_s9 + $0x2324] sm:$0xff] }
  0x5f   : >> { %358 = vst [vmem:[%s7259_s8 + $0x880] sm:$0xff] %v357_v10  ;;  %v363_v13 = vld [vmem:[%s7263_s9 + $0x232c] sm:$0xff]  ;;  %360 = vst [vmem:[%s7259_s8 + $0x888] sm:$0xff] %v359_v11  ;;  %v365_v14 = vld [vmem:[%s7263_s9 + $0x2334] sm:$0xff] }
  0x60   : >> { %362 = vst [vmem:[%s7259_s8 + $0x890] sm:$0xff] %v361_v12  ;;  %364 = vst [vmem:[%s7259_s8 + $0x898] sm:$0xff] %v363_v13  ;;  %v367_v15 = vld [vmem:[%s7263_s9 + $0x233c] sm:$0xff]  ;;  %v369_v16 = vld [vmem:[%s7263_s9 + $0x26e8] sm:$0xff] }
  0x61   : >> { %366 = vst [vmem:[%s7259_s8 + $0x8a0] sm:$0xff] %v365_v14  ;;  %368 = vst [vmem:[%s7259_s8 + $0x8a8] sm:$0xff] %v367_v15  ;;  %v371_v17 = vld [vmem:[%s7263_s9 + $0x26f0] sm:$0xff]  ;;  %v373_v18 = vld [vmem:[%s7263_s9 + $0x26f8] sm:$0xff] }
  0x62   : >> { %370 = vst [vmem:[%s7259_s8 + $0x960] sm:$0xff] %v369_v16  ;;  %v375_v19 = vld [vmem:[%s7263_s9 + $0x2700] sm:$0xff]  ;;  %372 = vst [vmem:[%s7259_s8 + $0x968] sm:$0xff] %v371_v17  ;;  %v377_v20 = vld [vmem:[%s7263_s9 + $0x2708] sm:$0xff] }
  0x63   : >> { %374 = vst [vmem:[%s7259_s8 + $0x970] sm:$0xff] %v373_v18  ;;  %376 = vst [vmem:[%s7259_s8 + $0x978] sm:$0xff] %v375_v19  ;;  %v379_v21 = vld [vmem:[%s7263_s9 + $0x2710] sm:$0xff]  ;;  %v381_v22 = vld [vmem:[%s7263_s9 + $0x2718] sm:$0xff] }
  0x64   : >> { %378 = vst [vmem:[%s7259_s8 + $0x980] sm:$0xff] %v377_v20  ;;  %380 = vst [vmem:[%s7259_s8 + $0x988] sm:$0xff] %v379_v21  ;;  %v383_v23 = vld [vmem:[%s7263_s9 + $0x2720] sm:$0xff]  ;;  %v385_v24 = vld [vmem:[%s7263_s9 + $0x2acc] sm:$0xff] }
  0x65   : >> { %382 = vst [vmem:[%s7259_s8 + $0x990] sm:$0xff] %v381_v22  ;;  %v387_v25 = vld [vmem:[%s7263_s9 + $0x2ad4] sm:$0xff]  ;;  %384 = vst [vmem:[%s7259_s8 + $0x998] sm:$0xff] %v383_v23  ;;  %v389_v26 = vld [vmem:[%s7263_s9 + $0x2adc] sm:$0xff] }
  0x66   : >> { %386 = vst [vmem:[%s7259_s8 + $0xa50] sm:$0xff] %v385_v24  ;;  %388 = vst [vmem:[%s7259_s8 + $0xa58] sm:$0xff] %v387_v25  ;;  %v391_v27 = vld [vmem:[%s7263_s9 + $0x2ae4] sm:$0xff]  ;;  %v393_v28 = vld [vmem:[%s7263_s9 + $0x2aec] sm:$0xff] }
  0x67   : >> { %390 = vst [vmem:[%s7259_s8 + $0xa60] sm:$0xff] %v389_v26  ;;  %392 = vst [vmem:[%s7259_s8 + $0xa68] sm:$0xff] %v391_v27  ;;  %v395_v29 = vld [vmem:[%s7263_s9 + $0x2af4] sm:$0xff]  ;;  %v397_v30 = vld [vmem:[%s7263_s9 + $0x2afc] sm:$0xff] }
  0x68   : >> { %394 = vst [vmem:[%s7259_s8 + $0xa70] sm:$0xff] %v393_v28  ;;  %v399_v31 = vld [vmem:[%s7263_s9 + $0x2b04] sm:$0xff]  ;;  %396 = vst [vmem:[%s7259_s8 + $0xa78] sm:$0xff] %v395_v29  ;;  %v401_v32 = vld [vmem:[%s7263_s9 + $0x2eb0] sm:$0xff] }
  0x69   : >> { %398 = vst [vmem:[%s7259_s8 + $0xa80] sm:$0xff] %v397_v30  ;;  %400 = vst [vmem:[%s7259_s8 + $0xa88] sm:$0xff] %v399_v31  ;;  %v403_v33 = vld [vmem:[%s7263_s9 + $0x2eb8] sm:$0xff]  ;;  %v405_v34 = vld [vmem:[%s7263_s9 + $0x2ec0] sm:$0xff] }
  0x6a   : >> { %402 = vst [vmem:[%s7259_s8 + $0xb40] sm:$0xff] %v401_v32  ;;  %404 = vst [vmem:[%s7259_s8 + $0xb48] sm:$0xff] %v403_v33  ;;  %v407_v35 = vld [vmem:[%s7263_s9 + $0x2ec8] sm:$0xff]  ;;  %v409_v36 = vld [vmem:[%s7263_s9 + $0x2ed0] sm:$0xff] }
  0x6b   : >> { %406 = vst [vmem:[%s7259_s8 + $0xb50] sm:$0xff] %v405_v34  ;;  %v411_v37 = vld [vmem:[%s7263_s9 + $0x2ed8] sm:$0xff]  ;;  %408 = vst [vmem:[%s7259_s8 + $0xb58] sm:$0xff] %v407_v35  ;;  %v413_v38 = vld [vmem:[%s7263_s9 + $0x2ee0] sm:$0xff]  ;;  %205 = sbr.rel (!%p202_p0) target bundleno = 57 (0x39), region = 235 }
  0x6c   : >> { %410 = vst [vmem:[%s7259_s8 + $0xb60] sm:$0xff] %v409_v36  ;;  %412 = vst [vmem:[%s7259_s8 + $0xb68] sm:$0xff] %v411_v37  ;;  %v415_v39 = vld [vmem:[%s7263_s9 + $0x2ee8] sm:$0xff]  ;;  %v417_v40 = vld [vmem:[%s7263_s9 + $0x3294] sm:$0xff] }
  0x6d   : >> { %414 = vst [vmem:[%s7259_s8 + $0xb70] sm:$0xff] %v413_v38  ;;  %416 = vst [vmem:[%s7259_s8 + $0xb78] sm:$0xff] %v415_v39  ;;  %v419_v41 = vld [vmem:[%s7263_s9 + $0x329c] sm:$0xff]  ;;  %v421_v42 = vld [vmem:[%s7263_s9 + $0x32a4] sm:$0xff] }
  0x6e   : >> { %418 = vst [vmem:[%s7259_s8 + $0xc30] sm:$0xff] %v417_v40  ;;  %v423_v43 = vld [vmem:[%s7263_s9 + $0x32ac] sm:$0xff]  ;;  %420 = vst [vmem:[%s7259_s8 + $0xc38] sm:$0xff] %v419_v41  ;;  %v425_v44 = vld [vmem:[%s7263_s9 + $0x32b4] sm:$0xff] }
  0x6f   : >> { %422 = vst [vmem:[%s7259_s8 + $0xc40] sm:$0xff] %v421_v42  ;;  %424 = vst [vmem:[%s7259_s8 + $0xc48] sm:$0xff] %v423_v43  ;;  %v427_v45 = vld [vmem:[%s7263_s9 + $0x32bc] sm:$0xff]  ;;  %v429_v46 = vld [vmem:[%s7263_s9 + $0x32c4] sm:$0xff] }
  0x70   : >> { %426 = vst [vmem:[%s7259_s8 + $0xc50] sm:$0xff] %v425_v44  ;;  %428 = vst [vmem:[%s7259_s8 + $0xc58] sm:$0xff] %v427_v45  ;;  %v431_v47 = vld [vmem:[%s7263_s9 + $0x32cc] sm:$0xff]  ;;  %s9290_s9 = smov %s7534_s21 }
  0x71   : >> { %430 = vst [vmem:[%s7259_s8 + $0xc60] sm:$0xff] %v429_v46  ;;  %432 = vst [vmem:[%s7259_s8 + $0xc68] sm:$0xff] %v431_v47  ;;  %s9289_s8 = smov %s7537_s22 }
  0x72 PF: > { %s7739_s23 = sand.u32 7, %s196_s6   ;;  %s6145_s24 = sshll.u32 %s7467_s7, 10 }
  0x73   : > { %s444_s25 = sshra.s32 %s6145_s24, 4  ;;  %p5623_p1 = scmp.le.s32.totalorder %s7739_s23, 0 }
  0x74   : > { %s7743_s26 = scalar_lea.vmem %s7452_s28, %s444_s25   ;;  %s7746_s27 = scalar_lea.vmem %s7456_s4, %s444_s25 [#allocation2]  }
  0x75   : > { %5495 = sbr.rel (%p5623_p1) target bundleno = 134 (0x86), region = 240  ;;  %s9292_s29 = smov (!%p5623_p1), %s7746_s27 }
  0x76   : > { %s9293_s8 = smov (!%p5623_p1), %s7743_s26  ;;  %s7755_s9 = smov (!%p5623_p1), 0  }
  0x77   : > { %s7757_s10 = smov (!%p5623_p1), 0  }
  0x7c LB: >> { %v460_v48 = vld [vmem:[%s7279_s8] sm:$0xff]  ;;  %v464_v50 = vld [vmem:[%s7279_s8 + $0x7c8] sm:$0xff]  ;;  %s488_s6 = sadd.s32 1, %s7283_s9  ;;  %v468_v52 = vld [vmem:[%s7279_s8 + $0xf90] sm:$0xff]  ;;  %s454_s10 = sadd.s32 1, %s7287_s10   ;;  %s7287_s10 = sphi %s7757_s10, %s454_s10   ;;  %s7283_s9 = sphi %s7755_s9, %s9294_s9   ;;  %s7279_s8 = sphi %s9293_s8, %s493_s8   ;;  %s7275_s29 = sphi %s9292_s29, %s494_s29  }
  0x7d   : >> { %v462_v49 = vld [vmem:[%s7279_s8 + $0x3e4] sm:$0xff]  ;;  %461 = vst [vmem:[%s7275_s29] sm:$0xff] %v460_v48  ;;  %465 = vst [vmem:[%s7275_s29 + $0x1e0] sm:$0xff] %v464_v50  ;;  %v466_v51 = vld [vmem:[%s7279_s8 + $0xbac] sm:$0xff]  ;;  %p489_p2 = scmp.ge.s32.totalorder %s488_s6, %s7739_s23  ;;  %p453_p3 = scmp.ge.s32.totalorder %s454_s10, %s7739_s23 }
  0x7e   : >> { %463 = vst [vmem:[%s7275_s29 + $0xf0] sm:$0xff] %v462_v49  ;;  %v470_v53 = vld [vmem:[%s7279_s8 + $0x1374] sm:$0xff]  ;;  %467 = vst [vmem:[%s7275_s29 + $0x2d0] sm:$0xff] %v466_v51  ;;  %v474_v55 = vld [vmem:[%s7279_s8 + $0x1b3c] sm:$0xff] }
  0x7f   : >> { %469 = vst [vmem:[%s7275_s29 + $0x3c0] sm:$0xff] %v468_v52  ;;  %471 = vst [vmem:[%s7275_s29 + $0x4b0] sm:$0xff] %v470_v53  ;;  %v472_v54 = vld [vmem:[%s7279_s8 + $0x1758] sm:$0xff]  ;;  %v476_v56 = vld [vmem:[%s7279_s8 + $0x1f20] sm:$0xff]  ;;  %s9321_s6 = smov (%p489_p2, %s488_s6), 0  ;;  %456 = sbr.rel (!%p453_p3) target bundleno = 124 (0x7c), region = 246 }
  0x80   : >> { %473 = vst [vmem:[%s7275_s29 + $0x5a0] sm:$0xff] %v472_v54  ;;  %475 = vst [vmem:[%s7275_s29 + $0x690] sm:$0xff] %v474_v55  ;;  %v478_v57 = vld [vmem:[%s7279_s8 + $0x2304] sm:$0xff]  ;;  %v482_v59 = vld [vmem:[%s7279_s8 + $0x2acc] sm:$0xff]  ;;  %s5624_s7 = sshll.u32 %s9321_s6, 3  ;;  %s9294_s9 = smov %s9321_s6 }
  0x81   : >> { %477 = vst [vmem:[%s7275_s29 + $0x780] sm:$0xff] %v476_v56  ;;  %v480_v58 = vld [vmem:[%s7279_s8 + $0x26e8] sm:$0xff]  ;;  %479 = vst [vmem:[%s7275_s29 + $0x870] sm:$0xff] %v478_v57  ;;  %v484_v60 = vld [vmem:[%s7279_s8 + $0x2eb0] sm:$0xff] }
  0x82   : >> { %481 = vst [vmem:[%s7275_s29 + $0x960] sm:$0xff] %v480_v58  ;;  %483 = vst [vmem:[%s7275_s29 + $0xa50] sm:$0xff] %v482_v59  ;;  %v486_v61 = vld [vmem:[%s7279_s8 + $0x3294] sm:$0xff]  ;;  %s493_s8 = scalar_lea.vmem %s7743_s26, %s5624_s7  }
  0x83   : >> { %485 = vst [vmem:[%s7275_s29 + $0xb40] sm:$0xff] %v484_v60  ;;  %487 = vst [vmem:[%s7275_s29 + $0xc30] sm:$0xff] %v486_v61  ;;  %s494_s29 = scalar_lea.vmem %s7746_s27, %s5624_s7 [#allocation2]  }
  0x86 PF: > { %497 = sbr.rel (%p192_p10) target bundleno = 242 (0xf2), region = 69  ;;  %s499_s11 = ssub.s32 (!%p192_p10), %s7454_s30, %s7460_s5 }
  0x87   : > { %s503_s17 = sshrl.u32 (!%p192_p10), %s7454_s30, 3  ;;  %s7816_s18 = scalar_lea.vmem (!%p192_p10), %s7452_s28, %s499_s11 }
  0x88   : > { %s7819_s21 = scalar_lea.vmem (!%p192_p10), %s7456_s4, %s499_s11 [#allocation2]  ;;  %s7823_s22 = sshrl.u32 (!%p192_p10), %s503_s17, 3 }
  0x89   : > { %p5626_p4 = scmp.le.s32.totalorder (!%p192_p10), %s7823_s22, 0 }
  0x8d   : > { %5509 = sbr.rel (%p5626_p4) target bundleno = 205 (0xcd), region = 251  ;;  %s9295_s23 = smov (!%p5626_p4), %s7456_s4 }
  0x8e   : > { %s9296_s24 = smov (!%p5626_p4), %s7452_s28  ;;  %s7832_s25 = smov (!%p5626_p4), 0  }
  0x8f   : > { %s7834_s26 = smov (!%p5626_p4), 0  }
  0x94 LB: >> { %v516_v62 = vld [vmem:[%s7295_s24] sm:$0xff]  ;;  %v518_v63 = vld [vmem:[%s7295_s24 + $0x8] sm:$0xff]  ;;  %v520_v0 = vld [vmem:[%s7295_s24 + $0x10] sm:$0xff]  ;;  %s740_s27 = sadd.s32 1, %s7299_s25  ;;  %s510_s26 = sadd.s32 1, %s7303_s26   ;;  %s7303_s26 = sphi %s7834_s26, %s510_s26   ;;  %s7299_s25 = sphi %s7832_s25, %s9299_s25   ;;  %s7295_s24 = sphi %s9296_s24, %s9298_s24   ;;  %s7291_s23 = sphi %s9295_s23, %s9297_s23  }
  0x95   : >> { %517 = vst [vmem:[%s7291_s23] sm:$0xff] %v516_v62  ;;  %519 = vst [vmem:[%s7291_s23 + $0x8] sm:$0xff] %v518_v63  ;;  %v522_v1 = vld [vmem:[%s7295_s24 + $0x18] sm:$0xff]  ;;  %v524_v2 = vld [vmem:[%s7295_s24 + $0x20] sm:$0xff]  ;;  %p741_p6 = scmp.ge.s32.totalorder %s740_s27, %s7823_s22  ;;  %p509_p7 = scmp.ge.s32.totalorder %s510_s26, %s7823_s22 }
  0x96   : >> { %521 = vst [vmem:[%s7291_s23 + $0x10] sm:$0xff] %v520_v0  ;;  %v526_v3 = vld [vmem:[%s7295_s24 + $0x28] sm:$0xff]  ;;  %523 = vst [vmem:[%s7291_s23 + $0x18] sm:$0xff] %v522_v1  ;;  %v528_v4 = vld [vmem:[%s7295_s24 + $0x30] sm:$0xff] }
  0x97   : >> { %525 = vst [vmem:[%s7291_s23 + $0x20] sm:$0xff] %v524_v2  ;;  %527 = vst [vmem:[%s7291_s23 + $0x28] sm:$0xff] %v526_v3  ;;  %v530_v5 = vld [vmem:[%s7295_s24 + $0x38] sm:$0xff]  ;;  %v532_v6 = vld [vmem:[%s7295_s24 + $0x3e4] sm:$0xff]  ;;  %s9323_s27 = smov (%p741_p6, %s740_s27), 0 }
  0x98   : >> { %529 = vst [vmem:[%s7291_s23 + $0x30] sm:$0xff] %v528_v4  ;;  %531 = vst [vmem:[%s7291_s23 + $0x38] sm:$0xff] %v530_v5  ;;  %v534_v7 = vld [vmem:[%s7295_s24 + $0x3ec] sm:$0xff]  ;;  %v536_v8 = vld [vmem:[%s7295_s24 + $0x3f4] sm:$0xff]  ;;  %s5627_s29 = sshll.u32 %s9323_s27, 6  ;;  %s9299_s25 = smov %s9323_s27 }
  0x99   : >> { %533 = vst [vmem:[%s7291_s23 + $0xf0] sm:$0xff] %v532_v6  ;;  %v538_v9 = vld [vmem:[%s7295_s24 + $0x3fc] sm:$0xff]  ;;  %535 = vst [vmem:[%s7291_s23 + $0xf8] sm:$0xff] %v534_v7  ;;  %v540_v10 = vld [vmem:[%s7295_s24 + $0x404] sm:$0xff]  ;;  %s7890_s8 = scalar_lea.vmem %s7452_s28, %s5627_s29   ;;  %s7893_s9 = scalar_lea.vmem %s7456_s4, %s5627_s29 [#allocation2]  }
  0x9a   : >> { %537 = vst [vmem:[%s7291_s23 + $0x100] sm:$0xff] %v536_v8  ;;  %539 = vst [vmem:[%s7291_s23 + $0x108] sm:$0xff] %v538_v9  ;;  %v542_v11 = vld [vmem:[%s7295_s24 + $0x40c] sm:$0xff]  ;;  %v544_v12 = vld [vmem:[%s7295_s24 + $0x414] sm:$0xff] }
  0x9b   : >> { %541 = vst [vmem:[%s7291_s23 + $0x110] sm:$0xff] %v540_v10  ;;  %543 = vst [vmem:[%s7291_s23 + $0x118] sm:$0xff] %v542_v11  ;;  %v546_v13 = vld [vmem:[%s7295_s24 + $0x41c] sm:$0xff]  ;;  %v548_v14 = vld [vmem:[%s7295_s24 + $0x7c8] sm:$0xff] }
  0x9c   : >> { %545 = vst [vmem:[%s7291_s23 + $0x120] sm:$0xff] %v544_v12  ;;  %v550_v15 = vld [vmem:[%s7295_s24 + $0x7d0] sm:$0xff]  ;;  %547 = vst [vmem:[%s7291_s23 + $0x128] sm:$0xff] %v546_v13  ;;  %v552_v16 = vld [vmem:[%s7295_s24 + $0x7d8] sm:$0xff] }
  0x9d   : >> { %549 = vst [vmem:[%s7291_s23 + $0x1e0] sm:$0xff] %v548_v14  ;;  %551 = vst [vmem:[%s7291_s23 + $0x1e8] sm:$0xff] %v550_v15  ;;  %v554_v17 = vld [vmem:[%s7295_s24 + $0x7e0] sm:$0xff]  ;;  %v556_v18 = vld [vmem:[%s7295_s24 + $0x7e8] sm:$0xff] }
  0x9e   : >> { %553 = vst [vmem:[%s7291_s23 + $0x1f0] sm:$0xff] %v552_v16  ;;  %555 = vst [vmem:[%s7291_s23 + $0x1f8] sm:$0xff] %v554_v17  ;;  %v558_v19 = vld [vmem:[%s7295_s24 + $0x7f0] sm:$0xff]  ;;  %v560_v20 = vld [vmem:[%s7295_s24 + $0x7f8] sm:$0xff] }
  0x9f   : >> { %557 = vst [vmem:[%s7291_s23 + $0x200] sm:$0xff] %v556_v18  ;;  %v562_v21 = vld [vmem:[%s7295_s24 + $0x800] sm:$0xff]  ;;  %559 = vst [vmem:[%s7291_s23 + $0x208] sm:$0xff] %v558_v19  ;;  %v564_v22 = vld [vmem:[%s7295_s24 + $0xbac] sm:$0xff] }
  0xa0   : >> { %561 = vst [vmem:[%s7291_s23 + $0x210] sm:$0xff] %v560_v20  ;;  %563 = vst [vmem:[%s7291_s23 + $0x218] sm:$0xff] %v562_v21  ;;  %v566_v23 = vld [vmem:[%s7295_s24 + $0xbb4] sm:$0xff]  ;;  %v568_v24 = vld [vmem:[%s7295_s24 + $0xbbc] sm:$0xff] }
  0xa1   : >> { %565 = vst [vmem:[%s7291_s23 + $0x2d0] sm:$0xff] %v564_v22  ;;  %567 = vst [vmem:[%s7291_s23 + $0x2d8] sm:$0xff] %v566_v23  ;;  %v570_v25 = vld [vmem:[%s7295_s24 + $0xbc4] sm:$0xff]  ;;  %v572_v26 = vld [vmem:[%s7295_s24 + $0xbcc] sm:$0xff] }
  0xa2   : >> { %569 = vst [vmem:[%s7291_s23 + $0x2e0] sm:$0xff] %v568_v24  ;;  %v574_v27 = vld [vmem:[%s7295_s24 + $0xbd4] sm:$0xff]  ;;  %571 = vst [vmem:[%s7291_s23 + $0x2e8] sm:$0xff] %v570_v25  ;;  %v576_v28 = vld [vmem:[%s7295_s24 + $0xbdc] sm:$0xff] }
  0xa3   : >> { %573 = vst [vmem:[%s7291_s23 + $0x2f0] sm:$0xff] %v572_v26  ;;  %575 = vst [vmem:[%s7291_s23 + $0x2f8] sm:$0xff] %v574_v27  ;;  %v578_v29 = vld [vmem:[%s7295_s24 + $0xbe4] sm:$0xff]  ;;  %v580_v30 = vld [vmem:[%s7295_s24 + $0xf90] sm:$0xff] }
  0xa4   : >> { %577 = vst [vmem:[%s7291_s23 + $0x300] sm:$0xff] %v576_v28  ;;  %579 = vst [vmem:[%s7291_s23 + $0x308] sm:$0xff] %v578_v29  ;;  %v582_v31 = vld [vmem:[%s7295_s24 + $0xf98] sm:$0xff]  ;;  %v584_v32 = vld [vmem:[%s7295_s24 + $0xfa0] sm:$0xff] }
  0xa5   : >> { %581 = vst [vmem:[%s7291_s23 + $0x3c0] sm:$0xff] %v580_v30  ;;  %v586_v33 = vld [vmem:[%s7295_s24 + $0xfa8] sm:$0xff]  ;;  %583 = vst [vmem:[%s7291_s23 + $0x3c8] sm:$0xff] %v582_v31  ;;  %v588_v34 = vld [vmem:[%s7295_s24 + $0xfb0] sm:$0xff] }
  0xa6   : >> { %585 = vst [vmem:[%s7291_s23 + $0x3d0] sm:$0xff] %v584_v32  ;;  %587 = vst [vmem:[%s7291_s23 + $0x3d8] sm:$0xff] %v586_v33  ;;  %v590_v35 = vld [vmem:[%s7295_s24 + $0xfb8] sm:$0xff]  ;;  %v592_v36 = vld [vmem:[%s7295_s24 + $0xfc0] sm:$0xff] }
  0xa7   : >> { %589 = vst [vmem:[%s7291_s23 + $0x3e0] sm:$0xff] %v588_v34  ;;  %591 = vst [vmem:[%s7291_s23 + $0x3e8] sm:$0xff] %v590_v35  ;;  %v594_v37 = vld [vmem:[%s7295_s24 + $0xfc8] sm:$0xff]  ;;  %v596_v38 = vld [vmem:[%s7295_s24 + $0x1374] sm:$0xff] }
  0xa8   : >> { %593 = vst [vmem:[%s7291_s23 + $0x3f0] sm:$0xff] %v592_v36  ;;  %v598_v39 = vld [vmem:[%s7295_s24 + $0x137c] sm:$0xff]  ;;  %595 = vst [vmem:[%s7291_s23 + $0x3f8] sm:$0xff] %v594_v37  ;;  %v600_v40 = vld [vmem:[%s7295_s24 + $0x1384] sm:$0xff] }
  0xa9   : >> { %597 = vst [vmem:[%s7291_s23 + $0x4b0] sm:$0xff] %v596_v38  ;;  %599 = vst [vmem:[%s7291_s23 + $0x4b8] sm:$0xff] %v598_v39  ;;  %v602_v41 = vld [vmem:[%s7295_s24 + $0x138c] sm:$0xff]  ;;  %v604_v42 = vld [vmem:[%s7295_s24 + $0x1394] sm:$0xff] }
  0xaa   : >> { %601 = vst [vmem:[%s7291_s23 + $0x4c0] sm:$0xff] %v600_v40  ;;  %603 = vst [vmem:[%s7291_s23 + $0x4c8] sm:$0xff] %v602_v41  ;;  %v606_v43 = vld [vmem:[%s7295_s24 + $0x139c] sm:$0xff]  ;;  %v608_v44 = vld [vmem:[%s7295_s24 + $0x13a4] sm:$0xff] }
  0xab   : >> { %605 = vst [vmem:[%s7291_s23 + $0x4d0] sm:$0xff] %v604_v42  ;;  %v610_v45 = vld [vmem:[%s7295_s24 + $0x13ac] sm:$0xff]  ;;  %607 = vst [vmem:[%s7291_s23 + $0x4d8] sm:$0xff] %v606_v43  ;;  %v612_v46 = vld [vmem:[%s7295_s24 + $0x1758] sm:$0xff] }
  0xac   : >> { %609 = vst [vmem:[%s7291_s23 + $0x4e0] sm:$0xff] %v608_v44  ;;  %611 = vst [vmem:[%s7291_s23 + $0x4e8] sm:$0xff] %v610_v45  ;;  %v614_v47 = vld [vmem:[%s7295_s24 + $0x1760] sm:$0xff]  ;;  %v616_v48 = vld [vmem:[%s7295_s24 + $0x1768] sm:$0xff] }
  0xad   : >> { %613 = vst [vmem:[%s7291_s23 + $0x5a0] sm:$0xff] %v612_v46  ;;  %615 = vst [vmem:[%s7291_s23 + $0x5a8] sm:$0xff] %v614_v47  ;;  %v618_v49 = vld [vmem:[%s7295_s24 + $0x1770] sm:$0xff]  ;;  %v620_v50 = vld [vmem:[%s7295_s24 + $0x1778] sm:$0xff] }
  0xae   : >> { %617 = vst [vmem:[%s7291_s23 + $0x5b0] sm:$0xff] %v616_v48  ;;  %v622_v51 = vld [vmem:[%s7295_s24 + $0x1780] sm:$0xff]  ;;  %619 = vst [vmem:[%s7291_s23 + $0x5b8] sm:$0xff] %v618_v49  ;;  %v624_v52 = vld [vmem:[%s7295_s24 + $0x1788] sm:$0xff] }
  0xaf   : >> { %621 = vst [vmem:[%s7291_s23 + $0x5c0] sm:$0xff] %v620_v50  ;;  %623 = vst [vmem:[%s7291_s23 + $0x5c8] sm:$0xff] %v622_v51  ;;  %v626_v53 = vld [vmem:[%s7295_s24 + $0x1790] sm:$0xff]  ;;  %v628_v54 = vld [vmem:[%s7295_s24 + $0x1b3c] sm:$0xff] }
  0xb0   : >> { %625 = vst [vmem:[%s7291_s23 + $0x5d0] sm:$0xff] %v624_v52  ;;  %627 = vst [vmem:[%s7291_s23 + $0x5d8] sm:$0xff] %v626_v53  ;;  %v630_v55 = vld [vmem:[%s7295_s24 + $0x1b44] sm:$0xff]  ;;  %v632_v56 = vld [vmem:[%s7295_s24 + $0x1b4c] sm:$0xff] }
  0xb1   : >> { %629 = vst [vmem:[%s7291_s23 + $0x690] sm:$0xff] %v628_v54  ;;  %v634_v57 = vld [vmem:[%s7295_s24 + $0x1b54] sm:$0xff]  ;;  %631 = vst [vmem:[%s7291_s23 + $0x698] sm:$0xff] %v630_v55  ;;  %v636_v58 = vld [vmem:[%s7295_s24 + $0x1b5c] sm:$0xff] }
  0xb2   : >> { %633 = vst [vmem:[%s7291_s23 + $0x6a0] sm:$0xff] %v632_v56  ;;  %635 = vst [vmem:[%s7291_s23 + $0x6a8] sm:$0xff] %v634_v57  ;;  %v638_v59 = vld [vmem:[%s7295_s24 + $0x1b64] sm:$0xff]  ;;  %v640_v60 = vld [vmem:[%s7295_s24 + $0x1b6c] sm:$0xff] }
  0xb3   : >> { %637 = vst [vmem:[%s7291_s23 + $0x6b0] sm:$0xff] %v636_v58  ;;  %639 = vst [vmem:[%s7291_s23 + $0x6b8] sm:$0xff] %v638_v59  ;;  %v642_v61 = vld [vmem:[%s7295_s24 + $0x1b74] sm:$0xff]  ;;  %v644_v62 = vld [vmem:[%s7295_s24 + $0x1f20] sm:$0xff] }
  0xb4   : >> { %641 = vst [vmem:[%s7291_s23 + $0x6c0] sm:$0xff] %v640_v60  ;;  %v646_v63 = vld [vmem:[%s7295_s24 + $0x1f28] sm:$0xff]  ;;  %643 = vst [vmem:[%s7291_s23 + $0x6c8] sm:$0xff] %v642_v61  ;;  %v648_v0 = vld [vmem:[%s7295_s24 + $0x1f30] sm:$0xff] }
  0xb5   : >> { %645 = vst [vmem:[%s7291_s23 + $0x780] sm:$0xff] %v644_v62  ;;  %647 = vst [vmem:[%s7291_s23 + $0x788] sm:$0xff] %v646_v63  ;;  %v650_v1 = vld [vmem:[%s7295_s24 + $0x1f38] sm:$0xff]  ;;  %v652_v2 = vld [vmem:[%s7295_s24 + $0x1f40] sm:$0xff] }
  0xb6   : >> { %649 = vst [vmem:[%s7291_s23 + $0x790] sm:$0xff] %v648_v0  ;;  %651 = vst [vmem:[%s7291_s23 + $0x798] sm:$0xff] %v650_v1  ;;  %v654_v3 = vld [vmem:[%s7295_s24 + $0x1f48] sm:$0xff]  ;;  %v656_v4 = vld [vmem:[%s7295_s24 + $0x1f50] sm:$0xff] }
  0xb7   : >> { %653 = vst [vmem:[%s7291_s23 + $0x7a0] sm:$0xff] %v652_v2  ;;  %v658_v5 = vld [vmem:[%s7295_s24 + $0x1f58] sm:$0xff]  ;;  %655 = vst [vmem:[%s7291_s23 + $0x7a8] sm:$0xff] %v654_v3  ;;  %v660_v6 = vld [vmem:[%s7295_s24 + $0x2304] sm:$0xff] }
  0xb8   : >> { %657 = vst [vmem:[%s7291_s23 + $0x7b0] sm:$0xff] %v656_v4  ;;  %659 = vst [vmem:[%s7291_s23 + $0x7b8] sm:$0xff] %v658_v5  ;;  %v662_v7 = vld [vmem:[%s7295_s24 + $0x230c] sm:$0xff]  ;;  %v664_v8 = vld [vmem:[%s7295_s24 + $0x2314] sm:$0xff] }
  0xb9   : >> { %661 = vst [vmem:[%s7291_s23 + $0x870] sm:$0xff] %v660_v6  ;;  %663 = vst [vmem:[%s7291_s23 + $0x878] sm:$0xff] %v662_v7  ;;  %v666_v9 = vld [vmem:[%s7295_s24 + $0x231c] sm:$0xff]  ;;  %v668_v10 = vld [vmem:[%s7295_s24 + $0x2324] sm:$0xff] }
  0xba   : >> { %665 = vst [vmem:[%s7291_s23 + $0x880] sm:$0xff] %v664_v8  ;;  %v670_v11 = vld [vmem:[%s7295_s24 + $0x232c] sm:$0xff]  ;;  %667 = vst [vmem:[%s7291_s23 + $0x888] sm:$0xff] %v666_v9  ;;  %v672_v12 = vld [vmem:[%s7295_s24 + $0x2334] sm:$0xff] }
  0xbb   : >> { %669 = vst [vmem:[%s7291_s23 + $0x890] sm:$0xff] %v668_v10  ;;  %671 = vst [vmem:[%s7291_s23 + $0x898] sm:$0xff] %v670_v11  ;;  %v674_v13 = vld [vmem:[%s7295_s24 + $0x233c] sm:$0xff]  ;;  %v676_v14 = vld [vmem:[%s7295_s24 + $0x26e8] sm:$0xff] }
  0xbc   : >> { %673 = vst [vmem:[%s7291_s23 + $0x8a0] sm:$0xff] %v672_v12  ;;  %675 = vst [vmem:[%s7291_s23 + $0x8a8] sm:$0xff] %v674_v13  ;;  %v678_v15 = vld [vmem:[%s7295_s24 + $0x26f0] sm:$0xff]  ;;  %v680_v16 = vld [vmem:[%s7295_s24 + $0x26f8] sm:$0xff] }
  0xbd   : >> { %677 = vst [vmem:[%s7291_s23 + $0x960] sm:$0xff] %v676_v14  ;;  %v682_v17 = vld [vmem:[%s7295_s24 + $0x2700] sm:$0xff]  ;;  %679 = vst [vmem:[%s7291_s23 + $0x968] sm:$0xff] %v678_v15  ;;  %v684_v18 = vld [vmem:[%s7295_s24 + $0x2708] sm:$0xff] }
  0xbe   : >> { %681 = vst [vmem:[%s7291_s23 + $0x970] sm:$0xff] %v680_v16  ;;  %683 = vst [vmem:[%s7291_s23 + $0x978] sm:$0xff] %v682_v17  ;;  %v686_v19 = vld [vmem:[%s7295_s24 + $0x2710] sm:$0xff]  ;;  %v688_v20 = vld [vmem:[%s7295_s24 + $0x2718] sm:$0xff] }
  0xbf   : >> { %685 = vst [vmem:[%s7291_s23 + $0x980] sm:$0xff] %v684_v18  ;;  %687 = vst [vmem:[%s7291_s23 + $0x988] sm:$0xff] %v686_v19  ;;  %v690_v21 = vld [vmem:[%s7295_s24 + $0x2720] sm:$0xff]  ;;  %v692_v22 = vld [vmem:[%s7295_s24 + $0x2acc] sm:$0xff] }
  0xc0   : >> { %689 = vst [vmem:[%s7291_s23 + $0x990] sm:$0xff] %v688_v20  ;;  %v694_v23 = vld [vmem:[%s7295_s24 + $0x2ad4] sm:$0xff]  ;;  %691 = vst [vmem:[%s7291_s23 + $0x998] sm:$0xff] %v690_v21  ;;  %v696_v24 = vld [vmem:[%s7295_s24 + $0x2adc] sm:$0xff] }
  0xc1   : >> { %693 = vst [vmem:[%s7291_s23 + $0xa50] sm:$0xff] %v692_v22  ;;  %695 = vst [vmem:[%s7291_s23 + $0xa58] sm:$0xff] %v694_v23  ;;  %v698_v25 = vld [vmem:[%s7295_s24 + $0x2ae4] sm:$0xff]  ;;  %v700_v26 = vld [vmem:[%s7295_s24 + $0x2aec] sm:$0xff] }
  0xc2   : >> { %697 = vst [vmem:[%s7291_s23 + $0xa60] sm:$0xff] %v696_v24  ;;  %699 = vst [vmem:[%s7291_s23 + $0xa68] sm:$0xff] %v698_v25  ;;  %v702_v27 = vld [vmem:[%s7295_s24 + $0x2af4] sm:$0xff]  ;;  %v704_v28 = vld [vmem:[%s7295_s24 + $0x2afc] sm:$0xff] }
  0xc3   : >> { %701 = vst [vmem:[%s7291_s23 + $0xa70] sm:$0xff] %v700_v26  ;;  %v706_v29 = vld [vmem:[%s7295_s24 + $0x2b04] sm:$0xff]  ;;  %703 = vst [vmem:[%s7291_s23 + $0xa78] sm:$0xff] %v702_v27  ;;  %v708_v30 = vld [vmem:[%s7295_s24 + $0x2eb0] sm:$0xff] }
  0xc4   : >> { %705 = vst [vmem:[%s7291_s23 + $0xa80] sm:$0xff] %v704_v28  ;;  %707 = vst [vmem:[%s7291_s23 + $0xa88] sm:$0xff] %v706_v29  ;;  %v710_v31 = vld [vmem:[%s7295_s24 + $0x2eb8] sm:$0xff]  ;;  %v712_v32 = vld [vmem:[%s7295_s24 + $0x2ec0] sm:$0xff] }
  0xc5   : >> { %709 = vst [vmem:[%s7291_s23 + $0xb40] sm:$0xff] %v708_v30  ;;  %711 = vst [vmem:[%s7291_s23 + $0xb48] sm:$0xff] %v710_v31  ;;  %v714_v33 = vld [vmem:[%s7295_s24 + $0x2ec8] sm:$0xff]  ;;  %v716_v34 = vld [vmem:[%s7295_s24 + $0x2ed0] sm:$0xff] }
  0xc6   : >> { %713 = vst [vmem:[%s7291_s23 + $0xb50] sm:$0xff] %v712_v32  ;;  %v718_v35 = vld [vmem:[%s7295_s24 + $0x2ed8] sm:$0xff]  ;;  %715 = vst [vmem:[%s7291_s23 + $0xb58] sm:$0xff] %v714_v33  ;;  %v720_v36 = vld [vmem:[%s7295_s24 + $0x2ee0] sm:$0xff]  ;;  %512 = sbr.rel (!%p509_p7) target bundleno = 148 (0x94), region = 257 }
  0xc7   : >> { %717 = vst [vmem:[%s7291_s23 + $0xb60] sm:$0xff] %v716_v34  ;;  %719 = vst [vmem:[%s7291_s23 + $0xb68] sm:$0xff] %v718_v35  ;;  %v722_v37 = vld [vmem:[%s7295_s24 + $0x2ee8] sm:$0xff]  ;;  %v724_v38 = vld [vmem:[%s7295_s24 + $0x3294] sm:$0xff] }
  0xc8   : >> { %721 = vst [vmem:[%s7291_s23 + $0xb70] sm:$0xff] %v720_v36  ;;  %723 = vst [vmem:[%s7291_s23 + $0xb78] sm:$0xff] %v722_v37  ;;  %v726_v39 = vld [vmem:[%s7295_s24 + $0x329c] sm:$0xff]  ;;  %v728_v40 = vld [vmem:[%s7295_s24 + $0x32a4] sm:$0xff] }
  0xc9   : >> { %725 = vst [vmem:[%s7291_s23 + $0xc30] sm:$0xff] %v724_v38  ;;  %v730_v41 = vld [vmem:[%s7295_s24 + $0x32ac] sm:$0xff]  ;;  %727 = vst [vmem:[%s7291_s23 + $0xc38] sm:$0xff] %v726_v39  ;;  %v732_v42 = vld [vmem:[%s7295_s24 + $0x32b4] sm:$0xff] }
  0xca   : >> { %729 = vst [vmem:[%s7291_s23 + $0xc40] sm:$0xff] %v728_v40  ;;  %731 = vst [vmem:[%s7291_s23 + $0xc48] sm:$0xff] %v730_v41  ;;  %v734_v43 = vld [vmem:[%s7295_s24 + $0x32bc] sm:$0xff]  ;;  %v736_v44 = vld [vmem:[%s7295_s24 + $0x32c4] sm:$0xff] }
  0xcb   : >> { %733 = vst [vmem:[%s7291_s23 + $0xc50] sm:$0xff] %v732_v42  ;;  %735 = vst [vmem:[%s7291_s23 + $0xc58] sm:$0xff] %v734_v43  ;;  %v738_v45 = vld [vmem:[%s7295_s24 + $0x32cc] sm:$0xff]  ;;  %s9298_s24 = smov %s7890_s8 }
  0xcc   : >> { %737 = vst [vmem:[%s7291_s23 + $0xc60] sm:$0xff] %v736_v44  ;;  %739 = vst [vmem:[%s7291_s23 + $0xc68] sm:$0xff] %v738_v45  ;;  %s9297_s23 = smov %s7893_s9 }
  0xcd PF: > { %s8095_s10 = sand.u32 7, %s503_s17   ;;  %s6147_s6 = sshll.u32 %s7823_s22, 10 }
  0xce   : > { %s751_s7 = sshra.s32 %s6147_s6, 4  ;;  %p5632_p8 = scmp.le.s32.totalorder %s8095_s10, 0 }
  0xcf   : > { %s8099_s11 = scalar_lea.vmem %s7452_s28, %s751_s7   ;;  %s8102_s29 = scalar_lea.vmem %s7456_s4, %s751_s7 [#allocation2]  }
  0xd0   : > { %5523 = sbr.rel (%p5632_p8) target bundleno = 225 (0xe1), region = 262  ;;  %s9300_s23 = smov (!%p5632_p8), %s8102_s29 }
  0xd1   : > { %s9301_s24 = smov (!%p5632_p8), %s8099_s11  ;;  %s8111_s25 = smov (!%p5632_p8), 0  }
  0xd2   : > { %s8113_s26 = smov (!%p5632_p8), 0  }
  0xd7 LB: >> { %v767_v46 = vld [vmem:[%s7311_s24] sm:$0xff]  ;;  %v771_v48 = vld [vmem:[%s7311_s24 + $0x7c8] sm:$0xff]  ;;  %s795_s17 = sadd.s32 1, %s7315_s25  ;;  %v775_v50 = vld [vmem:[%s7311_s24 + $0xf90] sm:$0xff]  ;;  %s761_s26 = sadd.s32 1, %s7319_s26   ;;  %s7319_s26 = sphi %s8113_s26, %s761_s26   ;;  %s7315_s25 = sphi %s8111_s25, %s9302_s25   ;;  %s7311_s24 = sphi %s9301_s24, %s800_s24   ;;  %s7307_s23 = sphi %s9300_s23, %s801_s23  }
  0xd8   : >> { %v769_v47 = vld [vmem:[%s7311_s24 + $0x3e4] sm:$0xff]  ;;  %768 = vst [vmem:[%s7307_s23] sm:$0xff] %v767_v46  ;;  %772 = vst [vmem:[%s7307_s23 + $0x1e0] sm:$0xff] %v771_v48  ;;  %v773_v49 = vld [vmem:[%s7311_s24 + $0xbac] sm:$0xff]  ;;  %p796_p9 = scmp.ge.s32.totalorder %s795_s17, %s8095_s10  ;;  %p760_p10 = scmp.ge.s32.totalorder %s761_s26, %s8095_s10 }
  0xd9   : >> { %770 = vst [vmem:[%s7307_s23 + $0xf0] sm:$0xff] %v769_v47  ;;  %v777_v51 = vld [vmem:[%s7311_s24 + $0x1374] sm:$0xff]  ;;  %774 = vst [vmem:[%s7307_s23 + $0x2d0] sm:$0xff] %v773_v49  ;;  %v781_v53 = vld [vmem:[%s7311_s24 + $0x1b3c] sm:$0xff] }
  0xda   : >> { %776 = vst [vmem:[%s7307_s23 + $0x3c0] sm:$0xff] %v775_v50  ;;  %778 = vst [vmem:[%s7307_s23 + $0x4b0] sm:$0xff] %v777_v51  ;;  %v779_v52 = vld [vmem:[%s7311_s24 + $0x1758] sm:$0xff]  ;;  %v783_v54 = vld [vmem:[%s7311_s24 + $0x1f20] sm:$0xff]  ;;  %s9325_s17 = smov (%p796_p9, %s795_s17), 0  ;;  %763 = sbr.rel (!%p760_p10) target bundleno = 215 (0xd7), region = 268 }
  0xdb   : >> { %780 = vst [vmem:[%s7307_s23 + $0x5a0] sm:$0xff] %v779_v52  ;;  %782 = vst [vmem:[%s7307_s23 + $0x690] sm:$0xff] %v781_v53  ;;  %v785_v55 = vld [vmem:[%s7311_s24 + $0x2304] sm:$0xff]  ;;  %v789_v57 = vld [vmem:[%s7311_s24 + $0x2acc] sm:$0xff]  ;;  %s5633_s22 = sshll.u32 %s9325_s17, 3  ;;  %s9302_s25 = smov %s9325_s17 }
  0xdc   : >> { %784 = vst [vmem:[%s7307_s23 + $0x780] sm:$0xff] %v783_v54  ;;  %v787_v56 = vld [vmem:[%s7311_s24 + $0x26e8] sm:$0xff]  ;;  %786 = vst [vmem:[%s7307_s23 + $0x870] sm:$0xff] %v785_v55  ;;  %v791_v58 = vld [vmem:[%s7311_s24 + $0x2eb0] sm:$0xff] }
  0xdd   : >> { %788 = vst [vmem:[%s7307_s23 + $0x960] sm:$0xff] %v787_v56  ;;  %790 = vst [vmem:[%s7307_s23 + $0xa50] sm:$0xff] %v789_v57  ;;  %v793_v59 = vld [vmem:[%s7311_s24 + $0x3294] sm:$0xff]  ;;  %s800_s24 = scalar_lea.vmem %s8099_s11, %s5633_s22  }
  0xde   : >> { %792 = vst [vmem:[%s7307_s23 + $0xb40] sm:$0xff] %v791_v58  ;;  %794 = vst [vmem:[%s7307_s23 + $0xc30] sm:$0xff] %v793_v59  ;;  %s801_s23 = scalar_lea.vmem %s8102_s29, %s5633_s22 [#allocation2]  }
  0xe1 PF: > { %s7385_s27 = smov 0  }
  0xe2   : > { %s802_s8 = sshllo.u32 %s7385_s27, %s7460_s5 }
  0xe3   : > { %v811_v60 = vld [vmem:[%s7816_s18] sm:%s802_s8]  ;;  %v815_v62 = vld [vmem:[%s7816_s18 + $0x7c8] sm:%s802_s8] }
  0xe4   : > { %v813_v61 = vld [vmem:[%s7816_s18 + $0x3e4] sm:%s802_s8]  ;;  %812 = vst [vmem:[%s7819_s21] sm:%s802_s8] %v811_v60 }
  0xe5   : > { %814 = vst [vmem:[%s7819_s21 + $0xf0] sm:%s802_s8] %v813_v61  ;;  %v817_v63 = vld [vmem:[%s7816_s18 + $0xbac] sm:%s802_s8] }
  0xe6   : > { %816 = vst [vmem:[%s7819_s21 + $0x1e0] sm:%s802_s8] %v815_v62  ;;  %818 = vst [vmem:[%s7819_s21 + $0x2d0] sm:%s802_s8] %v817_v63 }
  0xe7   : > { %v819_v0 = vld [vmem:[%s7816_s18 + $0xf90] sm:%s802_s8]  ;;  %v823_v2 = vld [vmem:[%s7816_s18 + $0x1758] sm:%s802_s8] }
  0xe8   : > { %v821_v1 = vld [vmem:[%s7816_s18 + $0x1374] sm:%s802_s8]  ;;  %820 = vst [vmem:[%s7819_s21 + $0x3c0] sm:%s802_s8] %v819_v0 }
  0xe9   : > { %822 = vst [vmem:[%s7819_s21 + $0x4b0] sm:%s802_s8] %v821_v1  ;;  %v825_v3 = vld [vmem:[%s7816_s18 + $0x1b3c] sm:%s802_s8] }
  0xea   : > { %824 = vst [vmem:[%s7819_s21 + $0x5a0] sm:%s802_s8] %v823_v2  ;;  %826 = vst [vmem:[%s7819_s21 + $0x690] sm:%s802_s8] %v825_v3 }
  0xeb   : > { %v827_v4 = vld [vmem:[%s7816_s18 + $0x1f20] sm:%s802_s8]  ;;  %v831_v6 = vld [vmem:[%s7816_s18 + $0x26e8] sm:%s802_s8] }
  0xec   : > { %v829_v5 = vld [vmem:[%s7816_s18 + $0x2304] sm:%s802_s8]  ;;  %828 = vst [vmem:[%s7819_s21 + $0x780] sm:%s802_s8] %v827_v4 }
  0xed   : > { %830 = vst [vmem:[%s7819_s21 + $0x870] sm:%s802_s8] %v829_v5  ;;  %v833_v7 = vld [vmem:[%s7816_s18 + $0x2acc] sm:%s802_s8] }
  0xee   : > { %832 = vst [vmem:[%s7819_s21 + $0x960] sm:%s802_s8] %v831_v6  ;;  %834 = vst [vmem:[%s7819_s21 + $0xa50] sm:%s802_s8] %v833_v7 }
  0xef   : > { %v835_v8 = vld [vmem:[%s7816_s18 + $0x2eb0] sm:%s802_s8] }
  0xf0   : > { %v837_v9 = vld [vmem:[%s7816_s18 + $0x3294] sm:%s802_s8]  ;;  %836 = vst [vmem:[%s7819_s21 + $0xb40] sm:%s802_s8] %v835_v8 }
  0xf1   : > { %838 = vst [vmem:[%s7819_s21 + $0xc30] sm:%s802_s8] %v837_v9 }
  0xf2 PF: > { %p5635_p11 = scmp.ge.u32.totalorder %s7454_s30, 8 }
  0xf3   : > { %s7386_s5 = smov (!%p5635_p11), 0  }
  0xf4   : > { %153 = sbr.rel (%p5635_p11) target bundleno = 260 (0x104), region = 40  ;;  %s154_s18 = sshllo.u32 (!%p5635_p11), %s7386_s5, %s7454_s30 }
  0xf5   : > { %v163_v10 = vld [vmem:[%s7452_s28] sm:%s154_s18] (!%p5635_p11)  ;;  %v167_v12 = vld [vmem:[%s7452_s28 + $0x7c8] sm:%s154_s18] (!%p5635_p11) }
  0xf6   : > { %v165_v11 = vld [vmem:[%s7452_s28 + $0x3e4] sm:%s154_s18] (!%p5635_p11)  ;;  %164 = vst [vmem:[%s7456_s4] sm:%s154_s18] (!%p5635_p11), %v163_v10 }
  0xf7   : > { %166 = vst [vmem:[%s7456_s4 + $0xf0] sm:%s154_s18] (!%p5635_p11), %v165_v11  ;;  %v169_v13 = vld [vmem:[%s7452_s28 + $0xbac] sm:%s154_s18] (!%p5635_p11) }
  0xf8   : > { %168 = vst [vmem:[%s7456_s4 + $0x1e0] sm:%s154_s18] (!%p5635_p11), %v167_v12  ;;  %170 = vst [vmem:[%s7456_s4 + $0x2d0] sm:%s154_s18] (!%p5635_p11), %v169_v13 }
  0xf9   : > { %v171_v14 = vld [vmem:[%s7452_s28 + $0xf90] sm:%s154_s18] (!%p5635_p11)  ;;  %v175_v16 = vld [vmem:[%s7452_s28 + $0x1758] sm:%s154_s18] (!%p5635_p11) }
  0xfa   : > { %v173_v15 = vld [vmem:[%s7452_s28 + $0x1374] sm:%s154_s18] (!%p5635_p11)  ;;  %172 = vst [vmem:[%s7456_s4 + $0x3c0] sm:%s154_s18] (!%p5635_p11), %v171_v14 }
  0xfb   : > { %174 = vst [vmem:[%s7456_s4 + $0x4b0] sm:%s154_s18] %v173_v15  ;;  %v177_v17 = vld [vmem:[%s7452_s28 + $0x1b3c] sm:%s154_s18] }
  0xfc   : > { %176 = vst [vmem:[%s7456_s4 + $0x5a0] sm:%s154_s18] %v175_v16  ;;  %178 = vst [vmem:[%s7456_s4 + $0x690] sm:%s154_s18] %v177_v17 }
  0xfd   : > { %v179_v18 = vld [vmem:[%s7452_s28 + $0x1f20] sm:%s154_s18]  ;;  %v183_v20 = vld [vmem:[%s7452_s28 + $0x26e8] sm:%s154_s18] }
  0xfe   : > { %v181_v19 = vld [vmem:[%s7452_s28 + $0x2304] sm:%s154_s18]  ;;  %180 = vst [vmem:[%s7456_s4 + $0x780] sm:%s154_s18] %v179_v18 }
  0xff   : > { %182 = vst [vmem:[%s7456_s4 + $0x870] sm:%s154_s18] %v181_v19  ;;  %v185_v21 = vld [vmem:[%s7452_s28 + $0x2acc] sm:%s154_s18] }
 0x100   : > { %184 = vst [vmem:[%s7456_s4 + $0x960] sm:%s154_s18] %v183_v20  ;;  %186 = vst [vmem:[%s7456_s4 + $0xa50] sm:%s154_s18] %v185_v21 }
 0x101   : > { %v187_v22 = vld [vmem:[%s7452_s28 + $0x2eb0] sm:%s154_s18] }
 0x102   : > { %v189_v23 = vld [vmem:[%s7452_s28 + $0x3294] sm:%s154_s18]  ;;  %188 = vst [vmem:[%s7456_s4 + $0xb40] sm:%s154_s18] %v187_v22 }
 0x103   : > { %190 = vst [vmem:[%s7456_s4 + $0xc30] sm:%s154_s18] %v189_v23 }
 0x104 PF: > { %p5636_p12 = scmp.ge.s32.totalorder %s7255_s14, 1  ;;  %p841_p13 = scmp.lt.s32.totalorder %s7255_s14, 6 }
 0x106   : > { %p842_p0 = pnand %p5636_p12, %p841_p13 }
 0x107   : > { %s848_s30 = sand.u32 (!%p842_p0), 1, %s7247_s12   ;;  %v1302_v24 = vld [vmem:[%s9284_s2] sm:$0xff] (!%p842_p0)  ;;  %v7387_v25 = vmov (!%p842_p0), 0   ;;  %vm3408_vm0 = vcmask (!%p842_p0), 916480  }
 0x108   : > { %845 = sbr.rel (%p842_p0) target bundleno = 1074 (0x432), region = 94  ;;  %3444 = vmatprep.mubr.bf16.mxu0 (!%p842_p0), %v7387_v25  ;;  %3485 = vmatprep.mubr.bf16.mxu1 (!%p842_p0), %v7387_v25  ;;  %v8271_v56 = vld [vmem:[%s9282_s0] sm:$0xf] (!%p842_p0) }
 0x109   : > { %s6185_s28 = smul.u32 (!%p842_p0), 3360, %s848_s30  ;;  %6472 = vset.pattern.permute.xlu0 (!%p842_p0), %v7387_v25 }
 0x10a   : > { %1305 = vperm.xlu0 (!%p842_p0), %6472, %v1302_v24   ;;  %s8546_s11 = smul.u32 (!%p842_p0), 240, %s848_s30 }
 0x10b   : > { %s8236_s14 = scalar_lea.vmem (!%p842_p0), [#allocation2], %s6185_s28 }
 0x10c   : > { %v6473_v26 = vld [vmem:[%s8236_s14 + $0x4] ss:$240 sps:$4 sm:$0xff] (!%p842_p0)   ;;  %v6475_v27 = vld [vmem:[%s8236_s14 + $0xc] ss:$240 sps:$4 sm:$0xff] (!%p842_p0)   ;;  %v6477_v28 = vld [vmem:[%s8236_s14] ss:$240 sps:$4 sm:$0xff] (!%p842_p0)  }
 0x10d   : > { %3412 = vmatprep.subr.bf16.mxu0 (!%p842_p0), %v6473_v26  ;;  %v6478_v29 = vld [vmem:[%s8236_s14 + $0x8] ss:$240 sps:$4 sm:$0xff] (!%p842_p0)   ;;  %3453 = vmatprep.subr.bf16.mxu1 (!%p842_p0), %v6475_v27  ;;  %v6479_v30 = vld [vmem:[%s8236_s14 + $0x1e4] ss:$240 sps:$4 sm:$0xff] (!%p842_p0)   ;;  %v6481_v31 = vld [vmem:[%s8236_s14 + $0x1ec] ss:$240 sps:$4 sm:$0xff] (!%p842_p0)  }
 0x10e   : > { %3413 = vmatpush1.bf16.msra.mxu0 (!%p842_p0), %v6477_v28  ;;  %3454 = vmatpush1.bf16.msra.mxu1 (!%p842_p0), %v6478_v29  ;;  %v6483_v32 = vld [vmem:[%s8236_s14 + $0x1e0] ss:$240 sps:$4 sm:$0xff] (!%p842_p0)   ;;  %v6484_v33 = vld [vmem:[%s8236_s14 + $0x1e8] ss:$240 sps:$4 sm:$0xff] (!%p842_p0)   ;;  %v6485_v34 = vld [vmem:[%s8236_s14 + $0x3c4] ss:$240 sps:$4 sm:$0xff] (!%p842_p0)  }
 0x10f   : > { %3414 = vmatprep.subr.bf16.mxu0 %v6479_v30  ;;  %3455 = vmatprep.subr.bf16.mxu1 %v6481_v31  ;;  %v6487_v35 = vld [vmem:[%s8236_s14 + $0x3cc] ss:$240 sps:$4 sm:$0xff]   ;;  %v6489_v36 = vld [vmem:[%s8236_s14 + $0x3c0] ss:$240 sps:$4 sm:$0xff]   ;;  %v6490_v37 = vld [vmem:[%s8236_s14 + $0x3c8] ss:$240 sps:$4 sm:$0xff]  }
 0x110   : > { %v6491_v38 = vld [vmem:[%s8236_s14 + $0x5a4] ss:$240 sps:$4 sm:$0xff]   ;;  %v6493_v39 = vld [vmem:[%s8236_s14 + $0x5ac] ss:$240 sps:$4 sm:$0xff]   ;;  %v6495_v40 = vld [vmem:[%s8236_s14 + $0x5a0] ss:$240 sps:$4 sm:$0xff]  }
 0x111   : > { %v6496_v41 = vld [vmem:[%s8236_s14 + $0x5a8] ss:$240 sps:$4 sm:$0xff]   ;;  %v6497_v42 = vld [vmem:[%s8236_s14 + $0x784] ss:$240 sps:$4 sm:$0xff]   ;;  %v6499_v43 = vld [vmem:[%s8236_s14 + $0x78c] ss:$240 sps:$4 sm:$0xff]  }
 0x112   : > { %3415 = vmatpush1.bf16.msra.mxu0 %v6483_v32  ;;  %3456 = vmatpush1.bf16.msra.mxu1 %v6484_v33  ;;  %v6501_v44 = vld [vmem:[%s8236_s14 + $0x780] ss:$240 sps:$4 sm:$0xff]   ;;  %v6502_v45 = vld [vmem:[%s8236_s14 + $0x788] ss:$240 sps:$4 sm:$0xff]   ;;  %v6503_v46 = vld [vmem:[%s8236_s14 + $0x964] ss:$240 sps:$4 sm:$0xff]  }
 0x113   : > { %3416 = vmatprep.subr.bf16.mxu0 %v6485_v34  ;;  %3457 = vmatprep.subr.bf16.mxu1 %v6487_v35  ;;  %v6505_v47 = vld [vmem:[%s8236_s14 + $0x96c] ss:$240 sps:$4 sm:$0xff]   ;;  %v6507_v48 = vld [vmem:[%s8236_s14 + $0x960] ss:$240 sps:$4 sm:$0xff]   ;;  %v6508_v49 = vld [vmem:[%s8236_s14 + $0x968] ss:$240 sps:$4 sm:$0xff]  }
 0x114   : > { %v6509_v50 = vld [vmem:[%s8236_s14 + $0xb44] ss:$240 sps:$4 sm:$0xff]   ;;  %v6511_v51 = vld [vmem:[%s8236_s14 + $0xb4c] ss:$240 sps:$4 sm:$0xff]   ;;  %v6513_v52 = vld [vmem:[%s8236_s14 + $0xb40] ss:$240 sps:$4 sm:$0xff]  }
 0x115   : > { %v6514_v53 = vld [vmem:[%s8236_s14 + $0xb48] ss:$240 sps:$4 sm:$0xff]   ;;  %v6517_v54 = vld [vmem:[%s8236_s14 + $0x14] ss:$240 sps:$4 sm:$0xff]   ;;  %v6520_v55 = vld [vmem:[%s8236_s14 + $0x1c] ss:$240 sps:$4 sm:$0xff]  }
 0x116   : > { %3417 = vmatpush1.bf16.msra.mxu0 %v6489_v36  ;;  %3458 = vmatpush1.bf16.msra.mxu1 %v6490_v37  ;;  %v6515_v57 = vld [vmem:[%s8236_s14 + $0x10] ss:$240 sps:$4 sm:$0xff]   ;;  %v6518_v58 = vld [vmem:[%s8236_s14 + $0x18] ss:$240 sps:$4 sm:$0xff]   ;;  %v6523_v59 = vld [vmem:[%s8236_s14 + $0x1f4] ss:$240 sps:$4 sm:$0xff]  }
 0x117   : > { %3418 = vmatprep.subr.bf16.mxu0 %v6491_v38  ;;  %3459 = vmatprep.subr.bf16.mxu1 %v6493_v39  ;;  %v6526_v60 = vld [vmem:[%s8236_s14 + $0x1fc] ss:$240 sps:$4 sm:$0xff]   ;;  %v6521_v61 = vld [vmem:[%s8236_s14 + $0x1f0] ss:$240 sps:$4 sm:$0xff]   ;;  %v6524_v62 = vld [vmem:[%s8236_s14 + $0x1f8] ss:$240 sps:$4 sm:$0xff]  }
 0x118   : > { %v6529_v63 = vld [vmem:[%s8236_s14 + $0x3d4] ss:$240 sps:$4 sm:$0xff]   ;;  %v6532_v0 = vld [vmem:[%s8236_s14 + $0x3dc] ss:$240 sps:$4 sm:$0xff]   ;;  %v6527_v1 = vld [vmem:[%s8236_s14 + $0x3d0] ss:$240 sps:$4 sm:$0xff]  }
 0x119   : > { %v6530_v2 = vld [vmem:[%s8236_s14 + $0x3d8] ss:$240 sps:$4 sm:$0xff]   ;;  %v6535_v3 = vld [vmem:[%s8236_s14 + $0x5b4] ss:$240 sps:$4 sm:$0xff]   ;;  %v6538_v4 = vld [vmem:[%s8236_s14 + $0x5bc] ss:$240 sps:$4 sm:$0xff]  }
 0x11a   : > { %3419 = vmatpush1.bf16.msra.mxu0 %v6495_v40  ;;  %3460 = vmatpush1.bf16.msra.mxu1 %v6496_v41  ;;  %v6533_v5 = vld [vmem:[%s8236_s14 + $0x5b0] ss:$240 sps:$4 sm:$0xff]   ;;  %v6536_v6 = vld [vmem:[%s8236_s14 + $0x5b8] ss:$240 sps:$4 sm:$0xff]   ;;  %v6541_v7 = vld [vmem:[%s8236_s14 + $0x794] ss:$240 sps:$4 sm:$0xff]  }
 0x11b   : > { %3420 = vmatprep.subr.bf16.mxu0 %v6497_v42  ;;  %3461 = vmatprep.subr.bf16.mxu1 %v6499_v43  ;;  %v6544_v8 = vld [vmem:[%s8236_s14 + $0x79c] ss:$240 sps:$4 sm:$0xff]   ;;  %v6539_v9 = vld [vmem:[%s8236_s14 + $0x790] ss:$240 sps:$4 sm:$0xff]   ;;  %v6542_v10 = vld [vmem:[%s8236_s14 + $0x798] ss:$240 sps:$4 sm:$0xff]  }
 0x11c   : > { %v6547_v11 = vld [vmem:[%s8236_s14 + $0x974] ss:$240 sps:$4 sm:$0xff]   ;;  %v6550_v12 = vld [vmem:[%s8236_s14 + $0x97c] ss:$240 sps:$4 sm:$0xff]   ;;  %v6545_v13 = vld [vmem:[%s8236_s14 + $0x970] ss:$240 sps:$4 sm:$0xff]  }
 0x11d   : > { %v6548_v14 = vld [vmem:[%s8236_s14 + $0x978] ss:$240 sps:$4 sm:$0xff]   ;;  %v6553_v15 = vld [vmem:[%s8236_s14 + $0xb54] ss:$240 sps:$4 sm:$0xff]   ;;  %v6556_v16 = vld [vmem:[%s8236_s14 + $0xb5c] ss:$240 sps:$4 sm:$0xff]  }
 0x11e   : > { %3421 = vmatpush1.bf16.msra.mxu0 %v6501_v44  ;;  %3462 = vmatpush1.bf16.msra.mxu1 %v6502_v45  ;;  %v6551_v17 = vld [vmem:[%s8236_s14 + $0xb50] ss:$240 sps:$4 sm:$0xff]   ;;  %v6554_v18 = vld [vmem:[%s8236_s14 + $0xb58] ss:$240 sps:$4 sm:$0xff]   ;;  %v6559_v19 = vld [vmem:[%s8236_s14 + $0x24] ss:$240 sps:$4 sm:$0xff]  }
 0x11f   : > { %3422 = vmatprep.subr.bf16.mxu0 %v6503_v46  ;;  %3463 = vmatprep.subr.bf16.mxu1 %v6505_v47  ;;  %v6562_v20 = vld [vmem:[%s8236_s14 + $0x2c] ss:$240 sps:$4 sm:$0xff]   ;;  %v6557_v21 = vld [vmem:[%s8236_s14 + $0x20] ss:$240 sps:$4 sm:$0xff]   ;;  %v6560_v22 = vld [vmem:[%s8236_s14 + $0x28] ss:$240 sps:$4 sm:$0xff]  }
 0x120   : > { %v6565_v23 = vld [vmem:[%s8236_s14 + $0x204] ss:$240 sps:$4 sm:$0xff]   ;;  %v6568_v24 = vld [vmem:[%s8236_s14 + $0x20c] ss:$240 sps:$4 sm:$0xff]   ;;  %v6563_v26 = vld [vmem:[%s8236_s14 + $0x200] ss:$240 sps:$4 sm:$0xff]  }
 0x121   : > { %v6566_v27 = vld [vmem:[%s8236_s14 + $0x208] ss:$240 sps:$4 sm:$0xff]   ;;  %v6571_v28 = vld [vmem:[%s8236_s14 + $0x3e4] ss:$240 sps:$4 sm:$0xff]   ;;  %v6574_v29 = vld [vmem:[%s8236_s14 + $0x3ec] ss:$240 sps:$4 sm:$0xff]  }
 0x122   : > { %3423 = vmatpush1.bf16.msra.mxu0 %v6507_v48  ;;  %3464 = vmatpush1.bf16.msra.mxu1 %v6508_v49  ;;  %v6569_v30 = vld [vmem:[%s8236_s14 + $0x3e0] ss:$240 sps:$4 sm:$0xff]   ;;  %v6572_v31 = vld [vmem:[%s8236_s14 + $0x3e8] ss:$240 sps:$4 sm:$0xff]   ;;  %v6577_v32 = vld [vmem:[%s8236_s14 + $0x5c4] ss:$240 sps:$4 sm:$0xff]  }
 0x123   : > { %3424 = vmatprep.subr.bf16.mxu0 %v6509_v50  ;;  %3465 = vmatprep.subr.bf16.mxu1 %v6511_v51  ;;  %v6580_v33 = vld [vmem:[%s8236_s14 + $0x5cc] ss:$240 sps:$4 sm:$0xff]   ;;  %v6575_v34 = vld [vmem:[%s8236_s14 + $0x5c0] ss:$240 sps:$4 sm:$0xff]   ;;  %v6578_v35 = vld [vmem:[%s8236_s14 + $0x5c8] ss:$240 sps:$4 sm:$0xff]  }
 0x124   : > { %v6583_v36 = vld [vmem:[%s8236_s14 + $0x7a4] ss:$240 sps:$4 sm:$0xff]   ;;  %v6586_v37 = vld [vmem:[%s8236_s14 + $0x7ac] ss:$240 sps:$4 sm:$0xff]   ;;  %v6581_v38 = vld [vmem:[%s8236_s14 + $0x7a0] ss:$240 sps:$4 sm:$0xff]  }
 0x125   : > { %v6584_v39 = vld [vmem:[%s8236_s14 + $0x7a8] ss:$240 sps:$4 sm:$0xff]   ;;  %v6589_v40 = vld [vmem:[%s8236_s14 + $0x984] ss:$240 sps:$4 sm:$0xff]   ;;  %v6592_v41 = vld [vmem:[%s8236_s14 + $0x98c] ss:$240 sps:$4 sm:$0xff]  }
 0x126   : > { %3425 = vmatpush1.bf16.msra.mxu0 %v6513_v52  ;;  %3466 = vmatpush1.bf16.msra.mxu1 %v6514_v53  ;;  %v6587_v42 = vld [vmem:[%s8236_s14 + $0x980] ss:$240 sps:$4 sm:$0xff]   ;;  %v6590_v43 = vld [vmem:[%s8236_s14 + $0x988] ss:$240 sps:$4 sm:$0xff]   ;;  %v6595_v44 = vld [vmem:[%s8236_s14 + $0xb64] ss:$240 sps:$4 sm:$0xff]  }
 0x127   : > { %3494 = vmatprep.subr.bf16.mxu0 %v6517_v54  ;;  %3535 = vmatprep.subr.bf16.mxu1 %v6520_v55  ;;  %v6598_v45 = vld [vmem:[%s8236_s14 + $0xb6c] ss:$240 sps:$4 sm:$0xff]   ;;  %v6593_v46 = vld [vmem:[%s8236_s14 + $0xb60] ss:$240 sps:$4 sm:$0xff]   ;;  %v6596_v47 = vld [vmem:[%s8236_s14 + $0xb68] ss:$240 sps:$4 sm:$0xff]  }
 0x128   : > { %v6601_v48 = vld [vmem:[%s8236_s14 + $0x34] ss:$240 sps:$4 sm:$0xff]   ;;  %v6604_v49 = vld [vmem:[%s8236_s14 + $0x3c] ss:$240 sps:$4 sm:$0xff]   ;;  %v6599_v50 = vld [vmem:[%s8236_s14 + $0x30] ss:$240 sps:$4 sm:$0xff]  }
 0x129   : > { %6057 = vmatmul.mubr.msk.bf16.vlgmr.msra.gmra.mrb[0].mxu0 %vm3408_vm0, %v8271_v56  ;;  %6058 = vmatmul.mubr.msk.bf16.vlgmr.msra.gmra.mrb[0].mxu1 %vm3408_vm0, %v8271_v56  ;;  %v6602_v51 = vld [vmem:[%s8236_s14 + $0x38] ss:$240 sps:$4 sm:$0xff]   ;;  %v6607_v52 = vld [vmem:[%s8236_s14 + $0x214] ss:$240 sps:$4 sm:$0xff]   ;;  %v6610_v53 = vld [vmem:[%s8236_s14 + $0x21c] ss:$240 sps:$4 sm:$0xff]  }
 0x12a   : > { %3495 = vmatpush1.bf16.msra.mxu0 %v6515_v57  ;;  %3536 = vmatpush1.bf16.msra.mxu1 %v6518_v58  ;;  %v6605_v54 = vld [vmem:[%s8236_s14 + $0x210] ss:$240 sps:$4 sm:$0xff]   ;;  %v6608_v55 = vld [vmem:[%s8236_s14 + $0x218] ss:$240 sps:$4 sm:$0xff]   ;;  %v6613_v57 = vld [vmem:[%s8236_s14 + $0x3f4] ss:$240 sps:$4 sm:$0xff]  }
 0x12b   : > { %3496 = vmatprep.subr.bf16.mxu0 %v6523_v59  ;;  %3537 = vmatprep.subr.bf16.mxu1 %v6526_v60  ;;  %v6616_v58 = vld [vmem:[%s8236_s14 + $0x3fc] ss:$240 sps:$4 sm:$0xff]   ;;  %v6611_v59 = vld [vmem:[%s8236_s14 + $0x3f0] ss:$240 sps:$4 sm:$0xff]   ;;  %v6614_v60 = vld [vmem:[%s8236_s14 + $0x3f8] ss:$240 sps:$4 sm:$0xff]  }
 0x12c   : > { %3526 = vmatprep.mubr.bf16.mxu0 %v7387_v25  ;;  %3567 = vmatprep.mubr.bf16.mxu1 %v7387_v25  ;;  %s8561_s12 = scalar_lea.vmem [#allocation3], %s8546_s11   ;;  %s4979_s24 = smul.u32 (%p7441_p5), 60, %s7426_s15 }
 0x12d   : > { %s6179_s25 = smul.u32 (%p7441_p5), 240, %s7426_s15 }
 0x12e   : > { %3497 = vmatpush1.bf16.msra.mxu0 %v6521_v61  ;;  %3538 = vmatpush1.bf16.msra.mxu1 %v6524_v62  ;;  %v6619_v61 = vld [vmem:[%s8236_s14 + $0x5d4] ss:$240 sps:$4 sm:$0xff]   ;;  %v6622_v62 = vld [vmem:[%s8236_s14 + $0x5dc] ss:$240 sps:$4 sm:$0xff]   ;;  %s4980_s26 = ssub.s32 (%p7441_p5), 249, %s4979_s24 }
 0x12f   : > { %3498 = vmatprep.subr.bf16.mxu0 %v6529_v63  ;;  %3539 = vmatprep.subr.bf16.mxu1 %v6532_v0  ;;  %v6617_v63 = vld [vmem:[%s8236_s14 + $0x5d0] ss:$240 sps:$4 sm:$0xff]   ;;  %v6620_v0 = vld [vmem:[%s8236_s14 + $0x5d8] ss:$240 sps:$4 sm:$0xff]   ;;  %p4981_p1 = scmp.lt.s32.totalorder (%p7441_p5), %s4980_s26, 60  ;;  %s8867_s27 = scalar_lea.vmem (%p7441_p5), %s9285_s3, %s6179_s25  }
 0x132   : > { %3499 = vmatpush1.bf16.msra.mxu0 %v6527_v1  ;;  %3540 = vmatpush1.bf16.msra.mxu1 %v6530_v2  ;;  %v6625_v1 = vld [vmem:[%s8236_s14 + $0x7b4] ss:$240 sps:$4 sm:$0xff]   ;;  %v6628_v2 = vld [vmem:[%s8236_s14 + $0x7bc] ss:$240 sps:$4 sm:$0xff]  }
 0x133   : > { %3500 = vmatprep.subr.bf16.mxu0 %v6535_v3  ;;  %3541 = vmatprep.subr.bf16.mxu1 %v6538_v4  ;;  %v6623_v3 = vld [vmem:[%s8236_s14 + $0x7b0] ss:$240 sps:$4 sm:$0xff]   ;;  %v6626_v4 = vld [vmem:[%s8236_s14 + $0x7b8] ss:$240 sps:$4 sm:$0xff]  }
 0x136   : > { %3501 = vmatpush1.bf16.msra.mxu0 %v6533_v5  ;;  %3542 = vmatpush1.bf16.msra.mxu1 %v6536_v6  ;;  %v6631_v5 = vld [vmem:[%s8236_s14 + $0x994] ss:$240 sps:$4 sm:$0xff]   ;;  %v6634_v6 = vld [vmem:[%s8236_s14 + $0x99c] ss:$240 sps:$4 sm:$0xff]  }
 0x137   : > { %3502 = vmatprep.subr.bf16.mxu0 %v6541_v7  ;;  %3543 = vmatprep.subr.bf16.mxu1 %v6544_v8  ;;  %v6629_v7 = vld [vmem:[%s8236_s14 + $0x990] ss:$240 sps:$4 sm:$0xff]   ;;  %v6632_v8 = vld [vmem:[%s8236_s14 + $0x998] ss:$240 sps:$4 sm:$0xff]  }
 0x13a   : > { %3503 = vmatpush1.bf16.msra.mxu0 %v6539_v9  ;;  %3544 = vmatpush1.bf16.msra.mxu1 %v6542_v10  ;;  %v6637_v9 = vld [vmem:[%s8236_s14 + $0xb74] ss:$240 sps:$4 sm:$0xff]   ;;  %v6640_v10 = vld [vmem:[%s8236_s14 + $0xb7c] ss:$240 sps:$4 sm:$0xff]  }
 0x13b   : > { %3504 = vmatprep.subr.bf16.mxu0 %v6547_v11  ;;  %3545 = vmatprep.subr.bf16.mxu1 %v6550_v12  ;;  %v6635_v11 = vld [vmem:[%s8236_s14 + $0xb70] ss:$240 sps:$4 sm:$0xff]   ;;  %v6638_v12 = vld [vmem:[%s8236_s14 + $0xb78] ss:$240 sps:$4 sm:$0xff]  }
 0x13e   : > { %3505 = vmatpush1.bf16.msra.mxu0 %v6545_v13  ;;  %3546 = vmatpush1.bf16.msra.mxu1 %v6548_v14  ;;  %v6643_v13 = vld [vmem:[%s8236_s14 + $0x44] ss:$240 sps:$4 sm:$0xff]   ;;  %v6646_v14 = vld [vmem:[%s8236_s14 + $0x4c] ss:$240 sps:$4 sm:$0xff]  }
 0x13f   : > { %3506 = vmatprep.subr.bf16.mxu0 %v6553_v15  ;;  %3547 = vmatprep.subr.bf16.mxu1 %v6556_v16  ;;  %v6641_v15 = vld [vmem:[%s8236_s14 + $0x40] ss:$240 sps:$4 sm:$0xff]   ;;  %v6644_v16 = vld [vmem:[%s8236_s14 + $0x48] ss:$240 sps:$4 sm:$0xff]  }
 0x142   : > { %3507 = vmatpush1.bf16.msra.mxu0 %v6551_v17  ;;  %3548 = vmatpush1.bf16.msra.mxu1 %v6554_v18  ;;  %v6649_v17 = vld [vmem:[%s8236_s14 + $0x224] ss:$240 sps:$4 sm:$0xff]   ;;  %v6652_v18 = vld [vmem:[%s8236_s14 + $0x22c] ss:$240 sps:$4 sm:$0xff]  }
 0x143   : > { %3576 = vmatprep.subr.bf16.mxu0 %v6559_v19  ;;  %3617 = vmatprep.subr.bf16.mxu1 %v6562_v20  ;;  %v6647_v19 = vld [vmem:[%s8236_s14 + $0x220] ss:$240 sps:$4 sm:$0xff]   ;;  %v6650_v20 = vld [vmem:[%s8236_s14 + $0x228] ss:$240 sps:$4 sm:$0xff]  }
 0x145   : > { %6059 = vmatmul.mubr.msk.bf16.vlgmr.msra.gmra.mrb[4].mxu0 %vm3408_vm0, %v8271_v56  ;;  %6060 = vmatmul.mubr.msk.bf16.vlgmr.msra.gmra.mrb[4].mxu1 %vm3408_vm0, %v8271_v56 }
 0x146   : > { %3577 = vmatpush1.bf16.msra.mxu0 %v6557_v21  ;;  %3618 = vmatpush1.bf16.msra.mxu1 %v6560_v22  ;;  %v6655_v21 = vld [vmem:[%s8236_s14 + $0x404] ss:$240 sps:$4 sm:$0xff]   ;;  %v6658_v22 = vld [vmem:[%s8236_s14 + $0x40c] ss:$240 sps:$4 sm:$0xff]  }
 0x147   : > { %3578 = vmatprep.subr.bf16.mxu0 %v6565_v23  ;;  %3619 = vmatprep.subr.bf16.mxu1 %v6568_v24  ;;  %v6653_v23 = vld [vmem:[%s8236_s14 + $0x400] ss:$240 sps:$4 sm:$0xff]   ;;  %v6656_v24 = vld [vmem:[%s8236_s14 + $0x408] ss:$240 sps:$4 sm:$0xff]  }
 0x148   : > { %3608 = vmatprep.mubr.bf16.mxu0 %v7387_v25  ;;  %3649 = vmatprep.mubr.bf16.mxu1 %v7387_v25 }
 0x14a   : > { %3579 = vmatpush1.bf16.msra.mxu0 %v6563_v26  ;;  %3620 = vmatpush1.bf16.msra.mxu1 %v6566_v27  ;;  %v6661_v26 = vld [vmem:[%s8236_s14 + $0x5e4] ss:$240 sps:$4 sm:$0xff]   ;;  %v6664_v27 = vld [vmem:[%s8236_s14 + $0x5ec] ss:$240 sps:$4 sm:$0xff]  }
 0x14b   : > { %3580 = vmatprep.subr.bf16.mxu0 %v6571_v28  ;;  %3621 = vmatprep.subr.bf16.mxu1 %v6574_v29  ;;  %v6659_v28 = vld [vmem:[%s8236_s14 + $0x5e0] ss:$240 sps:$4 sm:$0xff]   ;;  %v6662_v29 = vld [vmem:[%s8236_s14 + $0x5e8] ss:$240 sps:$4 sm:$0xff]  }
 0x14e   : > { %3581 = vmatpush1.bf16.msra.mxu0 %v6569_v30  ;;  %3622 = vmatpush1.bf16.msra.mxu1 %v6572_v31  ;;  %v6667_v30 = vld [vmem:[%s8236_s14 + $0x7c4] ss:$240 sps:$4 sm:$0xff]   ;;  %v6670_v31 = vld [vmem:[%s8236_s14 + $0x7cc] ss:$240 sps:$4 sm:$0xff]  }
 0x14f   : > { %3582 = vmatprep.subr.bf16.mxu0 %v6577_v32  ;;  %3623 = vmatprep.subr.bf16.mxu1 %v6580_v33  ;;  %v6665_v32 = vld [vmem:[%s8236_s14 + $0x7c0] ss:$240 sps:$4 sm:$0xff]   ;;  %v6668_v33 = vld [vmem:[%s8236_s14 + $0x7c8] ss:$240 sps:$4 sm:$0xff]  }
 0x152   : > { %3583 = vmatpush1.bf16.msra.mxu0 %v6575_v34  ;;  %3624 = vmatpush1.bf16.msra.mxu1 %v6578_v35  ;;  %v6673_v34 = vld [vmem:[%s8236_s14 + $0x9a4] ss:$240 sps:$4 sm:$0xff]   ;;  %v6676_v35 = vld [vmem:[%s8236_s14 + $0x9ac] ss:$240 sps:$4 sm:$0xff]  }
 0x153   : > { %3584 = vmatprep.subr.bf16.mxu0 %v6583_v36  ;;  %3625 = vmatprep.subr.bf16.mxu1 %v6586_v37  ;;  %v6671_v36 = vld [vmem:[%s8236_s14 + $0x9a0] ss:$240 sps:$4 sm:$0xff]   ;;  %v6674_v37 = vld [vmem:[%s8236_s14 + $0x9a8] ss:$240 sps:$4 sm:$0xff]  }
 0x156   : > { %3585 = vmatpush1.bf16.msra.mxu0 %v6581_v38  ;;  %3626 = vmatpush1.bf16.msra.mxu1 %v6584_v39  ;;  %v6679_v38 = vld [vmem:[%s8236_s14 + $0xb84] ss:$240 sps:$4 sm:$0xff]   ;;  %v6682_v39 = vld [vmem:[%s8236_s14 + $0xb8c] ss:$240 sps:$4 sm:$0xff]  }
 0x157   : > { %3586 = vmatprep.subr.bf16.mxu0 %v6589_v40  ;;  %3627 = vmatprep.subr.bf16.mxu1 %v6592_v41  ;;  %v6677_v40 = vld [vmem:[%s8236_s14 + $0xb80] ss:$240 sps:$4 sm:$0xff]   ;;  %v6680_v41 = vld [vmem:[%s8236_s14 + $0xb88] ss:$240 sps:$4 sm:$0xff]  }
 0x15a   : > { %3587 = vmatpush1.bf16.msra.mxu0 %v6587_v42  ;;  %3628 = vmatpush1.bf16.msra.mxu1 %v6590_v43  ;;  %v6685_v42 = vld [vmem:[%s8236_s14 + $0x54] ss:$240 sps:$4 sm:$0xff]   ;;  %v6688_v43 = vld [vmem:[%s8236_s14 + $0x5c] ss:$240 sps:$4 sm:$0xff]  }
 0x15b   : > { %3588 = vmatprep.subr.bf16.mxu0 %v6595_v44  ;;  %3629 = vmatprep.subr.bf16.mxu1 %v6598_v45  ;;  %v6683_v44 = vld [vmem:[%s8236_s14 + $0x50] ss:$240 sps:$4 sm:$0xff]   ;;  %v6686_v45 = vld [vmem:[%s8236_s14 + $0x58] ss:$240 sps:$4 sm:$0xff]  }
 0x15e   : > { %3589 = vmatpush1.bf16.msra.mxu0 %v6593_v46  ;;  %3630 = vmatpush1.bf16.msra.mxu1 %v6596_v47  ;;  %v6691_v46 = vld [vmem:[%s8236_s14 + $0x234] ss:$240 sps:$4 sm:$0xff]   ;;  %v6694_v47 = vld [vmem:[%s8236_s14 + $0x23c] ss:$240 sps:$4 sm:$0xff]  }
 0x15f   : > { %3658 = vmatprep.subr.bf16.mxu0 %v6601_v48  ;;  %3699 = vmatprep.subr.bf16.mxu1 %v6604_v49  ;;  %v6689_v48 = vld [vmem:[%s8236_s14 + $0x230] ss:$240 sps:$4 sm:$0xff]   ;;  %v6692_v49 = vld [vmem:[%s8236_s14 + $0x238] ss:$240 sps:$4 sm:$0xff]  }
 0x161   : > { %6061 = vmatmul.mubr.msk.bf16.vlgmr.msra.gmra.mrb[8].mxu0 %vm3408_vm0, %v8271_v56  ;;  %6062 = vmatmul.mubr.msk.bf16.vlgmr.msra.gmra.mrb[8].mxu1 %vm3408_vm0, %v8271_v56 }
 0x162   : > { %3659 = vmatpush1.bf16.msra.mxu0 %v6599_v50  ;;  %3700 = vmatpush1.bf16.msra.mxu1 %v6602_v51  ;;  %v6697_v50 = vld [vmem:[%s8236_s14 + $0x414] ss:$240 sps:$4 sm:$0xff]   ;;  %v6700_v51 = vld [vmem:[%s8236_s14 + $0x41c] ss:$240 sps:$4 sm:$0xff]  }
 0x163   : > { %3660 = vmatprep.subr.bf16.mxu0 %v6607_v52  ;;  %3701 = vmatprep.subr.bf16.mxu1 %v6610_v53  ;;  %v6695_v52 = vld [vmem:[%s8236_s14 + $0x410] ss:$240 sps:$4 sm:$0xff]   ;;  %v6703_v53 = vld [vmem:[%s8236_s14 + $0x5f4] ss:$240 sps:$4 sm:$0xff]  }
 0x164   : > { %3690 = vmatprep.mubr.bf16.mxu0 %v7387_v25  ;;  %3731 = vmatprep.mubr.bf16.mxu1 %v7387_v25 }
 0x166   : > { %3661 = vmatpush1.bf16.msra.mxu0 %v6605_v54  ;;  %3702 = vmatpush1.bf16.msra.mxu1 %v6608_v55  ;;  %v6706_v54 = vld [vmem:[%s8236_s14 + $0x5fc] ss:$240 sps:$4 sm:$0xff]   ;;  %v6701_v55 = vld [vmem:[%s8236_s14 + $0x5f0] ss:$240 sps:$4 sm:$0xff]  }
 0x167   : > { %3662 = vmatprep.subr.bf16.mxu0 %v6613_v57  ;;  %3703 = vmatprep.subr.bf16.mxu1 %v6616_v58  ;;  %v6704_v57 = vld [vmem:[%s8236_s14 + $0x5f8] ss:$240 sps:$4 sm:$0xff]   ;;  %v6709_v58 = vld [vmem:[%s8236_s14 + $0x7d4] ss:$240 sps:$4 sm:$0xff]  }
 0x16a   : > { %3663 = vmatpush1.bf16.msra.mxu0 %v6611_v59  ;;  %3704 = vmatpush1.bf16.msra.mxu1 %v6614_v60  ;;  %v6712_v59 = vld [vmem:[%s8236_s14 + $0x7dc] ss:$240 sps:$4 sm:$0xff]   ;;  %v6707_v60 = vld [vmem:[%s8236_s14 + $0x7d0] ss:$240 sps:$4 sm:$0xff]  }
 0x16b   : > { %3664 = vmatprep.subr.bf16.mxu0 %v6619_v61  ;;  %3705 = vmatprep.subr.bf16.mxu1 %v6622_v62  ;;  %v6710_v61 = vld [vmem:[%s8236_s14 + $0x7d8] ss:$240 sps:$4 sm:$0xff]   ;;  %v6715_v62 = vld [vmem:[%s8236_s14 + $0x9b4] ss:$240 sps:$4 sm:$0xff]  }
 0x16e   : > { %3665 = vmatpush1.bf16.msra.mxu0 %v6617_v63  ;;  %3706 = vmatpush1.bf16.msra.mxu1 %v6620_v0  ;;  %v6718_v63 = vld [vmem:[%s8236_s14 + $0x9bc] ss:$240 sps:$4 sm:$0xff]   ;;  %v6713_v0 = vld [vmem:[%s8236_s14 + $0x9b0] ss:$240 sps:$4 sm:$0xff]  }
 0x16f   : > { %3666 = vmatprep.subr.bf16.mxu0 %v6625_v1  ;;  %3707 = vmatprep.subr.bf16.mxu1 %v6628_v2  ;;  %v6716_v1 = vld [vmem:[%s8236_s14 + $0x9b8] ss:$240 sps:$4 sm:$0xff]   ;;  %v6721_v2 = vld [vmem:[%s8236_s14 + $0xb94] ss:$240 sps:$4 sm:$0xff]  }
 0x172   : > { %3667 = vmatpush1.bf16.msra.mxu0 %v6623_v3  ;;  %3708 = vmatpush1.bf16.msra.mxu1 %v6626_v4  ;;  %v6724_v3 = vld [vmem:[%s8236_s14 + $0xb9c] ss:$240 sps:$4 sm:$0xff]   ;;  %v6719_v4 = vld [vmem:[%s8236_s14 + $0xb90] ss:$240 sps:$4 sm:$0xff]  }
 0x173   : > { %3668 = vmatprep.subr.bf16.mxu0 %v6631_v5  ;;  %3709 = vmatprep.subr.bf16.mxu1 %v6634_v6  ;;  %v6722_v5 = vld [vmem:[%s8236_s14 + $0xb98] ss:$240 sps:$4 sm:$0xff]   ;;  %v6727_v6 = vld [vmem:[%s8236_s14 + $0x64] ss:$240 sps:$4 sm:$0xff]  }
 0x176   : > { %3669 = vmatpush1.bf16.msra.mxu0 %v6629_v7  ;;  %3710 = vmatpush1.bf16.msra.mxu1 %v6632_v8  ;;  %v6730_v7 = vld [vmem:[%s8236_s14 + $0x6c] ss:$240 sps:$4 sm:$0xff]   ;;  %v6725_v8 = vld [vmem:[%s8236_s14 + $0x60] ss:$240 sps:$4 sm:$0xff]  }
 0x177   : > { %3670 = vmatprep.subr.bf16.mxu0 %v6637_v9  ;;  %3711 = vmatprep.subr.bf16.mxu1 %v6640_v10  ;;  %v6728_v9 = vld [vmem:[%s8236_s14 + $0x68] ss:$240 sps:$4 sm:$0xff]   ;;  %v6733_v10 = vld [vmem:[%s8236_s14 + $0x244] ss:$240 sps:$4 sm:$0xff]  }
 0x17a   : > { %3671 = vmatpush1.bf16.msra.mxu0 %v6635_v11  ;;  %3712 = vmatpush1.bf16.msra.mxu1 %v6638_v12  ;;  %v6736_v11 = vld [vmem:[%s8236_s14 + $0x24c] ss:$240 sps:$4 sm:$0xff]   ;;  %v8450_v12 = vld [vmem:[%s9282_s0] sm:$0xf] }
 0x17b   : > { %3740 = vmatprep.subr.bf16.mxu0 %v6643_v13  ;;  %3781 = vmatprep.subr.bf16.mxu1 %v6646_v14  ;;  %v6731_v13 = vld [vmem:[%s8236_s14 + $0x240] ss:$240 sps:$4 sm:$0xff]   ;;  %v6734_v14 = vld [vmem:[%s8236_s14 + $0x248] ss:$240 sps:$4 sm:$0xff]  }
 0x17d   : > { %6063 = vmatmul.mubr.msk.bf16.vlgmr.msra.gmra.mrb[12].mxu0 %vm3408_vm0, %v8271_v56  ;;  %6064 = vmatmul.mubr.msk.bf16.vlgmr.msra.gmra.mrb[12].mxu1 %vm3408_vm0, %v8271_v56 }
 0x17e   : > { %3741 = vmatpush1.bf16.msra.mxu0 %v6641_v15  ;;  %3782 = vmatpush1.bf16.msra.mxu1 %v6644_v16  ;;  %v6739_v15 = vld [vmem:[%s8236_s14 + $0x424] ss:$240 sps:$4 sm:$0xff]   ;;  %v6742_v16 = vld [vmem:[%s8236_s14 + $0x42c] ss:$240 sps:$4 sm:$0xff]  }
 0x17f   : > { %3742 = vmatprep.subr.bf16.mxu0 %v6649_v17  ;;  %3783 = vmatprep.subr.bf16.mxu1 %v6652_v18  ;;  %v6737_v17 = vld [vmem:[%s8236_s14 + $0x420] ss:$240 sps:$4 sm:$0xff]   ;;  %v6740_v18 = vld [vmem:[%s8236_s14 + $0x428] ss:$240 sps:$4 sm:$0xff]  }
 0x180   : > { %3772 = vmatprep.mubr.bf16.mxu0 %v7387_v25  ;;  %3813 = vmatprep.mubr.bf16.mxu1 %v7387_v25 }
 0x182   : > { %3743 = vmatpush1.bf16.msra.mxu0 %v6647_v19  ;;  %3784 = vmatpush1.bf16.msra.mxu1 %v6650_v20  ;;  %v6745_v19 = vld [vmem:[%s8236_s14 + $0x604] ss:$240 sps:$4 sm:$0xff]   ;;  %v6748_v20 = vld [vmem:[%s8236_s14 + $0x60c] ss:$240 sps:$4 sm:$0xff]  }
 0x183   : > { %3744 = vmatprep.subr.bf16.mxu0 %v6655_v21  ;;  %3785 = vmatprep.subr.bf16.mxu1 %v6658_v22  ;;  %v6743_v21 = vld [vmem:[%s8236_s14 + $0x600] ss:$240 sps:$4 sm:$0xff]   ;;  %v6746_v22 = vld [vmem:[%s8236_s14 + $0x608] ss:$240 sps:$4 sm:$0xff]  }
 0x186   : > { %3745 = vmatpush1.bf16.msra.mxu0 %v6653_v23  ;;  %3786 = vmatpush1.bf16.msra.mxu1 %v6656_v24  ;;  %v6751_v23 = vld [vmem:[%s8236_s14 + $0x7e4] ss:$240 sps:$4 sm:$0xff]   ;;  %v6754_v24 = vld [vmem:[%s8236_s14 + $0x7ec] ss:$240 sps:$4 sm:$0xff]  }
 0x187   : > { %3746 = vmatprep.subr.bf16.mxu0 %v6661_v26  ;;  %3787 = vmatprep.subr.bf16.mxu1 %v6664_v27  ;;  %v6749_v26 = vld [vmem:[%s8236_s14 + $0x7e0] ss:$240 sps:$4 sm:$0xff]   ;;  %v6752_v27 = vld [vmem:[%s8236_s14 + $0x7e8] ss:$240 sps:$4 sm:$0xff]  }
 0x18a   : > { %3747 = vmatpush1.bf16.msra.mxu0 %v6659_v28  ;;  %3788 = vmatpush1.bf16.msra.mxu1 %v6662_v29  ;;  %v6757_v28 = vld [vmem:[%s8236_s14 + $0x9c4] ss:$240 sps:$4 sm:$0xff]   ;;  %v6760_v29 = vld [vmem:[%s8236_s14 + $0x9cc] ss:$240 sps:$4 sm:$0xff]  }
 0x18b   : > { %3748 = vmatprep.subr.bf16.mxu0 %v6667_v30  ;;  %3789 = vmatprep.subr.bf16.mxu1 %v6670_v31  ;;  %v6755_v30 = vld [vmem:[%s8236_s14 + $0x9c0] ss:$240 sps:$4 sm:$0xff]   ;;  %v6758_v31 = vld [vmem:[%s8236_s14 + $0x9c8] ss:$240 sps:$4 sm:$0xff]  }
 0x18e   : > { %3749 = vmatpush1.bf16.msra.mxu0 %v6665_v32  ;;  %3790 = vmatpush1.bf16.msra.mxu1 %v6668_v33  ;;  %v6763_v32 = vld [vmem:[%s8236_s14 + $0xba4] ss:$240 sps:$4 sm:$0xff]   ;;  %v6766_v33 = vld [vmem:[%s8236_s14 + $0xbac] ss:$240 sps:$4 sm:$0xff]  }
 0x18f   : > { %3750 = vmatprep.subr.bf16.mxu0 %v6673_v34  ;;  %3791 = vmatprep.subr.bf16.mxu1 %v6676_v35  ;;  %v6761_v34 = vld [vmem:[%s8236_s14 + $0xba0] ss:$240 sps:$4 sm:$0xff]   ;;  %v6764_v35 = vld [vmem:[%s8236_s14 + $0xba8] ss:$240 sps:$4 sm:$0xff]  }
 0x192   : > { %3751 = vmatpush1.bf16.msra.mxu0 %v6671_v36  ;;  %3792 = vmatpush1.bf16.msra.mxu1 %v6674_v37  ;;  %v6769_v36 = vld [vmem:[%s8236_s14 + $0x74] ss:$240 sps:$4 sm:$0xff]   ;;  %v6772_v37 = vld [vmem:[%s8236_s14 + $0x7c] ss:$240 sps:$4 sm:$0xff]  }
 0x193   : > { %3752 = vmatprep.subr.bf16.mxu0 %v6679_v38  ;;  %3793 = vmatprep.subr.bf16.mxu1 %v6682_v39  ;;  %v6767_v38 = vld [vmem:[%s8236_s14 + $0x70] ss:$240 sps:$4 sm:$0xff]   ;;  %v6770_v39 = vld [vmem:[%s8236_s14 + $0x78] ss:$240 sps:$4 sm:$0xff]  }
 0x196   : > { %3753 = vmatpush1.bf16.msra.mxu0 %v6677_v40  ;;  %3794 = vmatpush1.bf16.msra.mxu1 %v6680_v41  ;;  %v6775_v40 = vld [vmem:[%s8236_s14 + $0x254] ss:$240 sps:$4 sm:$0xff]   ;;  %v6778_v41 = vld [vmem:[%s8236_s14 + $0x25c] ss:$240 sps:$4 sm:$0xff]  }
 0x197   : > { %3822 = vmatprep.subr.bf16.mxu0 %v6685_v42  ;;  %3863 = vmatprep.subr.bf16.mxu1 %v6688_v43  ;;  %v6773_v42 = vld [vmem:[%s8236_s14 + $0x250] ss:$240 sps:$4 sm:$0xff]   ;;  %v6776_v43 = vld [vmem:[%s8236_s14 + $0x258] ss:$240 sps:$4 sm:$0xff]  }
 0x199   : > { %6065 = vmatmul.mubr.msk.bf16.vlgmr.msra.gmra.mrb[16].mxu0 %vm3408_vm0, %v8271_v56  ;;  %6066 = vmatmul.mubr.msk.bf16.vlgmr.msra.gmra.mrb[16].mxu1 %vm3408_vm0, %v8271_v56  ;;  %v6698_v56 = vld [vmem:[%s8236_s14 + $0x418] ss:$240 sps:$4 sm:$0xff]  }
 0x19a   : > { %3823 = vmatpush1.bf16.msra.mxu0 %v6683_v44  ;;  %3864 = vmatpush1.bf16.msra.mxu1 %v6686_v45  ;;  %v6781_v44 = vld [vmem:[%s8236_s14 + $0x434] ss:$240 sps:$4 sm:$0xff]   ;;  %v6784_v45 = vld [vmem:[%s8236_s14 + $0x43c] ss:$240 sps:$4 sm:$0xff]  }
 0x19b   : > { %3824 = vmatprep.subr.bf16.mxu0 %v6691_v46  ;;  %3865 = vmatprep.subr.bf16.mxu1 %v6694_v47  ;;  %v6779_v46 = vld [vmem:[%s8236_s14 + $0x430] ss:$240 sps:$4 sm:$0xff]   ;;  %v6782_v47 = vld [vmem:[%s8236_s14 + $0x438] ss:$240 sps:$4 sm:$0xff]  }
 0x19c   : > { %3854 = vmatprep.mubr.bf16.mxu0 %v7387_v25  ;;  %3895 = vmatprep.mubr.bf16.mxu1 %v7387_v25 }
 0x19e   : > { %3825 = vmatpush1.bf16.msra.mxu0 %v6689_v48  ;;  %3866 = vmatpush1.bf16.msra.mxu1 %v6692_v49  ;;  %v6787_v48 = vld [vmem:[%s8236_s14 + $0x614] ss:$240 sps:$4 sm:$0xff]   ;;  %v6790_v49 = vld [vmem:[%s8236_s14 + $0x61c] ss:$240 sps:$4 sm:$0xff]  }
 0x19f   : > { %3826 = vmatprep.subr.bf16.mxu0 %v6697_v50  ;;  %3867 = vmatprep.subr.bf16.mxu1 %v6700_v51  ;;  %v6785_v50 = vld [vmem:[%s8236_s14 + $0x610] ss:$240 sps:$4 sm:$0xff]   ;;  %v6788_v51 = vld [vmem:[%s8236_s14 + $0x618] ss:$240 sps:$4 sm:$0xff]  }
 0x1a2   : > { %3827 = vmatpush1.bf16.msra.mxu0 %v6695_v52  ;;  %3868 = vmatpush1.bf16.msra.mxu1 %v6698_v56  ;;  %v6793_v52 = vld [vmem:[%s8236_s14 + $0x7f4] ss:$240 sps:$4 sm:$0xff]   ;;  %v6796_v56 = vld [vmem:[%s8236_s14 + $0x7fc] ss:$240 sps:$4 sm:$0xff]  }
 0x1a3   : > { %3828 = vmatprep.subr.bf16.mxu0 %v6703_v53  ;;  %3869 = vmatprep.subr.bf16.mxu1 %v6706_v54  ;;  %v6791_v53 = vld [vmem:[%s8236_s14 + $0x7f0] ss:$240 sps:$4 sm:$0xff]   ;;  %v6794_v54 = vld [vmem:[%s8236_s14 + $0x7f8] ss:$240 sps:$4 sm:$0xff]  }
 0x1a6   : > { %3829 = vmatpush1.bf16.msra.mxu0 %v6701_v55  ;;  %3870 = vmatpush1.bf16.msra.mxu1 %v6704_v57  ;;  %v6799_v55 = vld [vmem:[%s8236_s14 + $0x9d4] ss:$240 sps:$4 sm:$0xff]   ;;  %v6802_v57 = vld [vmem:[%s8236_s14 + $0x9dc] ss:$240 sps:$4 sm:$0xff]  }
 0x1a7   : > { %3830 = vmatprep.subr.bf16.mxu0 %v6709_v58  ;;  %3871 = vmatprep.subr.bf16.mxu1 %v6712_v59  ;;  %v6797_v58 = vld [vmem:[%s8236_s14 + $0x9d0] ss:$240 sps:$4 sm:$0xff]   ;;  %v6800_v59 = vld [vmem:[%s8236_s14 + $0x9d8] ss:$240 sps:$4 sm:$0xff]  }
 0x1aa   : > { %3831 = vmatpush1.bf16.msra.mxu0 %v6707_v60  ;;  %3872 = vmatpush1.bf16.msra.mxu1 %v6710_v61  ;;  %v6805_v60 = vld [vmem:[%s8236_s14 + $0xbb4] ss:$240 sps:$4 sm:$0xff]   ;;  %v6808_v61 = vld [vmem:[%s8236_s14 + $0xbbc] ss:$240 sps:$4 sm:$0xff]  }
 0x1ab   : > { %3832 = vmatprep.subr.bf16.mxu0 %v6715_v62  ;;  %3873 = vmatprep.subr.bf16.mxu1 %v6718_v63  ;;  %v6803_v62 = vld [vmem:[%s8236_s14 + $0xbb0] ss:$240 sps:$4 sm:$0xff]   ;;  %v6806_v63 = vld [vmem:[%s8236_s14 + $0xbb8] ss:$240 sps:$4 sm:$0xff]  }
 0x1ae   : > { %3833 = vmatpush1.bf16.msra.mxu0 %v6713_v0  ;;  %3874 = vmatpush1.bf16.msra.mxu1 %v6716_v1  ;;  %v6811_v0 = vld [vmem:[%s8236_s14 + $0x84] ss:$240 sps:$4 sm:$0xff]   ;;  %v6814_v1 = vld [vmem:[%s8236_s14 + $0x8c] ss:$240 sps:$4 sm:$0xff]  }
 0x1af   : > { %3834 = vmatprep.subr.bf16.mxu0 %v6721_v2  ;;  %3875 = vmatprep.subr.bf16.mxu1 %v6724_v3  ;;  %v6809_v2 = vld [vmem:[%s8236_s14 + $0x80] ss:$240 sps:$4 sm:$0xff]   ;;  %v6812_v3 = vld [vmem:[%s8236_s14 + $0x88] ss:$240 sps:$4 sm:$0xff]  }
 0x1b2   : > { %3835 = vmatpush1.bf16.msra.mxu0 %v6719_v4  ;;  %3876 = vmatpush1.bf16.msra.mxu1 %v6722_v5  ;;  %v6817_v4 = vld [vmem:[%s8236_s14 + $0x264] ss:$240 sps:$4 sm:$0xff]   ;;  %v6820_v5 = vld [vmem:[%s8236_s14 + $0x26c] ss:$240 sps:$4 sm:$0xff]  }
 0x1b3   : > { %3904 = vmatprep.subr.bf16.mxu0 %v6727_v6  ;;  %3945 = vmatprep.subr.bf16.mxu1 %v6730_v7  ;;  %v6815_v6 = vld [vmem:[%s8236_s14 + $0x260] ss:$240 sps:$4 sm:$0xff]   ;;  %v6818_v7 = vld [vmem:[%s8236_s14 + $0x268] ss:$240 sps:$4 sm:$0xff]  }
 0x1b5   : > { %6067 = vmatmul.mubr.msk.bf16.vlgmr.msra.gmra.mrb[20].mxu0 %vm3408_vm0, %v8450_v12  ;;  %6068 = vmatmul.mubr.msk.bf16.vlgmr.msra.gmra.mrb[20].mxu1 %vm3408_vm0, %v8450_v12 }
 0x1b6   : > { %3905 = vmatpush1.bf16.msra.mxu0 %v6725_v8  ;;  %3946 = vmatpush1.bf16.msra.mxu1 %v6728_v9  ;;  %v6823_v8 = vld [vmem:[%s8236_s14 + $0x444] ss:$240 sps:$4 sm:$0xff]   ;;  %v6826_v9 = vld [vmem:[%s8236_s14 + $0x44c] ss:$240 sps:$4 sm:$0xff]  }
 0x1b7   : > { %3906 = vmatprep.subr.bf16.mxu0 %v6733_v10  ;;  %3947 = vmatprep.subr.bf16.mxu1 %v6736_v11  ;;  %v6821_v10 = vld [vmem:[%s8236_s14 + $0x440] ss:$240 sps:$4 sm:$0xff]   ;;  %v6824_v11 = vld [vmem:[%s8236_s14 + $0x448] ss:$240 sps:$4 sm:$0xff]  }
 0x1b8   : > { %3936 = vmatprep.mubr.bf16.mxu0 %v7387_v25  ;;  %3977 = vmatprep.mubr.bf16.mxu1 %v7387_v25 }
 0x1ba   : > { %3907 = vmatpush1.bf16.msra.mxu0 %v6731_v13  ;;  %3948 = vmatpush1.bf16.msra.mxu1 %v6734_v14  ;;  %v6829_v13 = vld [vmem:[%s8236_s14 + $0x624] ss:$240 sps:$4 sm:$0xff]   ;;  %v6832_v14 = vld [vmem:[%s8236_s14 + $0x62c] ss:$240 sps:$4 sm:$0xff]  }
 0x1bb   : > { %3908 = vmatprep.subr.bf16.mxu0 %v6739_v15  ;;  %3949 = vmatprep.subr.bf16.mxu1 %v6742_v16  ;;  %v6827_v15 = vld [vmem:[%s8236_s14 + $0x620] ss:$240 sps:$4 sm:$0xff]   ;;  %v6830_v16 = vld [vmem:[%s8236_s14 + $0x628] ss:$240 sps:$4 sm:$0xff]  }
 0x1be   : > { %3909 = vmatpush1.bf16.msra.mxu0 %v6737_v17  ;;  %3950 = vmatpush1.bf16.msra.mxu1 %v6740_v18  ;;  %v6835_v17 = vld [vmem:[%s8236_s14 + $0x804] ss:$240 sps:$4 sm:$0xff]   ;;  %v6838_v18 = vld [vmem:[%s8236_s14 + $0x80c] ss:$240 sps:$4 sm:$0xff]  }
 0x1bf   : > { %3910 = vmatprep.subr.bf16.mxu0 %v6745_v19  ;;  %3951 = vmatprep.subr.bf16.mxu1 %v6748_v20  ;;  %v6833_v19 = vld [vmem:[%s8236_s14 + $0x800] ss:$240 sps:$4 sm:$0xff]   ;;  %v6836_v20 = vld [vmem:[%s8236_s14 + $0x808] ss:$240 sps:$4 sm:$0xff]  }
 0x1c2   : > { %3911 = vmatpush1.bf16.msra.mxu0 %v6743_v21  ;;  %3952 = vmatpush1.bf16.msra.mxu1 %v6746_v22  ;;  %v8540_v21 = vpop.permute.xlu0 %1305  ;;  %v6841_v22 = vld [vmem:[%s8236_s14 + $0x9e4] ss:$240 sps:$4 sm:$0xff]  }
 0x1c3   : > { %3912 = vmatprep.subr.bf16.mxu0 %v6751_v23  ;;  %3953 = vmatprep.subr.bf16.mxu1 %v6754_v24  ;;  %v6844_v23 = vld [vmem:[%s8236_s14 + $0x9ec] ss:$240 sps:$4 sm:$0xff]  }
 0x1c6   : > { %3913 = vmatpush1.bf16.msra.mxu0 %v6749_v26  ;;  %3954 = vmatpush1.bf16.msra.mxu1 %v6752_v27  ;;  %v6839_v27 = vld [vmem:[%s8236_s14 + $0x9e0] ss:$240 sps:$4 sm:$0xff]  }
 0x1c7   : > { %3914 = vmatprep.subr.bf16.mxu0 %v6757_v28  ;;  %3955 = vmatprep.subr.bf16.mxu1 %v6760_v29 }
 0x1ca   : > { %3915 = vmatpush1.bf16.msra.mxu0 %v6755_v30  ;;  %3956 = vmatpush1.bf16.msra.mxu1 %v6758_v31 }
 0x1cb   : > { %3916 = vmatprep.subr.bf16.mxu0 %v6763_v32  ;;  %3957 = vmatprep.subr.bf16.mxu1 %v6766_v33  ;;  %v6842_v32 = vld [vmem:[%s8236_s14 + $0x9e8] ss:$240 sps:$4 sm:$0xff]  }
 0x1ce   : > { %3917 = vmatpush1.bf16.msra.mxu0 %v6761_v34  ;;  %3958 = vmatpush1.bf16.msra.mxu1 %v6764_v35 }
 0x1cf   : > { %3986 = vmatprep.subr.bf16.mxu0 %v6769_v36  ;;  %4027 = vmatprep.subr.bf16.mxu1 %v6772_v37  ;;  %v6847_v37 = vld [vmem:[%s8236_s14 + $0xbc4] ss:$240 sps:$4 sm:$0xff]  }
 0x1d1   : > { %6069 = vmatmul.mubr.msk.bf16.vlgmr.msra.gmra.mrb[24].mxu0 %vm3408_vm0, %v8450_v12  ;;  %6070 = vmatmul.mubr.msk.bf16.vlgmr.msra.gmra.mrb[24].mxu1 %vm3408_vm0, %v8450_v12 }
 0x1d2   : > { %3987 = vmatpush1.bf16.msra.mxu0 %v6767_v38  ;;  %4028 = vmatpush1.bf16.msra.mxu1 %v6770_v39 }
 0x1d3   : > { %3988 = vmatprep.subr.bf16.mxu0 %v6775_v40  ;;  %4029 = vmatprep.subr.bf16.mxu1 %v6778_v41 }
 0x1d4   : > { %4018 = vmatprep.mubr.bf16.mxu0 %v7387_v25  ;;  %4059 = vmatprep.mubr.bf16.mxu1 %v7387_v25 }
 0x1d6   : > { %3989 = vmatpush1.bf16.msra.mxu0 %v6773_v42  ;;  %4030 = vmatpush1.bf16.msra.mxu1 %v6776_v43  ;;  %v6850_v42 = vld [vmem:[%s8236_s14 + $0xbcc] ss:$240 sps:$4 sm:$0xff]  }
 0x1d7   : > { %3990 = vmatprep.subr.bf16.mxu0 %v6781_v44  ;;  %4031 = vmatprep.subr.bf16.mxu1 %v6784_v45  ;;  %v6845_v45 = vld [vmem:[%s8236_s14 + $0xbc0] ss:$240 sps:$4 sm:$0xff]  }
 0x1da   : > { %3991 = vmatpush1.bf16.msra.mxu0 %v6779_v46  ;;  %4032 = vmatpush1.bf16.msra.mxu1 %v6782_v47 }
 0x1db   : > { %3992 = vmatprep.subr.bf16.mxu0 %v6787_v48  ;;  %4033 = vmatprep.subr.bf16.mxu1 %v6790_v49  ;;  %v6848_v48 = vld [vmem:[%s8236_s14 + $0xbc8] ss:$240 sps:$4 sm:$0xff]   ;;  %v6853_v49 = vld [vmem:[%s8236_s14 + $0x94] ss:$240 sps:$4 sm:$0xff]  }
 0x1de   : > { %3993 = vmatpush1.bf16.msra.mxu0 %v6785_v50  ;;  %4034 = vmatpush1.bf16.msra.mxu1 %v6788_v51  ;;  %v6856_v50 = vld [vmem:[%s8236_s14 + $0x9c] ss:$240 sps:$4 sm:$0xff]   ;;  %v6851_v51 = vld [vmem:[%s8236_s14 + $0x90] ss:$240 sps:$4 sm:$0xff]  }
 0x1df   : > { %3994 = vmatprep.subr.bf16.mxu0 %v6793_v52  ;;  %4035 = vmatprep.subr.bf16.mxu1 %v6796_v56  ;;  %v6854_v52 = vld [vmem:[%s8236_s14 + $0x98] ss:$240 sps:$4 sm:$0xff]   ;;  %v6859_v56 = vld [vmem:[%s8236_s14 + $0x274] ss:$240 sps:$4 sm:$0xff]  }
 0x1e2   : > { %3995 = vmatpush1.bf16.msra.mxu0 %v6791_v53  ;;  %4036 = vmatpush1.bf16.msra.mxu1 %v6794_v54  ;;  %v6862_v53 = vld [vmem:[%s8236_s14 + $0x27c] ss:$240 sps:$4 sm:$0xff]   ;;  %v6857_v54 = vld [vmem:[%s8236_s14 + $0x270] ss:$240 sps:$4 sm:$0xff]  }
 0x1e3   : > { %3996 = vmatprep.subr.bf16.mxu0 %v6799_v55  ;;  %4037 = vmatprep.subr.bf16.mxu1 %v6802_v57  ;;  %v6860_v55 = vld [vmem:[%s8236_s14 + $0x278] ss:$240 sps:$4 sm:$0xff]   ;;  %v6865_v57 = vld [vmem:[%s8236_s14 + $0x454] ss:$240 sps:$4 sm:$0xff]  }
 0x1e6   : > { %3997 = vmatpush1.bf16.msra.mxu0 %v6797_v58  ;;  %4038 = vmatpush1.bf16.msra.mxu1 %v6800_v59  ;;  %v6868_v58 = vld [vmem:[%s8236_s14 + $0x45c] ss:$240 sps:$4 sm:$0xff]   ;;  %v6863_v59 = vld [vmem:[%s8236_s14 + $0x450] ss:$240 sps:$4 sm:$0xff]  }
 0x1e7   : > { %3998 = vmatprep.subr.bf16.mxu0 %v6805_v60  ;;  %4039 = vmatprep.subr.bf16.mxu1 %v6808_v61  ;;  %v6866_v60 = vld [vmem:[%s8236_s14 + $0x458] ss:$240 sps:$4 sm:$0xff]   ;;  %v6871_v61 = vld [vmem:[%s8236_s14 + $0x634] ss:$240 sps:$4 sm:$0xff]  }
 0x1ea   : > { %3999 = vmatpush1.bf16.msra.mxu0 %v6803_v62  ;;  %4040 = vmatpush1.bf16.msra.mxu1 %v6806_v63  ;;  %v6874_v62 = vld [vmem:[%s8236_s14 + $0x63c] ss:$240 sps:$4 sm:$0xff]   ;;  %v6869_v63 = vld [vmem:[%s8236_s14 + $0x630] ss:$240 sps:$4 sm:$0xff]  }
 0x1eb   : > { %4068 = vmatprep.subr.bf16.mxu0 %v6811_v0  ;;  %4109 = vmatprep.subr.bf16.mxu1 %v6814_v1  ;;  %v6872_v0 = vld [vmem:[%s8236_s14 + $0x638] ss:$240 sps:$4 sm:$0xff]   ;;  %v6877_v1 = vld [vmem:[%s8236_s14 + $0x814] ss:$240 sps:$4 sm:$0xff]  }
 0x1ed   : > { %6071 = vmatmul.mubr.msk.bf16.vlgmr.msra.gmra.mrb[28].mxu0 %vm3408_vm0, %v8450_v12  ;;  %6072 = vmatmul.mubr.msk.bf16.vlgmr.msra.gmra.mrb[28].mxu1 %vm3408_vm0, %v8450_v12 }
 0x1ee   : > { %4069 = vmatpush1.bf16.msra.mxu0 %v6809_v2  ;;  %4110 = vmatpush1.bf16.msra.mxu1 %v6812_v3  ;;  %v6880_v2 = vld [vmem:[%s8236_s14 + $0x81c] ss:$240 sps:$4 sm:$0xff]   ;;  %v6875_v3 = vld [vmem:[%s8236_s14 + $0x810] ss:$240 sps:$4 sm:$0xff]  }
 0x1ef   : > { %4070 = vmatprep.subr.bf16.mxu0 %v6817_v4  ;;  %4111 = vmatprep.subr.bf16.mxu1 %v6820_v5  ;;  %v6878_v4 = vld [vmem:[%s8236_s14 + $0x818] ss:$240 sps:$4 sm:$0xff]   ;;  %v6883_v5 = vld [vmem:[%s8236_s14 + $0x9f4] ss:$240 sps:$4 sm:$0xff]  }
 0x1f0   : > { %4100 = vmatprep.mubr.bf16.mxu0 %v7387_v25  ;;  %4141 = vmatprep.mubr.bf16.mxu1 %v7387_v25 }
 0x1f2   : > { %4071 = vmatpush1.bf16.msra.mxu0 %v6815_v6  ;;  %4112 = vmatpush1.bf16.msra.mxu1 %v6818_v7  ;;  %v6886_v6 = vld [vmem:[%s8236_s14 + $0x9fc] ss:$240 sps:$4 sm:$0xff]  }
 0x1f3   : > { %4072 = vmatprep.subr.bf16.mxu0 %v6823_v8  ;;  %4113 = vmatprep.subr.bf16.mxu1 %v6826_v9  ;;  %v6881_v9 = vld [vmem:[%s8236_s14 + $0x9f0] ss:$240 sps:$4 sm:$0xff]  }
 0x1f6   : > { %4073 = vmatpush1.bf16.msra.mxu0 %v6821_v10  ;;  %4114 = vmatpush1.bf16.msra.mxu1 %v6824_v11 }
 0x1f7   : > { %4074 = vmatprep.subr.bf16.mxu0 %v6829_v13  ;;  %4115 = vmatprep.subr.bf16.mxu1 %v6832_v14 }
 0x1fa   : > { %4075 = vmatpush1.bf16.msra.mxu0 %v6827_v15  ;;  %4116 = vmatpush1.bf16.msra.mxu1 %v6830_v16 }
 0x1fb   : > { %4076 = vmatprep.subr.bf16.mxu0 %v6835_v17  ;;  %4117 = vmatprep.subr.bf16.mxu1 %v6838_v18 }
 0x1fc   : > { %v3446_v24 = vpop.f32.mrb[0].mxu0  ;;  %v3487_v26 = vpop.f32.mrb[0].mxu1 }
 0x1fd   : > { %v3447_v28 = vadd.f32 %v3446_v24, %v8540_v21  ;;  %v3448_v29 = vpop.f32.mrb[1].mxu0  ;;  %v3488_v30 = vadd.f32 %v3487_v26, %v8540_v21  ;;  %v3489_v31 = vpop.f32.mrb[1].mxu1 }
 0x1fe   : > { %v3449_v33 = vadd.f32 %v3448_v29, %v8540_v21  ;;  %v3490_v34 = vadd.f32 %v3489_v31, %v8540_v21  ;;  %v3450_v35 = vpop.f32.mrb[2].mxu0  ;;  %v3491_v36 = vpop.f32.mrb[2].mxu1  ;;  %4077 = vmatpush1.bf16.msra.mxu0 %v6833_v19  ;;  %4118 = vmatpush1.bf16.msra.mxu1 %v6836_v20  ;;  %v6884_v19 = vld [vmem:[%s8236_s14 + $0x9f8] ss:$240 sps:$4 sm:$0xff]   ;;  %v6889_v20 = vld [vmem:[%s8236_s14 + $0xbd4] ss:$240 sps:$4 sm:$0xff]  }
 0x1ff   : > { %v4642_v38 = vmax.f32 %v3447_v28, 0.0  ;;  %v4644_v39 = vmax.f32 %v3488_v30, 0.0  ;;  %v3451_v40 = vpop.f32.mrb[3].mxu0  ;;  %v3492_v41 = vpop.f32.mrb[3].mxu1  ;;  %4078 = vmatprep.subr.bf16.mxu0 %v6841_v22  ;;  %4119 = vmatprep.subr.bf16.mxu1 %v6844_v23  ;;  %v6898_v35 = vld [vmem:[%s8236_s14 + $0xac] ss:$240 sps:$4 sm:$0xff]  }
 0x200   : > { %v4643_v43 = vmax.f32 %v3449_v33, 0.0  ;;  %v4645_v44 = vmax.f32 %v3490_v34, 0.0  ;;  %v6890_v33 = vld [vmem:[%s8236_s14 + $0xbd8] ss:$240 sps:$4 sm:$0xff]   ;;  %v6895_v34 = vld [vmem:[%s8236_s14 + $0xa4] ss:$240 sps:$4 sm:$0xff]  }
 0x201   : > { %v6893_v36 = vld [vmem:[%s8236_s14 + $0xa0] ss:$240 sps:$4 sm:$0xff]   ;;  %v6902_v41 = vld [vmem:[%s8236_s14 + $0x288] ss:$240 sps:$4 sm:$0xff]  }
 0x202   : > { %v6149_v46 = vpack.c.bf16 %v4643_v43, %v4642_v38  ;;  %v6150_v47 = vpack.c.bf16 %v4645_v44, %v4644_v39  ;;  %4079 = vmatpush1.bf16.msra.mxu0 %v6839_v27  ;;  %4120 = vmatpush1.bf16.msra.mxu1 %v6842_v32  ;;  %v6892_v27 = vld [vmem:[%s8236_s14 + $0xbdc] ss:$240 sps:$4 sm:$0xff]   ;;  %v6887_v32 = vld [vmem:[%s8236_s14 + $0xbd0] ss:$240 sps:$4 sm:$0xff]   ;;  %v6901_v38 = vld [vmem:[%s8236_s14 + $0x284] ss:$240 sps:$4 sm:$0xff]  }
 0x203   : > { %4080 = vmatprep.subr.bf16.mxu0 %v6847_v37  ;;  %4121 = vmatprep.subr.bf16.mxu1 %v6850_v42  ;;  %v6896_v37 = vld [vmem:[%s8236_s14 + $0xa8] ss:$240 sps:$4 sm:$0xff]   ;;  %v6904_v39 = vld [vmem:[%s8236_s14 + $0x28c] ss:$240 sps:$4 sm:$0xff]   ;;  %v6899_v40 = vld [vmem:[%s8236_s14 + $0x280] ss:$240 sps:$4 sm:$0xff]  }
 0x204   : > { %4942 = vst [vmem:[%s8561_s12] sm:$0xff] %v6149_v46  ;;  %4943 = vst [vmem:[%s8561_s12 + $0x8] sm:$0xff] %v6150_v47  ;;  %v6907_v42 = vld [vmem:[%s8236_s14 + $0x464] ss:$240 sps:$4 sm:$0xff]   ;;  %v6910_v43 = vld [vmem:[%s8236_s14 + $0x46c] ss:$240 sps:$4 sm:$0xff]  }
 0x205   : > { %v6908_v44 = vld [vmem:[%s8236_s14 + $0x468] ss:$240 sps:$4 sm:$0xff]   ;;  %v6916_v46 = vld [vmem:[%s8236_s14 + $0x64c] ss:$240 sps:$4 sm:$0xff]   ;;  %v6911_v47 = vld [vmem:[%s8236_s14 + $0x640] ss:$240 sps:$4 sm:$0xff]  }
 0x206   : > { %4081 = vmatpush1.bf16.msra.mxu0 %v6845_v45  ;;  %4122 = vmatpush1.bf16.msra.mxu1 %v6848_v48  ;;  %v6913_v45 = vld [vmem:[%s8236_s14 + $0x644] ss:$240 sps:$4 sm:$0xff]   ;;  %v6914_v48 = vld [vmem:[%s8236_s14 + $0x648] ss:$240 sps:$4 sm:$0xff]  }
 0x207   : > { %4150 = vmatprep.subr.bf16.mxu0 %v6853_v49  ;;  %4191 = vmatprep.subr.bf16.mxu1 %v6856_v50  ;;  %v6919_v49 = vld [vmem:[%s8236_s14 + $0x824] ss:$240 sps:$4 sm:$0xff]   ;;  %v6922_v50 = vld [vmem:[%s8236_s14 + $0x82c] ss:$240 sps:$4 sm:$0xff]  }
 0x209   : > { %6073 = vmatmul.mubr.msk.bf16.vlgmr.msra.gmra.mrb[32].mxu0 %vm3408_vm0, %v8450_v12  ;;  %6074 = vmatmul.mubr.msk.bf16.vlgmr.msra.gmra.mrb[32].mxu1 %vm3408_vm0, %v8450_v12 }
 0x20a   : > { %4151 = vmatpush1.bf16.msra.mxu0 %v6851_v51  ;;  %4192 = vmatpush1.bf16.msra.mxu1 %v6854_v52  ;;  %v6917_v51 = vld [vmem:[%s8236_s14 + $0x820] ss:$240 sps:$4 sm:$0xff]   ;;  %v6920_v52 = vld [vmem:[%s8236_s14 + $0x828] ss:$240 sps:$4 sm:$0xff]  }
 0x20b   : > { %4152 = vmatprep.subr.bf16.mxu0 %v6859_v56  ;;  %4193 = vmatprep.subr.bf16.mxu1 %v6862_v53  ;;  %v6925_v56 = vld [vmem:[%s8236_s14 + $0xa04] ss:$240 sps:$4 sm:$0xff]   ;;  %v6928_v53 = vld [vmem:[%s8236_s14 + $0xa0c] ss:$240 sps:$4 sm:$0xff]  }
 0x20c   : > { %4182 = vmatprep.mubr.bf16.mxu0 %v7387_v25  ;;  %4223 = vmatprep.mubr.bf16.mxu1 %v7387_v25 }
 0x20e   : > { %4153 = vmatpush1.bf16.msra.mxu0 %v6857_v54  ;;  %4194 = vmatpush1.bf16.msra.mxu1 %v6860_v55 }
 0x20f   : > { %4154 = vmatprep.subr.bf16.mxu0 %v6865_v57  ;;  %4195 = vmatprep.subr.bf16.mxu1 %v6868_v58 }
 0x212   : > { %4155 = vmatpush1.bf16.msra.mxu0 %v6863_v59  ;;  %4196 = vmatpush1.bf16.msra.mxu1 %v6866_v60 }
 0x213   : > { %4156 = vmatprep.subr.bf16.mxu0 %v6871_v61  ;;  %4197 = vmatprep.subr.bf16.mxu1 %v6874_v62  ;;  %v6923_v61 = vld [vmem:[%s8236_s14 + $0xa00] ss:$240 sps:$4 sm:$0xff]  }
 0x216   : > { %4157 = vmatpush1.bf16.msra.mxu0 %v6869_v63  ;;  %4198 = vmatpush1.bf16.msra.mxu1 %v6872_v0 }
 0x217   : > { %4158 = vmatprep.subr.bf16.mxu0 %v6877_v1  ;;  %4199 = vmatprep.subr.bf16.mxu1 %v6880_v2  ;;  %v6926_v2 = vld [vmem:[%s8236_s14 + $0xa08] ss:$240 sps:$4 sm:$0xff]  }
 0x218   : > { %v3528_v7 = vpop.f32.mrb[4].mxu0  ;;  %v3569_v8 = vpop.f32.mrb[4].mxu1 }
 0x219   : > { %v3529_v10 = vadd.f32 %v3528_v7, %v8540_v21  ;;  %v3570_v11 = vadd.f32 %v3569_v8, %v8540_v21  ;;  %v3530_v13 = vpop.f32.mrb[5].mxu0  ;;  %v3571_v14 = vpop.f32.mrb[5].mxu1  ;;  %v6934_v8 = vld [vmem:[%s8236_s14 + $0xbec] ss:$240 sps:$4 sm:$0xff]  }
 0x21a   : > { %v3531_v15 = vadd.f32 %v3530_v13, %v8540_v21  ;;  %v3572_v16 = vadd.f32 %v3571_v14, %v8540_v21  ;;  %v3532_v17 = vpop.f32.mrb[6].mxu0  ;;  %v3573_v18 = vpop.f32.mrb[6].mxu1  ;;  %4159 = vmatpush1.bf16.msra.mxu0 %v6875_v3  ;;  %4200 = vmatpush1.bf16.msra.mxu1 %v6878_v4  ;;  %v6931_v3 = vld [vmem:[%s8236_s14 + $0xbe4] ss:$240 sps:$4 sm:$0xff]   ;;  %v6929_v14 = vld [vmem:[%s8236_s14 + $0xbe0] ss:$240 sps:$4 sm:$0xff]  }
 0x21b   : > { %v4646_v22 = vmax.f32 %v3529_v10, 0.0  ;;  %v4648_v23 = vmax.f32 %v3570_v11, 0.0  ;;  %v3533_v24 = vpop.f32.mrb[7].mxu0  ;;  %v3574_v26 = vpop.f32.mrb[7].mxu1  ;;  %4160 = vmatprep.subr.bf16.mxu0 %v6883_v5  ;;  %4201 = vmatprep.subr.bf16.mxu1 %v6886_v6  ;;  %v6940_v17 = vld [vmem:[%s8236_s14 + $0xbc] ss:$240 sps:$4 sm:$0xff]  }
 0x21c   : > { %v4647_v28 = vmax.f32 %v3531_v15, 0.0  ;;  %v4649_v29 = vmax.f32 %v3572_v16, 0.0  ;;  %v6932_v15 = vld [vmem:[%s8236_s14 + $0xbe8] ss:$240 sps:$4 sm:$0xff]   ;;  %v6937_v16 = vld [vmem:[%s8236_s14 + $0xb4] ss:$240 sps:$4 sm:$0xff]  }
 0x21d   : > { %v6935_v18 = vld [vmem:[%s8236_s14 + $0xb0] ss:$240 sps:$4 sm:$0xff]   ;;  %v6944_v26 = vld [vmem:[%s8236_s14 + $0x298] ss:$240 sps:$4 sm:$0xff]  }
 0x21e   : > { %v6151_v30 = vpack.c.bf16 %v4647_v28, %v4646_v22  ;;  %v6152_v31 = vpack.c.bf16 %v4649_v29, %v4648_v23  ;;  %4161 = vmatpush1.bf16.msra.mxu0 %v6881_v9  ;;  %4202 = vmatpush1.bf16.msra.mxu1 %v6884_v19  ;;  %v6938_v19 = vld [vmem:[%s8236_s14 + $0xb8] ss:$240 sps:$4 sm:$0xff]   ;;  %v6946_v22 = vld [vmem:[%s8236_s14 + $0x29c] ss:$240 sps:$4 sm:$0xff]   ;;  %v8652_v23 = vld [vmem:[%s9282_s0] sm:$0xf] }
 0x21f   : > { %4162 = vmatprep.subr.bf16.mxu0 %v6889_v20  ;;  %4203 = vmatprep.subr.bf16.mxu1 %v6892_v27  ;;  %v6943_v20 = vld [vmem:[%s8236_s14 + $0x294] ss:$240 sps:$4 sm:$0xff]   ;;  %v6941_v24 = vld [vmem:[%s8236_s14 + $0x290] ss:$240 sps:$4 sm:$0xff]   ;;  %v6952_v28 = vld [vmem:[%s8236_s14 + $0x47c] ss:$240 sps:$4 sm:$0xff]  }
 0x220   : > { %4944 = vst [vmem:[%s8561_s12 + $0x10] sm:$0xff] %v6151_v30  ;;  %4945 = vst [vmem:[%s8561_s12 + $0x18] sm:$0xff] %v6152_v31  ;;  %v6949_v27 = vld [vmem:[%s8236_s14 + $0x474] ss:$240 sps:$4 sm:$0xff]   ;;  %v6947_v29 = vld [vmem:[%s8236_s14 + $0x470] ss:$240 sps:$4 sm:$0xff]  }
 0x221   : > { %v6950_v30 = vld [vmem:[%s8236_s14 + $0x478] ss:$240 sps:$4 sm:$0xff]   ;;  %v6955_v31 = vld [vmem:[%s8236_s14 + $0x654] ss:$240 sps:$4 sm:$0xff]  }
 0x222   : > { %4163 = vmatpush1.bf16.msra.mxu0 %v6887_v32  ;;  %4204 = vmatpush1.bf16.msra.mxu1 %v6890_v33  ;;  %v6958_v32 = vld [vmem:[%s8236_s14 + $0x65c] ss:$240 sps:$4 sm:$0xff]   ;;  %v6953_v33 = vld [vmem:[%s8236_s14 + $0x650] ss:$240 sps:$4 sm:$0xff]  }
 0x223   : > { %4232 = vmatprep.subr.bf16.mxu0 %v6895_v34  ;;  %4273 = vmatprep.subr.bf16.mxu1 %v6898_v35  ;;  %v6956_v34 = vld [vmem:[%s8236_s14 + $0x658] ss:$240 sps:$4 sm:$0xff]   ;;  %v6961_v35 = vld [vmem:[%s8236_s14 + $0x834] ss:$240 sps:$4 sm:$0xff]  }
 0x225   : > { %6075 = vmatmul.mubr.msk.bf16.vlgmr.msra.gmra.mrb[36].mxu0 %vm3408_vm0, %v8450_v12  ;;  %6076 = vmatmul.mubr.msk.bf16.vlgmr.msra.gmra.mrb[36].mxu1 %vm3408_vm0, %v8450_v12  ;;  %v6905_v12 = vld [vmem:[%s8236_s14 + $0x460] ss:$240 sps:$4 sm:$0xff]  }
 0x226   : > { %4233 = vmatpush1.bf16.msra.mxu0 %v6893_v36  ;;  %4274 = vmatpush1.bf16.msra.mxu1 %v6896_v37  ;;  %v6964_v36 = vld [vmem:[%s8236_s14 + $0x83c] ss:$240 sps:$4 sm:$0xff]   ;;  %v6959_v37 = vld [vmem:[%s8236_s14 + $0x830] ss:$240 sps:$4 sm:$0xff]  }
 0x227   : > { %4234 = vmatprep.subr.bf16.mxu0 %v6901_v38  ;;  %4275 = vmatprep.subr.bf16.mxu1 %v6904_v39  ;;  %v6962_v38 = vld [vmem:[%s8236_s14 + $0x838] ss:$240 sps:$4 sm:$0xff]   ;;  %v6967_v39 = vld [vmem:[%s8236_s14 + $0xa14] ss:$240 sps:$4 sm:$0xff]  }
 0x228   : > { %4264 = vmatprep.mubr.bf16.mxu0 %v7387_v25  ;;  %4305 = vmatprep.mubr.bf16.mxu1 %v7387_v25 }
 0x22a   : > { %4235 = vmatpush1.bf16.msra.mxu0 %v6899_v40  ;;  %4276 = vmatpush1.bf16.msra.mxu1 %v6902_v41  ;;  %v6970_v40 = vld [vmem:[%s8236_s14 + $0xa1c] ss:$240 sps:$4 sm:$0xff]  }
 0x22b   : > { %4236 = vmatprep.subr.bf16.mxu0 %v6907_v42  ;;  %4277 = vmatprep.subr.bf16.mxu1 %v6910_v43 }
 0x22e   : > { %4237 = vmatpush1.bf16.msra.mxu0 %v6905_v12  ;;  %4278 = vmatpush1.bf16.msra.mxu1 %v6908_v44 }
 0x22f   : > { %4238 = vmatprep.subr.bf16.mxu0 %v6913_v45  ;;  %4279 = vmatprep.subr.bf16.mxu1 %v6916_v46  ;;  %v6965_v46 = vld [vmem:[%s8236_s14 + $0xa10] ss:$240 sps:$4 sm:$0xff]  }
 0x232   : > { %4239 = vmatpush1.bf16.msra.mxu0 %v6911_v47  ;;  %4280 = vmatpush1.bf16.msra.mxu1 %v6914_v48 }
 0x233   : > { %4240 = vmatprep.subr.bf16.mxu0 %v6919_v49  ;;  %4281 = vmatprep.subr.bf16.mxu1 %v6922_v50 }
 0x234   : > { %v3610_v54 = vpop.f32.mrb[8].mxu0  ;;  %v3651_v55 = vpop.f32.mrb[8].mxu1 }
 0x235   : > { %v3611_v57 = vadd.f32 %v3610_v54, %v8540_v21  ;;  %v3652_v58 = vadd.f32 %v3651_v55, %v8540_v21  ;;  %v3612_v59 = vpop.f32.mrb[9].mxu0  ;;  %v3653_v60 = vpop.f32.mrb[9].mxu1 }
 0x236   : > { %v3613_v62 = vadd.f32 %v3612_v59, %v8540_v21  ;;  %v3654_v63 = vadd.f32 %v3653_v60, %v8540_v21  ;;  %v3614_v0 = vpop.f32.mrb[10].mxu0  ;;  %v3655_v1 = vpop.f32.mrb[10].mxu1  ;;  %4241 = vmatpush1.bf16.msra.mxu0 %v6917_v51  ;;  %4282 = vmatpush1.bf16.msra.mxu1 %v6920_v52  ;;  %v6968_v51 = vld [vmem:[%s8236_s14 + $0xa18] ss:$240 sps:$4 sm:$0xff]   ;;  %v6973_v52 = vld [vmem:[%s8236_s14 + $0xbf4] ss:$240 sps:$4 sm:$0xff]  }
 0x237   : > { %v4650_v4 = vmax.f32 %v3611_v57, 0.0  ;;  %v4652_v5 = vmax.f32 %v3652_v58, 0.0  ;;  %v3615_v6 = vpop.f32.mrb[11].mxu0  ;;  %v3656_v7 = vpop.f32.mrb[11].mxu1  ;;  %4242 = vmatprep.subr.bf16.mxu0 %v6925_v56  ;;  %4283 = vmatprep.subr.bf16.mxu1 %v6928_v53  ;;  %v6976_v57 = vld [vmem:[%s8236_s14 + $0xbfc] ss:$240 sps:$4 sm:$0xff]  }
 0x238   : > { %v4651_v9 = vmax.f32 %v3613_v62, 0.0  ;;  %v4653_v10 = vmax.f32 %v3654_v63, 0.0  ;;  %v6971_v62 = vld [vmem:[%s8236_s14 + $0xbf0] ss:$240 sps:$4 sm:$0xff]   ;;  %v6974_v63 = vld [vmem:[%s8236_s14 + $0xbf8] ss:$240 sps:$4 sm:$0xff]  }
 0x239   : > { %v6979_v0 = vld [vmem:[%s8236_s14 + $0xc4] ss:$240 sps:$4 sm:$0xff]   ;;  %v6982_v1 = vld [vmem:[%s8236_s14 + $0xcc] ss:$240 sps:$4 sm:$0xff]   ;;  %v6983_v6 = vld [vmem:[%s8236_s14 + $0x2a0] ss:$240 sps:$4 sm:$0xff]  }
 0x23a   : > { %v6153_v11 = vpack.c.bf16 %v4651_v9, %v4650_v4  ;;  %v6154_v13 = vpack.c.bf16 %v4653_v10, %v4652_v5  ;;  %4243 = vmatpush1.bf16.msra.mxu0 %v6923_v61  ;;  %4284 = vmatpush1.bf16.msra.mxu1 %v6926_v2  ;;  %v6977_v2 = vld [vmem:[%s8236_s14 + $0xc0] ss:$240 sps:$4 sm:$0xff]   ;;  %v6985_v4 = vld [vmem:[%s8236_s14 + $0x2a4] ss:$240 sps:$4 sm:$0xff]   ;;  %v6988_v5 = vld [vmem:[%s8236_s14 + $0x2ac] ss:$240 sps:$4 sm:$0xff]  }
 0x23b   : > { %4244 = vmatprep.subr.bf16.mxu0 %v6931_v3  ;;  %4285 = vmatprep.subr.bf16.mxu1 %v6934_v8  ;;  %v6980_v3 = vld [vmem:[%s8236_s14 + $0xc8] ss:$240 sps:$4 sm:$0xff]   ;;  %v6991_v8 = vld [vmem:[%s8236_s14 + $0x484] ss:$240 sps:$4 sm:$0xff]   ;;  %v6994_v9 = vld [vmem:[%s8236_s14 + $0x48c] ss:$240 sps:$4 sm:$0xff]  }
 0x23c   : > { %4946 = vst [vmem:[%s8561_s12 + $0x20] sm:$0xff] %v6153_v11  ;;  %4947 = vst [vmem:[%s8561_s12 + $0x28] sm:$0xff] %v6154_v13  ;;  %v6986_v7 = vld [vmem:[%s8236_s14 + $0x2a8] ss:$240 sps:$4 sm:$0xff]   ;;  %v6989_v10 = vld [vmem:[%s8236_s14 + $0x480] ss:$240 sps:$4 sm:$0xff]  }
 0x23d   : > { %v6992_v11 = vld [vmem:[%s8236_s14 + $0x488] ss:$240 sps:$4 sm:$0xff]   ;;  %v6997_v13 = vld [vmem:[%s8236_s14 + $0x664] ss:$240 sps:$4 sm:$0xff]  }
 0x23e   : > { %4245 = vmatpush1.bf16.msra.mxu0 %v6929_v14  ;;  %4286 = vmatpush1.bf16.msra.mxu1 %v6932_v15  ;;  %v7000_v14 = vld [vmem:[%s8236_s14 + $0x66c] ss:$240 sps:$4 sm:$0xff]   ;;  %v6995_v15 = vld [vmem:[%s8236_s14 + $0x660] ss:$240 sps:$4 sm:$0xff]  }
 0x23f   : > { %4314 = vmatprep.subr.bf16.mxu0 %v6937_v16  ;;  %4355 = vmatprep.subr.bf16.mxu1 %v6940_v17  ;;  %v6998_v16 = vld [vmem:[%s8236_s14 + $0x668] ss:$240 sps:$4 sm:$0xff]   ;;  %v7003_v17 = vld [vmem:[%s8236_s14 + $0x844] ss:$240 sps:$4 sm:$0xff]  }
 0x241   : > { %6077 = vmatmul.mubr.msk.bf16.vlgmr.msra.gmra.mrb[40].mxu0 %vm3408_vm0, %v8652_v23  ;;  %6078 = vmatmul.mubr.msk.bf16.vlgmr.msra.gmra.mrb[40].mxu1 %vm3408_vm0, %v8652_v23 }
 0x242   : > { %4315 = vmatpush1.bf16.msra.mxu0 %v6935_v18  ;;  %4356 = vmatpush1.bf16.msra.mxu1 %v6938_v19  ;;  %v7006_v18 = vld [vmem:[%s8236_s14 + $0x84c] ss:$240 sps:$4 sm:$0xff]   ;;  %v7001_v19 = vld [vmem:[%s8236_s14 + $0x840] ss:$240 sps:$4 sm:$0xff]  }
 0x243   : > { %4316 = vmatprep.subr.bf16.mxu0 %v6943_v20  ;;  %4357 = vmatprep.subr.bf16.mxu1 %v6946_v22  ;;  %v7004_v20 = vld [vmem:[%s8236_s14 + $0x848] ss:$240 sps:$4 sm:$0xff]   ;;  %v7009_v22 = vld [vmem:[%s8236_s14 + $0xa24] ss:$240 sps:$4 sm:$0xff]  }
 0x244   : > { %4346 = vmatprep.mubr.bf16.mxu0 %v7387_v25  ;;  %4387 = vmatprep.mubr.bf16.mxu1 %v7387_v25 }
 0x246   : > { %4317 = vmatpush1.bf16.msra.mxu0 %v6941_v24  ;;  %4358 = vmatpush1.bf16.msra.mxu1 %v6944_v26  ;;  %v7012_v24 = vld [vmem:[%s8236_s14 + $0xa2c] ss:$240 sps:$4 sm:$0xff]  }
 0x247   : > { %4318 = vmatprep.subr.bf16.mxu0 %v6949_v27  ;;  %4359 = vmatprep.subr.bf16.mxu1 %v6952_v28 }
 0x24a   : > { %4319 = vmatpush1.bf16.msra.mxu0 %v6947_v29  ;;  %4360 = vmatpush1.bf16.msra.mxu1 %v6950_v30 }
 0x24b   : > { %4320 = vmatprep.subr.bf16.mxu0 %v6955_v31  ;;  %4361 = vmatprep.subr.bf16.mxu1 %v6958_v32  ;;  %v7007_v32 = vld [vmem:[%s8236_s14 + $0xa20] ss:$240 sps:$4 sm:$0xff]  }
 0x24e   : > { %4321 = vmatpush1.bf16.msra.mxu0 %v6953_v33  ;;  %4362 = vmatpush1.bf16.msra.mxu1 %v6956_v34 }
 0x24f   : > { %4322 = vmatprep.subr.bf16.mxu0 %v6961_v35  ;;  %4363 = vmatprep.subr.bf16.mxu1 %v6964_v36 }
 0x250   : > { %v3692_v41 = vpop.f32.mrb[12].mxu0  ;;  %v3733_v42 = vpop.f32.mrb[12].mxu1 }
 0x251   : > { %v3693_v43 = vadd.f32 %v3692_v41, %v8540_v21  ;;  %v3734_v12 = vadd.f32 %v3733_v42, %v8540_v21  ;;  %v3694_v44 = vpop.f32.mrb[13].mxu0  ;;  %v3735_v45 = vpop.f32.mrb[13].mxu1 }
 0x252   : > { %v3695_v47 = vadd.f32 %v3694_v44, %v8540_v21  ;;  %v3736_v48 = vadd.f32 %v3735_v45, %v8540_v21  ;;  %v3696_v49 = vpop.f32.mrb[14].mxu0  ;;  %v3737_v50 = vpop.f32.mrb[14].mxu1  ;;  %4323 = vmatpush1.bf16.msra.mxu0 %v6959_v37  ;;  %4364 = vmatpush1.bf16.msra.mxu1 %v6962_v38  ;;  %v7010_v37 = vld [vmem:[%s8236_s14 + $0xa28] ss:$240 sps:$4 sm:$0xff]   ;;  %v7015_v38 = vld [vmem:[%s8236_s14 + $0xc04] ss:$240 sps:$4 sm:$0xff]  }
 0x253   : > { %v4654_v56 = vmax.f32 %v3693_v43, 0.0  ;;  %v4656_v53 = vmax.f32 %v3734_v12, 0.0  ;;  %v3697_v54 = vpop.f32.mrb[15].mxu0  ;;  %v3738_v55 = vpop.f32.mrb[15].mxu1  ;;  %4324 = vmatprep.subr.bf16.mxu0 %v6967_v39  ;;  %4365 = vmatprep.subr.bf16.mxu1 %v6970_v40  ;;  %v7018_v43 = vld [vmem:[%s8236_s14 + $0xc0c] ss:$240 sps:$4 sm:$0xff]  }
 0x254   : > { %v4655_v58 = vmax.f32 %v3695_v47, 0.0  ;;  %v4657_v59 = vmax.f32 %v3736_v48, 0.0  ;;  %v7013_v47 = vld [vmem:[%s8236_s14 + $0xc00] ss:$240 sps:$4 sm:$0xff]   ;;  %v7016_v48 = vld [vmem:[%s8236_s14 + $0xc08] ss:$240 sps:$4 sm:$0xff]  }
 0x255   : > { %v7021_v49 = vld [vmem:[%s8236_s14 + $0xd4] ss:$240 sps:$4 sm:$0xff]   ;;  %v7024_v50 = vld [vmem:[%s8236_s14 + $0xdc] ss:$240 sps:$4 sm:$0xff]   ;;  %v7025_v54 = vld [vmem:[%s8236_s14 + $0x2b0] ss:$240 sps:$4 sm:$0xff]  }
 0x256   : > { %v6155_v60 = vpack.c.bf16 %v4655_v58, %v4654_v56  ;;  %v6156_v61 = vpack.c.bf16 %v4657_v59, %v4656_v53  ;;  %4325 = vmatpush1.bf16.msra.mxu0 %v6965_v46  ;;  %4366 = vmatpush1.bf16.msra.mxu1 %v6968_v51  ;;  %v7019_v51 = vld [vmem:[%s8236_s14 + $0xd0] ss:$240 sps:$4 sm:$0xff]   ;;  %v7027_v56 = vld [vmem:[%s8236_s14 + $0x2b4] ss:$240 sps:$4 sm:$0xff]   ;;  %v7030_v53 = vld [vmem:[%s8236_s14 + $0x2bc] ss:$240 sps:$4 sm:$0xff]  }
 0x257   : > { %4326 = vmatprep.subr.bf16.mxu0 %v6973_v52  ;;  %4367 = vmatprep.subr.bf16.mxu1 %v6976_v57  ;;  %v7022_v52 = vld [vmem:[%s8236_s14 + $0xd8] ss:$240 sps:$4 sm:$0xff]   ;;  %v7033_v57 = vld [vmem:[%s8236_s14 + $0x494] ss:$240 sps:$4 sm:$0xff]   ;;  %v7036_v58 = vld [vmem:[%s8236_s14 + $0x49c] ss:$240 sps:$4 sm:$0xff]  }
 0x258   : > { %4948 = vst [vmem:[%s8561_s12 + $0x30] sm:$0xff] %v6155_v60  ;;  %4949 = vst [vmem:[%s8561_s12 + $0x38] sm:$0xff] %v6156_v61  ;;  %v7028_v55 = vld [vmem:[%s8236_s14 + $0x2b8] ss:$240 sps:$4 sm:$0xff]   ;;  %v7031_v59 = vld [vmem:[%s8236_s14 + $0x490] ss:$240 sps:$4 sm:$0xff]  }
 0x259   : > { %v7034_v60 = vld [vmem:[%s8236_s14 + $0x498] ss:$240 sps:$4 sm:$0xff]   ;;  %v7039_v61 = vld [vmem:[%s8236_s14 + $0x674] ss:$240 sps:$4 sm:$0xff]  }
 0x25a   : > { %4327 = vmatpush1.bf16.msra.mxu0 %v6971_v62  ;;  %4368 = vmatpush1.bf16.msra.mxu1 %v6974_v63  ;;  %v7042_v62 = vld [vmem:[%s8236_s14 + $0x67c] ss:$240 sps:$4 sm:$0xff]   ;;  %v7037_v63 = vld [vmem:[%s8236_s14 + $0x670] ss:$240 sps:$4 sm:$0xff]  }
 0x25b   : > { %4396 = vmatprep.subr.bf16.mxu0 %v6979_v0  ;;  %4437 = vmatprep.subr.bf16.mxu1 %v6982_v1  ;;  %v7040_v0 = vld [vmem:[%s8236_s14 + $0x678] ss:$240 sps:$4 sm:$0xff]   ;;  %v7045_v1 = vld [vmem:[%s8236_s14 + $0x854] ss:$240 sps:$4 sm:$0xff]  }
 0x25d   : > { %6079 = vmatmul.mubr.msk.bf16.vlgmr.msra.gmra.mrb[44].mxu0 %vm3408_vm0, %v8652_v23  ;;  %6080 = vmatmul.mubr.msk.bf16.vlgmr.msra.gmra.mrb[44].mxu1 %vm3408_vm0, %v8652_v23 }
 0x25e   : > { %4397 = vmatpush1.bf16.msra.mxu0 %v6977_v2  ;;  %4438 = vmatpush1.bf16.msra.mxu1 %v6980_v3  ;;  %v7048_v2 = vld [vmem:[%s8236_s14 + $0x85c] ss:$240 sps:$4 sm:$0xff]   ;;  %v7043_v3 = vld [vmem:[%s8236_s14 + $0x850] ss:$240 sps:$4 sm:$0xff]  }
 0x25f   : > { %4398 = vmatprep.subr.bf16.mxu0 %v6985_v4  ;;  %4439 = vmatprep.subr.bf16.mxu1 %v6988_v5  ;;  %v7046_v4 = vld [vmem:[%s8236_s14 + $0x858] ss:$240 sps:$4 sm:$0xff]   ;;  %v7051_v5 = vld [vmem:[%s8236_s14 + $0xa34] ss:$240 sps:$4 sm:$0xff]  }
 0x260   : > { %4428 = vmatprep.mubr.bf16.mxu0 %v7387_v25  ;;  %4469 = vmatprep.mubr.bf16.mxu1 %v7387_v25 }
 0x262   : > { %4399 = vmatpush1.bf16.msra.mxu0 %v6983_v6  ;;  %4440 = vmatpush1.bf16.msra.mxu1 %v6986_v7  ;;  %v7054_v6 = vld [vmem:[%s8236_s14 + $0xa3c] ss:$240 sps:$4 sm:$0xff]  }
 0x263   : > { %4400 = vmatprep.subr.bf16.mxu0 %v6991_v8  ;;  %4441 = vmatprep.subr.bf16.mxu1 %v6994_v9 }
 0x266   : > { %4401 = vmatpush1.bf16.msra.mxu0 %v6989_v10  ;;  %4442 = vmatpush1.bf16.msra.mxu1 %v6992_v11 }
 0x267   : > { %4402 = vmatprep.subr.bf16.mxu0 %v6997_v13  ;;  %4443 = vmatprep.subr.bf16.mxu1 %v7000_v14  ;;  %v7049_v14 = vld [vmem:[%s8236_s14 + $0xa30] ss:$240 sps:$4 sm:$0xff]  }
 0x26a   : > { %4403 = vmatpush1.bf16.msra.mxu0 %v6995_v15  ;;  %4444 = vmatpush1.bf16.msra.mxu1 %v6998_v16 }
 0x26b   : > { %4404 = vmatprep.subr.bf16.mxu0 %v7003_v17  ;;  %4445 = vmatprep.subr.bf16.mxu1 %v7006_v18 }
 0x26c   : > { %v3774_v26 = vpop.f32.mrb[16].mxu0  ;;  %v3815_v27 = vpop.f32.mrb[16].mxu1 }
 0x26d   : > { %v3775_v28 = vadd.f32 %v3774_v26, %v8540_v21  ;;  %v3816_v29 = vadd.f32 %v3815_v27, %v8540_v21  ;;  %v3776_v30 = vpop.f32.mrb[17].mxu0  ;;  %v3817_v31 = vpop.f32.mrb[17].mxu1 }
 0x26e   : > { %v3777_v33 = vadd.f32 %v3776_v30, %v8540_v21  ;;  %v3818_v34 = vadd.f32 %v3817_v31, %v8540_v21  ;;  %v3778_v35 = vpop.f32.mrb[18].mxu0  ;;  %v3819_v36 = vpop.f32.mrb[18].mxu1  ;;  %4405 = vmatpush1.bf16.msra.mxu0 %v7001_v19  ;;  %4446 = vmatpush1.bf16.msra.mxu1 %v7004_v20  ;;  %v7052_v19 = vld [vmem:[%s8236_s14 + $0xa38] ss:$240 sps:$4 sm:$0xff]   ;;  %v7057_v20 = vld [vmem:[%s8236_s14 + $0xc14] ss:$240 sps:$4 sm:$0xff]  }
 0x26f   : > { %v4658_v39 = vmax.f32 %v3775_v28, 0.0  ;;  %v4660_v40 = vmax.f32 %v3816_v29, 0.0  ;;  %v3779_v41 = vpop.f32.mrb[19].mxu0  ;;  %v3820_v42 = vpop.f32.mrb[19].mxu1  ;;  %4406 = vmatprep.subr.bf16.mxu0 %v7009_v22  ;;  %4447 = vmatprep.subr.bf16.mxu1 %v7012_v24  ;;  %v7060_v28 = vld [vmem:[%s8236_s14 + $0xc1c] ss:$240 sps:$4 sm:$0xff]  }
 0x270   : > { %v4659_v12 = vmax.f32 %v3777_v33, 0.0  ;;  %v4661_v44 = vmax.f32 %v3818_v34, 0.0  ;;  %v7055_v33 = vld [vmem:[%s8236_s14 + $0xc10] ss:$240 sps:$4 sm:$0xff]   ;;  %v7058_v34 = vld [vmem:[%s8236_s14 + $0xc18] ss:$240 sps:$4 sm:$0xff]  }
 0x271   : > { %v7063_v35 = vld [vmem:[%s8236_s14 + $0xe4] ss:$240 sps:$4 sm:$0xff]   ;;  %v7066_v36 = vld [vmem:[%s8236_s14 + $0xec] ss:$240 sps:$4 sm:$0xff]   ;;  %v7067_v41 = vld [vmem:[%s8236_s14 + $0x2c0] ss:$240 sps:$4 sm:$0xff]  }
 0x272   : > { %v6157_v45 = vpack.c.bf16 %v4659_v12, %v4658_v39  ;;  %v6158_v46 = vpack.c.bf16 %v4661_v44, %v4660_v40  ;;  %4407 = vmatpush1.bf16.msra.mxu0 %v7007_v32  ;;  %4448 = vmatpush1.bf16.msra.mxu1 %v7010_v37  ;;  %v7061_v37 = vld [vmem:[%s8236_s14 + $0xe0] ss:$240 sps:$4 sm:$0xff]   ;;  %v7069_v39 = vld [vmem:[%s8236_s14 + $0x2c4] ss:$240 sps:$4 sm:$0xff]   ;;  %v7072_v40 = vld [vmem:[%s8236_s14 + $0x2cc] ss:$240 sps:$4 sm:$0xff]  }
 0x273   : > { %4408 = vmatprep.subr.bf16.mxu0 %v7015_v38  ;;  %4449 = vmatprep.subr.bf16.mxu1 %v7018_v43  ;;  %v7064_v38 = vld [vmem:[%s8236_s14 + $0xe8] ss:$240 sps:$4 sm:$0xff]   ;;  %v7075_v43 = vld [vmem:[%s8236_s14 + $0x4a4] ss:$240 sps:$4 sm:$0xff]   ;;  %v7078_v12 = vld [vmem:[%s8236_s14 + $0x4ac] ss:$240 sps:$4 sm:$0xff]  }
 0x274   : > { %4950 = vst [vmem:[%s8561_s12 + $0x40] sm:$0xff] %v6157_v45  ;;  %4951 = vst [vmem:[%s8561_s12 + $0x48] sm:$0xff] %v6158_v46  ;;  %v7070_v42 = vld [vmem:[%s8236_s14 + $0x2c8] ss:$240 sps:$4 sm:$0xff]   ;;  %v7073_v44 = vld [vmem:[%s8236_s14 + $0x4a0] ss:$240 sps:$4 sm:$0xff]  }
 0x275   : > { %v7076_v45 = vld [vmem:[%s8236_s14 + $0x4a8] ss:$240 sps:$4 sm:$0xff]   ;;  %v7081_v46 = vld [vmem:[%s8236_s14 + $0x684] ss:$240 sps:$4 sm:$0xff]  }
 0x276   : > { %4409 = vmatpush1.bf16.msra.mxu0 %v7013_v47  ;;  %4450 = vmatpush1.bf16.msra.mxu1 %v7016_v48  ;;  %v7084_v47 = vld [vmem:[%s8236_s14 + $0x68c] ss:$240 sps:$4 sm:$0xff]   ;;  %v7079_v48 = vld [vmem:[%s8236_s14 + $0x680] ss:$240 sps:$4 sm:$0xff]  }
 0x277   : > { %4478 = vmatprep.subr.bf16.mxu0 %v7021_v49  ;;  %4519 = vmatprep.subr.bf16.mxu1 %v7024_v50  ;;  %v7082_v49 = vld [vmem:[%s8236_s14 + $0x688] ss:$240 sps:$4 sm:$0xff]   ;;  %v7090_v50 = vld [vmem:[%s8236_s14 + $0x86c] ss:$240 sps:$4 sm:$0xff]  }
 0x279   : > { %6081 = vmatmul.mubr.msk.bf16.vlgmr.msra.gmra.mrb[48].mxu0 %vm3408_vm0, %v8652_v23  ;;  %6082 = vmatmul.mubr.msk.bf16.vlgmr.msra.gmra.mrb[48].mxu1 %vm3408_vm0, %v8652_v23 }
 0x27a   : > { %4479 = vmatpush1.bf16.msra.mxu0 %v7019_v51  ;;  %4520 = vmatpush1.bf16.msra.mxu1 %v7022_v52  ;;  %v7085_v51 = vld [vmem:[%s8236_s14 + $0x860] ss:$240 sps:$4 sm:$0xff]   ;;  %v7088_v52 = vld [vmem:[%s8236_s14 + $0x868] ss:$240 sps:$4 sm:$0xff]  }
 0x27b   : > { %4480 = vmatprep.subr.bf16.mxu0 %v7027_v56  ;;  %4521 = vmatprep.subr.bf16.mxu1 %v7030_v53  ;;  %v7093_v56 = vld [vmem:[%s8236_s14 + $0xa44] ss:$240 sps:$4 sm:$0xff]   ;;  %v7096_v53 = vld [vmem:[%s8236_s14 + $0xa4c] ss:$240 sps:$4 sm:$0xff]  }
 0x27c   : > { %4510 = vmatprep.mubr.bf16.mxu0 %v7387_v25  ;;  %4551 = vmatprep.mubr.bf16.mxu1 %v7387_v25 }
 0x27e   : > { %4481 = vmatpush1.bf16.msra.mxu0 %v7025_v54  ;;  %4522 = vmatpush1.bf16.msra.mxu1 %v7028_v55 }
 0x27f   : > { %4482 = vmatprep.subr.bf16.mxu0 %v7033_v57  ;;  %4523 = vmatprep.subr.bf16.mxu1 %v7036_v58 }
 0x282   : > { %4483 = vmatpush1.bf16.msra.mxu0 %v7031_v59  ;;  %4524 = vmatpush1.bf16.msra.mxu1 %v7034_v60 }
 0x283   : > { %4484 = vmatprep.subr.bf16.mxu0 %v7039_v61  ;;  %4525 = vmatprep.subr.bf16.mxu1 %v7042_v62  ;;  %v7091_v61 = vld [vmem:[%s8236_s14 + $0xa40] ss:$240 sps:$4 sm:$0xff]  }
 0x286   : > { %4485 = vmatpush1.bf16.msra.mxu0 %v7037_v63  ;;  %4526 = vmatpush1.bf16.msra.mxu1 %v7040_v0 }
 0x287   : > { %4486 = vmatprep.subr.bf16.mxu0 %v7045_v1  ;;  %4527 = vmatprep.subr.bf16.mxu1 %v7048_v2  ;;  %v7094_v2 = vld [vmem:[%s8236_s14 + $0xa48] ss:$240 sps:$4 sm:$0xff]  }
 0x288   : > { %v3856_v7 = vpop.f32.mrb[20].mxu0  ;;  %v3897_v8 = vpop.f32.mrb[20].mxu1 }
 0x289   : > { %v3857_v9 = vadd.f32 %v3856_v7, %v8540_v21  ;;  %v3898_v10 = vadd.f32 %v3897_v8, %v8540_v21  ;;  %v3858_v11 = vpop.f32.mrb[21].mxu0  ;;  %v3899_v13 = vpop.f32.mrb[21].mxu1  ;;  %v7102_v8 = vld [vmem:[%s8236_s14 + $0xc2c] ss:$240 sps:$4 sm:$0xff]  }
 0x28a   : > { %v3859_v15 = vadd.f32 %v3858_v11, %v8540_v21  ;;  %v3900_v16 = vadd.f32 %v3899_v13, %v8540_v21  ;;  %v3860_v17 = vpop.f32.mrb[22].mxu0  ;;  %v3901_v18 = vpop.f32.mrb[22].mxu1  ;;  %4487 = vmatpush1.bf16.msra.mxu0 %v7043_v3  ;;  %4528 = vmatpush1.bf16.msra.mxu1 %v7046_v4  ;;  %v7099_v3 = vld [vmem:[%s8236_s14 + $0xc24] ss:$240 sps:$4 sm:$0xff]  }
 0x28b   : > { %v4662_v22 = vmax.f32 %v3857_v9, 0.0  ;;  %v4664_v24 = vmax.f32 %v3898_v10, 0.0  ;;  %v3861_v26 = vpop.f32.mrb[23].mxu0  ;;  %v3902_v27 = vpop.f32.mrb[23].mxu1  ;;  %4488 = vmatprep.subr.bf16.mxu0 %v7051_v5  ;;  %4529 = vmatprep.subr.bf16.mxu1 %v7054_v6 }
 0x28c   : > { %v4663_v29 = vmax.f32 %v3859_v15, 0.0  ;;  %v4665_v30 = vmax.f32 %v3900_v16, 0.0  ;;  %v7100_v15 = vld [vmem:[%s8236_s14 + $0xc28] ss:$240 sps:$4 sm:$0xff]  }
 0x28e   : > { %v6159_v31 = vpack.c.bf16 %v4663_v29, %v4662_v22  ;;  %v6160_v32 = vpack.c.bf16 %v4665_v30, %v4664_v24  ;;  %4489 = vmatpush1.bf16.msra.mxu0 %v7049_v14  ;;  %4530 = vmatpush1.bf16.msra.mxu1 %v7052_v19  ;;  %v7097_v14 = vld [vmem:[%s8236_s14 + $0xc20] ss:$240 sps:$4 sm:$0xff]  }
 0x28f   : > { %4490 = vmatprep.subr.bf16.mxu0 %v7057_v20  ;;  %4531 = vmatprep.subr.bf16.mxu1 %v7060_v28 }
 0x290   : > { %4952 = vst [vmem:[%s8561_s12 + $0x50] sm:$0xff] %v6159_v31  ;;  %4953 = vst [vmem:[%s8561_s12 + $0x58] sm:$0xff] %v6160_v32 }
 0x292   : > { %4491 = vmatpush1.bf16.msra.mxu0 %v7055_v33  ;;  %4532 = vmatpush1.bf16.msra.mxu1 %v7058_v34 }
 0x293   : > { %4560 = vmatprep.subr.bf16.mxu0 %v7063_v35  ;;  %4601 = vmatprep.subr.bf16.mxu1 %v7066_v36 }
 0x295   : > { %6083 = vmatmul.mubr.msk.bf16.vlgmr.msra.gmra.mrb[52].mxu0 %vm3408_vm0, %v8652_v23  ;;  %6084 = vmatmul.mubr.msk.bf16.vlgmr.msra.gmra.mrb[52].mxu1 %vm3408_vm0, %v8652_v23 }
 0x296   : > { %4561 = vmatpush1.bf16.msra.mxu0 %v7061_v37  ;;  %4602 = vmatpush1.bf16.msra.mxu1 %v7064_v38 }
 0x297   : > { %4562 = vmatprep.subr.bf16.mxu0 %v7069_v39  ;;  %4603 = vmatprep.subr.bf16.mxu1 %v7072_v40 }
 0x298   : > { %4592 = vmatprep.mubr.bf16.mxu0 %v7387_v25  ;;  %4633 = vmatprep.mubr.bf16.mxu1 %v7387_v25  ;;  %v7087_v25 = vld [vmem:[%s8236_s14 + $0x864] ss:$240 sps:$4 sm:$0xff]  }
 0x29a   : > { %4563 = vmatpush1.bf16.msra.mxu0 %v7067_v41  ;;  %4604 = vmatpush1.bf16.msra.mxu1 %v7070_v42 }
 0x29b   : > { %4564 = vmatprep.subr.bf16.mxu0 %v7075_v43  ;;  %4605 = vmatprep.subr.bf16.mxu1 %v7078_v12 }
 0x29e   : > { %4565 = vmatpush1.bf16.msra.mxu0 %v7073_v44  ;;  %4606 = vmatpush1.bf16.msra.mxu1 %v7076_v45 }
 0x29f   : > { %4566 = vmatprep.subr.bf16.mxu0 %v7081_v46  ;;  %4607 = vmatprep.subr.bf16.mxu1 %v7084_v47 }
 0x2a2   : > { %4567 = vmatpush1.bf16.msra.mxu0 %v7079_v48  ;;  %4608 = vmatpush1.bf16.msra.mxu1 %v7082_v49 }
 0x2a3   : > { %4568 = vmatprep.subr.bf16.mxu0 %v7087_v25  ;;  %4609 = vmatprep.subr.bf16.mxu1 %v7090_v50 }
 0x2a4   : > { %v3938_v54 = vpop.f32.mrb[24].mxu0  ;;  %v3979_v55 = vpop.f32.mrb[24].mxu1 }
 0x2a5   : > { %v3939_v57 = vadd.f32 %v3938_v54, %v8540_v21  ;;  %v3980_v58 = vadd.f32 %v3979_v55, %v8540_v21  ;;  %v3940_v59 = vpop.f32.mrb[25].mxu0  ;;  %v3981_v60 = vpop.f32.mrb[25].mxu1 }
 0x2a6   : > { %v3941_v62 = vadd.f32 %v3940_v59, %v8540_v21  ;;  %v3982_v63 = vadd.f32 %v3981_v60, %v8540_v21  ;;  %v3942_v0 = vpop.f32.mrb[26].mxu0  ;;  %v3983_v1 = vpop.f32.mrb[26].mxu1  ;;  %4569 = vmatpush1.bf16.msra.mxu0 %v7085_v51  ;;  %4610 = vmatpush1.bf16.msra.mxu1 %v7088_v52 }
 0x2a7   : > { %v4666_v4 = vmax.f32 %v3939_v57, 0.0  ;;  %v4668_v5 = vmax.f32 %v3980_v58, 0.0  ;;  %v3943_v6 = vpop.f32.mrb[27].mxu0  ;;  %v3984_v7 = vpop.f32.mrb[27].mxu1  ;;  %4570 = vmatprep.subr.bf16.mxu0 %v7093_v56  ;;  %4611 = vmatprep.subr.bf16.mxu1 %v7096_v53 }
 0x2a8   : > { %v4667_v9 = vmax.f32 %v3941_v62, 0.0  ;;  %v4669_v10 = vmax.f32 %v3982_v63, 0.0 }
 0x2aa   : > { %v6161_v11 = vpack.c.bf16 %v4667_v9, %v4666_v4  ;;  %v6162_v13 = vpack.c.bf16 %v4669_v10, %v4668_v5  ;;  %4571 = vmatpush1.bf16.msra.mxu0 %v7091_v61  ;;  %4612 = vmatpush1.bf16.msra.mxu1 %v7094_v2 }
 0x2ab   : > { %4572 = vmatprep.subr.bf16.mxu0 %v7099_v3  ;;  %4613 = vmatprep.subr.bf16.mxu1 %v7102_v8 }
 0x2ac   : > { %4954 = vst [vmem:[%s8561_s12 + $0x60] sm:$0xff] %v6161_v11  ;;  %4955 = vst [vmem:[%s8561_s12 + $0x68] sm:$0xff] %v6162_v13 }
 0x2ae   : > { %4573 = vmatpush1.bf16.msra.mxu0 %v7097_v14  ;;  %4614 = vmatpush1.bf16.msra.mxu1 %v7100_v15 }
 0x2b1   : > { %6085 = vmatmul.mubr.msk.bf16.vlgmr.msra.gmra.mrb[56].mxu0 %vm3408_vm0, %v8652_v23  ;;  %6086 = vmatmul.mubr.msk.bf16.vlgmr.msra.gmra.mrb[56].mxu1 %vm3408_vm0, %v8652_v23 }
 0x2c0   : > { %v4020_v16 = vpop.f32.mrb[28].mxu0  ;;  %v4061_v17 = vpop.f32.mrb[28].mxu1 }
 0x2c1   : > { %v4021_v18 = vadd.f32 %v4020_v16, %v8540_v21  ;;  %v4062_v19 = vadd.f32 %v4061_v17, %v8540_v21  ;;  %v4022_v20 = vpop.f32.mrb[29].mxu0  ;;  %v4063_v22 = vpop.f32.mrb[29].mxu1 }
 0x2c2   : > { %v4023_v24 = vadd.f32 %v4022_v20, %v8540_v21  ;;  %v4064_v26 = vadd.f32 %v4063_v22, %v8540_v21  ;;  %v4024_v27 = vpop.f32.mrb[30].mxu0  ;;  %v4065_v28 = vpop.f32.mrb[30].mxu1 }
 0x2c3   : > { %v4670_v29 = vmax.f32 %v4021_v18, 0.0  ;;  %v4672_v30 = vmax.f32 %v4062_v19, 0.0  ;;  %v4025_v31 = vpop.f32.mrb[31].mxu0  ;;  %v4066_v23 = vpop.f32.mrb[31].mxu1 }
 0x2c4   : > { %v4671_v32 = vmax.f32 %v4023_v24, 0.0  ;;  %v4673_v33 = vmax.f32 %v4064_v26, 0.0 }
 0x2c6   : > { %v6163_v34 = vpack.c.bf16 %v4671_v32, %v4670_v29  ;;  %v6164_v35 = vpack.c.bf16 %v4673_v33, %v4672_v30 }
 0x2c8   : > { %4956 = vst [vmem:[%s8561_s12 + $0x70] sm:$0xff] %v6163_v34  ;;  %4957 = vst [vmem:[%s8561_s12 + $0x78] sm:$0xff] %v6164_v35 }
 0x2dc   : > { %v4102_v36 = vpop.f32.mrb[32].mxu0  ;;  %v4143_v37 = vpop.f32.mrb[32].mxu1 }
 0x2dd   : > { %v4103_v38 = vadd.f32 %v4102_v36, %v8540_v21  ;;  %v4144_v39 = vadd.f32 %v4143_v37, %v8540_v21  ;;  %v4104_v40 = vpop.f32.mrb[33].mxu0  ;;  %v4145_v41 = vpop.f32.mrb[33].mxu1 }
 0x2de   : > { %v4105_v42 = vadd.f32 %v4104_v40, %v8540_v21  ;;  %v4146_v43 = vadd.f32 %v4145_v41, %v8540_v21  ;;  %v4106_v12 = vpop.f32.mrb[34].mxu0  ;;  %v4147_v44 = vpop.f32.mrb[34].mxu1 }
 0x2df   : > { %v4674_v45 = vmax.f32 %v4103_v38, 0.0  ;;  %v4676_v46 = vmax.f32 %v4144_v39, 0.0  ;;  %v4107_v47 = vpop.f32.mrb[35].mxu0  ;;  %v4148_v48 = vpop.f32.mrb[35].mxu1 }
 0x2e0   : > { %v4675_v49 = vmax.f32 %v4105_v42, 0.0  ;;  %v4677_v25 = vmax.f32 %v4146_v43, 0.0 }
 0x2e2   : > { %v6165_v50 = vpack.c.bf16 %v4675_v49, %v4674_v45  ;;  %v6166_v51 = vpack.c.bf16 %v4677_v25, %v4676_v46 }
 0x2e4   : > { %4958 = vst [vmem:[%s8561_s12 + $0x80] sm:$0xff] %v6165_v50  ;;  %4959 = vst [vmem:[%s8561_s12 + $0x88] sm:$0xff] %v6166_v51 }
 0x2f8   : > { %v4184_v52 = vpop.f32.mrb[36].mxu0  ;;  %v4225_v56 = vpop.f32.mrb[36].mxu1 }
 0x2f9   : > { %v4185_v53 = vadd.f32 %v4184_v52, %v8540_v21  ;;  %v4226_v54 = vadd.f32 %v4225_v56, %v8540_v21  ;;  %v4186_v55 = vpop.f32.mrb[37].mxu0  ;;  %v4227_v57 = vpop.f32.mrb[37].mxu1 }
 0x2fa   : > { %v4187_v58 = vadd.f32 %v4186_v55, %v8540_v21  ;;  %v4228_v59 = vadd.f32 %v4227_v57, %v8540_v21  ;;  %v4188_v60 = vpop.f32.mrb[38].mxu0  ;;  %v4229_v61 = vpop.f32.mrb[38].mxu1 }
 0x2fb   : > { %v4678_v62 = vmax.f32 %v4185_v53, 0.0  ;;  %v4680_v63 = vmax.f32 %v4226_v54, 0.0  ;;  %v4189_v0 = vpop.f32.mrb[39].mxu0  ;;  %v4230_v1 = vpop.f32.mrb[39].mxu1 }
 0x2fc   : > { %v4679_v2 = vmax.f32 %v4187_v58, 0.0  ;;  %v4681_v3 = vmax.f32 %v4228_v59, 0.0 }
 0x2fe   : > { %v6167_v4 = vpack.c.bf16 %v4679_v2, %v4678_v62  ;;  %v6168_v5 = vpack.c.bf16 %v4681_v3, %v4680_v63 }
 0x300   : > { %4960 = vst [vmem:[%s8561_s12 + $0x90] sm:$0xff] %v6167_v4  ;;  %4961 = vst [vmem:[%s8561_s12 + $0x98] sm:$0xff] %v6168_v5 }
 0x314   : > { %v4266_v6 = vpop.f32.mrb[40].mxu0  ;;  %v4307_v7 = vpop.f32.mrb[40].mxu1 }
 0x315   : > { %v4267_v8 = vadd.f32 %v4266_v6, %v8540_v21  ;;  %v4308_v9 = vadd.f32 %v4307_v7, %v8540_v21  ;;  %v4268_v10 = vpop.f32.mrb[41].mxu0  ;;  %v4309_v11 = vpop.f32.mrb[41].mxu1 }
 0x316   : > { %v4269_v13 = vadd.f32 %v4268_v10, %v8540_v21  ;;  %v4310_v14 = vadd.f32 %v4309_v11, %v8540_v21  ;;  %v4270_v15 = vpop.f32.mrb[42].mxu0  ;;  %v4311_v16 = vpop.f32.mrb[42].mxu1 }
 0x317   : > { %v4682_v17 = vmax.f32 %v4267_v8, 0.0  ;;  %v4684_v18 = vmax.f32 %v4308_v9, 0.0  ;;  %v4271_v19 = vpop.f32.mrb[43].mxu0  ;;  %v4312_v20 = vpop.f32.mrb[43].mxu1 }
 0x318   : > { %v4683_v22 = vmax.f32 %v4269_v13, 0.0  ;;  %v4685_v24 = vmax.f32 %v4310_v14, 0.0 }
 0x31a   : > { %v6169_v26 = vpack.c.bf16 %v4683_v22, %v4682_v17  ;;  %v6170_v27 = vpack.c.bf16 %v4685_v24, %v4684_v18 }
 0x31c   : > { %4962 = vst [vmem:[%s8561_s12 + $0xa0] sm:$0xff] %v6169_v26  ;;  %4963 = vst [vmem:[%s8561_s12 + $0xa8] sm:$0xff] %v6170_v27 }
 0x330   : > { %v4348_v28 = vpop.f32.mrb[44].mxu0  ;;  %v4389_v29 = vpop.f32.mrb[44].mxu1 }
 0x331   : > { %v4349_v30 = vadd.f32 %v4348_v28, %v8540_v21  ;;  %v4390_v31 = vadd.f32 %v4389_v29, %v8540_v21  ;;  %v4350_v23 = vpop.f32.mrb[45].mxu0  ;;  %v4391_v32 = vpop.f32.mrb[45].mxu1 }
 0x332   : > { %v4351_v33 = vadd.f32 %v4350_v23, %v8540_v21  ;;  %v4392_v34 = vadd.f32 %v4391_v32, %v8540_v21  ;;  %v4352_v35 = vpop.f32.mrb[46].mxu0  ;;  %v4393_v36 = vpop.f32.mrb[46].mxu1 }
 0x333   : > { %v4686_v37 = vmax.f32 %v4349_v30, 0.0  ;;  %v4688_v38 = vmax.f32 %v4390_v31, 0.0  ;;  %v4353_v39 = vpop.f32.mrb[47].mxu0  ;;  %v4394_v40 = vpop.f32.mrb[47].mxu1 }
 0x334   : > { %v4687_v41 = vmax.f32 %v4351_v33, 0.0  ;;  %v4689_v42 = vmax.f32 %v4392_v34, 0.0 }
 0x336   : > { %v6171_v43 = vpack.c.bf16 %v4687_v41, %v4686_v37  ;;  %v6172_v12 = vpack.c.bf16 %v4689_v42, %v4688_v38 }
 0x338   : > { %4964 = vst [vmem:[%s8561_s12 + $0xb0] sm:$0xff] %v6171_v43  ;;  %4965 = vst [vmem:[%s8561_s12 + $0xb8] sm:$0xff] %v6172_v12 }
 0x34c   : > { %v4430_v44 = vpop.f32.mrb[48].mxu0  ;;  %v4471_v45 = vpop.f32.mrb[48].mxu1 }
 0x34d   : > { %v4431_v46 = vadd.f32 %v4430_v44, %v8540_v21  ;;  %v4472_v47 = vadd.f32 %v4471_v45, %v8540_v21  ;;  %v4432_v48 = vpop.f32.mrb[49].mxu0  ;;  %v4473_v49 = vpop.f32.mrb[49].mxu1 }
 0x34e   : > { %v4433_v25 = vadd.f32 %v4432_v48, %v8540_v21  ;;  %v4474_v50 = vadd.f32 %v4473_v49, %v8540_v21  ;;  %v4434_v51 = vpop.f32.mrb[50].mxu0  ;;  %v4475_v52 = vpop.f32.mrb[50].mxu1 }
 0x34f   : > { %v4690_v56 = vmax.f32 %v4431_v46, 0.0  ;;  %v4692_v53 = vmax.f32 %v4472_v47, 0.0  ;;  %v4435_v54 = vpop.f32.mrb[51].mxu0  ;;  %v4476_v55 = vpop.f32.mrb[51].mxu1 }
 0x350   : > { %v4691_v57 = vmax.f32 %v4433_v25, 0.0  ;;  %v4693_v58 = vmax.f32 %v4474_v50, 0.0 }
 0x352   : > { %v6173_v59 = vpack.c.bf16 %v4691_v57, %v4690_v56  ;;  %v6174_v60 = vpack.c.bf16 %v4693_v58, %v4692_v53 }
 0x354   : > { %4966 = vst [vmem:[%s8561_s12 + $0xc0] sm:$0xff] %v6173_v59  ;;  %4967 = vst [vmem:[%s8561_s12 + $0xc8] sm:$0xff] %v6174_v60 }
 0x368   : > { %v4512_v61 = vpop.f32.mrb[52].mxu0  ;;  %v4553_v62 = vpop.f32.mrb[52].mxu1 }
 0x369   : > { %v4513_v63 = vadd.f32 %v4512_v61, %v8540_v21  ;;  %v4554_v0 = vadd.f32 %v4553_v62, %v8540_v21  ;;  %v4514_v1 = vpop.f32.mrb[53].mxu0  ;;  %v4555_v2 = vpop.f32.mrb[53].mxu1 }
 0x36a   : > { %v4515_v3 = vadd.f32 %v4514_v1, %v8540_v21  ;;  %v4556_v4 = vadd.f32 %v4555_v2, %v8540_v21  ;;  %v4516_v5 = vpop.f32.mrb[54].mxu0  ;;  %v4557_v6 = vpop.f32.mrb[54].mxu1 }
 0x36b   : > { %v4694_v7 = vmax.f32 %v4513_v63, 0.0  ;;  %v4696_v8 = vmax.f32 %v4554_v0, 0.0  ;;  %v4517_v9 = vpop.f32.mrb[55].mxu0  ;;  %v4558_v10 = vpop.f32.mrb[55].mxu1 }
 0x36c   : > { %v4695_v11 = vmax.f32 %v4515_v3, 0.0  ;;  %v4697_v13 = vmax.f32 %v4556_v4, 0.0 }
 0x36e   : > { %v6175_v14 = vpack.c.bf16 %v4695_v11, %v4694_v7  ;;  %v6176_v15 = vpack.c.bf16 %v4697_v13, %v4696_v8 }
 0x370   : > { %4968 = vst [vmem:[%s8561_s12 + $0xd0] sm:$0xff] %v6175_v14  ;;  %4969 = vst [vmem:[%s8561_s12 + $0xd8] sm:$0xff] %v6176_v15 }
 0x384   : > { %v4594_v16 = vpop.f32.mrb[56].mxu0  ;;  %v4635_v17 = vpop.f32.mrb[56].mxu1 }
 0x385   : > { %v4595_v18 = vadd.f32 %v4594_v16, %v8540_v21  ;;  %v4636_v19 = vadd.f32 %v4635_v17, %v8540_v21  ;;  %v4596_v20 = vpop.f32.mrb[57].mxu0  ;;  %v4637_v22 = vpop.f32.mrb[57].mxu1 }
 0x386   : > { %v4597_v24 = vadd.f32 %v4596_v20, %v8540_v21  ;;  %v4638_v26 = vadd.f32 %v4637_v22, %v8540_v21  ;;  %v4598_v27 = vpop.f32.mrb[58].mxu0  ;;  %v4639_v28 = vpop.f32.mrb[58].mxu1  ;;  %4978 = sbr.rel (!%p7441_p5) target bundleno = 1074 (0x432), region = 102 }
 0x387   : > { %v4698_v29 = vmax.f32 %v4595_v18, 0.0  ;;  %v4700_v30 = vmax.f32 %v4636_v19, 0.0  ;;  %v4599_v31 = vpop.f32.mrb[59].mxu0  ;;  %v4640_v23 = vpop.f32.mrb[59].mxu1 }
 0x388   : > { %v4699_v32 = vmax.f32 %v4597_v24, 0.0  ;;  %v4701_v33 = vmax.f32 %v4638_v26, 0.0 }
 0x38a   : > { %v6177_v34 = vpack.c.bf16 %v4699_v32, %v4698_v29  ;;  %v6178_v35 = vpack.c.bf16 %v4701_v33, %v4700_v30 }
 0x38c   : > { %4970 = vst [vmem:[%s8561_s12 + $0xe0] sm:$0xff] %v6177_v34  ;;  %4971 = vst [vmem:[%s8561_s12 + $0xe8] sm:$0xff] %v6178_v35 }
 0x38d   : > { %s9327_s26 = smov (!%p4981_p1, %s4980_s26), 60 }
 0x38e   : > { %s6117_s8 = sshll.u32 %s9327_s26, 6  ;;  %s8869_s5 = sshll.u32 %s9327_s26, 2 }
 0x38f   : > { %p6121_p2 = scmp.eq.s32.totalorder %s6117_s8, 0 }
 0x390   : > { %p4991_p3 = scmp.lt.u32.totalorder (!%p6121_p2), %s8869_s5, 8 }
 0x391   : > { %4990 = sbr.rel (%p6121_p2) target bundleno = 1074 (0x432), region = 106 }
 0x398   : > { %4994 = sbr.rel (%p4991_p3) target bundleno = 1065 (0x429), region = 110  ;;  %s8873_s20 = sand.u32 (!%p4991_p3), 7, %s8869_s5  }
 0x399   : > { %p5010_p5 = scmp.eq.s32.totalorder (!%p4991_p3), %s8873_s20, 0  ;;  %p6122_p4 = scmp.ne.s32.totalorder (!%p4991_p3), %s8873_s20, 0 }
 0x39f   : > { %5013 = sbr.rel (%p6122_p4) target bundleno = 994 (0x3e2), region = 125  ;;  %s5014_s15 = sshrl.u32 (!%p6122_p4), %s8869_s5, 3 }
 0x3a0   : > { %s8880_s18 = sshrl.u32 (!%p6122_p4), %s5014_s15, 6 }
 0x3a1   : > { %p6123_p6 = scmp.le.s32.totalorder (!%p6122_p4), %s8880_s18, 0 }
 0x3a6   : > { %5537 = sbr.rel (%p6123_p6) target bundleno = 974 (0x3ce), region = 273  ;;  %s9303_s30 = smov (!%p6123_p6), %s8867_s27 }
 0x3a7   : > { %s9304_s21 = smov (!%p6123_p6), %s8561_s12  ;;  %s8889_s9 = smov (!%p6123_p6), 0  }
 0x3a8   : > { %s8891_s28 = smov (!%p6123_p6), 0  }
 0x3ad LB: >> { %v5027_v21 = vld [vmem:[%s7327_s21] sm:$0xff]  ;;  %v5029_v36 = vld [vmem:[%s7327_s21 + $0x8] sm:$0xff]  ;;  %v5031_v37 = vld [vmem:[%s7327_s21 + $0x10] sm:$0xff]  ;;  %s5155_s14 = sadd.s32 1, %s7331_s9  ;;  %s5021_s28 = sadd.s32 1, %s7335_s28   ;;  %s7335_s28 = sphi %s8891_s28, %s5021_s28   ;;  %s7331_s9 = sphi %s8889_s9, %s9307_s9   ;;  %s7327_s21 = sphi %s9304_s21, %s9306_s21   ;;  %s7323_s30 = sphi %s9303_s30, %s9305_s30  }
 0x3ae   : >> { %5028 = vst [vmem:[%s7323_s30] sm:$0xff] %v5027_v21  ;;  %5030 = vst [vmem:[%s7323_s30 + $0x8] sm:$0xff] %v5029_v36  ;;  %v5033_v38 = vld [vmem:[%s7327_s21 + $0x18] sm:$0xff]  ;;  %v5035_v39 = vld [vmem:[%s7327_s21 + $0x20] sm:$0xff]  ;;  %p5156_p7 = scmp.ge.s32.totalorder %s5155_s14, %s8880_s18  ;;  %p5020_p8 = scmp.ge.s32.totalorder %s5021_s28, %s8880_s18 }
 0x3af   : >> { %5032 = vst [vmem:[%s7323_s30 + $0x10] sm:$0xff] %v5031_v37  ;;  %v5037_v40 = vld [vmem:[%s7327_s21 + $0x28] sm:$0xff]  ;;  %5034 = vst [vmem:[%s7323_s30 + $0x18] sm:$0xff] %v5033_v38  ;;  %v5039_v41 = vld [vmem:[%s7327_s21 + $0x30] sm:$0xff] }
 0x3b0   : >> { %5036 = vst [vmem:[%s7323_s30 + $0x20] sm:$0xff] %v5035_v39  ;;  %5038 = vst [vmem:[%s7323_s30 + $0x28] sm:$0xff] %v5037_v40  ;;  %v5041_v42 = vld [vmem:[%s7327_s21 + $0x38] sm:$0xff]  ;;  %v5043_v43 = vld [vmem:[%s7327_s21 + $0x40] sm:$0xff]  ;;  %s9329_s14 = smov (%p5156_p7, %s5155_s14), 0 }
 0x3b1   : >> { %5040 = vst [vmem:[%s7323_s30 + $0x30] sm:$0xff] %v5039_v41  ;;  %5042 = vst [vmem:[%s7323_s30 + $0x38] sm:$0xff] %v5041_v42  ;;  %v5045_v12 = vld [vmem:[%s7327_s21 + $0x48] sm:$0xff]  ;;  %v5047_v44 = vld [vmem:[%s7327_s21 + $0x50] sm:$0xff]  ;;  %s6124_s4 = sshll.u32 %s9329_s14, 9  ;;  %s9307_s9 = smov %s9329_s14 }
 0x3b2   : >> { %5044 = vst [vmem:[%s7323_s30 + $0x40] sm:$0xff] %v5043_v43  ;;  %v5049_v45 = vld [vmem:[%s7327_s21 + $0x58] sm:$0xff]  ;;  %5046 = vst [vmem:[%s7323_s30 + $0x48] sm:$0xff] %v5045_v12  ;;  %v5051_v46 = vld [vmem:[%s7327_s21 + $0x60] sm:$0xff]  ;;  %s8947_s10 = scalar_lea.vmem %s8561_s12, %s6124_s4 [#allocation3]   ;;  %s8950_s6 = scalar_lea.vmem %s8867_s27, %s6124_s4  }
 0x3b3   : >> { %5048 = vst [vmem:[%s7323_s30 + $0x50] sm:$0xff] %v5047_v44  ;;  %5050 = vst [vmem:[%s7323_s30 + $0x58] sm:$0xff] %v5049_v45  ;;  %v5053_v47 = vld [vmem:[%s7327_s21 + $0x68] sm:$0xff]  ;;  %v5055_v48 = vld [vmem:[%s7327_s21 + $0x70] sm:$0xff] }
 0x3b4   : >> { %5052 = vst [vmem:[%s7323_s30 + $0x60] sm:$0xff] %v5051_v46  ;;  %5054 = vst [vmem:[%s7323_s30 + $0x68] sm:$0xff] %v5053_v47  ;;  %v5057_v49 = vld [vmem:[%s7327_s21 + $0x78] sm:$0xff]  ;;  %v5059_v25 = vld [vmem:[%s7327_s21 + $0x80] sm:$0xff] }
 0x3b5   : >> { %5056 = vst [vmem:[%s7323_s30 + $0x70] sm:$0xff] %v5055_v48  ;;  %v5061_v50 = vld [vmem:[%s7327_s21 + $0x88] sm:$0xff]  ;;  %5058 = vst [vmem:[%s7323_s30 + $0x78] sm:$0xff] %v5057_v49  ;;  %v5063_v51 = vld [vmem:[%s7327_s21 + $0x90] sm:$0xff] }
 0x3b6   : >> { %5060 = vst [vmem:[%s7323_s30 + $0x80] sm:$0xff] %v5059_v25  ;;  %5062 = vst [vmem:[%s7323_s30 + $0x88] sm:$0xff] %v5061_v50  ;;  %v5065_v52 = vld [vmem:[%s7327_s21 + $0x98] sm:$0xff]  ;;  %v5067_v56 = vld [vmem:[%s7327_s21 + $0xa0] sm:$0xff] }
 0x3b7   : >> { %5064 = vst [vmem:[%s7323_s30 + $0x90] sm:$0xff] %v5063_v51  ;;  %5066 = vst [vmem:[%s7323_s30 + $0x98] sm:$0xff] %v5065_v52  ;;  %v5069_v53 = vld [vmem:[%s7327_s21 + $0xa8] sm:$0xff]  ;;  %v5071_v54 = vld [vmem:[%s7327_s21 + $0xb0] sm:$0xff] }
 0x3b8   : >> { %5068 = vst [vmem:[%s7323_s30 + $0xa0] sm:$0xff] %v5067_v56  ;;  %v5073_v55 = vld [vmem:[%s7327_s21 + $0xb8] sm:$0xff]  ;;  %5070 = vst [vmem:[%s7323_s30 + $0xa8] sm:$0xff] %v5069_v53  ;;  %v5075_v57 = vld [vmem:[%s7327_s21 + $0xc0] sm:$0xff] }
 0x3b9   : >> { %5072 = vst [vmem:[%s7323_s30 + $0xb0] sm:$0xff] %v5071_v54  ;;  %5074 = vst [vmem:[%s7323_s30 + $0xb8] sm:$0xff] %v5073_v55  ;;  %v5077_v58 = vld [vmem:[%s7327_s21 + $0xc8] sm:$0xff]  ;;  %v5079_v59 = vld [vmem:[%s7327_s21 + $0xd0] sm:$0xff] }
 0x3ba   : >> { %5076 = vst [vmem:[%s7323_s30 + $0xc0] sm:$0xff] %v5075_v57  ;;  %5078 = vst [vmem:[%s7323_s30 + $0xc8] sm:$0xff] %v5077_v58  ;;  %v5081_v60 = vld [vmem:[%s7327_s21 + $0xd8] sm:$0xff]  ;;  %v5083_v61 = vld [vmem:[%s7327_s21 + $0xe0] sm:$0xff] }
 0x3bb   : >> { %5080 = vst [vmem:[%s7323_s30 + $0xd0] sm:$0xff] %v5079_v59  ;;  %v5085_v62 = vld [vmem:[%s7327_s21 + $0xe8] sm:$0xff]  ;;  %5082 = vst [vmem:[%s7323_s30 + $0xd8] sm:$0xff] %v5081_v60  ;;  %v5087_v63 = vld [vmem:[%s7327_s21 + $0xf0] sm:$0xff] }
 0x3bc   : >> { %5084 = vst [vmem:[%s7323_s30 + $0xe0] sm:$0xff] %v5083_v61  ;;  %5086 = vst [vmem:[%s7323_s30 + $0xe8] sm:$0xff] %v5085_v62  ;;  %v5089_v0 = vld [vmem:[%s7327_s21 + $0xf8] sm:$0xff]  ;;  %v5091_v1 = vld [vmem:[%s7327_s21 + $0x100] sm:$0xff] }
 0x3bd   : >> { %5088 = vst [vmem:[%s7323_s30 + $0xf0] sm:$0xff] %v5087_v63  ;;  %5090 = vst [vmem:[%s7323_s30 + $0xf8] sm:$0xff] %v5089_v0  ;;  %v5093_v2 = vld [vmem:[%s7327_s21 + $0x108] sm:$0xff]  ;;  %v5095_v3 = vld [vmem:[%s7327_s21 + $0x110] sm:$0xff] }
 0x3be   : >> { %5092 = vst [vmem:[%s7323_s30 + $0x100] sm:$0xff] %v5091_v1  ;;  %v5097_v4 = vld [vmem:[%s7327_s21 + $0x118] sm:$0xff]  ;;  %5094 = vst [vmem:[%s7323_s30 + $0x108] sm:$0xff] %v5093_v2  ;;  %v5099_v5 = vld [vmem:[%s7327_s21 + $0x120] sm:$0xff] }
 0x3bf   : >> { %5096 = vst [vmem:[%s7323_s30 + $0x110] sm:$0xff] %v5095_v3  ;;  %5098 = vst [vmem:[%s7323_s30 + $0x118] sm:$0xff] %v5097_v4  ;;  %v5101_v6 = vld [vmem:[%s7327_s21 + $0x128] sm:$0xff]  ;;  %v5103_v7 = vld [vmem:[%s7327_s21 + $0x130] sm:$0xff] }
 0x3c0   : >> { %5100 = vst [vmem:[%s7323_s30 + $0x120] sm:$0xff] %v5099_v5  ;;  %5102 = vst [vmem:[%s7323_s30 + $0x128] sm:$0xff] %v5101_v6  ;;  %v5105_v8 = vld [vmem:[%s7327_s21 + $0x138] sm:$0xff]  ;;  %v5107_v9 = vld [vmem:[%s7327_s21 + $0x140] sm:$0xff] }
 0x3c1   : >> { %5104 = vst [vmem:[%s7323_s30 + $0x130] sm:$0xff] %v5103_v7  ;;  %v5109_v10 = vld [vmem:[%s7327_s21 + $0x148] sm:$0xff]  ;;  %5106 = vst [vmem:[%s7323_s30 + $0x138] sm:$0xff] %v5105_v8  ;;  %v5111_v11 = vld [vmem:[%s7327_s21 + $0x150] sm:$0xff] }
 0x3c2   : >> { %5108 = vst [vmem:[%s7323_s30 + $0x140] sm:$0xff] %v5107_v9  ;;  %5110 = vst [vmem:[%s7323_s30 + $0x148] sm:$0xff] %v5109_v10  ;;  %v5113_v13 = vld [vmem:[%s7327_s21 + $0x158] sm:$0xff]  ;;  %v5115_v14 = vld [vmem:[%s7327_s21 + $0x160] sm:$0xff] }
 0x3c3   : >> { %5112 = vst [vmem:[%s7323_s30 + $0x150] sm:$0xff] %v5111_v11  ;;  %5114 = vst [vmem:[%s7323_s30 + $0x158] sm:$0xff] %v5113_v13  ;;  %v5117_v15 = vld [vmem:[%s7327_s21 + $0x168] sm:$0xff]  ;;  %v5119_v16 = vld [vmem:[%s7327_s21 + $0x170] sm:$0xff] }
 0x3c4   : >> { %5116 = vst [vmem:[%s7323_s30 + $0x160] sm:$0xff] %v5115_v14  ;;  %v5121_v17 = vld [vmem:[%s7327_s21 + $0x178] sm:$0xff]  ;;  %5118 = vst [vmem:[%s7323_s30 + $0x168] sm:$0xff] %v5117_v15  ;;  %v5123_v18 = vld [vmem:[%s7327_s21 + $0x180] sm:$0xff] }
 0x3c5   : >> { %5120 = vst [vmem:[%s7323_s30 + $0x170] sm:$0xff] %v5119_v16  ;;  %5122 = vst [vmem:[%s7323_s30 + $0x178] sm:$0xff] %v5121_v17  ;;  %v5125_v19 = vld [vmem:[%s7327_s21 + $0x188] sm:$0xff]  ;;  %v5127_v20 = vld [vmem:[%s7327_s21 + $0x190] sm:$0xff] }
 0x3c6   : >> { %5124 = vst [vmem:[%s7323_s30 + $0x180] sm:$0xff] %v5123_v18  ;;  %5126 = vst [vmem:[%s7323_s30 + $0x188] sm:$0xff] %v5125_v19  ;;  %v5129_v22 = vld [vmem:[%s7327_s21 + $0x198] sm:$0xff]  ;;  %v5131_v24 = vld [vmem:[%s7327_s21 + $0x1a0] sm:$0xff] }
 0x3c7   : >> { %5128 = vst [vmem:[%s7323_s30 + $0x190] sm:$0xff] %v5127_v20  ;;  %v5133_v26 = vld [vmem:[%s7327_s21 + $0x1a8] sm:$0xff]  ;;  %5130 = vst [vmem:[%s7323_s30 + $0x198] sm:$0xff] %v5129_v22  ;;  %v5135_v27 = vld [vmem:[%s7327_s21 + $0x1b0] sm:$0xff]  ;;  %5023 = sbr.rel (!%p5020_p8) target bundleno = 941 (0x3ad), region = 279 }
 0x3c8   : >> { %5132 = vst [vmem:[%s7323_s30 + $0x1a0] sm:$0xff] %v5131_v24  ;;  %5134 = vst [vmem:[%s7323_s30 + $0x1a8] sm:$0xff] %v5133_v26  ;;  %v5137_v28 = vld [vmem:[%s7327_s21 + $0x1b8] sm:$0xff]  ;;  %v5139_v29 = vld [vmem:[%s7327_s21 + $0x1c0] sm:$0xff] }
 0x3c9   : >> { %5136 = vst [vmem:[%s7323_s30 + $0x1b0] sm:$0xff] %v5135_v27  ;;  %5138 = vst [vmem:[%s7323_s30 + $0x1b8] sm:$0xff] %v5137_v28  ;;  %v5141_v30 = vld [vmem:[%s7327_s21 + $0x1c8] sm:$0xff]  ;;  %v5143_v31 = vld [vmem:[%s7327_s21 + $0x1d0] sm:$0xff] }
 0x3ca   : >> { %5140 = vst [vmem:[%s7323_s30 + $0x1c0] sm:$0xff] %v5139_v29  ;;  %v5145_v23 = vld [vmem:[%s7327_s21 + $0x1d8] sm:$0xff]  ;;  %5142 = vst [vmem:[%s7323_s30 + $0x1c8] sm:$0xff] %v5141_v30  ;;  %v5147_v32 = vld [vmem:[%s7327_s21 + $0x1e0] sm:$0xff] }
 0x3cb   : >> { %5144 = vst [vmem:[%s7323_s30 + $0x1d0] sm:$0xff] %v5143_v31  ;;  %5146 = vst [vmem:[%s7323_s30 + $0x1d8] sm:$0xff] %v5145_v23  ;;  %v5149_v33 = vld [vmem:[%s7327_s21 + $0x1e8] sm:$0xff]  ;;  %v5151_v34 = vld [vmem:[%s7327_s21 + $0x1f0] sm:$0xff] }
 0x3cc   : >> { %5148 = vst [vmem:[%s7323_s30 + $0x1e0] sm:$0xff] %v5147_v32  ;;  %5150 = vst [vmem:[%s7323_s30 + $0x1e8] sm:$0xff] %v5149_v33  ;;  %v5153_v35 = vld [vmem:[%s7327_s21 + $0x1f8] sm:$0xff]  ;;  %s9306_s21 = smov %s8947_s10 }
 0x3cd   : >> { %5152 = vst [vmem:[%s7323_s30 + $0x1f0] sm:$0xff] %v5151_v34  ;;  %5154 = vst [vmem:[%s7323_s30 + $0x1f8] sm:$0xff] %v5153_v35  ;;  %s9305_s30 = smov %s8950_s6 }
 0x3ce PF: > { %s9056_s7 = sand.u32 63, %s5014_s15   ;;  %s6180_s11 = sshll.u32 %s8880_s18, 13 }
 0x3cf   : > { %s5166_s29 = sshra.s32 %s6180_s11, 4  ;;  %p6129_p9 = scmp.le.s32.totalorder %s9056_s7, 0 }
 0x3d0   : > { %s5167_s23 = scalar_lea.vmem %s8561_s12, %s5166_s29 [#allocation3]   ;;  %s5170_s24 = scalar_lea.vmem %s8867_s27, %s5166_s29  }
 0x3d1   : > { %5551 = sbr.rel (%p6129_p9) target bundleno = 994 (0x3e2), region = 284  ;;  %s7337_s25 = smov (!%p6129_p9), %s5170_s24  }
 0x3d2   : > { %s7341_s26 = smov (!%p6129_p9), %s5167_s23   ;;  %s7345_s17 = smov (!%p6129_p9), 0  }
 0x3d3   : > { %s7349_s22 = smov (!%p6129_p9), 0  }
 0x3d8 LB: >> { %v5182_v21 = vld [vmem:[%s7343_s26] sm:$0xff]  ;;  %s5184_s8 = sadd.s32 1, %s7347_s17  ;;  %s5176_s22 = sadd.s32 1, %s7351_s22   ;;  %s7351_s22 = sphi %s7349_s22, %s5176_s22   ;;  %s7347_s17 = sphi %s7345_s17, %s7346_s17   ;;  %s7343_s26 = sphi %s7341_s26, %s5189_s26   ;;  %s7339_s25 = sphi %s7337_s25, %s5190_s25  }
 0x3d9   : >> { %5183 = vst [vmem:[%s7339_s25] sm:$0xff] %v5182_v21  ;;  %p5185_p10 = scmp.ge.s32.totalorder %s5184_s8, %s9056_s7  ;;  %p5175_p11 = scmp.ge.s32.totalorder %s5176_s22, %s9056_s7 }
 0x3db   : >> { %s9331_s8 = smov (%p5185_p10, %s5184_s8), 0  ;;  %5178 = sbr.rel (!%p5175_p11) target bundleno = 984 (0x3d8), region = 290 }
 0x3dc   : >> { %s6130_s15 = sshll.u32 %s9331_s8, 3  ;;  %s7346_s17 = smov %s9331_s8  }
 0x3dd   : >> { %s5189_s26 = scalar_lea.vmem %s5167_s23, %s6130_s15 [#allocation3]   ;;  %s5190_s25 = scalar_lea.vmem %s5170_s24, %s6130_s15  }
 0x3e2 PF: > { %5193 = sbr.rel (%p5010_p5) target bundleno = 1065 (0x429), region = 143  ;;  %s9068_s18 = ssub.s32 (!%p5010_p5), %s8869_s5, %s8873_s20 }
 0x3e3   : > { %s5199_s30 = sshrl.u32 (!%p5010_p5), %s8869_s5, 3  ;;  %s5196_s21 = scalar_lea.vmem (!%p5010_p5), %s8561_s12, %s9068_s18 [#allocation3] }
 0x3e4   : > { %s5198_s9 = scalar_lea.vmem (!%p5010_p5), %s8867_s27, %s9068_s18  ;;  %s9077_s28 = sshrl.u32 (!%p5010_p5), %s5199_s30, 6 }
 0x3e5   : > { %p6132_p12 = scmp.le.s32.totalorder (!%p5010_p5), %s9077_s28, 0 }
 0x3e9   : > { %5565 = sbr.rel (%p6132_p12) target bundleno = 1041 (0x411), region = 295  ;;  %s9308_s14 = smov (!%p6132_p12), %s8867_s27 }
 0x3ea   : > { %s9309_s4 = smov (!%p6132_p12), %s8561_s12  ;;  %s9086_s10 = smov (!%p6132_p12), 0  }
 0x3eb   : > { %s9088_s6 = smov (!%p6132_p12), 0  }
 0x3f0 LB: >> { %v5212_v36 = vld [vmem:[%s7359_s4] sm:$0xff]  ;;  %v5214_v37 = vld [vmem:[%s7359_s4 + $0x8] sm:$0xff]  ;;  %v5216_v38 = vld [vmem:[%s7359_s4 + $0x10] sm:$0xff]  ;;  %s5340_s7 = sadd.s32 1, %s7363_s10  ;;  %s5206_s6 = sadd.s32 1, %s7367_s6   ;;  %s7367_s6 = sphi %s9088_s6, %s5206_s6   ;;  %s7363_s10 = sphi %s9086_s10, %s9312_s10   ;;  %s7359_s4 = sphi %s9309_s4, %s9311_s4   ;;  %s7355_s14 = sphi %s9308_s14, %s9310_s14  }
 0x3f1   : >> { %5213 = vst [vmem:[%s7355_s14] sm:$0xff] %v5212_v36  ;;  %5215 = vst [vmem:[%s7355_s14 + $0x8] sm:$0xff] %v5214_v37  ;;  %v5218_v39 = vld [vmem:[%s7359_s4 + $0x18] sm:$0xff]  ;;  %v5220_v40 = vld [vmem:[%s7359_s4 + $0x20] sm:$0xff]  ;;  %p5341_p13 = scmp.ge.s32.totalorder %s5340_s7, %s9077_s28  ;;  %p5205_p0 = scmp.ge.s32.totalorder %s5206_s6, %s9077_s28 }
 0x3f2   : >> { %5217 = vst [vmem:[%s7355_s14 + $0x10] sm:$0xff] %v5216_v38  ;;  %v5222_v41 = vld [vmem:[%s7359_s4 + $0x28] sm:$0xff]  ;;  %5219 = vst [vmem:[%s7355_s14 + $0x18] sm:$0xff] %v5218_v39  ;;  %v5224_v42 = vld [vmem:[%s7359_s4 + $0x30] sm:$0xff] }
 0x3f3   : >> { %5221 = vst [vmem:[%s7355_s14 + $0x20] sm:$0xff] %v5220_v40  ;;  %5223 = vst [vmem:[%s7355_s14 + $0x28] sm:$0xff] %v5222_v41  ;;  %v5226_v43 = vld [vmem:[%s7359_s4 + $0x38] sm:$0xff]  ;;  %v5228_v12 = vld [vmem:[%s7359_s4 + $0x40] sm:$0xff]  ;;  %s9333_s7 = smov (%p5341_p13, %s5340_s7), 0 }
 0x3f4   : >> { %5225 = vst [vmem:[%s7355_s14 + $0x30] sm:$0xff] %v5224_v42  ;;  %5227 = vst [vmem:[%s7355_s14 + $0x38] sm:$0xff] %v5226_v43  ;;  %v5230_v44 = vld [vmem:[%s7359_s4 + $0x48] sm:$0xff]  ;;  %v5232_v45 = vld [vmem:[%s7359_s4 + $0x50] sm:$0xff]  ;;  %s6133_s11 = sshll.u32 %s9333_s7, 9  ;;  %s9312_s10 = smov %s9333_s7 }
 0x3f5   : >> { %5229 = vst [vmem:[%s7355_s14 + $0x40] sm:$0xff] %v5228_v12  ;;  %v5234_v46 = vld [vmem:[%s7359_s4 + $0x58] sm:$0xff]  ;;  %5231 = vst [vmem:[%s7355_s14 + $0x48] sm:$0xff] %v5230_v44  ;;  %v5236_v47 = vld [vmem:[%s7359_s4 + $0x60] sm:$0xff]  ;;  %s9144_s29 = scalar_lea.vmem %s8561_s12, %s6133_s11 [#allocation3]   ;;  %s9147_s23 = scalar_lea.vmem %s8867_s27, %s6133_s11  }
 0x3f6   : >> { %5233 = vst [vmem:[%s7355_s14 + $0x50] sm:$0xff] %v5232_v45  ;;  %5235 = vst [vmem:[%s7355_s14 + $0x58] sm:$0xff] %v5234_v46  ;;  %v5238_v48 = vld [vmem:[%s7359_s4 + $0x68] sm:$0xff]  ;;  %v5240_v49 = vld [vmem:[%s7359_s4 + $0x70] sm:$0xff] }
 0x3f7   : >> { %5237 = vst [vmem:[%s7355_s14 + $0x60] sm:$0xff] %v5236_v47  ;;  %5239 = vst [vmem:[%s7355_s14 + $0x68] sm:$0xff] %v5238_v48  ;;  %v5242_v25 = vld [vmem:[%s7359_s4 + $0x78] sm:$0xff]  ;;  %v5244_v50 = vld [vmem:[%s7359_s4 + $0x80] sm:$0xff] }
 0x3f8   : >> { %5241 = vst [vmem:[%s7355_s14 + $0x70] sm:$0xff] %v5240_v49  ;;  %v5246_v51 = vld [vmem:[%s7359_s4 + $0x88] sm:$0xff]  ;;  %5243 = vst [vmem:[%s7355_s14 + $0x78] sm:$0xff] %v5242_v25  ;;  %v5248_v52 = vld [vmem:[%s7359_s4 + $0x90] sm:$0xff] }
 0x3f9   : >> { %5245 = vst [vmem:[%s7355_s14 + $0x80] sm:$0xff] %v5244_v50  ;;  %5247 = vst [vmem:[%s7355_s14 + $0x88] sm:$0xff] %v5246_v51  ;;  %v5250_v56 = vld [vmem:[%s7359_s4 + $0x98] sm:$0xff]  ;;  %v5252_v53 = vld [vmem:[%s7359_s4 + $0xa0] sm:$0xff] }
 0x3fa   : >> { %5249 = vst [vmem:[%s7355_s14 + $0x90] sm:$0xff] %v5248_v52  ;;  %5251 = vst [vmem:[%s7355_s14 + $0x98] sm:$0xff] %v5250_v56  ;;  %v5254_v54 = vld [vmem:[%s7359_s4 + $0xa8] sm:$0xff]  ;;  %v5256_v55 = vld [vmem:[%s7359_s4 + $0xb0] sm:$0xff] }
 0x3fb   : >> { %5253 = vst [vmem:[%s7355_s14 + $0xa0] sm:$0xff] %v5252_v53  ;;  %v5258_v57 = vld [vmem:[%s7359_s4 + $0xb8] sm:$0xff]  ;;  %5255 = vst [vmem:[%s7355_s14 + $0xa8] sm:$0xff] %v5254_v54  ;;  %v5260_v58 = vld [vmem:[%s7359_s4 + $0xc0] sm:$0xff] }
 0x3fc   : >> { %5257 = vst [vmem:[%s7355_s14 + $0xb0] sm:$0xff] %v5256_v55  ;;  %5259 = vst [vmem:[%s7355_s14 + $0xb8] sm:$0xff] %v5258_v57  ;;  %v5262_v59 = vld [vmem:[%s7359_s4 + $0xc8] sm:$0xff]  ;;  %v5264_v60 = vld [vmem:[%s7359_s4 + $0xd0] sm:$0xff] }
 0x3fd   : >> { %5261 = vst [vmem:[%s7355_s14 + $0xc0] sm:$0xff] %v5260_v58  ;;  %5263 = vst [vmem:[%s7355_s14 + $0xc8] sm:$0xff] %v5262_v59  ;;  %v5266_v61 = vld [vmem:[%s7359_s4 + $0xd8] sm:$0xff]  ;;  %v5268_v62 = vld [vmem:[%s7359_s4 + $0xe0] sm:$0xff] }
 0x3fe   : >> { %5265 = vst [vmem:[%s7355_s14 + $0xd0] sm:$0xff] %v5264_v60  ;;  %v5270_v63 = vld [vmem:[%s7359_s4 + $0xe8] sm:$0xff]  ;;  %5267 = vst [vmem:[%s7355_s14 + $0xd8] sm:$0xff] %v5266_v61  ;;  %v5272_v0 = vld [vmem:[%s7359_s4 + $0xf0] sm:$0xff] }
 0x3ff   : >> { %5269 = vst [vmem:[%s7355_s14 + $0xe0] sm:$0xff] %v5268_v62  ;;  %5271 = vst [vmem:[%s7355_s14 + $0xe8] sm:$0xff] %v5270_v63  ;;  %v5274_v1 = vld [vmem:[%s7359_s4 + $0xf8] sm:$0xff]  ;;  %v5276_v2 = vld [vmem:[%s7359_s4 + $0x100] sm:$0xff] }
 0x400   : >> { %5273 = vst [vmem:[%s7355_s14 + $0xf0] sm:$0xff] %v5272_v0  ;;  %5275 = vst [vmem:[%s7355_s14 + $0xf8] sm:$0xff] %v5274_v1  ;;  %v5278_v3 = vld [vmem:[%s7359_s4 + $0x108] sm:$0xff]  ;;  %v5280_v4 = vld [vmem:[%s7359_s4 + $0x110] sm:$0xff] }
 0x401   : >> { %5277 = vst [vmem:[%s7355_s14 + $0x100] sm:$0xff] %v5276_v2  ;;  %v5282_v5 = vld [vmem:[%s7359_s4 + $0x118] sm:$0xff]  ;;  %5279 = vst [vmem:[%s7355_s14 + $0x108] sm:$0xff] %v5278_v3  ;;  %v5284_v6 = vld [vmem:[%s7359_s4 + $0x120] sm:$0xff] }
 0x402   : >> { %5281 = vst [vmem:[%s7355_s14 + $0x110] sm:$0xff] %v5280_v4  ;;  %5283 = vst [vmem:[%s7355_s14 + $0x118] sm:$0xff] %v5282_v5  ;;  %v5286_v7 = vld [vmem:[%s7359_s4 + $0x128] sm:$0xff]  ;;  %v5288_v8 = vld [vmem:[%s7359_s4 + $0x130] sm:$0xff] }
 0x403   : >> { %5285 = vst [vmem:[%s7355_s14 + $0x120] sm:$0xff] %v5284_v6  ;;  %5287 = vst [vmem:[%s7355_s14 + $0x128] sm:$0xff] %v5286_v7  ;;  %v5290_v9 = vld [vmem:[%s7359_s4 + $0x138] sm:$0xff]  ;;  %v5292_v10 = vld [vmem:[%s7359_s4 + $0x140] sm:$0xff] }
 0x404   : >> { %5289 = vst [vmem:[%s7355_s14 + $0x130] sm:$0xff] %v5288_v8  ;;  %v5294_v11 = vld [vmem:[%s7359_s4 + $0x148] sm:$0xff]  ;;  %5291 = vst [vmem:[%s7355_s14 + $0x138] sm:$0xff] %v5290_v9  ;;  %v5296_v13 = vld [vmem:[%s7359_s4 + $0x150] sm:$0xff] }
 0x405   : >> { %5293 = vst [vmem:[%s7355_s14 + $0x140] sm:$0xff] %v5292_v10  ;;  %5295 = vst [vmem:[%s7355_s14 + $0x148] sm:$0xff] %v5294_v11  ;;  %v5298_v14 = vld [vmem:[%s7359_s4 + $0x158] sm:$0xff]  ;;  %v5300_v15 = vld [vmem:[%s7359_s4 + $0x160] sm:$0xff] }
 0x406   : >> { %5297 = vst [vmem:[%s7355_s14 + $0x150] sm:$0xff] %v5296_v13  ;;  %5299 = vst [vmem:[%s7355_s14 + $0x158] sm:$0xff] %v5298_v14  ;;  %v5302_v16 = vld [vmem:[%s7359_s4 + $0x168] sm:$0xff]  ;;  %v5304_v17 = vld [vmem:[%s7359_s4 + $0x170] sm:$0xff] }
 0x407   : >> { %5301 = vst [vmem:[%s7355_s14 + $0x160] sm:$0xff] %v5300_v15  ;;  %v5306_v18 = vld [vmem:[%s7359_s4 + $0x178] sm:$0xff]  ;;  %5303 = vst [vmem:[%s7355_s14 + $0x168] sm:$0xff] %v5302_v16  ;;  %v5308_v19 = vld [vmem:[%s7359_s4 + $0x180] sm:$0xff] }
 0x408   : >> { %5305 = vst [vmem:[%s7355_s14 + $0x170] sm:$0xff] %v5304_v17  ;;  %5307 = vst [vmem:[%s7355_s14 + $0x178] sm:$0xff] %v5306_v18  ;;  %v5310_v20 = vld [vmem:[%s7359_s4 + $0x188] sm:$0xff]  ;;  %v5312_v22 = vld [vmem:[%s7359_s4 + $0x190] sm:$0xff] }
 0x409   : >> { %5309 = vst [vmem:[%s7355_s14 + $0x180] sm:$0xff] %v5308_v19  ;;  %5311 = vst [vmem:[%s7355_s14 + $0x188] sm:$0xff] %v5310_v20  ;;  %v5314_v24 = vld [vmem:[%s7359_s4 + $0x198] sm:$0xff]  ;;  %v5316_v26 = vld [vmem:[%s7359_s4 + $0x1a0] sm:$0xff] }
 0x40a   : >> { %5313 = vst [vmem:[%s7355_s14 + $0x190] sm:$0xff] %v5312_v22  ;;  %v5318_v27 = vld [vmem:[%s7359_s4 + $0x1a8] sm:$0xff]  ;;  %5315 = vst [vmem:[%s7355_s14 + $0x198] sm:$0xff] %v5314_v24  ;;  %v5320_v28 = vld [vmem:[%s7359_s4 + $0x1b0] sm:$0xff]  ;;  %5208 = sbr.rel (!%p5205_p0) target bundleno = 1008 (0x3f0), region = 301 }
 0x40b   : >> { %5317 = vst [vmem:[%s7355_s14 + $0x1a0] sm:$0xff] %v5316_v26  ;;  %5319 = vst [vmem:[%s7355_s14 + $0x1a8] sm:$0xff] %v5318_v27  ;;  %v5322_v29 = vld [vmem:[%s7359_s4 + $0x1b8] sm:$0xff]  ;;  %v5324_v30 = vld [vmem:[%s7359_s4 + $0x1c0] sm:$0xff] }
 0x40c   : >> { %5321 = vst [vmem:[%s7355_s14 + $0x1b0] sm:$0xff] %v5320_v28  ;;  %5323 = vst [vmem:[%s7355_s14 + $0x1b8] sm:$0xff] %v5322_v29  ;;  %v5326_v31 = vld [vmem:[%s7359_s4 + $0x1c8] sm:$0xff]  ;;  %v5328_v23 = vld [vmem:[%s7359_s4 + $0x1d0] sm:$0xff] }
 0x40d   : >> { %5325 = vst [vmem:[%s7355_s14 + $0x1c0] sm:$0xff] %v5324_v30  ;;  %v5330_v32 = vld [vmem:[%s7359_s4 + $0x1d8] sm:$0xff]  ;;  %5327 = vst [vmem:[%s7355_s14 + $0x1c8] sm:$0xff] %v5326_v31  ;;  %v5332_v33 = vld [vmem:[%s7359_s4 + $0x1e0] sm:$0xff] }
 0x40e   : >> { %5329 = vst [vmem:[%s7355_s14 + $0x1d0] sm:$0xff] %v5328_v23  ;;  %5331 = vst [vmem:[%s7355_s14 + $0x1d8] sm:$0xff] %v5330_v32  ;;  %v5334_v34 = vld [vmem:[%s7359_s4 + $0x1e8] sm:$0xff]  ;;  %v5336_v35 = vld [vmem:[%s7359_s4 + $0x1f0] sm:$0xff] }
 0x40f   : >> { %5333 = vst [vmem:[%s7355_s14 + $0x1e0] sm:$0xff] %v5332_v33  ;;  %5335 = vst [vmem:[%s7355_s14 + $0x1e8] sm:$0xff] %v5334_v34  ;;  %v5338_v21 = vld [vmem:[%s7359_s4 + $0x1f8] sm:$0xff]  ;;  %s9311_s4 = smov %s9144_s29 }
 0x410   : >> { %5337 = vst [vmem:[%s7355_s14 + $0x1f0] sm:$0xff] %v5336_v35  ;;  %5339 = vst [vmem:[%s7355_s14 + $0x1f8] sm:$0xff] %v5338_v21  ;;  %s9310_s14 = smov %s9147_s23 }
 0x411 PF: > { %s9253_s24 = sand.u32 63, %s5199_s30   ;;  %s6182_s25 = sshll.u32 %s9077_s28, 13 }
 0x412   : > { %s5351_s26 = sshra.s32 %s6182_s25, 4  ;;  %p6138_p1 = scmp.le.s32.totalorder %s9253_s24, 0 }
 0x413   : > { %s5352_s17 = scalar_lea.vmem %s8561_s12, %s5351_s26 [#allocation3]   ;;  %s5355_s22 = scalar_lea.vmem %s8867_s27, %s5351_s26  }
 0x414   : > { %5579 = sbr.rel (%p6138_p1) target bundleno = 1061 (0x425), region = 306  ;;  %s7369_s8 = smov (!%p6138_p1), %s5355_s22  }
 0x415   : > { %s7373_s15 = smov (!%p6138_p1), %s5352_s17   ;;  %s7377_s7 = smov (!%p6138_p1), 0  }
 0x416   : > { %s7381_s6 = smov (!%p6138_p1), 0  }
 0x41b LB: >> { %v5367_v36 = vld [vmem:[%s7375_s15] sm:$0xff]  ;;  %s5369_s30 = sadd.s32 1, %s7379_s7  ;;  %s5361_s6 = sadd.s32 1, %s7383_s6   ;;  %s7383_s6 = sphi %s7381_s6, %s5361_s6   ;;  %s7379_s7 = sphi %s7377_s7, %s7378_s7   ;;  %s7375_s15 = sphi %s7373_s15, %s5374_s15   ;;  %s7371_s8 = sphi %s7369_s8, %s5375_s8  }
 0x41c   : >> { %5368 = vst [vmem:[%s7371_s8] sm:$0xff] %v5367_v36  ;;  %p5370_p2 = scmp.ge.s32.totalorder %s5369_s30, %s9253_s24  ;;  %p5360_p3 = scmp.ge.s32.totalorder %s5361_s6, %s9253_s24 }
 0x41e   : >> { %s9335_s30 = smov (%p5370_p2, %s5369_s30), 0  ;;  %5363 = sbr.rel (!%p5360_p3) target bundleno = 1051 (0x41b), region = 312 }
 0x41f   : >> { %s6139_s28 = sshll.u32 %s9335_s30, 3  ;;  %s7378_s7 = smov %s9335_s30  }
 0x420   : >> { %s5374_s15 = scalar_lea.vmem %s5352_s17, %s6139_s28 [#allocation3]   ;;  %s5375_s8 = scalar_lea.vmem %s5355_s22, %s6139_s28  }
 0x425 PF: > { %s7388_s14 = smov 0  }
 0x426   : > { %s5376_s4 = sshllo.u32 %s7388_s14, %s8873_s20 }
 0x427   : > { %v5385_v37 = vld [vmem:[%s5196_s21] sm:%s5376_s4] }
 0x428   : > { %5386 = vst [vmem:[%s5198_s9] sm:%s5376_s4] %v5385_v37 }
 0x429 PF: > { %p6141_p5 = scmp.ge.u32.totalorder %s8869_s5, 8 }
 0x42a   : > { %s7389_s10 = smov (!%p6141_p5), 0  }
 0x42b   : > { %4997 = sbr.rel (%p6141_p5) target bundleno = 1074 (0x432), region = 114  ;;  %s4998_s11 = sshllo.u32 (!%p6141_p5), %s7389_s10, %s8869_s5 }
 0x42c   : > { %v5007_v38 = vld [vmem:[%s8561_s12] sm:%s4998_s11] (!%p6141_p5) }
 0x42d   : > { %5008 = vst [vmem:[%s8867_s27] sm:%s4998_s11] (!%p6141_p5), %v5007_v38 }
 0x432 PF: > { %p10_p4 = scmp.ge.s32.totalorder %s7429_s16, 7   ;;  %s9313_s12 = smov %s7251_s13 }
 0x433   : > { %s9314_s13 = smov %s7439_s19  ;;  %s9315_s14 = smov %s7429_s16 }
 0x434   :  { %12 = sbr.rel (!%p10_p4) target bundleno = 2 (0x2), region = 323 }

// kernel: cnn_3_layers_forward.6
= control target key start
LH: loop header
LB: loop body
LE: loop exit
PB: predicated region body
PF: predicated region fallthrough
CT: control target
= control target key end

     0   :  { %s1580_s12 = smov 0   ;;  %s1582_s13 = smov 0   ;;  %s2062_s0 = inlined_call_operand.vmem [shape: bf16[16,80], index: 0, kind: input, shape index: {}]   ;;  %s2063_s1 = inlined_call_operand.vmem [shape: bf16[80,8192], index: 1, kind: input, shape index: {}]   ;;  %s2064_s2 = inlined_call_operand.vmem [shape: f32[16,1], index: 2, kind: input, shape index: {}]   ;;  %s2065_s3 = inlined_call_operand.vmem [shape: f32[16,8192], index: 3, kind: output, shape index: {}]  }
   0x1   :  { %s1584_s14 = smov 0  }
   0x2 LB: > { %s1402_s15 = sadd.s32 4294967295, %s1557_s14   ;;  %s1597_s16 = sadd.s32 1, %s1557_s14   ;;  %s1557_s14 = sphi %s1584_s14, %s2069_s14   ;;  %s1553_s13 = sphi %s1582_s13, %s2068_s13   ;;  %s1549_s12 = sphi %s1580_s12, %s2067_s12  }
   0x3   : > { %s38_s17 = ssub.s32 %s1557_s14, %s1597_s16  ;;  %s41_s18 = sadd.s32 1, %s1553_s13 }
   0x4   : > { %p39_p0 = scmp.eq.s32.totalorder %s38_s17, 0  ;;  %p48_p1 = scmp.ne.s32.totalorder %s1553_s13, %s1549_s12 }
   0x5   : > { %p49_p2 = scmp.eq.s32.totalorder %s1557_s14, 0  ;;  %p99_p3 = scmp.eq.s32.totalorder %s1402_s15, 3 }
   0x6   : > { %s1608_s19 = scalar_select %p39_p0, %s1553_s13, %s41_s18  }
   0x7   : > { %p50_p4 = por %p49_p2, %p48_p1  ;;  %p1610_p5 = por %p99_p3, %p48_p1 }
   0x8   : > { %p1405_p6 = scmp.ge.s32.totalorder %s1557_s14, 4 }
   0xa   : > { %127 = sbr.rel (%p1405_p6) target bundleno = 62 (0x3e), region = 24 }
  0x11   : > { %130 = sbr.rel (!%p50_p4) target bundleno = 62 (0x3e), region = 28  ;;  %s132_s21 = sand.u32 (%p50_p4), 1, %s1553_s13  }
  0x12   : > { %s1504_s22 = sshll.u32 (%p50_p4), %s1557_s14, 6  ;;  %s1506_s23 = smul.u32 (%p50_p4), 640, %s132_s21 }
  0x13   : > { %s1620_s26 = scalar_lea.vmem (%p50_p4), %s2063_s1, %s1504_s22 }
  0x14   : > { %v150_v0 = vld [vmem:[%s1620_s26] sm:$0xff] (%p50_p4)  ;;  %v152_v1 = vld [vmem:[%s1620_s26 + $0x8] sm:$0xff] (%p50_p4)  ;;  %v154_v2 = vld [vmem:[%s1620_s26 + $0x10] sm:$0xff] (%p50_p4)  ;;  %s1628_s27 = scalar_lea.vmem (%p50_p4), [#allocation2], %s1506_s23 }
  0x15   : > { %v156_v3 = vld [vmem:[%s1620_s26 + $0x18] sm:$0xff] (%p50_p4)  ;;  %v158_v4 = vld [vmem:[%s1620_s26 + $0x20] sm:$0xff] (%p50_p4)  ;;  %v160_v5 = vld [vmem:[%s1620_s26 + $0x28] sm:$0xff] (%p50_p4)  ;;  %151 = vst [vmem:[%s1628_s27] sm:$0xff] (%p50_p4), %v150_v0 }
  0x16   : > { %153 = vst [vmem:[%s1628_s27 + $0x8] sm:$0xff] (%p50_p4), %v152_v1  ;;  %155 = vst [vmem:[%s1628_s27 + $0x10] sm:$0xff] (%p50_p4), %v154_v2  ;;  %v162_v6 = vld [vmem:[%s1620_s26 + $0x30] sm:$0xff] (%p50_p4)  ;;  %v164_v7 = vld [vmem:[%s1620_s26 + $0x38] sm:$0xff] (%p50_p4) }
  0x17   : > { %157 = vst [vmem:[%s1628_s27 + $0x18] sm:$0xff] (%p50_p4), %v156_v3  ;;  %159 = vst [vmem:[%s1628_s27 + $0x20] sm:$0xff] (%p50_p4), %v158_v4  ;;  %v166_v8 = vld [vmem:[%s1620_s26 + $0x100] sm:$0xff] (%p50_p4)  ;;  %v168_v9 = vld [vmem:[%s1620_s26 + $0x108] sm:$0xff] (%p50_p4) }
  0x18   : > { %161 = vst [vmem:[%s1628_s27 + $0x28] sm:$0xff] %v160_v5  ;;  %163 = vst [vmem:[%s1628_s27 + $0x30] sm:$0xff] %v162_v6  ;;  %v170_v10 = vld [vmem:[%s1620_s26 + $0x110] sm:$0xff]  ;;  %v172_v11 = vld [vmem:[%s1620_s26 + $0x118] sm:$0xff] }
  0x19   : > { %165 = vst [vmem:[%s1628_s27 + $0x38] sm:$0xff] %v164_v7  ;;  %167 = vst [vmem:[%s1628_s27 + $0x40] sm:$0xff] %v166_v8  ;;  %v174_v12 = vld [vmem:[%s1620_s26 + $0x120] sm:$0xff]  ;;  %v176_v13 = vld [vmem:[%s1620_s26 + $0x128] sm:$0xff] }
  0x1a   : > { %169 = vst [vmem:[%s1628_s27 + $0x48] sm:$0xff] %v168_v9  ;;  %171 = vst [vmem:[%s1628_s27 + $0x50] sm:$0xff] %v170_v10  ;;  %v178_v14 = vld [vmem:[%s1620_s26 + $0x130] sm:$0xff]  ;;  %v180_v15 = vld [vmem:[%s1620_s26 + $0x138] sm:$0xff] }
  0x1b   : > { %173 = vst [vmem:[%s1628_s27 + $0x58] sm:$0xff] %v172_v11  ;;  %175 = vst [vmem:[%s1628_s27 + $0x60] sm:$0xff] %v174_v12  ;;  %v182_v16 = vld [vmem:[%s1620_s26 + $0x200] sm:$0xff]  ;;  %v184_v17 = vld [vmem:[%s1620_s26 + $0x208] sm:$0xff] }
  0x1c   : > { %177 = vst [vmem:[%s1628_s27 + $0x68] sm:$0xff] %v176_v13  ;;  %179 = vst [vmem:[%s1628_s27 + $0x70] sm:$0xff] %v178_v14  ;;  %v186_v18 = vld [vmem:[%s1620_s26 + $0x210] sm:$0xff]  ;;  %v188_v19 = vld [vmem:[%s1620_s26 + $0x218] sm:$0xff] }
  0x1d   : > { %181 = vst [vmem:[%s1628_s27 + $0x78] sm:$0xff] %v180_v15  ;;  %183 = vst [vmem:[%s1628_s27 + $0x80] sm:$0xff] %v182_v16  ;;  %v190_v20 = vld [vmem:[%s1620_s26 + $0x220] sm:$0xff]  ;;  %v192_v21 = vld [vmem:[%s1620_s26 + $0x228] sm:$0xff] }
  0x1e   : > { %185 = vst [vmem:[%s1628_s27 + $0x88] sm:$0xff] %v184_v17  ;;  %187 = vst [vmem:[%s1628_s27 + $0x90] sm:$0xff] %v186_v18  ;;  %v194_v22 = vld [vmem:[%s1620_s26 + $0x230] sm:$0xff]  ;;  %v196_v23 = vld [vmem:[%s1620_s26 + $0x238] sm:$0xff] }
  0x1f   : > { %189 = vst [vmem:[%s1628_s27 + $0x98] sm:$0xff] %v188_v19  ;;  %191 = vst [vmem:[%s1628_s27 + $0xa0] sm:$0xff] %v190_v20  ;;  %v198_v24 = vld [vmem:[%s1620_s26 + $0x300] sm:$0xff]  ;;  %v200_v25 = vld [vmem:[%s1620_s26 + $0x308] sm:$0xff] }
  0x20   : > { %193 = vst [vmem:[%s1628_s27 + $0xa8] sm:$0xff] %v192_v21  ;;  %195 = vst [vmem:[%s1628_s27 + $0xb0] sm:$0xff] %v194_v22  ;;  %v202_v26 = vld [vmem:[%s1620_s26 + $0x310] sm:$0xff]  ;;  %v204_v27 = vld [vmem:[%s1620_s26 + $0x318] sm:$0xff] }
  0x21   : > { %197 = vst [vmem:[%s1628_s27 + $0xb8] sm:$0xff] %v196_v23  ;;  %199 = vst [vmem:[%s1628_s27 + $0xc0] sm:$0xff] %v198_v24  ;;  %v206_v28 = vld [vmem:[%s1620_s26 + $0x320] sm:$0xff]  ;;  %v208_v29 = vld [vmem:[%s1620_s26 + $0x328] sm:$0xff] }
  0x22   : > { %201 = vst [vmem:[%s1628_s27 + $0xc8] sm:$0xff] %v200_v25  ;;  %203 = vst [vmem:[%s1628_s27 + $0xd0] sm:$0xff] %v202_v26  ;;  %v210_v30 = vld [vmem:[%s1620_s26 + $0x330] sm:$0xff]  ;;  %v212_v31 = vld [vmem:[%s1620_s26 + $0x338] sm:$0xff] }
  0x23   : > { %205 = vst [vmem:[%s1628_s27 + $0xd8] sm:$0xff] %v204_v27  ;;  %207 = vst [vmem:[%s1628_s27 + $0xe0] sm:$0xff] %v206_v28  ;;  %v214_v32 = vld [vmem:[%s1620_s26 + $0x400] sm:$0xff]  ;;  %v216_v33 = vld [vmem:[%s1620_s26 + $0x408] sm:$0xff] }
  0x24   : > { %209 = vst [vmem:[%s1628_s27 + $0xe8] sm:$0xff] %v208_v29  ;;  %211 = vst [vmem:[%s1628_s27 + $0xf0] sm:$0xff] %v210_v30  ;;  %v218_v34 = vld [vmem:[%s1620_s26 + $0x410] sm:$0xff]  ;;  %v220_v35 = vld [vmem:[%s1620_s26 + $0x418] sm:$0xff] }
  0x25   : > { %213 = vst [vmem:[%s1628_s27 + $0xf8] sm:$0xff] %v212_v31  ;;  %215 = vst [vmem:[%s1628_s27 + $0x100] sm:$0xff] %v214_v32  ;;  %v222_v36 = vld [vmem:[%s1620_s26 + $0x420] sm:$0xff]  ;;  %v224_v37 = vld [vmem:[%s1620_s26 + $0x428] sm:$0xff] }
  0x26   : > { %217 = vst [vmem:[%s1628_s27 + $0x108] sm:$0xff] %v216_v33  ;;  %219 = vst [vmem:[%s1628_s27 + $0x110] sm:$0xff] %v218_v34  ;;  %v226_v38 = vld [vmem:[%s1620_s26 + $0x430] sm:$0xff]  ;;  %v228_v39 = vld [vmem:[%s1620_s26 + $0x438] sm:$0xff] }
  0x27   : > { %221 = vst [vmem:[%s1628_s27 + $0x118] sm:$0xff] %v220_v35  ;;  %223 = vst [vmem:[%s1628_s27 + $0x120] sm:$0xff] %v222_v36  ;;  %v230_v40 = vld [vmem:[%s1620_s26 + $0x500] sm:$0xff]  ;;  %v232_v41 = vld [vmem:[%s1620_s26 + $0x508] sm:$0xff] }
  0x28   : > { %225 = vst [vmem:[%s1628_s27 + $0x128] sm:$0xff] %v224_v37  ;;  %227 = vst [vmem:[%s1628_s27 + $0x130] sm:$0xff] %v226_v38  ;;  %v234_v42 = vld [vmem:[%s1620_s26 + $0x510] sm:$0xff]  ;;  %v236_v43 = vld [vmem:[%s1620_s26 + $0x518] sm:$0xff] }
  0x29   : > { %229 = vst [vmem:[%s1628_s27 + $0x138] sm:$0xff] %v228_v39  ;;  %231 = vst [vmem:[%s1628_s27 + $0x140] sm:$0xff] %v230_v40  ;;  %v238_v44 = vld [vmem:[%s1620_s26 + $0x520] sm:$0xff]  ;;  %v240_v45 = vld [vmem:[%s1620_s26 + $0x528] sm:$0xff] }
  0x2a   : > { %233 = vst [vmem:[%s1628_s27 + $0x148] sm:$0xff] %v232_v41  ;;  %235 = vst [vmem:[%s1628_s27 + $0x150] sm:$0xff] %v234_v42  ;;  %v242_v46 = vld [vmem:[%s1620_s26 + $0x530] sm:$0xff]  ;;  %v244_v47 = vld [vmem:[%s1620_s26 + $0x538] sm:$0xff] }
  0x2b   : > { %237 = vst [vmem:[%s1628_s27 + $0x158] sm:$0xff] %v236_v43  ;;  %239 = vst [vmem:[%s1628_s27 + $0x160] sm:$0xff] %v238_v44  ;;  %v246_v48 = vld [vmem:[%s1620_s26 + $0x600] sm:$0xff]  ;;  %v248_v49 = vld [vmem:[%s1620_s26 + $0x608] sm:$0xff] }
  0x2c   : > { %241 = vst [vmem:[%s1628_s27 + $0x168] sm:$0xff] %v240_v45  ;;  %243 = vst [vmem:[%s1628_s27 + $0x170] sm:$0xff] %v242_v46  ;;  %v250_v50 = vld [vmem:[%s1620_s26 + $0x610] sm:$0xff]  ;;  %v252_v51 = vld [vmem:[%s1620_s26 + $0x618] sm:$0xff] }
  0x2d   : > { %245 = vst [vmem:[%s1628_s27 + $0x178] sm:$0xff] %v244_v47  ;;  %247 = vst [vmem:[%s1628_s27 + $0x180] sm:$0xff] %v246_v48  ;;  %v254_v52 = vld [vmem:[%s1620_s26 + $0x620] sm:$0xff]  ;;  %v256_v53 = vld [vmem:[%s1620_s26 + $0x628] sm:$0xff] }
  0x2e   : > { %249 = vst [vmem:[%s1628_s27 + $0x188] sm:$0xff] %v248_v49  ;;  %251 = vst [vmem:[%s1628_s27 + $0x190] sm:$0xff] %v250_v50  ;;  %v258_v54 = vld [vmem:[%s1620_s26 + $0x630] sm:$0xff]  ;;  %v260_v55 = vld [vmem:[%s1620_s26 + $0x638] sm:$0xff] }
  0x2f   : > { %253 = vst [vmem:[%s1628_s27 + $0x198] sm:$0xff] %v252_v51  ;;  %255 = vst [vmem:[%s1628_s27 + $0x1a0] sm:$0xff] %v254_v52  ;;  %v262_v56 = vld [vmem:[%s1620_s26 + $0x700] sm:$0xff]  ;;  %v264_v57 = vld [vmem:[%s1620_s26 + $0x708] sm:$0xff] }
  0x30   : > { %257 = vst [vmem:[%s1628_s27 + $0x1a8] sm:$0xff] %v256_v53  ;;  %259 = vst [vmem:[%s1628_s27 + $0x1b0] sm:$0xff] %v258_v54  ;;  %v266_v58 = vld [vmem:[%s1620_s26 + $0x710] sm:$0xff]  ;;  %v268_v59 = vld [vmem:[%s1620_s26 + $0x718] sm:$0xff] }
  0x31   : > { %261 = vst [vmem:[%s1628_s27 + $0x1b8] sm:$0xff] %v260_v55  ;;  %263 = vst [vmem:[%s1628_s27 + $0x1c0] sm:$0xff] %v262_v56  ;;  %v270_v60 = vld [vmem:[%s1620_s26 + $0x720] sm:$0xff]  ;;  %v272_v61 = vld [vmem:[%s1620_s26 + $0x728] sm:$0xff] }
  0x32   : > { %265 = vst [vmem:[%s1628_s27 + $0x1c8] sm:$0xff] %v264_v57  ;;  %267 = vst [vmem:[%s1628_s27 + $0x1d0] sm:$0xff] %v266_v58  ;;  %v274_v62 = vld [vmem:[%s1620_s26 + $0x730] sm:$0xff]  ;;  %v276_v63 = vld [vmem:[%s1620_s26 + $0x738] sm:$0xff] }
  0x33   : > { %269 = vst [vmem:[%s1628_s27 + $0x1d8] sm:$0xff] %v268_v59  ;;  %271 = vst [vmem:[%s1628_s27 + $0x1e0] sm:$0xff] %v270_v60  ;;  %v278_v0 = vld [vmem:[%s1620_s26 + $0x800] sm:$0xff]  ;;  %v280_v1 = vld [vmem:[%s1620_s26 + $0x808] sm:$0xff] }
  0x34   : > { %273 = vst [vmem:[%s1628_s27 + $0x1e8] sm:$0xff] %v272_v61  ;;  %275 = vst [vmem:[%s1628_s27 + $0x1f0] sm:$0xff] %v274_v62  ;;  %v282_v2 = vld [vmem:[%s1620_s26 + $0x810] sm:$0xff]  ;;  %v284_v3 = vld [vmem:[%s1620_s26 + $0x818] sm:$0xff] }
  0x35   : > { %277 = vst [vmem:[%s1628_s27 + $0x1f8] sm:$0xff] %v276_v63  ;;  %279 = vst [vmem:[%s1628_s27 + $0x200] sm:$0xff] %v278_v0  ;;  %v286_v4 = vld [vmem:[%s1620_s26 + $0x820] sm:$0xff]  ;;  %v288_v5 = vld [vmem:[%s1620_s26 + $0x828] sm:$0xff] }
  0x36   : > { %281 = vst [vmem:[%s1628_s27 + $0x208] sm:$0xff] %v280_v1  ;;  %283 = vst [vmem:[%s1628_s27 + $0x210] sm:$0xff] %v282_v2  ;;  %v290_v6 = vld [vmem:[%s1620_s26 + $0x830] sm:$0xff]  ;;  %v292_v7 = vld [vmem:[%s1620_s26 + $0x838] sm:$0xff] }
  0x37   : > { %285 = vst [vmem:[%s1628_s27 + $0x218] sm:$0xff] %v284_v3  ;;  %287 = vst [vmem:[%s1628_s27 + $0x220] sm:$0xff] %v286_v4  ;;  %v294_v8 = vld [vmem:[%s1620_s26 + $0x900] sm:$0xff]  ;;  %v296_v9 = vld [vmem:[%s1620_s26 + $0x908] sm:$0xff] }
  0x38   : > { %289 = vst [vmem:[%s1628_s27 + $0x228] sm:$0xff] %v288_v5  ;;  %291 = vst [vmem:[%s1628_s27 + $0x230] sm:$0xff] %v290_v6  ;;  %v298_v10 = vld [vmem:[%s1620_s26 + $0x910] sm:$0xff]  ;;  %v300_v11 = vld [vmem:[%s1620_s26 + $0x918] sm:$0xff] }
  0x39   : > { %293 = vst [vmem:[%s1628_s27 + $0x238] sm:$0xff] %v292_v7  ;;  %295 = vst [vmem:[%s1628_s27 + $0x240] sm:$0xff] %v294_v8  ;;  %v302_v12 = vld [vmem:[%s1620_s26 + $0x920] sm:$0xff]  ;;  %v304_v13 = vld [vmem:[%s1620_s26 + $0x928] sm:$0xff] }
  0x3a   : > { %297 = vst [vmem:[%s1628_s27 + $0x248] sm:$0xff] %v296_v9  ;;  %299 = vst [vmem:[%s1628_s27 + $0x250] sm:$0xff] %v298_v10  ;;  %v306_v14 = vld [vmem:[%s1620_s26 + $0x930] sm:$0xff]  ;;  %v308_v15 = vld [vmem:[%s1620_s26 + $0x938] sm:$0xff] }
  0x3b   : > { %301 = vst [vmem:[%s1628_s27 + $0x258] sm:$0xff] %v300_v11  ;;  %303 = vst [vmem:[%s1628_s27 + $0x260] sm:$0xff] %v302_v12 }
  0x3c   : > { %305 = vst [vmem:[%s1628_s27 + $0x268] sm:$0xff] %v304_v13  ;;  %307 = vst [vmem:[%s1628_s27 + $0x270] sm:$0xff] %v306_v14 }
  0x3d   : > { %309 = vst [vmem:[%s1628_s27 + $0x278] sm:$0xff] %v308_v15 }
  0x3e PF: > { %p1408_p7 = scmp.ge.s32.totalorder %s1557_s14, 1  ;;  %p314_p8 = scmp.lt.s32.totalorder %s1557_s14, 5 }
  0x40   : > { %p315_p9 = pnand %p1408_p7, %p314_p8 }
  0x41   : > { %s321_s28 = sand.u32 (!%p315_p9), 1, %s1549_s12   ;;  %v1559_v16 = vmov (!%p315_p9), 0   ;;  %v428_v17 = vld [vmem:[%s2064_s2] sm:$0xff] (!%p315_p9)  ;;  %v429_v18 = vld [vmem:[%s2064_s2 + $0x8] sm:$0xff] (!%p315_p9)  ;;  %vm845_vm0 = vcmask (!%p315_p9), 654336  }
  0x42   : > { %318 = sbr.rel (%p315_p9) target bundleno = 382 (0x17e), region = 51  ;;  %881 = vmatprep.mubr.bf16.mxu0 (!%p315_p9), %v1559_v16  ;;  %924 = vmatprep.mubr.bf16.mxu1 (!%p315_p9), %v1559_v16  ;;  %v1829_v3 = vld [vmem:[%s2062_s0] sm:$0xff] (!%p315_p9)   ;;  %s1409_s10 = sshll.u32 (!%p315_p9), %s321_s28, 8 }
  0x43   : > { %s1507_s29 = smul.u32 (!%p315_p9), 640, %s321_s28  ;;  %1533 = vset.pattern.permute.xlu0 (!%p315_p9), %v1559_v16  ;;  %s1920_s11 = scalar_lea.vmem (!%p315_p9), [#allocation3], %s1409_s10 }
  0x44   : > { %432 = vperm.xlu0 (!%p315_p9), %1533, %v428_v17  }
  0x45   : > { %s1798_s7 = scalar_lea.vmem (!%p315_p9), [#allocation2], %s1507_s29 }
  0x46   : > { %v348_v19 = vld [vmem:[%s1798_s7] sm:$0xff] (!%p315_p9)  ;;  %v349_v21 = vld [vmem:[%s1798_s7 + $0x8] sm:$0xff] (!%p315_p9)  ;;  %v350_v57 = vld [vmem:[%s1798_s7 + $0x10] sm:$0xff] (!%p315_p9) }
  0x47   : > { %v356_v20 = vld [vmem:[%s1798_s7 + $0x40] sm:$0xff] (!%p315_p9)  ;;  %v357_v23 = vld [vmem:[%s1798_s7 + $0x48] sm:$0xff] (!%p315_p9)  ;;  %v358_v58 = vld [vmem:[%s1798_s7 + $0x50] sm:$0xff] (!%p315_p9) }
  0x48   : > { %v1412_v22 = vcombine.high (!%p315_p9), %v348_v19, %v356_v20  ;;  %v1411_v24 = vcombine.low (!%p315_p9), %v348_v19, %v356_v20  ;;  %v364_v25 = vld [vmem:[%s1798_s7 + $0x80] sm:$0xff] (!%p315_p9)  ;;  %v1414_v27 = vcombine.high (!%p315_p9), %v349_v21, %v357_v23  ;;  %v1413_v28 = vcombine.low (!%p315_p9), %v349_v21, %v357_v23  ;;  %v365_v30 = vld [vmem:[%s1798_s7 + $0x88] sm:$0xff] (!%p315_p9)  ;;  %437 = vperm.xlu0 (!%p315_p9), %1533, %v429_v18   ;;  %v351_v59 = vld [vmem:[%s1798_s7 + $0x18] sm:$0xff] (!%p315_p9) }
  0x49   : > { %v372_v26 = vld [vmem:[%s1798_s7 + $0xc0] sm:$0xff]  ;;  %v373_v31 = vld [vmem:[%s1798_s7 + $0xc8] sm:$0xff]  ;;  %v359_v60 = vld [vmem:[%s1798_s7 + $0x58] sm:$0xff]  ;;  %v1416_v63 = vcombine.high %v350_v57, %v358_v58  ;;  %v1415_v6 = vcombine.low %v350_v57, %v358_v58  ;;  %s1505_s12 = sshll.u32 (%p1610_p5), %s1402_s15, 7 }
  0x4a   : > { %v1428_v29 = vcombine.high %v364_v25, %v372_v26  ;;  %v380_v32 = vld [vmem:[%s1798_s7 + $0x100] sm:$0xff]  ;;  %849 = vmatprep.subr.bf16.mxu0 %v1412_v22  ;;  %v1430_v33 = vcombine.high %v365_v30, %v373_v31  ;;  %v381_v35 = vld [vmem:[%s1798_s7 + $0x108] sm:$0xff]  ;;  %892 = vmatprep.subr.bf16.mxu1 %v1414_v27  ;;  %v1427_v37 = vcombine.low %v364_v25, %v372_v26  ;;  %v366_v1 = vld [vmem:[%s1798_s7 + $0x90] sm:$0xff]  ;;  %s1989_s20 = scalar_lea.vmem (%p1610_p5), %s2065_s3, %s1505_s12 }
  0x4b   : > { %v388_v34 = vld [vmem:[%s1798_s7 + $0x140] sm:$0xff]  ;;  %v389_v36 = vld [vmem:[%s1798_s7 + $0x148] sm:$0xff]  ;;  %850 = vmatpush1.bf16.msra.mxu0 %v1411_v24  ;;  %893 = vmatpush1.bf16.msra.mxu1 %v1413_v28  ;;  %v1429_v38 = vcombine.low %v365_v30, %v373_v31  ;;  %v1418_v0 = vcombine.high %v351_v59, %v359_v60  ;;  %v374_v2 = vld [vmem:[%s1798_s7 + $0xd0] sm:$0xff]  ;;  %v1417_v7 = vcombine.low %v351_v59, %v359_v60 }
  0x4c   : > { %851 = vmatprep.subr.bf16.mxu0 %v1428_v29  ;;  %v1444_v39 = vcombine.high %v380_v32, %v388_v34  ;;  %894 = vmatprep.subr.bf16.mxu1 %v1430_v33  ;;  %v1446_v40 = vcombine.high %v381_v35, %v389_v36  ;;  %v396_v41 = vld [vmem:[%s1798_s7 + $0x180] sm:$0xff]  ;;  %v397_v43 = vld [vmem:[%s1798_s7 + $0x188] sm:$0xff]  ;;  %v1443_v45 = vcombine.low %v380_v32, %v388_v34  ;;  %v367_v4 = vld [vmem:[%s1798_s7 + $0x98] sm:$0xff] }
  0x4d   : > { %v404_v42 = vld [vmem:[%s1798_s7 + $0x1c0] sm:$0xff]  ;;  %v405_v44 = vld [vmem:[%s1798_s7 + $0x1c8] sm:$0xff]  ;;  %v1445_v46 = vcombine.low %v381_v35, %v389_v36  ;;  %v375_v5 = vld [vmem:[%s1798_s7 + $0xd8] sm:$0xff]  ;;  %v1432_v8 = vcombine.high %v366_v1, %v374_v2  ;;  %v1431_v14 = vcombine.low %v366_v1, %v374_v2 }
  0x4e   : > { %v1460_v47 = vcombine.high %v396_v41, %v404_v42  ;;  %v1462_v48 = vcombine.high %v397_v43, %v405_v44  ;;  %v412_v49 = vld [vmem:[%s1798_s7 + $0x200] sm:$0xff]  ;;  %v413_v51 = vld [vmem:[%s1798_s7 + $0x208] sm:$0xff]  ;;  %v1459_v53 = vcombine.low %v396_v41, %v404_v42  ;;  %v1461_v54 = vcombine.low %v397_v43, %v405_v44  ;;  %v382_v10 = vld [vmem:[%s1798_s7 + $0x110] sm:$0xff] }
  0x4f   : > { %852 = vmatpush1.bf16.msra.mxu0 %v1427_v37  ;;  %895 = vmatpush1.bf16.msra.mxu1 %v1429_v38  ;;  %v420_v50 = vld [vmem:[%s1798_s7 + $0x240] sm:$0xff]  ;;  %v421_v52 = vld [vmem:[%s1798_s7 + $0x248] sm:$0xff]  ;;  %v1434_v9 = vcombine.high %v367_v4, %v375_v5  ;;  %v390_v11 = vld [vmem:[%s1798_s7 + $0x150] sm:$0xff]  ;;  %v1433_v15 = vcombine.low %v367_v4, %v375_v5 }
  0x50   : > { %853 = vmatprep.subr.bf16.mxu0 %v1444_v39  ;;  %896 = vmatprep.subr.bf16.mxu1 %v1446_v40  ;;  %v1476_v55 = vcombine.high %v412_v49, %v420_v50  ;;  %v1478_v56 = vcombine.high %v413_v51, %v421_v52  ;;  %v1475_v61 = vcombine.low %v412_v49, %v420_v50  ;;  %v383_v12 = vld [vmem:[%s1798_s7 + $0x118] sm:$0xff]  ;;  %v398_v19 = vld [vmem:[%s1798_s7 + $0x190] sm:$0xff]  ;;  %v352_v35 = vld [vmem:[%s1798_s7 + $0x20] sm:$0xff] }
  0x51   : > { %v1477_v62 = vcombine.low %v413_v51, %v421_v52  ;;  %v391_v13 = vld [vmem:[%s1798_s7 + $0x158] sm:$0xff]  ;;  %v1448_v17 = vcombine.high %v382_v10, %v390_v11  ;;  %v406_v20 = vld [vmem:[%s1798_s7 + $0x1d0] sm:$0xff]  ;;  %v1447_v23 = vcombine.low %v382_v10, %v390_v11  ;;  %v360_v36 = vld [vmem:[%s1798_s7 + $0x60] sm:$0xff] }
  0x52   : > { %v1450_v18 = vcombine.high %v383_v12, %v391_v13  ;;  %v399_v21 = vld [vmem:[%s1798_s7 + $0x198] sm:$0xff]  ;;  %v1449_v24 = vcombine.low %v383_v12, %v391_v13  ;;  %v1464_v25 = vcombine.high %v398_v19, %v406_v20  ;;  %v414_v27 = vld [vmem:[%s1798_s7 + $0x210] sm:$0xff]  ;;  %v1463_v31 = vcombine.low %v398_v19, %v406_v20  ;;  %v353_v37 = vld [vmem:[%s1798_s7 + $0x28] sm:$0xff] }
  0x53   : > { %854 = vmatpush1.bf16.msra.mxu0 %v1443_v45  ;;  %897 = vmatpush1.bf16.msra.mxu1 %v1445_v46  ;;  %v407_v22 = vld [vmem:[%s1798_s7 + $0x1d8] sm:$0xff]  ;;  %v422_v28 = vld [vmem:[%s1798_s7 + $0x250] sm:$0xff]  ;;  %v361_v38 = vld [vmem:[%s1798_s7 + $0x68] sm:$0xff]  ;;  %v1420_v41 = vcombine.high %v352_v35, %v360_v36 }
  0x54   : > { %855 = vmatprep.subr.bf16.mxu0 %v1460_v47  ;;  %898 = vmatprep.subr.bf16.mxu1 %v1462_v48  ;;  %v1466_v26 = vcombine.high %v399_v21, %v407_v22  ;;  %v415_v29 = vld [vmem:[%s1798_s7 + $0x218] sm:$0xff]  ;;  %v1465_v32 = vcombine.low %v399_v21, %v407_v22  ;;  %v1480_v33 = vcombine.high %v414_v27, %v422_v28  ;;  %v368_v43 = vld [vmem:[%s1798_s7 + $0xa0] sm:$0xff]  ;;  %v369_v45 = vld [vmem:[%s1798_s7 + $0xa8] sm:$0xff] }
  0x55   : > { %v423_v30 = vld [vmem:[%s1798_s7 + $0x258] sm:$0xff]  ;;  %v1479_v39 = vcombine.low %v414_v27, %v422_v28  ;;  %v1422_v42 = vcombine.high %v353_v37, %v361_v38  ;;  %v376_v44 = vld [vmem:[%s1798_s7 + $0xe0] sm:$0xff]  ;;  %v377_v46 = vld [vmem:[%s1798_s7 + $0xe8] sm:$0xff]  ;;  %v1419_v47 = vcombine.low %v352_v35, %v360_v36  ;;  %v1421_v48 = vcombine.low %v353_v37, %v361_v38 }
  0x56   : > { %v1482_v34 = vcombine.high %v415_v29, %v423_v30  ;;  %v1481_v40 = vcombine.low %v415_v29, %v423_v30  ;;  %v1436_v49 = vcombine.high %v368_v43, %v376_v44  ;;  %v1438_v50 = vcombine.high %v369_v45, %v377_v46  ;;  %v384_v51 = vld [vmem:[%s1798_s7 + $0x120] sm:$0xff]  ;;  %v354_v12 = vld [vmem:[%s1798_s7 + $0x30] sm:$0xff] }
  0x57   : > { %856 = vmatpush1.bf16.msra.mxu0 %v1459_v53  ;;  %899 = vmatpush1.bf16.msra.mxu1 %v1461_v54  ;;  %v392_v52 = vld [vmem:[%s1798_s7 + $0x160] sm:$0xff]  ;;  %v385_v53 = vld [vmem:[%s1798_s7 + $0x128] sm:$0xff]  ;;  %v362_v13 = vld [vmem:[%s1798_s7 + $0x70] sm:$0xff] }
  0x58   : > { %857 = vmatprep.subr.bf16.mxu0 %v1476_v55  ;;  %900 = vmatprep.subr.bf16.mxu1 %v1478_v56  ;;  %v393_v54 = vld [vmem:[%s1798_s7 + $0x168] sm:$0xff]  ;;  %v1435_v55 = vcombine.low %v368_v43, %v376_v44  ;;  %v1437_v56 = vcombine.low %v369_v45, %v377_v46  ;;  %v1452_v57 = vcombine.high %v384_v51, %v392_v52  ;;  %v400_v59 = vld [vmem:[%s1798_s7 + $0x1a0] sm:$0xff]  ;;  %v370_v21 = vld [vmem:[%s1798_s7 + $0xb0] sm:$0xff] }
  0x59   : > { %v1454_v58 = vcombine.high %v385_v53, %v393_v54  ;;  %v408_v60 = vld [vmem:[%s1798_s7 + $0x1e0] sm:$0xff]  ;;  %v1424_v19 = vcombine.high %v354_v12, %v362_v13  ;;  %v378_v22 = vld [vmem:[%s1798_s7 + $0xf0] sm:$0xff] }
  0x5a   : > { %v1468_v1 = vcombine.high %v400_v59, %v408_v60  ;;  %v416_v4 = vld [vmem:[%s1798_s7 + $0x220] sm:$0xff]  ;;  %v1440_v27 = vcombine.high %v370_v21, %v378_v22  ;;  %v386_v29 = vld [vmem:[%s1798_s7 + $0x130] sm:$0xff] }
  0x5b   : > { %858 = vmatpush1.bf16.msra.mxu0 %v1475_v61  ;;  %901 = vmatpush1.bf16.msra.mxu1 %v1477_v62  ;;  %v401_v61 = vld [vmem:[%s1798_s7 + $0x1a8] sm:$0xff]  ;;  %v424_v5 = vld [vmem:[%s1798_s7 + $0x260] sm:$0xff]  ;;  %v394_v30 = vld [vmem:[%s1798_s7 + $0x170] sm:$0xff] }
  0x5c   : > { %935 = vmatprep.subr.bf16.mxu0 %v1416_v63  ;;  %978 = vmatprep.subr.bf16.mxu1 %v1418_v0  ;;  %v409_v62 = vld [vmem:[%s1798_s7 + $0x1e8] sm:$0xff]  ;;  %v1451_v63 = vcombine.low %v384_v51, %v392_v52  ;;  %v1453_v0 = vcombine.low %v385_v53, %v393_v54  ;;  %v1484_v10 = vcombine.high %v416_v4, %v424_v5  ;;  %v402_v37 = vld [vmem:[%s1798_s7 + $0x1b0] sm:$0xff] }
  0x5d   : > { %v1470_v2 = vcombine.high %v401_v61, %v409_v62  ;;  %v1456_v35 = vcombine.high %v386_v29, %v394_v30  ;;  %v410_v38 = vld [vmem:[%s1798_s7 + $0x1f0] sm:$0xff] }
  0x5e   : > { %1491 = vmatmul.mubr.msk.bf16.vlgmr.msra.gmra.mrb[0].mxu0 %vm845_vm0, %v1829_v3  ;;  %1492 = vmatmul.mubr.msk.bf16.vlgmr.msra.gmra.mrb[0].mxu1 %vm845_vm0, %v1829_v3  ;;  %v1472_v43 = vcombine.high %v402_v37, %v410_v38  ;;  %v418_v45 = vld [vmem:[%s1798_s7 + $0x230] sm:$0xff] }
  0x5f   : > { %936 = vmatpush1.bf16.msra.mxu0 %v1415_v6  ;;  %979 = vmatpush1.bf16.msra.mxu1 %v1417_v7  ;;  %v417_v6 = vld [vmem:[%s1798_s7 + $0x228] sm:$0xff]  ;;  %v426_v46 = vld [vmem:[%s1798_s7 + $0x270] sm:$0xff] }
  0x60   : > { %937 = vmatprep.subr.bf16.mxu0 %v1432_v8  ;;  %980 = vmatprep.subr.bf16.mxu1 %v1434_v9  ;;  %v425_v7 = vld [vmem:[%s1798_s7 + $0x268] sm:$0xff]  ;;  %v1467_v8 = vcombine.low %v400_v59, %v408_v60  ;;  %v1469_v9 = vcombine.low %v401_v61, %v409_v62  ;;  %v1488_v51 = vcombine.high %v418_v45, %v426_v46 }
  0x61   : > { %967 = vmatprep.mubr.bf16.mxu0 %v1559_v16  ;;  %1010 = vmatprep.mubr.bf16.mxu1 %v1559_v16  ;;  %v1486_v11 = vcombine.high %v417_v6, %v425_v7  ;;  %v1487_v52 = vcombine.low %v418_v45, %v426_v46 }
  0x63   : > { %938 = vmatpush1.bf16.msra.mxu0 %v1431_v14  ;;  %981 = vmatpush1.bf16.msra.mxu1 %v1433_v15  ;;  %v355_v14 = vld [vmem:[%s1798_s7 + $0x38] sm:$0xff] }
  0x64   : > { %939 = vmatprep.subr.bf16.mxu0 %v1448_v17  ;;  %982 = vmatprep.subr.bf16.mxu1 %v1450_v18  ;;  %v363_v15 = vld [vmem:[%s1798_s7 + $0x78] sm:$0xff]  ;;  %v1483_v17 = vcombine.low %v416_v4, %v424_v5  ;;  %v1485_v18 = vcombine.low %v417_v6, %v425_v7 }
  0x65   : > { %v1426_v20 = vcombine.high %v355_v14, %v363_v15 }
  0x67   : > { %940 = vmatpush1.bf16.msra.mxu0 %v1447_v23  ;;  %983 = vmatpush1.bf16.msra.mxu1 %v1449_v24  ;;  %v371_v23 = vld [vmem:[%s1798_s7 + $0xb8] sm:$0xff] }
  0x68   : > { %941 = vmatprep.subr.bf16.mxu0 %v1464_v25  ;;  %984 = vmatprep.subr.bf16.mxu1 %v1466_v26  ;;  %v379_v24 = vld [vmem:[%s1798_s7 + $0xf8] sm:$0xff]  ;;  %v1423_v25 = vcombine.low %v354_v12, %v362_v13  ;;  %v1425_v26 = vcombine.low %v355_v14, %v363_v15 }
  0x69   : > { %v1442_v28 = vcombine.high %v371_v23, %v379_v24 }
  0x6b   : > { %942 = vmatpush1.bf16.msra.mxu0 %v1463_v31  ;;  %985 = vmatpush1.bf16.msra.mxu1 %v1465_v32  ;;  %v387_v31 = vld [vmem:[%s1798_s7 + $0x138] sm:$0xff] }
  0x6c   : > { %943 = vmatprep.subr.bf16.mxu0 %v1480_v33  ;;  %986 = vmatprep.subr.bf16.mxu1 %v1482_v34  ;;  %v395_v32 = vld [vmem:[%s1798_s7 + $0x178] sm:$0xff]  ;;  %v1439_v33 = vcombine.low %v370_v21, %v378_v22  ;;  %v1441_v34 = vcombine.low %v371_v23, %v379_v24 }
  0x6d   : > { %v1458_v36 = vcombine.high %v387_v31, %v395_v32 }
  0x6f   : > { %944 = vmatpush1.bf16.msra.mxu0 %v1479_v39  ;;  %987 = vmatpush1.bf16.msra.mxu1 %v1481_v40  ;;  %v403_v39 = vld [vmem:[%s1798_s7 + $0x1b8] sm:$0xff] }
  0x70   : > { %1021 = vmatprep.subr.bf16.mxu0 %v1420_v41  ;;  %1064 = vmatprep.subr.bf16.mxu1 %v1422_v42  ;;  %v411_v40 = vld [vmem:[%s1798_s7 + $0x1f8] sm:$0xff]  ;;  %v1455_v41 = vcombine.low %v386_v29, %v394_v30  ;;  %v1457_v42 = vcombine.low %v387_v31, %v395_v32 }
  0x71   : > { %v1474_v44 = vcombine.high %v403_v39, %v411_v40 }
  0x72   : > { %1493 = vmatmul.mubr.msk.bf16.vlgmr.msra.gmra.mrb[4].mxu0 %vm845_vm0, %v1829_v3  ;;  %1494 = vmatmul.mubr.msk.bf16.vlgmr.msra.gmra.mrb[4].mxu1 %vm845_vm0, %v1829_v3 }
  0x73   : > { %1022 = vmatpush1.bf16.msra.mxu0 %v1419_v47  ;;  %1065 = vmatpush1.bf16.msra.mxu1 %v1421_v48  ;;  %v419_v47 = vld [vmem:[%s1798_s7 + $0x238] sm:$0xff] }
  0x74   : > { %1023 = vmatprep.subr.bf16.mxu0 %v1436_v49  ;;  %1066 = vmatprep.subr.bf16.mxu1 %v1438_v50  ;;  %v427_v48 = vld [vmem:[%s1798_s7 + $0x278] sm:$0xff]  ;;  %v1471_v49 = vcombine.low %v402_v37, %v410_v38  ;;  %v1473_v50 = vcombine.low %v403_v39, %v411_v40 }
  0x75   : > { %1053 = vmatprep.mubr.bf16.mxu0 %v1559_v16  ;;  %1096 = vmatprep.mubr.bf16.mxu1 %v1559_v16  ;;  %v1489_v53 = vcombine.low %v419_v47, %v427_v48 }
  0x77   : > { %1024 = vmatpush1.bf16.msra.mxu0 %v1435_v55  ;;  %1067 = vmatpush1.bf16.msra.mxu1 %v1437_v56 }
  0x78   : > { %1025 = vmatprep.subr.bf16.mxu0 %v1452_v57  ;;  %1068 = vmatprep.subr.bf16.mxu1 %v1454_v58 }
  0x7b   : > { %1026 = vmatpush1.bf16.msra.mxu0 %v1451_v63  ;;  %1069 = vmatpush1.bf16.msra.mxu1 %v1453_v0 }
  0x7c   : > { %1027 = vmatprep.subr.bf16.mxu0 %v1468_v1  ;;  %1070 = vmatprep.subr.bf16.mxu1 %v1470_v2 }
  0x7f   : > { %1028 = vmatpush1.bf16.msra.mxu0 %v1467_v8  ;;  %1071 = vmatpush1.bf16.msra.mxu1 %v1469_v9 }
  0x80   : > { %1029 = vmatprep.subr.bf16.mxu0 %v1484_v10  ;;  %1072 = vmatprep.subr.bf16.mxu1 %v1486_v11 }
  0x83   : > { %1030 = vmatpush1.bf16.msra.mxu0 %v1483_v17  ;;  %1073 = vmatpush1.bf16.msra.mxu1 %v1485_v18 }
  0x84   : > { %1107 = vmatprep.subr.bf16.mxu0 %v1424_v19  ;;  %1150 = vmatprep.subr.bf16.mxu1 %v1426_v20 }
  0x86   : > { %1495 = vmatmul.mubr.msk.bf16.vlgmr.msra.gmra.mrb[8].mxu0 %vm845_vm0, %v1829_v3  ;;  %1496 = vmatmul.mubr.msk.bf16.vlgmr.msra.gmra.mrb[8].mxu1 %vm845_vm0, %v1829_v3 }
  0x87   : > { %1108 = vmatpush1.bf16.msra.mxu0 %v1423_v25  ;;  %1151 = vmatpush1.bf16.msra.mxu1 %v1425_v26 }
  0x88   : > { %1109 = vmatprep.subr.bf16.mxu0 %v1440_v27  ;;  %1152 = vmatprep.subr.bf16.mxu1 %v1442_v28 }
  0x89   : > { %1139 = vmatprep.mubr.bf16.mxu0 %v1559_v16  ;;  %1182 = vmatprep.mubr.bf16.mxu1 %v1559_v16  ;;  %v1490_v16 = vcombine.high %v419_v47, %v427_v48 }
  0x8b   : > { %1110 = vmatpush1.bf16.msra.mxu0 %v1439_v33  ;;  %1153 = vmatpush1.bf16.msra.mxu1 %v1441_v34 }
  0x8c   : > { %1111 = vmatprep.subr.bf16.mxu0 %v1456_v35  ;;  %1154 = vmatprep.subr.bf16.mxu1 %v1458_v36 }
  0x8f   : > { %1112 = vmatpush1.bf16.msra.mxu0 %v1455_v41  ;;  %1155 = vmatpush1.bf16.msra.mxu1 %v1457_v42 }
  0x90   : > { %1113 = vmatprep.subr.bf16.mxu0 %v1472_v43  ;;  %1156 = vmatprep.subr.bf16.mxu1 %v1474_v44 }
  0x93   : > { %1114 = vmatpush1.bf16.msra.mxu0 %v1471_v49  ;;  %1157 = vmatpush1.bf16.msra.mxu1 %v1473_v50 }
  0x94   : > { %1115 = vmatprep.subr.bf16.mxu0 %v1488_v51  ;;  %1158 = vmatprep.subr.bf16.mxu1 %v1490_v16 }
  0x97   : > { %1116 = vmatpush1.bf16.msra.mxu0 %v1487_v52  ;;  %1159 = vmatpush1.bf16.msra.mxu1 %v1489_v53 }
  0x9a   : > { %1497 = vmatmul.mubr.msk.bf16.vlgmr.msra.gmra.mrb[12].mxu0 %vm845_vm0, %v1829_v3  ;;  %1498 = vmatmul.mubr.msk.bf16.vlgmr.msra.gmra.mrb[12].mxu1 %vm845_vm0, %v1829_v3 }
  0xc3   : > { %v1907_v54 = vpop.permute.xlu0 %432 }
  0xc7   : > { %v1911_v56 = vpop.permute.xlu0 %437 }
 0x131   : > { %v883_v55 = vpop.f32.mrb[0].mxu0  ;;  %v926_v58 = vpop.f32.mrb[0].mxu1 }
 0x132   : > { %v884_v57 = vadd.f32 %v883_v55, %v1907_v54  ;;  %v885_v59 = vpop.f32.mrb[1].mxu0  ;;  %v927_v60 = vadd.f32 %v926_v58, %v1907_v54  ;;  %v928_v62 = vpop.f32.mrb[1].mxu1 }
 0x133   : > { %v886_v61 = vadd.f32 %v885_v59, %v1907_v54  ;;  %v887_v63 = vpop.f32.mrb[2].mxu0  ;;  %v929_v3 = vadd.f32 %v928_v62, %v1907_v54  ;;  %v930_v2 = vpop.f32.mrb[2].mxu1 }
 0x134   : > { %v1193_v0 = vmax.f32 %v884_v57, 0.0  ;;  %v888_v1 = vadd.f32 %v887_v63, %v1911_v56  ;;  %v889_v4 = vpop.f32.mrb[3].mxu0  ;;  %v1195_v5 = vmax.f32 %v927_v60, 0.0  ;;  %v931_v7 = vadd.f32 %v930_v2, %v1911_v56  ;;  %v932_v9 = vpop.f32.mrb[3].mxu1 }
 0x135   : > { %v1194_v6 = vmax.f32 %v886_v61, 0.0  ;;  %v890_v8 = vadd.f32 %v889_v4, %v1911_v56  ;;  %v1196_v10 = vmax.f32 %v929_v3, 0.0  ;;  %v933_v12 = vadd.f32 %v932_v9, %v1911_v56 }
 0x136   : > { %1225 = vst [vmem:[%s1920_s11] sm:$0xff] %v1193_v0  ;;  %v1209_v11 = vmax.f32 %v888_v1, 0.0  ;;  %1227 = vst [vmem:[%s1920_s11 + $0x10] sm:$0xff] %v1195_v5  ;;  %v1211_v13 = vmax.f32 %v931_v7, 0.0 }
 0x137   : > { %1226 = vst [vmem:[%s1920_s11 + $0x8] sm:$0xff] %v1194_v6  ;;  %v1210_v14 = vmax.f32 %v890_v8, 0.0  ;;  %1228 = vst [vmem:[%s1920_s11 + $0x18] sm:$0xff] %v1196_v10  ;;  %v1212_v15 = vmax.f32 %v933_v12, 0.0 }
 0x138   : > { %1241 = vst [vmem:[%s1920_s11 + $0x80] sm:$0xff] %v1209_v11  ;;  %1243 = vst [vmem:[%s1920_s11 + $0x90] sm:$0xff] %v1211_v13 }
 0x139   : > { %1242 = vst [vmem:[%s1920_s11 + $0x88] sm:$0xff] %v1210_v14  ;;  %1244 = vst [vmem:[%s1920_s11 + $0x98] sm:$0xff] %v1212_v15 }
 0x145   : > { %v969_v17 = vpop.f32.mrb[4].mxu0  ;;  %v1012_v19 = vpop.f32.mrb[4].mxu1 }
 0x146   : > { %v970_v18 = vadd.f32 %v969_v17, %v1907_v54  ;;  %v971_v20 = vpop.f32.mrb[5].mxu0  ;;  %v1013_v21 = vadd.f32 %v1012_v19, %v1907_v54  ;;  %v1014_v23 = vpop.f32.mrb[5].mxu1 }
 0x147   : > { %v972_v22 = vadd.f32 %v971_v20, %v1907_v54  ;;  %v973_v24 = vpop.f32.mrb[6].mxu0  ;;  %v1015_v26 = vadd.f32 %v1014_v23, %v1907_v54  ;;  %v1016_v28 = vpop.f32.mrb[6].mxu1 }
 0x148   : > { %v1197_v25 = vmax.f32 %v970_v18, 0.0  ;;  %v974_v27 = vadd.f32 %v973_v24, %v1911_v56  ;;  %v975_v29 = vpop.f32.mrb[7].mxu0  ;;  %v1199_v30 = vmax.f32 %v1013_v21, 0.0  ;;  %v1017_v32 = vadd.f32 %v1016_v28, %v1911_v56  ;;  %v1018_v34 = vpop.f32.mrb[7].mxu1  ;;  %v1285_v28 = vld [vmem:[%s1920_s11 + $0x18] sm:$0xff] (%p1610_p5) }
 0x149   : > { %v1198_v31 = vmax.f32 %v972_v22, 0.0  ;;  %v976_v33 = vadd.f32 %v975_v29, %v1911_v56  ;;  %v1200_v35 = vmax.f32 %v1015_v26, 0.0  ;;  %v1019_v37 = vadd.f32 %v1018_v34, %v1911_v56  ;;  %v1281_v26 = vld [vmem:[%s1920_s11 + $0x8] sm:$0xff] (%p1610_p5)  ;;  %1286 = vst [vmem:[%s1989_s20 + $0x18] sm:$0xff] (%p1610_p5), %v1285_v28 }
 0x14a   : > { %1229 = vst [vmem:[%s1920_s11 + $0x20] sm:$0xff] %v1197_v25  ;;  %v1213_v36 = vmax.f32 %v974_v27, 0.0  ;;  %1231 = vst [vmem:[%s1920_s11 + $0x30] sm:$0xff] %v1199_v30  ;;  %v1215_v38 = vmax.f32 %v1017_v32, 0.0  ;;  %v1283_v27 = vld [vmem:[%s1920_s11 + $0x10] sm:$0xff] (%p1610_p5) }
 0x14b   : > { %1230 = vst [vmem:[%s1920_s11 + $0x28] sm:$0xff] %v1198_v31  ;;  %v1214_v39 = vmax.f32 %v976_v33, 0.0  ;;  %1232 = vst [vmem:[%s1920_s11 + $0x38] sm:$0xff] %v1200_v35  ;;  %v1216_v40 = vmax.f32 %v1019_v37, 0.0 }
 0x14c   : > { %1245 = vst [vmem:[%s1920_s11 + $0xa0] sm:$0xff] %v1213_v36  ;;  %1247 = vst [vmem:[%s1920_s11 + $0xb0] sm:$0xff] %v1215_v38 }
 0x14d   : > { %1246 = vst [vmem:[%s1920_s11 + $0xa8] sm:$0xff] %v1214_v39  ;;  %1248 = vst [vmem:[%s1920_s11 + $0xb8] sm:$0xff] %v1216_v40 }
 0x14e   : > { %1282 = vst [vmem:[%s1989_s20 + $0x8] sm:$0xff] (%p1610_p5), %v1281_v26  ;;  %1284 = vst [vmem:[%s1989_s20 + $0x10] sm:$0xff] (%p1610_p5), %v1283_v27 }
 0x151   : > { %v1287_v29 = vld [vmem:[%s1920_s11 + $0x20] sm:$0xff] (%p1610_p5)  ;;  %v1291_v31 = vld [vmem:[%s1920_s11 + $0x30] sm:$0xff] (%p1610_p5) }
 0x152   : > { %v1289_v30 = vld [vmem:[%s1920_s11 + $0x28] sm:$0xff] (%p1610_p5)  ;;  %1288 = vst [vmem:[%s1989_s20 + $0x20] sm:$0xff] (%p1610_p5), %v1287_v29  ;;  %v1293_v32 = vld [vmem:[%s1920_s11 + $0x38] sm:$0xff] (%p1610_p5)  ;;  %1292 = vst [vmem:[%s1989_s20 + $0x30] sm:$0xff] (%p1610_p5), %v1291_v31 }
 0x153   : > { %1290 = vst [vmem:[%s1989_s20 + $0x28] sm:$0xff] (%p1610_p5), %v1289_v30  ;;  %1294 = vst [vmem:[%s1989_s20 + $0x38] sm:$0xff] (%p1610_p5), %v1293_v32 }
 0x159   : > { %v1055_v41 = vpop.f32.mrb[8].mxu0  ;;  %v1098_v43 = vpop.f32.mrb[8].mxu1 }
 0x15a   : > { %v1056_v42 = vadd.f32 %v1055_v41, %v1907_v54  ;;  %v1057_v44 = vpop.f32.mrb[9].mxu0  ;;  %v1099_v45 = vadd.f32 %v1098_v43, %v1907_v54  ;;  %v1100_v47 = vpop.f32.mrb[9].mxu1  ;;  %v1311_v41 = vld [vmem:[%s1920_s11 + $0x80] sm:$0xff] (%p1610_p5)  ;;  %v1315_v43 = vld [vmem:[%s1920_s11 + $0x90] sm:$0xff] (%p1610_p5) }
 0x15b   : > { %v1058_v46 = vadd.f32 %v1057_v44, %v1907_v54  ;;  %v1059_v48 = vpop.f32.mrb[10].mxu0  ;;  %v1101_v50 = vadd.f32 %v1100_v47, %v1907_v54  ;;  %v1102_v16 = vpop.f32.mrb[10].mxu1  ;;  %1312 = vst [vmem:[%s1989_s20 + $0x200] sm:$0xff] (%p1610_p5), %v1311_v41  ;;  %v1317_v44 = vld [vmem:[%s1920_s11 + $0x98] sm:$0xff] (%p1610_p5)  ;;  %1316 = vst [vmem:[%s1989_s20 + $0x210] sm:$0xff] (%p1610_p5), %v1315_v43  ;;  %v1323_v47 = vld [vmem:[%s1920_s11 + $0xb0] sm:$0xff] (%p1610_p5) }
 0x15c   : > { %v1201_v49 = vmax.f32 %v1056_v42, 0.0  ;;  %v1060_v51 = vadd.f32 %v1059_v48, %v1911_v56  ;;  %v1061_v52 = vpop.f32.mrb[11].mxu0  ;;  %v1203_v53 = vmax.f32 %v1099_v45, 0.0  ;;  %v1103_v57 = vadd.f32 %v1102_v16, %v1911_v56  ;;  %v1104_v59 = vpop.f32.mrb[11].mxu1  ;;  %v1313_v42 = vld [vmem:[%s1920_s11 + $0x88] sm:$0xff] (%p1610_p5)  ;;  %v1319_v45 = vld [vmem:[%s1920_s11 + $0xa0] sm:$0xff] (%p1610_p5) }
 0x15d   : > { %v1202_v55 = vmax.f32 %v1058_v46, 0.0  ;;  %v1062_v58 = vadd.f32 %v1061_v52, %v1911_v56  ;;  %v1204_v60 = vmax.f32 %v1101_v50, 0.0  ;;  %v1105_v62 = vadd.f32 %v1104_v59, %v1911_v56  ;;  %1314 = vst [vmem:[%s1989_s20 + $0x208] sm:$0xff] (%p1610_p5), %v1313_v42  ;;  %1318 = vst [vmem:[%s1989_s20 + $0x218] sm:$0xff] (%p1610_p5), %v1317_v44  ;;  %v1321_v46 = vld [vmem:[%s1920_s11 + $0xa8] sm:$0xff] (%p1610_p5)  ;;  %v1325_v48 = vld [vmem:[%s1920_s11 + $0xb8] sm:$0xff] (%p1610_p5) }
 0x15e   : > { %1233 = vst [vmem:[%s1920_s11 + $0x40] sm:$0xff] %v1201_v49  ;;  %v1217_v61 = vmax.f32 %v1060_v51, 0.0  ;;  %1235 = vst [vmem:[%s1920_s11 + $0x50] sm:$0xff] %v1203_v53  ;;  %v1219_v63 = vmax.f32 %v1103_v57, 0.0 }
 0x15f   : > { %1234 = vst [vmem:[%s1920_s11 + $0x48] sm:$0xff] %v1202_v55  ;;  %v1218_v0 = vmax.f32 %v1062_v58, 0.0  ;;  %1236 = vst [vmem:[%s1920_s11 + $0x58] sm:$0xff] %v1204_v60  ;;  %v1220_v3 = vmax.f32 %v1105_v62, 0.0 }
 0x160   : > { %1249 = vst [vmem:[%s1920_s11 + $0xc0] sm:$0xff] %v1217_v61  ;;  %1251 = vst [vmem:[%s1920_s11 + $0xd0] sm:$0xff] %v1219_v63 }
 0x161   : > { %1250 = vst [vmem:[%s1920_s11 + $0xc8] sm:$0xff] %v1218_v0  ;;  %1252 = vst [vmem:[%s1920_s11 + $0xd8] sm:$0xff] %v1220_v3 }
 0x162   : > { %1320 = vst [vmem:[%s1989_s20 + $0x220] sm:$0xff] (%p1610_p5), %v1319_v45  ;;  %1322 = vst [vmem:[%s1989_s20 + $0x228] sm:$0xff] (%p1610_p5), %v1321_v46 }
 0x163   : > { %1324 = vst [vmem:[%s1989_s20 + $0x230] sm:$0xff] (%p1610_p5), %v1323_v47  ;;  %1326 = vst [vmem:[%s1989_s20 + $0x238] sm:$0xff] (%p1610_p5), %v1325_v48 }
 0x165   : > { %v1295_v33 = vld [vmem:[%s1920_s11 + $0x40] sm:$0xff] (%p1610_p5)  ;;  %v1299_v35 = vld [vmem:[%s1920_s11 + $0x50] sm:$0xff] (%p1610_p5) }
 0x166   : > { %1296 = vst [vmem:[%s1989_s20 + $0x40] sm:$0xff] (%p1610_p5), %v1295_v33  ;;  %v1297_v34 = vld [vmem:[%s1920_s11 + $0x48] sm:$0xff] (%p1610_p5)  ;;  %v1301_v36 = vld [vmem:[%s1920_s11 + $0x58] sm:$0xff] (%p1610_p5)  ;;  %1300 = vst [vmem:[%s1989_s20 + $0x50] sm:$0xff] (%p1610_p5), %v1299_v35 }
 0x167   : > { %1298 = vst [vmem:[%s1989_s20 + $0x48] sm:$0xff] (%p1610_p5), %v1297_v34  ;;  %1302 = vst [vmem:[%s1989_s20 + $0x58] sm:$0xff] (%p1610_p5), %v1301_v36  ;;  %v1327_v49 = vld [vmem:[%s1920_s11 + $0xc0] sm:$0xff] (%p1610_p5)  ;;  %v1331_v51 = vld [vmem:[%s1920_s11 + $0xd0] sm:$0xff] (%p1610_p5) }
 0x168   : > { %v1329_v50 = vld [vmem:[%s1920_s11 + $0xc8] sm:$0xff] (%p1610_p5)  ;;  %1328 = vst [vmem:[%s1989_s20 + $0x240] sm:$0xff] (%p1610_p5), %v1327_v49  ;;  %1332 = vst [vmem:[%s1989_s20 + $0x250] sm:$0xff] (%p1610_p5), %v1331_v51  ;;  %v1333_v16 = vld [vmem:[%s1920_s11 + $0xd8] sm:$0xff] (%p1610_p5) }
 0x169   : > { %1330 = vst [vmem:[%s1989_s20 + $0x248] sm:$0xff] (%p1610_p5), %v1329_v50  ;;  %1334 = vst [vmem:[%s1989_s20 + $0x258] sm:$0xff] (%p1610_p5), %v1333_v16 }
 0x16d   : > { %v1141_v1 = vpop.f32.mrb[12].mxu0  ;;  %v1184_v4 = vpop.f32.mrb[12].mxu1 }
 0x16e   : > { %v1142_v2 = vadd.f32 %v1141_v1, %v1907_v54  ;;  %v1143_v5 = vpop.f32.mrb[13].mxu0  ;;  %v1185_v6 = vadd.f32 %v1184_v4, %v1907_v54  ;;  %v1186_v8 = vpop.f32.mrb[13].mxu1 }
 0x16f   : > { %v1144_v7 = vadd.f32 %v1143_v5, %v1907_v54  ;;  %v1145_v9 = vpop.f32.mrb[14].mxu0  ;;  %v1187_v11 = vadd.f32 %v1186_v8, %v1907_v54  ;;  %v1188_v13 = vpop.f32.mrb[14].mxu1  ;;  %1263 = sbr.rel (!%p1610_p5) target bundleno = 382 (0x17e), region = 59 }
 0x170   : > { %v1205_v10 = vmax.f32 %v1142_v2, 0.0  ;;  %v1146_v12 = vadd.f32 %v1145_v9, %v1911_v56  ;;  %v1147_v14 = vpop.f32.mrb[15].mxu0  ;;  %v1207_v15 = vmax.f32 %v1185_v6, 0.0  ;;  %v1189_v18 = vadd.f32 %v1188_v13, %v1911_v56  ;;  %v1190_v20 = vpop.f32.mrb[15].mxu1 }
 0x171   : > { %v1206_v17 = vmax.f32 %v1144_v7, 0.0  ;;  %v1148_v19 = vadd.f32 %v1147_v14, %v1911_v56  ;;  %v1208_v21 = vmax.f32 %v1187_v11, 0.0  ;;  %v1191_v54 = vadd.f32 %v1190_v20, %v1911_v56  ;;  %v1279_v56 = vld [vmem:[%s1920_s11] sm:$0xff] (%p1610_p5) }
 0x172   : > { %1237 = vst [vmem:[%s1920_s11 + $0x60] sm:$0xff] %v1205_v10  ;;  %v1221_v22 = vmax.f32 %v1146_v12, 0.0  ;;  %1239 = vst [vmem:[%s1920_s11 + $0x70] sm:$0xff] %v1207_v15  ;;  %v1223_v23 = vmax.f32 %v1189_v18, 0.0 }
 0x173   : > { %1238 = vst [vmem:[%s1920_s11 + $0x68] sm:$0xff] %v1206_v17  ;;  %v1222_v24 = vmax.f32 %v1148_v19, 0.0  ;;  %1240 = vst [vmem:[%s1920_s11 + $0x78] sm:$0xff] %v1208_v21  ;;  %v1224_v25 = vmax.f32 %v1191_v54, 0.0 }
 0x174   : > { %1253 = vst [vmem:[%s1920_s11 + $0xe0] sm:$0xff] %v1221_v22  ;;  %1255 = vst [vmem:[%s1920_s11 + $0xf0] sm:$0xff] %v1223_v23 }
 0x175   : > { %1254 = vst [vmem:[%s1920_s11 + $0xe8] sm:$0xff] %v1222_v24  ;;  %1256 = vst [vmem:[%s1920_s11 + $0xf8] sm:$0xff] %v1224_v25 }
 0x176   : > { %1280 = vst [vmem:[%s1989_s20] sm:$0xff] %v1279_v56 }
 0x179   : > { %v1303_v37 = vld [vmem:[%s1920_s11 + $0x60] sm:$0xff]  ;;  %v1307_v39 = vld [vmem:[%s1920_s11 + $0x70] sm:$0xff] }
 0x17a   : > { %v1305_v38 = vld [vmem:[%s1920_s11 + $0x68] sm:$0xff]  ;;  %1304 = vst [vmem:[%s1989_s20 + $0x60] sm:$0xff] %v1303_v37  ;;  %1308 = vst [vmem:[%s1989_s20 + $0x70] sm:$0xff] %v1307_v39  ;;  %v1309_v40 = vld [vmem:[%s1920_s11 + $0x78] sm:$0xff] }
 0x17b   : > { %1306 = vst [vmem:[%s1989_s20 + $0x68] sm:$0xff] %v1305_v38  ;;  %1310 = vst [vmem:[%s1989_s20 + $0x78] sm:$0xff] %v1309_v40  ;;  %v1335_v52 = vld [vmem:[%s1920_s11 + $0xe0] sm:$0xff]  ;;  %v1339_v55 = vld [vmem:[%s1920_s11 + $0xf0] sm:$0xff] }
 0x17c   : > { %v1337_v53 = vld [vmem:[%s1920_s11 + $0xe8] sm:$0xff]  ;;  %1336 = vst [vmem:[%s1989_s20 + $0x260] sm:$0xff] %v1335_v52  ;;  %v1341_v57 = vld [vmem:[%s1920_s11 + $0xf8] sm:$0xff]  ;;  %1340 = vst [vmem:[%s1989_s20 + $0x270] sm:$0xff] %v1339_v55 }
 0x17d   : > { %1338 = vst [vmem:[%s1989_s20 + $0x268] sm:$0xff] %v1337_v53  ;;  %1342 = vst [vmem:[%s1989_s20 + $0x278] sm:$0xff] %v1341_v57 }
 0x17e PF: > { %p10_p10 = scmp.ge.s32.totalorder %s1597_s16, 6   ;;  %s2067_s12 = smov %s1553_s13 }
 0x17f   : > { %s2068_s13 = smov %s1608_s19  ;;  %s2069_s14 = smov %s1597_s16 }
 0x180   :  { %12 = sbr.rel (!%p10_p10) target bundleno = 2 (0x2), region = 113 }

// kernel: cnn_3_layers_forward.7
= control target key start
LH: loop header
LB: loop body
LE: loop exit
PB: predicated region body
PF: predicated region fallthrough
CT: control target
= control target key end

     0   :  { %s3893_s12 = smov 0   ;;  %s3895_s13 = smov 0   ;;  %s4934_s0 = inlined_call_operand.vmem [shape: f32[16,2,64,64], index: 0, kind: input, shape index: {}]   ;;  %s4935_s1 = inlined_call_operand.vmem [shape: f32[8,15,128], index: 1, kind: input, shape index: {}]   ;;  %s4936_s2 = inlined_call_operand.vmem [shape: f32[15,1], index: 2, kind: input, shape index: {}]   ;;  %s4937_s3 = inlined_call_operand.vmem [shape: f32[2,15,1], index: 3, kind: output, shape index: {}]  }
   0x1   :  { %s3897_s14 = smov 0  }
   0x2 LB: > { %s3100_s15 = sadd.s32 4294967295, %s3871_s14   ;;  %s3910_s16 = sadd.s32 1, %s3871_s14   ;;  %s3871_s14 = sphi %s3897_s14, %s4940_s14   ;;  %s3867_s13 = sphi %s3895_s13, %s4939_s13   ;;  %s3863_s12 = sphi %s3893_s12, %s4938_s12  }
   0x3   : > { %s17_s17 = ssub.s32 %s3871_s14, %s3910_s16  ;;  %s20_s18 = sadd.s32 1, %s3867_s13 }
   0x4   : > { %p18_p0 = scmp.eq.s32.totalorder %s17_s17, 0  ;;  %p27_p1 = scmp.ne.s32.totalorder %s3867_s13, %s3863_s12 }
   0x5   : > { %p28_p2 = scmp.eq.s32.totalorder %s3871_s14, 0  ;;  %p3103_p4 = scmp.ge.s32.totalorder %s3871_s14, 2 }
   0x6   : > { %s3919_s19 = scalar_select %p18_p0, %s3867_s13, %s20_s18  }
   0x7   : > { %p29_p3 = por %p28_p2, %p27_p1  ;;  %127 = sbr.rel (%p3103_p4) target bundleno = 82 (0x52), region = 24 }
   0xe   : > { %130 = sbr.rel (!%p29_p3) target bundleno = 82 (0x52), region = 28  ;;  %s132_s20 = sand.u32 (%p29_p3), 1, %s3867_s13  }
   0xf   : > { %s3127_s21 = sshll.u32 (%p29_p3), %s3871_s14, 6  ;;  %s3104_s22 = sshll.u32 (%p29_p3), %s132_s20, 10 }
  0x10   : > { %s3927_s25 = scalar_lea.vmem (%p29_p3), %s4934_s0, %s3127_s21  ;;  %s3932_s26 = scalar_lea.vmem (%p29_p3), [#allocation2], %s3104_s22 }
  0x11   : > { %v419_v0 = vld [vmem:[%s3927_s25] sm:$0xff] (%p29_p3)  ;;  %v421_v1 = vld [vmem:[%s3927_s25 + $0x8] sm:$0xff] (%p29_p3)  ;;  %v423_v2 = vld [vmem:[%s3927_s25 + $0x10] sm:$0xff] (%p29_p3) }
  0x12   : > { %420 = vst [vmem:[%s3932_s26] sm:$0xff] (%p29_p3), %v419_v0  ;;  %422 = vst [vmem:[%s3932_s26 + $0x8] sm:$0xff] (%p29_p3), %v421_v1  ;;  %v425_v3 = vld [vmem:[%s3927_s25 + $0x18] sm:$0xff] (%p29_p3)  ;;  %v427_v4 = vld [vmem:[%s3927_s25 + $0x20] sm:$0xff] (%p29_p3) }
  0x13   : > { %424 = vst [vmem:[%s3932_s26 + $0x10] sm:$0xff] (%p29_p3), %v423_v2  ;;  %v429_v5 = vld [vmem:[%s3927_s25 + $0x28] sm:$0xff] (%p29_p3)  ;;  %426 = vst [vmem:[%s3932_s26 + $0x18] sm:$0xff] (%p29_p3), %v425_v3  ;;  %v431_v6 = vld [vmem:[%s3927_s25 + $0x30] sm:$0xff] (%p29_p3) }
  0x14   : > { %428 = vst [vmem:[%s3932_s26 + $0x20] sm:$0xff] (%p29_p3), %v427_v4  ;;  %430 = vst [vmem:[%s3932_s26 + $0x28] sm:$0xff] (%p29_p3), %v429_v5  ;;  %v433_v7 = vld [vmem:[%s3927_s25 + $0x38] sm:$0xff] (%p29_p3)  ;;  %v435_v8 = vld [vmem:[%s3927_s25 + $0x80] sm:$0xff] (%p29_p3) }
  0x15   : > { %432 = vst [vmem:[%s3932_s26 + $0x30] sm:$0xff] %v431_v6  ;;  %434 = vst [vmem:[%s3932_s26 + $0x38] sm:$0xff] %v433_v7  ;;  %v437_v9 = vld [vmem:[%s3927_s25 + $0x88] sm:$0xff]  ;;  %v439_v10 = vld [vmem:[%s3927_s25 + $0x90] sm:$0xff] }
  0x16   : > { %436 = vst [vmem:[%s3932_s26 + $0x40] sm:$0xff] %v435_v8  ;;  %v441_v11 = vld [vmem:[%s3927_s25 + $0x98] sm:$0xff]  ;;  %438 = vst [vmem:[%s3932_s26 + $0x48] sm:$0xff] %v437_v9  ;;  %v443_v12 = vld [vmem:[%s3927_s25 + $0xa0] sm:$0xff] }
  0x17   : > { %440 = vst [vmem:[%s3932_s26 + $0x50] sm:$0xff] %v439_v10  ;;  %442 = vst [vmem:[%s3932_s26 + $0x58] sm:$0xff] %v441_v11  ;;  %v445_v13 = vld [vmem:[%s3927_s25 + $0xa8] sm:$0xff]  ;;  %v447_v14 = vld [vmem:[%s3927_s25 + $0xb0] sm:$0xff] }
  0x18   : > { %444 = vst [vmem:[%s3932_s26 + $0x60] sm:$0xff] %v443_v12  ;;  %446 = vst [vmem:[%s3932_s26 + $0x68] sm:$0xff] %v445_v13  ;;  %v449_v15 = vld [vmem:[%s3927_s25 + $0xb8] sm:$0xff]  ;;  %v451_v16 = vld [vmem:[%s3927_s25 + $0x100] sm:$0xff] }
  0x19   : > { %448 = vst [vmem:[%s3932_s26 + $0x70] sm:$0xff] %v447_v14  ;;  %v453_v17 = vld [vmem:[%s3927_s25 + $0x108] sm:$0xff]  ;;  %450 = vst [vmem:[%s3932_s26 + $0x78] sm:$0xff] %v449_v15  ;;  %v455_v18 = vld [vmem:[%s3927_s25 + $0x110] sm:$0xff] }
  0x1a   : > { %452 = vst [vmem:[%s3932_s26 + $0x80] sm:$0xff] %v451_v16  ;;  %454 = vst [vmem:[%s3932_s26 + $0x88] sm:$0xff] %v453_v17  ;;  %v457_v19 = vld [vmem:[%s3927_s25 + $0x118] sm:$0xff]  ;;  %v459_v20 = vld [vmem:[%s3927_s25 + $0x120] sm:$0xff] }
  0x1b   : > { %456 = vst [vmem:[%s3932_s26 + $0x90] sm:$0xff] %v455_v18  ;;  %458 = vst [vmem:[%s3932_s26 + $0x98] sm:$0xff] %v457_v19  ;;  %v461_v21 = vld [vmem:[%s3927_s25 + $0x128] sm:$0xff]  ;;  %v463_v22 = vld [vmem:[%s3927_s25 + $0x130] sm:$0xff] }
  0x1c   : > { %460 = vst [vmem:[%s3932_s26 + $0xa0] sm:$0xff] %v459_v20  ;;  %v465_v23 = vld [vmem:[%s3927_s25 + $0x138] sm:$0xff]  ;;  %462 = vst [vmem:[%s3932_s26 + $0xa8] sm:$0xff] %v461_v21  ;;  %v467_v24 = vld [vmem:[%s3927_s25 + $0x180] sm:$0xff] }
  0x1d   : > { %464 = vst [vmem:[%s3932_s26 + $0xb0] sm:$0xff] %v463_v22  ;;  %466 = vst [vmem:[%s3932_s26 + $0xb8] sm:$0xff] %v465_v23  ;;  %v469_v25 = vld [vmem:[%s3927_s25 + $0x188] sm:$0xff]  ;;  %v471_v26 = vld [vmem:[%s3927_s25 + $0x190] sm:$0xff] }
  0x1e   : > { %468 = vst [vmem:[%s3932_s26 + $0xc0] sm:$0xff] %v467_v24  ;;  %470 = vst [vmem:[%s3932_s26 + $0xc8] sm:$0xff] %v469_v25  ;;  %v473_v27 = vld [vmem:[%s3927_s25 + $0x198] sm:$0xff]  ;;  %v475_v28 = vld [vmem:[%s3927_s25 + $0x1a0] sm:$0xff] }
  0x1f   : > { %472 = vst [vmem:[%s3932_s26 + $0xd0] sm:$0xff] %v471_v26  ;;  %v477_v29 = vld [vmem:[%s3927_s25 + $0x1a8] sm:$0xff]  ;;  %474 = vst [vmem:[%s3932_s26 + $0xd8] sm:$0xff] %v473_v27  ;;  %v479_v30 = vld [vmem:[%s3927_s25 + $0x1b0] sm:$0xff] }
  0x20   : > { %476 = vst [vmem:[%s3932_s26 + $0xe0] sm:$0xff] %v475_v28  ;;  %478 = vst [vmem:[%s3932_s26 + $0xe8] sm:$0xff] %v477_v29  ;;  %v481_v31 = vld [vmem:[%s3927_s25 + $0x1b8] sm:$0xff]  ;;  %v483_v32 = vld [vmem:[%s3927_s25 + $0x200] sm:$0xff] }
  0x21   : > { %480 = vst [vmem:[%s3932_s26 + $0xf0] sm:$0xff] %v479_v30  ;;  %482 = vst [vmem:[%s3932_s26 + $0xf8] sm:$0xff] %v481_v31  ;;  %v485_v33 = vld [vmem:[%s3927_s25 + $0x208] sm:$0xff]  ;;  %v487_v34 = vld [vmem:[%s3927_s25 + $0x210] sm:$0xff] }
  0x22   : > { %484 = vst [vmem:[%s3932_s26 + $0x100] sm:$0xff] %v483_v32  ;;  %v489_v35 = vld [vmem:[%s3927_s25 + $0x218] sm:$0xff]  ;;  %486 = vst [vmem:[%s3932_s26 + $0x108] sm:$0xff] %v485_v33  ;;  %v491_v36 = vld [vmem:[%s3927_s25 + $0x220] sm:$0xff] }
  0x23   : > { %488 = vst [vmem:[%s3932_s26 + $0x110] sm:$0xff] %v487_v34  ;;  %490 = vst [vmem:[%s3932_s26 + $0x118] sm:$0xff] %v489_v35  ;;  %v493_v37 = vld [vmem:[%s3927_s25 + $0x228] sm:$0xff]  ;;  %v495_v38 = vld [vmem:[%s3927_s25 + $0x230] sm:$0xff] }
  0x24   : > { %492 = vst [vmem:[%s3932_s26 + $0x120] sm:$0xff] %v491_v36  ;;  %494 = vst [vmem:[%s3932_s26 + $0x128] sm:$0xff] %v493_v37  ;;  %v497_v39 = vld [vmem:[%s3927_s25 + $0x238] sm:$0xff]  ;;  %v499_v40 = vld [vmem:[%s3927_s25 + $0x280] sm:$0xff] }
  0x25   : > { %496 = vst [vmem:[%s3932_s26 + $0x130] sm:$0xff] %v495_v38  ;;  %v501_v41 = vld [vmem:[%s3927_s25 + $0x288] sm:$0xff]  ;;  %498 = vst [vmem:[%s3932_s26 + $0x138] sm:$0xff] %v497_v39  ;;  %v503_v42 = vld [vmem:[%s3927_s25 + $0x290] sm:$0xff] }
  0x26   : > { %500 = vst [vmem:[%s3932_s26 + $0x140] sm:$0xff] %v499_v40  ;;  %502 = vst [vmem:[%s3932_s26 + $0x148] sm:$0xff] %v501_v41  ;;  %v505_v43 = vld [vmem:[%s3927_s25 + $0x298] sm:$0xff]  ;;  %v507_v44 = vld [vmem:[%s3927_s25 + $0x2a0] sm:$0xff] }
  0x27   : > { %504 = vst [vmem:[%s3932_s26 + $0x150] sm:$0xff] %v503_v42  ;;  %506 = vst [vmem:[%s3932_s26 + $0x158] sm:$0xff] %v505_v43  ;;  %v509_v45 = vld [vmem:[%s3927_s25 + $0x2a8] sm:$0xff]  ;;  %v511_v46 = vld [vmem:[%s3927_s25 + $0x2b0] sm:$0xff] }
  0x28   : > { %508 = vst [vmem:[%s3932_s26 + $0x160] sm:$0xff] %v507_v44  ;;  %v513_v47 = vld [vmem:[%s3927_s25 + $0x2b8] sm:$0xff]  ;;  %510 = vst [vmem:[%s3932_s26 + $0x168] sm:$0xff] %v509_v45  ;;  %v515_v48 = vld [vmem:[%s3927_s25 + $0x300] sm:$0xff] }
  0x29   : > { %512 = vst [vmem:[%s3932_s26 + $0x170] sm:$0xff] %v511_v46  ;;  %514 = vst [vmem:[%s3932_s26 + $0x178] sm:$0xff] %v513_v47  ;;  %v517_v49 = vld [vmem:[%s3927_s25 + $0x308] sm:$0xff]  ;;  %v519_v50 = vld [vmem:[%s3927_s25 + $0x310] sm:$0xff] }
  0x2a   : > { %516 = vst [vmem:[%s3932_s26 + $0x180] sm:$0xff] %v515_v48  ;;  %518 = vst [vmem:[%s3932_s26 + $0x188] sm:$0xff] %v517_v49  ;;  %v521_v51 = vld [vmem:[%s3927_s25 + $0x318] sm:$0xff]  ;;  %v523_v52 = vld [vmem:[%s3927_s25 + $0x320] sm:$0xff] }
  0x2b   : > { %520 = vst [vmem:[%s3932_s26 + $0x190] sm:$0xff] %v519_v50  ;;  %v525_v53 = vld [vmem:[%s3927_s25 + $0x328] sm:$0xff]  ;;  %522 = vst [vmem:[%s3932_s26 + $0x198] sm:$0xff] %v521_v51  ;;  %v527_v54 = vld [vmem:[%s3927_s25 + $0x330] sm:$0xff] }
  0x2c   : > { %524 = vst [vmem:[%s3932_s26 + $0x1a0] sm:$0xff] %v523_v52  ;;  %526 = vst [vmem:[%s3932_s26 + $0x1a8] sm:$0xff] %v525_v53  ;;  %v529_v55 = vld [vmem:[%s3927_s25 + $0x338] sm:$0xff]  ;;  %v531_v56 = vld [vmem:[%s3927_s25 + $0x380] sm:$0xff] }
  0x2d   : > { %528 = vst [vmem:[%s3932_s26 + $0x1b0] sm:$0xff] %v527_v54  ;;  %530 = vst [vmem:[%s3932_s26 + $0x1b8] sm:$0xff] %v529_v55  ;;  %v533_v57 = vld [vmem:[%s3927_s25 + $0x388] sm:$0xff]  ;;  %v535_v58 = vld [vmem:[%s3927_s25 + $0x390] sm:$0xff] }
  0x2e   : > { %532 = vst [vmem:[%s3932_s26 + $0x1c0] sm:$0xff] %v531_v56  ;;  %v537_v59 = vld [vmem:[%s3927_s25 + $0x398] sm:$0xff]  ;;  %534 = vst [vmem:[%s3932_s26 + $0x1c8] sm:$0xff] %v533_v57  ;;  %v539_v60 = vld [vmem:[%s3927_s25 + $0x3a0] sm:$0xff] }
  0x2f   : > { %536 = vst [vmem:[%s3932_s26 + $0x1d0] sm:$0xff] %v535_v58  ;;  %538 = vst [vmem:[%s3932_s26 + $0x1d8] sm:$0xff] %v537_v59  ;;  %v541_v61 = vld [vmem:[%s3927_s25 + $0x3a8] sm:$0xff]  ;;  %v543_v62 = vld [vmem:[%s3927_s25 + $0x3b0] sm:$0xff] }
  0x30   : > { %540 = vst [vmem:[%s3932_s26 + $0x1e0] sm:$0xff] %v539_v60  ;;  %542 = vst [vmem:[%s3932_s26 + $0x1e8] sm:$0xff] %v541_v61  ;;  %v545_v63 = vld [vmem:[%s3927_s25 + $0x3b8] sm:$0xff]  ;;  %v547_v0 = vld [vmem:[%s3927_s25 + $0x400] sm:$0xff] }
  0x31   : > { %544 = vst [vmem:[%s3932_s26 + $0x1f0] sm:$0xff] %v543_v62  ;;  %v549_v1 = vld [vmem:[%s3927_s25 + $0x408] sm:$0xff]  ;;  %546 = vst [vmem:[%s3932_s26 + $0x1f8] sm:$0xff] %v545_v63  ;;  %v551_v2 = vld [vmem:[%s3927_s25 + $0x410] sm:$0xff] }
  0x32   : > { %548 = vst [vmem:[%s3932_s26 + $0x200] sm:$0xff] %v547_v0  ;;  %550 = vst [vmem:[%s3932_s26 + $0x208] sm:$0xff] %v549_v1  ;;  %v553_v3 = vld [vmem:[%s3927_s25 + $0x418] sm:$0xff]  ;;  %v555_v4 = vld [vmem:[%s3927_s25 + $0x420] sm:$0xff] }
  0x33   : > { %552 = vst [vmem:[%s3932_s26 + $0x210] sm:$0xff] %v551_v2  ;;  %554 = vst [vmem:[%s3932_s26 + $0x218] sm:$0xff] %v553_v3  ;;  %v557_v5 = vld [vmem:[%s3927_s25 + $0x428] sm:$0xff]  ;;  %v559_v6 = vld [vmem:[%s3927_s25 + $0x430] sm:$0xff] }
  0x34   : > { %556 = vst [vmem:[%s3932_s26 + $0x220] sm:$0xff] %v555_v4  ;;  %v561_v7 = vld [vmem:[%s3927_s25 + $0x438] sm:$0xff]  ;;  %558 = vst [vmem:[%s3932_s26 + $0x228] sm:$0xff] %v557_v5  ;;  %v563_v8 = vld [vmem:[%s3927_s25 + $0x480] sm:$0xff] }
  0x35   : > { %560 = vst [vmem:[%s3932_s26 + $0x230] sm:$0xff] %v559_v6  ;;  %562 = vst [vmem:[%s3932_s26 + $0x238] sm:$0xff] %v561_v7  ;;  %v565_v9 = vld [vmem:[%s3927_s25 + $0x488] sm:$0xff]  ;;  %v567_v10 = vld [vmem:[%s3927_s25 + $0x490] sm:$0xff] }
  0x36   : > { %564 = vst [vmem:[%s3932_s26 + $0x240] sm:$0xff] %v563_v8  ;;  %566 = vst [vmem:[%s3932_s26 + $0x248] sm:$0xff] %v565_v9  ;;  %v569_v11 = vld [vmem:[%s3927_s25 + $0x498] sm:$0xff]  ;;  %v571_v12 = vld [vmem:[%s3927_s25 + $0x4a0] sm:$0xff] }
  0x37   : > { %568 = vst [vmem:[%s3932_s26 + $0x250] sm:$0xff] %v567_v10  ;;  %v573_v13 = vld [vmem:[%s3927_s25 + $0x4a8] sm:$0xff]  ;;  %570 = vst [vmem:[%s3932_s26 + $0x258] sm:$0xff] %v569_v11  ;;  %v575_v14 = vld [vmem:[%s3927_s25 + $0x4b0] sm:$0xff] }
  0x38   : > { %572 = vst [vmem:[%s3932_s26 + $0x260] sm:$0xff] %v571_v12  ;;  %574 = vst [vmem:[%s3932_s26 + $0x268] sm:$0xff] %v573_v13  ;;  %v577_v15 = vld [vmem:[%s3927_s25 + $0x4b8] sm:$0xff]  ;;  %v579_v16 = vld [vmem:[%s3927_s25 + $0x500] sm:$0xff] }
  0x39   : > { %576 = vst [vmem:[%s3932_s26 + $0x270] sm:$0xff] %v575_v14  ;;  %578 = vst [vmem:[%s3932_s26 + $0x278] sm:$0xff] %v577_v15  ;;  %v581_v17 = vld [vmem:[%s3927_s25 + $0x508] sm:$0xff]  ;;  %v583_v18 = vld [vmem:[%s3927_s25 + $0x510] sm:$0xff] }
  0x3a   : > { %580 = vst [vmem:[%s3932_s26 + $0x280] sm:$0xff] %v579_v16  ;;  %v585_v19 = vld [vmem:[%s3927_s25 + $0x518] sm:$0xff]  ;;  %582 = vst [vmem:[%s3932_s26 + $0x288] sm:$0xff] %v581_v17  ;;  %v587_v20 = vld [vmem:[%s3927_s25 + $0x520] sm:$0xff] }
  0x3b   : > { %584 = vst [vmem:[%s3932_s26 + $0x290] sm:$0xff] %v583_v18  ;;  %586 = vst [vmem:[%s3932_s26 + $0x298] sm:$0xff] %v585_v19  ;;  %v589_v21 = vld [vmem:[%s3927_s25 + $0x528] sm:$0xff]  ;;  %v591_v22 = vld [vmem:[%s3927_s25 + $0x530] sm:$0xff] }
  0x3c   : > { %588 = vst [vmem:[%s3932_s26 + $0x2a0] sm:$0xff] %v587_v20  ;;  %590 = vst [vmem:[%s3932_s26 + $0x2a8] sm:$0xff] %v589_v21  ;;  %v593_v23 = vld [vmem:[%s3927_s25 + $0x538] sm:$0xff]  ;;  %v595_v24 = vld [vmem:[%s3927_s25 + $0x580] sm:$0xff] }
  0x3d   : > { %592 = vst [vmem:[%s3932_s26 + $0x2b0] sm:$0xff] %v591_v22  ;;  %v597_v25 = vld [vmem:[%s3927_s25 + $0x588] sm:$0xff]  ;;  %594 = vst [vmem:[%s3932_s26 + $0x2b8] sm:$0xff] %v593_v23  ;;  %v599_v26 = vld [vmem:[%s3927_s25 + $0x590] sm:$0xff] }
  0x3e   : > { %596 = vst [vmem:[%s3932_s26 + $0x2c0] sm:$0xff] %v595_v24  ;;  %598 = vst [vmem:[%s3932_s26 + $0x2c8] sm:$0xff] %v597_v25  ;;  %v601_v27 = vld [vmem:[%s3927_s25 + $0x598] sm:$0xff]  ;;  %v603_v28 = vld [vmem:[%s3927_s25 + $0x5a0] sm:$0xff] }
  0x3f   : > { %600 = vst [vmem:[%s3932_s26 + $0x2d0] sm:$0xff] %v599_v26  ;;  %602 = vst [vmem:[%s3932_s26 + $0x2d8] sm:$0xff] %v601_v27  ;;  %v605_v29 = vld [vmem:[%s3927_s25 + $0x5a8] sm:$0xff]  ;;  %v607_v30 = vld [vmem:[%s3927_s25 + $0x5b0] sm:$0xff] }
  0x40   : > { %604 = vst [vmem:[%s3932_s26 + $0x2e0] sm:$0xff] %v603_v28  ;;  %v609_v31 = vld [vmem:[%s3927_s25 + $0x5b8] sm:$0xff]  ;;  %606 = vst [vmem:[%s3932_s26 + $0x2e8] sm:$0xff] %v605_v29  ;;  %v611_v32 = vld [vmem:[%s3927_s25 + $0x600] sm:$0xff] }
  0x41   : > { %608 = vst [vmem:[%s3932_s26 + $0x2f0] sm:$0xff] %v607_v30  ;;  %610 = vst [vmem:[%s3932_s26 + $0x2f8] sm:$0xff] %v609_v31  ;;  %v613_v33 = vld [vmem:[%s3927_s25 + $0x608] sm:$0xff]  ;;  %v615_v34 = vld [vmem:[%s3927_s25 + $0x610] sm:$0xff] }
  0x42   : > { %612 = vst [vmem:[%s3932_s26 + $0x300] sm:$0xff] %v611_v32  ;;  %614 = vst [vmem:[%s3932_s26 + $0x308] sm:$0xff] %v613_v33  ;;  %v617_v35 = vld [vmem:[%s3927_s25 + $0x618] sm:$0xff]  ;;  %v619_v36 = vld [vmem:[%s3927_s25 + $0x620] sm:$0xff] }
  0x43   : > { %616 = vst [vmem:[%s3932_s26 + $0x310] sm:$0xff] %v615_v34  ;;  %v621_v37 = vld [vmem:[%s3927_s25 + $0x628] sm:$0xff]  ;;  %618 = vst [vmem:[%s3932_s26 + $0x318] sm:$0xff] %v617_v35  ;;  %v623_v38 = vld [vmem:[%s3927_s25 + $0x630] sm:$0xff] }
  0x44   : > { %620 = vst [vmem:[%s3932_s26 + $0x320] sm:$0xff] %v619_v36  ;;  %622 = vst [vmem:[%s3932_s26 + $0x328] sm:$0xff] %v621_v37  ;;  %v625_v39 = vld [vmem:[%s3927_s25 + $0x638] sm:$0xff]  ;;  %v627_v40 = vld [vmem:[%s3927_s25 + $0x680] sm:$0xff] }
  0x45   : > { %624 = vst [vmem:[%s3932_s26 + $0x330] sm:$0xff] %v623_v38  ;;  %626 = vst [vmem:[%s3932_s26 + $0x338] sm:$0xff] %v625_v39  ;;  %v629_v41 = vld [vmem:[%s3927_s25 + $0x688] sm:$0xff]  ;;  %v631_v42 = vld [vmem:[%s3927_s25 + $0x690] sm:$0xff] }
  0x46   : > { %628 = vst [vmem:[%s3932_s26 + $0x340] sm:$0xff] %v627_v40  ;;  %v633_v43 = vld [vmem:[%s3927_s25 + $0x698] sm:$0xff]  ;;  %630 = vst [vmem:[%s3932_s26 + $0x348] sm:$0xff] %v629_v41  ;;  %v635_v44 = vld [vmem:[%s3927_s25 + $0x6a0] sm:$0xff] }
  0x47   : > { %632 = vst [vmem:[%s3932_s26 + $0x350] sm:$0xff] %v631_v42  ;;  %634 = vst [vmem:[%s3932_s26 + $0x358] sm:$0xff] %v633_v43  ;;  %v637_v45 = vld [vmem:[%s3927_s25 + $0x6a8] sm:$0xff]  ;;  %v639_v46 = vld [vmem:[%s3927_s25 + $0x6b0] sm:$0xff] }
  0x48   : > { %636 = vst [vmem:[%s3932_s26 + $0x360] sm:$0xff] %v635_v44  ;;  %638 = vst [vmem:[%s3932_s26 + $0x368] sm:$0xff] %v637_v45  ;;  %v641_v47 = vld [vmem:[%s3927_s25 + $0x6b8] sm:$0xff]  ;;  %v643_v48 = vld [vmem:[%s3927_s25 + $0x700] sm:$0xff] }
  0x49   : > { %640 = vst [vmem:[%s3932_s26 + $0x370] sm:$0xff] %v639_v46  ;;  %v645_v49 = vld [vmem:[%s3927_s25 + $0x708] sm:$0xff]  ;;  %642 = vst [vmem:[%s3932_s26 + $0x378] sm:$0xff] %v641_v47  ;;  %v647_v50 = vld [vmem:[%s3927_s25 + $0x710] sm:$0xff] }
  0x4a   : > { %644 = vst [vmem:[%s3932_s26 + $0x380] sm:$0xff] %v643_v48  ;;  %646 = vst [vmem:[%s3932_s26 + $0x388] sm:$0xff] %v645_v49  ;;  %v649_v51 = vld [vmem:[%s3927_s25 + $0x718] sm:$0xff]  ;;  %v651_v52 = vld [vmem:[%s3927_s25 + $0x720] sm:$0xff] }
  0x4b   : > { %648 = vst [vmem:[%s3932_s26 + $0x390] sm:$0xff] %v647_v50  ;;  %650 = vst [vmem:[%s3932_s26 + $0x398] sm:$0xff] %v649_v51  ;;  %v653_v53 = vld [vmem:[%s3927_s25 + $0x728] sm:$0xff]  ;;  %v655_v54 = vld [vmem:[%s3927_s25 + $0x730] sm:$0xff] }
  0x4c   : > { %652 = vst [vmem:[%s3932_s26 + $0x3a0] sm:$0xff] %v651_v52  ;;  %v657_v55 = vld [vmem:[%s3927_s25 + $0x738] sm:$0xff]  ;;  %654 = vst [vmem:[%s3932_s26 + $0x3a8] sm:$0xff] %v653_v53  ;;  %v659_v56 = vld [vmem:[%s3927_s25 + $0x780] sm:$0xff] }
  0x4d   : > { %656 = vst [vmem:[%s3932_s26 + $0x3b0] sm:$0xff] %v655_v54  ;;  %658 = vst [vmem:[%s3932_s26 + $0x3b8] sm:$0xff] %v657_v55  ;;  %v661_v57 = vld [vmem:[%s3927_s25 + $0x788] sm:$0xff]  ;;  %v663_v58 = vld [vmem:[%s3927_s25 + $0x790] sm:$0xff] }
  0x4e   : > { %660 = vst [vmem:[%s3932_s26 + $0x3c0] sm:$0xff] %v659_v56  ;;  %662 = vst [vmem:[%s3932_s26 + $0x3c8] sm:$0xff] %v661_v57  ;;  %v665_v59 = vld [vmem:[%s3927_s25 + $0x798] sm:$0xff]  ;;  %v667_v60 = vld [vmem:[%s3927_s25 + $0x7a0] sm:$0xff] }
  0x4f   : > { %664 = vst [vmem:[%s3932_s26 + $0x3d0] sm:$0xff] %v663_v58  ;;  %v669_v61 = vld [vmem:[%s3927_s25 + $0x7a8] sm:$0xff]  ;;  %666 = vst [vmem:[%s3932_s26 + $0x3d8] sm:$0xff] %v665_v59  ;;  %v671_v62 = vld [vmem:[%s3927_s25 + $0x7b0] sm:$0xff] }
  0x50   : > { %668 = vst [vmem:[%s3932_s26 + $0x3e0] sm:$0xff] %v667_v60  ;;  %670 = vst [vmem:[%s3932_s26 + $0x3e8] sm:$0xff] %v669_v61  ;;  %v673_v63 = vld [vmem:[%s3927_s25 + $0x7b8] sm:$0xff] }
  0x51   : > { %672 = vst [vmem:[%s3932_s26 + $0x3f0] sm:$0xff] %v671_v62  ;;  %674 = vst [vmem:[%s3932_s26 + $0x3f8] sm:$0xff] %v673_v63 }
  0x52 PF: > { %p3107_p5 = scmp.ge.s32.totalorder %s3871_s14, 1  ;;  %p679_p6 = scmp.lt.s32.totalorder %s3871_s14, 3 }
  0x54   : > { %p680_p7 = pnand %p3107_p5, %p679_p6 }
  0x55   : > { %s686_s27 = sand.u32 (!%p680_p7), 1, %s3863_s12   ;;  %vm842_vm0 = vcmask (!%p680_p7), 523264   ;;  %vm1869_vm1 = vcmask (!%p680_p7), 1041409   ;;  %vm1871_vm2 = vcmask (!%p680_p7), 1042434   ;;  %vm1873_vm3 = vcmask (!%p680_p7), 1043459   ;;  %p709_p8 = scmp.lt.s32.totalorder (!%p680_p7), %s3100_s15, 1 }
  0x56   : > { %683 = sbr.rel (%p680_p7) target bundleno = 916 (0x394), region = 66  ;;  %s3108_s28 = sshll.u32 (!%p680_p7), %s686_s27, 10  ;;  %vm1875_vm4 = vcmask (!%p680_p7), 1044484   ;;  %vm1877_vm5 = vcmask (!%p680_p7), 1045509   ;;  %vm1879_vm6 = vcmask (!%p680_p7), 1046534   ;;  %vm1881_vm7 = vcmask (!%p680_p7), 1047559  }
  0x57   : > { %s4190_s29 = scalar_lea.vmem (!%p680_p7), [#allocation2], %s3108_s28  ;;  %vm2519_vm8 = vcmask (!%p680_p7), 326912   ;;  %vm2004_vm9 = vcmask (!%p680_p7), 64512   ;;  %vm2132_vm10 = vcmask (!%p680_p7), 130112   ;;  %vm2648_vm11 = vcmask (!%p680_p7), 392512  }
  0x58   : > { %v714_v0 = vld [vmem:[%s4190_s29] sm:$0xff] (!%p680_p7)  ;;  %v715_v1 = vld [vmem:[%s4190_s29 + $0x8] sm:$0xff] (!%p680_p7)  ;;  %v716_v2 = vld [vmem:[%s4190_s29 + $0x10] sm:$0xff] (!%p680_p7)  ;;  %vm2261_vm12 = vcmask (!%p680_p7), 195712   ;;  %vm2777_vm13 = vcmask (!%p680_p7), 458112   ;;  %vm2390_vm14 = vcmask (!%p680_p7), 261312  }
  0x59   : > { %v717_v3 = vld [vmem:[%s4190_s29 + $0x18] sm:$0xff] (!%p680_p7)  ;;  %v718_v4 = vld [vmem:[%s4190_s29 + $0x20] sm:$0xff] (!%p680_p7)  ;;  %v719_v5 = vld [vmem:[%s4190_s29 + $0x28] sm:$0xff] (!%p680_p7)  ;;  %v843_v6 = vsel (!%p680_p7), %vm842_vm0, %v714_v0, -inf  ;;  %v850_v7 = vsel (!%p680_p7), %vm842_vm0, %v715_v1, -inf  ;;  %v857_v8 = vsel (!%p680_p7), %vm842_vm0, %v716_v2, -inf }
  0x5a   : > { %v720_v9 = vld [vmem:[%s4190_s29 + $0x30] sm:$0xff] (!%p680_p7)  ;;  %v721_v10 = vld [vmem:[%s4190_s29 + $0x38] sm:$0xff] (!%p680_p7)  ;;  %v844_v11 = vrot.slane (!%p680_p7), %v843_v6, 4  ;;  %v851_v12 = vrot.slane (!%p680_p7), %v850_v7, 4  ;;  %v858_v13 = vrot.slane (!%p680_p7), %v857_v8, 4  ;;  %v864_v14 = vsel (!%p680_p7), %vm842_vm0, %v717_v3, -inf }
  0x5b   : > { %v865_v15 = vrot.slane (!%p680_p7), %v864_v14, 4  ;;  %v871_v16 = vsel (!%p680_p7), %vm842_vm0, %v718_v4, -inf  ;;  %v878_v17 = vsel (!%p680_p7), %vm842_vm0, %v719_v5, -inf  ;;  %v885_v18 = vsel (!%p680_p7), %vm842_vm0, %v720_v9, -inf  ;;  %v722_v51 = vld [vmem:[%s4190_s29 + $0x40] sm:$0xff] (!%p680_p7)  ;;  %v723_v52 = vld [vmem:[%s4190_s29 + $0x48] sm:$0xff] (!%p680_p7) }
  0x5c   : > { %v845_v19 = vmax.f32 (!%p680_p7), %v843_v6, %v844_v11  ;;  %v852_v20 = vmax.f32 (!%p680_p7), %v850_v7, %v851_v12  ;;  %v859_v21 = vmax.f32 (!%p680_p7), %v857_v8, %v858_v13  ;;  %v872_v22 = vrot.slane (!%p680_p7), %v871_v16, 4  ;;  %v724_v61 = vld [vmem:[%s4190_s29 + $0x50] sm:$0xff] (!%p680_p7)  ;;  %v725_v0 = vld [vmem:[%s4190_s29 + $0x58] sm:$0xff] (!%p680_p7)  ;;  %v726_v8 = vld [vmem:[%s4190_s29 + $0x60] sm:$0xff] (!%p680_p7) }
  0x5d   : > { %v866_v23 = vmax.f32 %v864_v14, %v865_v15  ;;  %v879_v24 = vrot.slane %v878_v17, 4  ;;  %v886_v25 = vrot.slane %v885_v18, 4  ;;  %v892_v26 = vsel %vm842_vm0, %v721_v10, -inf  ;;  %v727_v9 = vld [vmem:[%s4190_s29 + $0x68] sm:$0xff]  ;;  %s4942_s15 = smov (!%p709_p8, %s3100_s15), 1 }
  0x5e   : > { %v846_v27 = vrot.slane %v845_v19, 2  ;;  %v853_v28 = vrot.slane %v852_v20, 2  ;;  %v860_v29 = vrot.slane %v859_v21, 2  ;;  %v873_v30 = vmax.f32 %v871_v16, %v872_v22  ;;  %s3128_s22 = sshll.u32 %s4942_s15, 4 }
  0x5f   : > { %v867_v31 = vrot.slane %v866_v23, 2  ;;  %v880_v32 = vmax.f32 %v878_v17, %v879_v24  ;;  %v887_v33 = vmax.f32 %v885_v18, %v886_v25  ;;  %v893_v34 = vrot.slane %v892_v26, 4  ;;  %s713_s25 = scalar_lea.vmem %s4937_s3, %s3128_s22 }
  0x60   : > { %v847_v35 = vmax.f32 %v845_v19, %v846_v27  ;;  %v854_v36 = vmax.f32 %v852_v20, %v853_v28  ;;  %v861_v37 = vmax.f32 %v859_v21, %v860_v29  ;;  %v874_v38 = vrot.slane %v873_v30, 2  ;;  %v729_v27 = vld [vmem:[%s4190_s29 + $0x78] sm:$0xff] }
  0x61   : > { %v868_v39 = vmax.f32 %v866_v23, %v867_v31  ;;  %v881_v40 = vrot.slane %v880_v32, 2  ;;  %v888_v41 = vrot.slane %v887_v33, 2  ;;  %v894_v42 = vmax.f32 %v892_v26, %v893_v34  ;;  %v728_v26 = vld [vmem:[%s4190_s29 + $0x70] sm:$0xff] }
  0x62   : > { %v848_v43 = vrot.slane %v847_v35, 1  ;;  %v855_v44 = vrot.slane %v854_v36, 1  ;;  %v862_v45 = vrot.slane %v861_v37, 1  ;;  %v875_v46 = vmax.f32 %v873_v30, %v874_v38 }
  0x63   : > { %v869_v47 = vrot.slane %v868_v39, 1  ;;  %v882_v48 = vmax.f32 %v880_v32, %v881_v40  ;;  %v889_v49 = vmax.f32 %v887_v33, %v888_v41  ;;  %v895_v50 = vrot.slane %v894_v42, 2 }
  0x64   : > { %v849_v53 = vmax.f32 %v847_v35, %v848_v43  ;;  %v856_v54 = vmax.f32 %v854_v36, %v855_v44  ;;  %v863_v55 = vmax.f32 %v861_v37, %v862_v45  ;;  %v876_v56 = vrot.slane %v875_v46, 1 }
  0x65   : > { %v870_v57 = vmax.f32 %v868_v39, %v869_v47  ;;  %v883_v58 = vrot.slane %v882_v48, 1  ;;  %v890_v59 = vrot.slane %v889_v49, 1  ;;  %v896_v60 = vmax.f32 %v894_v42, %v895_v50 }
  0x66   : > { %v877_v62 = vmax.f32 %v875_v46, %v876_v56  ;;  %v1870_v63 = vsel %vm1869_vm1, %v856_v54, %v849_v53  ;;  %v899_v1 = vsel %vm842_vm0, %v722_v51, -inf  ;;  %v906_v2 = vsel %vm842_vm0, %v723_v52, -inf  ;;  %v738_v51 = vld [vmem:[%s4190_s29 + $0xc0] sm:$0xff] }
  0x67   : > { %v884_v3 = vmax.f32 %v882_v48, %v883_v58  ;;  %v891_v4 = vmax.f32 %v889_v49, %v890_v59  ;;  %v897_v5 = vrot.slane %v896_v60, 1  ;;  %v1872_v6 = vsel %vm1871_vm2, %v863_v55, %v1870_v63 }
  0x68   : > { %v1874_v7 = vsel %vm1873_vm3, %v870_v57, %v1872_v6  ;;  %v900_v10 = vrot.slane %v899_v1, 4  ;;  %v907_v11 = vrot.slane %v906_v2, 4  ;;  %v913_v12 = vsel %vm842_vm0, %v724_v61, -inf  ;;  %v741_v6 = vld [vmem:[%s4190_s29 + $0xd8] sm:$0xff] }
  0x69   : > { %v898_v13 = vmax.f32 %v896_v60, %v897_v5  ;;  %v1876_v14 = vsel %vm1875_vm4, %v877_v62, %v1874_v7  ;;  %v914_v15 = vrot.slane %v913_v12, 4  ;;  %v920_v16 = vsel %vm842_vm0, %v725_v0, -inf  ;;  %v739_v60 = vld [vmem:[%s4190_s29 + $0xc8] sm:$0xff]  ;;  %v740_v5 = vld [vmem:[%s4190_s29 + $0xd0] sm:$0xff] }
  0x6a   : > { %v1878_v17 = vsel %vm1877_vm5, %v884_v3, %v1876_v14  ;;  %v901_v18 = vmax.f32 %v899_v1, %v900_v10  ;;  %v908_v19 = vmax.f32 %v906_v2, %v907_v11  ;;  %v921_v20 = vrot.slane %v920_v16, 4 }
  0x6b   : > { %v1880_v21 = vsel %vm1879_vm6, %v891_v4, %v1878_v17  ;;  %v915_v22 = vmax.f32 %v913_v12, %v914_v15  ;;  %v927_v23 = vsel %vm842_vm0, %v726_v8, -inf  ;;  %v934_v24 = vsel %vm842_vm0, %v727_v9, -inf }
  0x6c   : > { %v4227_v25 = vsel %vm1881_vm7, %v898_v13, %v1880_v21  ;;  %v902_v28 = vrot.slane %v901_v18, 2  ;;  %v909_v29 = vrot.slane %v908_v19, 2  ;;  %v922_v30 = vmax.f32 %v920_v16, %v921_v20  ;;  %v742_v16 = vld [vmem:[%s4190_s29 + $0xe0] sm:$0xff] }
  0x6d   : > { %v2520_v31 = vsel %vm2519_vm8, %v4227_v25, -inf  ;;  %v2005_v32 = vsel %vm2004_vm9, %v4227_v25, -inf  ;;  %v916_v33 = vrot.slane %v915_v22, 2  ;;  %v928_v34 = vrot.slane %v927_v23, 4 }
  0x6e   : > { %2521 = vmax.xlane.f32.xlu1 %v2520_v31  ;;  %2006 = vmax.xlane.f32.xlu0 %v2005_v32  ;;  %v903_v35 = vmax.f32 %v901_v18, %v902_v28  ;;  %v910_v36 = vmax.f32 %v908_v19, %v909_v29  ;;  %v923_v37 = vrot.slane %v922_v30, 2  ;;  %v935_v38 = vrot.slane %v934_v24, 4 }
  0x6f   : > { %v917_v39 = vmax.f32 %v915_v22, %v916_v33  ;;  %v929_v40 = vmax.f32 %v927_v23, %v928_v34  ;;  %v941_v41 = vsel %vm842_vm0, %v728_v26, -inf  ;;  %v948_v42 = vsel %vm842_vm0, %v729_v27, -inf  ;;  %v743_v26 = vld [vmem:[%s4190_s29 + $0xe8] sm:$0xff]  ;;  %v744_v27 = vld [vmem:[%s4190_s29 + $0xf0] sm:$0xff] }
  0x70   : > { %v904_v43 = vrot.slane %v903_v35, 1  ;;  %v911_v44 = vrot.slane %v910_v36, 1  ;;  %v924_v45 = vmax.f32 %v922_v30, %v923_v37  ;;  %v936_v46 = vmax.f32 %v934_v24, %v935_v38 }
  0x71   : > { %v918_v47 = vrot.slane %v917_v39, 1  ;;  %v930_v48 = vrot.slane %v929_v40, 2  ;;  %v942_v49 = vrot.slane %v941_v41, 4  ;;  %v949_v50 = vrot.slane %v948_v42, 4 }
  0x72   : > { %v905_v52 = vmax.f32 %v903_v35, %v904_v43  ;;  %v912_v53 = vmax.f32 %v910_v36, %v911_v44  ;;  %v925_v54 = vrot.slane %v924_v45, 1  ;;  %v937_v55 = vrot.slane %v936_v46, 2  ;;  %v745_v44 = vld [vmem:[%s4190_s29 + $0xf8] sm:$0xff] }
  0x73   : > { %v919_v56 = vmax.f32 %v917_v39, %v918_v47  ;;  %v931_v57 = vmax.f32 %v929_v40, %v930_v48  ;;  %v943_v58 = vmax.f32 %v941_v41, %v942_v49  ;;  %v950_v59 = vmax.f32 %v948_v42, %v949_v50 }
  0x74   : > { %v926_v61 = vmax.f32 %v924_v45, %v925_v54  ;;  %v938_v62 = vmax.f32 %v936_v46, %v937_v55  ;;  %v1883_v63 = vsel %vm1869_vm1, %v912_v53, %v905_v52  ;;  %v1011_v0 = vsel %vm842_vm0, %v738_v51, -inf }
  0x75   : > { %v932_v1 = vrot.slane %v931_v57, 1  ;;  %v944_v2 = vrot.slane %v943_v58, 2  ;;  %v951_v3 = vrot.slane %v950_v59, 2  ;;  %v1884_v4 = vsel %vm1871_vm2, %v919_v56, %v1883_v63  ;;  %v730_v56 = vld [vmem:[%s4190_s29 + $0x80] sm:$0xff] }
  0x76   : > { %v939_v7 = vrot.slane %v938_v62, 1  ;;  %v1885_v8 = vsel %vm1873_vm3, %v926_v61, %v1884_v4  ;;  %v1012_v9 = vrot.slane %v1011_v0, 4  ;;  %v1018_v10 = vsel %vm842_vm0, %v739_v60, -inf }
  0x77   : > { %v933_v11 = vmax.f32 %v931_v57, %v932_v1  ;;  %v945_v12 = vmax.f32 %v943_v58, %v944_v2  ;;  %v952_v13 = vmax.f32 %v950_v59, %v951_v3  ;;  %v1019_v14 = vrot.slane %v1018_v10, 4  ;;  %v731_v1 = vld [vmem:[%s4190_s29 + $0x88] sm:$0xff] }
  0x78   : > { %v940_v15 = vmax.f32 %v938_v62, %v939_v7  ;;  %v1013_v17 = vmax.f32 %v1011_v0, %v1012_v9  ;;  %v1025_v18 = vsel %vm842_vm0, %v740_v5, -inf  ;;  %v1032_v19 = vsel %vm842_vm0, %v741_v6, -inf }
  0x79   : > { %v946_v20 = vrot.slane %v945_v12, 1  ;;  %v953_v21 = vrot.slane %v952_v13, 1  ;;  %v1886_v22 = vsel %vm1875_vm4, %v933_v11, %v1885_v8  ;;  %v1020_v23 = vmax.f32 %v1018_v10, %v1019_v14 }
  0x7a   : > { %v1887_v24 = vsel %vm1877_vm5, %v940_v15, %v1886_v22  ;;  %v1014_v28 = vrot.slane %v1013_v17, 2  ;;  %v1026_v29 = vrot.slane %v1025_v18, 4  ;;  %v1033_v30 = vrot.slane %v1032_v19, 4  ;;  %v733_v22 = vld [vmem:[%s4190_s29 + $0x98] sm:$0xff] }
  0x7b   : > { %v947_v31 = vmax.f32 %v945_v12, %v946_v20  ;;  %v954_v32 = vmax.f32 %v952_v13, %v953_v21  ;;  %v1021_v33 = vrot.slane %v1020_v23, 2  ;;  %v1039_v34 = vsel %vm842_vm0, %v742_v16, -inf  ;;  %v732_v12 = vld [vmem:[%s4190_s29 + $0x90] sm:$0xff] }
  0x7c   : > { %v1015_v35 = vmax.f32 %v1013_v17, %v1014_v28  ;;  %v1027_v36 = vmax.f32 %v1025_v18, %v1026_v29  ;;  %v1034_v37 = vmax.f32 %v1032_v19, %v1033_v30  ;;  %v1040_v38 = vrot.slane %v1039_v34, 4 }
  0x7d   : > { %v1888_v39 = vsel %vm1879_vm6, %v947_v31, %v1887_v24  ;;  %v1022_v40 = vmax.f32 %v1020_v23, %v1021_v33  ;;  %v1046_v41 = vsel %vm842_vm0, %v743_v26, -inf  ;;  %v1053_v42 = vsel %vm842_vm0, %v744_v27, -inf  ;;  %v734_v31 = vld [vmem:[%s4190_s29 + $0xa0] sm:$0xff] }
  0x7e   : > { %v4258_v43 = vsel %vm1881_vm7, %v954_v32, %v1888_v39  ;;  %v1016_v45 = vrot.slane %v1015_v35, 1  ;;  %v1028_v46 = vrot.slane %v1027_v36, 2  ;;  %v1035_v47 = vrot.slane %v1034_v37, 2  ;;  %v735_v39 = vld [vmem:[%s4190_s29 + $0xa8] sm:$0xff] }
  0x7f   : > { %v2523_v48 = vsel %vm2519_vm8, %v4258_v43, -inf  ;;  %v2008_v49 = vsel %vm2004_vm9, %v4258_v43, -inf  ;;  %v1023_v50 = vrot.slane %v1022_v40, 1  ;;  %v1041_v51 = vmax.f32 %v1039_v34, %v1040_v38 }
  0x80   : > { %2524 = vmax.xlane.f32.xlu1 %v2523_v48  ;;  %2009 = vmax.xlane.f32.xlu0 %v2008_v49  ;;  %v1017_v52 = vmax.f32 %v1015_v35, %v1016_v45  ;;  %v1029_v53 = vmax.f32 %v1027_v36, %v1028_v46  ;;  %v1036_v54 = vmax.f32 %v1034_v37, %v1035_v47  ;;  %v1047_v55 = vrot.slane %v1046_v41, 4  ;;  %v736_v49 = vld [vmem:[%s4190_s29 + $0xb0] sm:$0xff] }
  0x81   : > { %v1024_v57 = vmax.f32 %v1022_v40, %v1023_v50  ;;  %v1042_v58 = vrot.slane %v1041_v51, 2  ;;  %v1054_v59 = vrot.slane %v1053_v42, 4  ;;  %v1060_v60 = vsel %vm842_vm0, %v745_v44, -inf }
  0x82   : > { %v1030_v61 = vrot.slane %v1029_v53, 1  ;;  %v1037_v62 = vrot.slane %v1036_v54, 1  ;;  %v1048_v63 = vmax.f32 %v1046_v41, %v1047_v55  ;;  %v1061_v0 = vrot.slane %v1060_v60, 4 }
  0x83   : > { %v1043_v2 = vmax.f32 %v1041_v51, %v1042_v58  ;;  %v1055_v3 = vmax.f32 %v1053_v42, %v1054_v59  ;;  %v1897_v4 = vsel %vm1869_vm1, %v1024_v57, %v1017_v52  ;;  %v955_v5 = vsel %vm842_vm0, %v730_v56, -inf }
  0x84   : > { %v1031_v6 = vmax.f32 %v1029_v53, %v1030_v61  ;;  %v1038_v7 = vmax.f32 %v1036_v54, %v1037_v62  ;;  %v1049_v8 = vrot.slane %v1048_v63, 2  ;;  %v1062_v9 = vmax.f32 %v1060_v60, %v1061_v0  ;;  %v737_v54 = vld [vmem:[%s4190_s29 + $0xb8] sm:$0xff] }
  0x85   : > { %v1044_v10 = vrot.slane %v1043_v2, 1  ;;  %v1056_v11 = vrot.slane %v1055_v3, 2  ;;  %v956_v13 = vrot.slane %v955_v5, 4  ;;  %v962_v14 = vsel %vm842_vm0, %v731_v1, -inf }
  0x86   : > { %v1050_v15 = vmax.f32 %v1048_v63, %v1049_v8  ;;  %v1063_v16 = vrot.slane %v1062_v9, 2  ;;  %v1898_v17 = vsel %vm1871_vm2, %v1031_v6, %v1897_v4  ;;  %v963_v18 = vrot.slane %v962_v14, 4  ;;  %v754_v6 = vld [vmem:[%s4190_s29 + $0x140] sm:$0xff] }
  0x87   : > { %v1045_v19 = vmax.f32 %v1043_v2, %v1044_v10  ;;  %v1057_v20 = vmax.f32 %v1055_v3, %v1056_v11  ;;  %v1899_v21 = vsel %vm1873_vm3, %v1038_v7, %v1898_v17  ;;  %v957_v23 = vmax.f32 %v955_v5, %v956_v13 }
  0x88   : > { %v1051_v24 = vrot.slane %v1050_v15, 1  ;;  %v1064_v26 = vmax.f32 %v1062_v9, %v1063_v16  ;;  %v964_v27 = vmax.f32 %v962_v14, %v963_v18  ;;  %v969_v28 = vsel %vm842_vm0, %v732_v12, -inf }
  0x89   : > { %v1058_v29 = vrot.slane %v1057_v20, 1  ;;  %v1900_v30 = vsel %vm1875_vm4, %v1045_v19, %v1899_v21  ;;  %v958_v32 = vrot.slane %v957_v23, 2  ;;  %v970_v33 = vrot.slane %v969_v28, 4 }
  0x8a   : > { %v1052_v34 = vmax.f32 %v1050_v15, %v1051_v24  ;;  %v1065_v35 = vrot.slane %v1064_v26, 1  ;;  %v965_v36 = vrot.slane %v964_v27, 2  ;;  %v976_v37 = vsel %vm842_vm0, %v733_v22, -inf  ;;  %v755_v15 = vld [vmem:[%s4190_s29 + $0x148] sm:$0xff] }
  0x8b   : > { %v1059_v38 = vmax.f32 %v1057_v20, %v1058_v29  ;;  %v959_v40 = vmax.f32 %v957_v23, %v958_v32  ;;  %v971_v41 = vmax.f32 %v969_v28, %v970_v33  ;;  %v977_v42 = vrot.slane %v976_v37, 4  ;;  %v756_v23 = vld [vmem:[%s4190_s29 + $0x150] sm:$0xff]  ;;  %v757_v32 = vld [vmem:[%s4190_s29 + $0x158] sm:$0xff] }
  0x8c   : > { %v1066_v44 = vmax.f32 %v1064_v26, %v1065_v35  ;;  %v1901_v45 = vsel %vm1877_vm5, %v1052_v34, %v1900_v30  ;;  %v966_v46 = vmax.f32 %v964_v27, %v965_v36  ;;  %v983_v47 = vsel %vm842_vm0, %v734_v31, -inf }
  0x8d   : > { %v1902_v48 = vsel %vm1879_vm6, %v1059_v38, %v1901_v45  ;;  %v960_v50 = vrot.slane %v959_v40, 1  ;;  %v972_v51 = vrot.slane %v971_v41, 2  ;;  %v978_v52 = vmax.f32 %v976_v37, %v977_v42 }
  0x8e   : > { %v4285_v53 = vsel %vm1881_vm7, %v1066_v44, %v1902_v48  ;;  %v967_v55 = vrot.slane %v966_v46, 1  ;;  %v984_v56 = vrot.slane %v983_v47, 4  ;;  %v990_v57 = vsel %vm842_vm0, %v735_v39, -inf }
  0x8f   : > { %v2014_v58 = vsel %vm2004_vm9, %v4285_v53, -inf  ;;  %v961_v59 = vmax.f32 %v959_v40, %v960_v50  ;;  %v973_v60 = vmax.f32 %v971_v41, %v972_v51  ;;  %v979_v61 = vrot.slane %v978_v52, 2  ;;  %v758_v40 = vld [vmem:[%s4190_s29 + $0x160] sm:$0xff]  ;;  %v759_v50 = vld [vmem:[%s4190_s29 + $0x168] sm:$0xff] }
  0x90   : > { %2015 = vmax.xlane.f32.xlu1 %v2014_v58  ;;  %v968_v62 = vmax.f32 %v966_v46, %v967_v55  ;;  %v985_v63 = vmax.f32 %v983_v47, %v984_v56  ;;  %v991_v0 = vrot.slane %v990_v57, 4  ;;  %v997_v1 = vsel %vm842_vm0, %v736_v49, -inf }
  0x91   : > { %v974_v2 = vrot.slane %v973_v60, 1  ;;  %v980_v3 = vmax.f32 %v978_v52, %v979_v61  ;;  %v998_v4 = vrot.slane %v997_v1, 4  ;;  %v1004_v5 = vsel %vm842_vm0, %v737_v54, -inf }
  0x92   : > { %v986_v7 = vrot.slane %v985_v63, 2  ;;  %v992_v8 = vmax.f32 %v990_v57, %v991_v0  ;;  %v1005_v9 = vrot.slane %v1004_v5, 4  ;;  %v1890_v10 = vsel %vm1869_vm1, %v968_v62, %v961_v59  ;;  %v760_v0 = vld [vmem:[%s4190_s29 + $0x170] sm:$0xff] }
  0x93   : > { %v975_v11 = vmax.f32 %v973_v60, %v974_v2  ;;  %v981_v12 = vrot.slane %v980_v3, 1  ;;  %v999_v13 = vmax.f32 %v997_v1, %v998_v4  ;;  %v2529_v14 = vsel %vm2519_vm8, %v4285_v53, -inf  ;;  %v761_v1 = vld [vmem:[%s4190_s29 + $0x178] sm:$0xff] }
  0x94   : > { %v987_v16 = vmax.f32 %v985_v63, %v986_v7  ;;  %v993_v17 = vrot.slane %v992_v8, 2  ;;  %v1006_v18 = vmax.f32 %v1004_v5, %v1005_v9  ;;  %2530 = vmax.xlane.f32.xlu1 %v2529_v14  ;;  %v1123_v19 = vsel %vm842_vm0, %v754_v6, -inf  ;;  %v746_v5 = vld [vmem:[%s4190_s29 + $0x100] sm:$0xff] }
  0x95   : > { %v982_v20 = vmax.f32 %v980_v3, %v981_v12  ;;  %v1000_v21 = vrot.slane %v999_v13, 2  ;;  %v1891_v22 = vsel %vm1871_vm2, %v975_v11, %v1890_v10  ;;  %v1124_v24 = vrot.slane %v1123_v19, 4 }
  0x96   : > { %v988_v26 = vrot.slane %v987_v16, 1  ;;  %v994_v27 = vmax.f32 %v992_v8, %v993_v17  ;;  %v1007_v28 = vrot.slane %v1006_v18, 2  ;;  %v1130_v29 = vsel %vm842_vm0, %v755_v15, -inf }
  0x97   : > { %v1001_v30 = vmax.f32 %v999_v13, %v1000_v21  ;;  %v1892_v31 = vsel %vm1873_vm3, %v982_v20, %v1891_v22  ;;  %v1125_v33 = vmax.f32 %v1123_v19, %v1124_v24  ;;  %v1131_v34 = vrot.slane %v1130_v29, 4  ;;  %v747_v22 = vld [vmem:[%s4190_s29 + $0x108] sm:$0xff] }
  0x98   : > { %v989_v35 = vmax.f32 %v987_v16, %v988_v26  ;;  %v995_v36 = vrot.slane %v994_v27, 1  ;;  %v1008_v37 = vmax.f32 %v1006_v18, %v1007_v28  ;;  %v1137_v38 = vsel %vm842_vm0, %v756_v23, -inf }
  0x99   : > { %v1002_v39 = vrot.slane %v1001_v30, 1  ;;  %v1126_v41 = vrot.slane %v1125_v33, 2  ;;  %v1132_v42 = vmax.f32 %v1130_v29, %v1131_v34  ;;  %v1138_v44 = vrot.slane %v1137_v38, 4  ;;  %v748_v34 = vld [vmem:[%s4190_s29 + $0x110] sm:$0xff] }
  0x9a   : > { %v996_v45 = vmax.f32 %v994_v27, %v995_v36  ;;  %v1009_v46 = vrot.slane %v1008_v37, 1  ;;  %v1893_v47 = vsel %vm1875_vm4, %v989_v35, %v1892_v31  ;;  %v1144_v48 = vsel %vm842_vm0, %v757_v32, -inf }
  0x9b   : > { %v1003_v49 = vmax.f32 %v1001_v30, %v1002_v39  ;;  %v1127_v51 = vmax.f32 %v1125_v33, %v1126_v41  ;;  %v1133_v52 = vrot.slane %v1132_v42, 2  ;;  %v1139_v54 = vmax.f32 %v1137_v38, %v1138_v44  ;;  %v749_v44 = vld [vmem:[%s4190_s29 + $0x118] sm:$0xff] }
  0x9c   : > { %v1010_v55 = vmax.f32 %v1008_v37, %v1009_v46  ;;  %v1894_v56 = vsel %vm1877_vm5, %v996_v45, %v1893_v47  ;;  %v1145_v57 = vrot.slane %v1144_v48, 4  ;;  %v1151_v58 = vsel %vm842_vm0, %v758_v40, -inf }
  0x9d   : > { %v1895_v59 = vsel %vm1879_vm6, %v1003_v49, %v1894_v56  ;;  %v1128_v60 = vrot.slane %v1127_v51, 1  ;;  %v1134_v61 = vmax.f32 %v1132_v42, %v1133_v52  ;;  %v1140_v62 = vrot.slane %v1139_v54, 2 }
  0x9e   : > { %v4313_v63 = vsel %vm1881_vm7, %v1010_v55, %v1895_v59  ;;  %v1146_v2 = vmax.f32 %v1144_v48, %v1145_v57  ;;  %v1152_v3 = vrot.slane %v1151_v58, 4  ;;  %v1158_v4 = vsel %vm842_vm0, %v759_v50, -inf }
  0x9f   : > { %v2011_v6 = vsel %vm2004_vm9, %v4313_v63, -inf  ;;  %v2526_v7 = vsel %vm2519_vm8, %v4313_v63, -inf  ;;  %v1129_v8 = vmax.f32 %v1127_v51, %v1128_v60  ;;  %v1135_v9 = vrot.slane %v1134_v61, 1 }
  0xa0   : > { %2012 = vmax.xlane.f32.xlu0 %v2011_v6  ;;  %v1141_v10 = vmax.f32 %v1139_v54, %v1140_v62  ;;  %v1147_v11 = vrot.slane %v1146_v2, 2  ;;  %v1153_v12 = vmax.f32 %v1151_v58, %v1152_v3  ;;  %v1159_v13 = vrot.slane %v1158_v4, 4  ;;  %v750_v54 = vld [vmem:[%s4190_s29 + $0x120] sm:$0xff] }
  0xa1   : > { %v1136_v14 = vmax.f32 %v1134_v61, %v1135_v9  ;;  %v1165_v15 = vsel %vm842_vm0, %v760_v0, -inf  ;;  %v1172_v16 = vsel %vm842_vm0, %v761_v1, -inf  ;;  %v1067_v17 = vsel %vm842_vm0, %v746_v5, -inf  ;;  %v751_v0 = vld [vmem:[%s4190_s29 + $0x128] sm:$0xff] }
  0xa2   : > { %v1142_v18 = vrot.slane %v1141_v10, 1  ;;  %v1148_v19 = vmax.f32 %v1146_v2, %v1147_v11  ;;  %v1154_v20 = vrot.slane %v1153_v12, 2  ;;  %v1160_v21 = vmax.f32 %v1158_v4, %v1159_v13  ;;  %v752_v4 = vld [vmem:[%s4190_s29 + $0x130] sm:$0xff] }
  0xa3   : > { %v1166_v23 = vrot.slane %v1165_v15, 4  ;;  %v1173_v24 = vrot.slane %v1172_v16, 4  ;;  %v1911_v26 = vsel %vm1869_vm1, %v1136_v14, %v1129_v8  ;;  %v1068_v27 = vrot.slane %v1067_v17, 4 }
  0xa4   : > { %2527 = vmax.xlane.f32.xlu0 %v2526_v7  ;;  %v1143_v28 = vmax.f32 %v1141_v10, %v1142_v18  ;;  %v1149_v29 = vrot.slane %v1148_v19, 1  ;;  %v1155_v30 = vmax.f32 %v1153_v12, %v1154_v20  ;;  %v1161_v31 = vrot.slane %v1160_v21, 2 }
  0xa5   : > { %v1167_v32 = vmax.f32 %v1165_v15, %v1166_v23  ;;  %v1174_v33 = vmax.f32 %v1172_v16, %v1173_v24  ;;  %v1069_v35 = vmax.f32 %v1067_v17, %v1068_v27  ;;  %v1074_v36 = vsel %vm842_vm0, %v747_v22, -inf  ;;  %v753_v17 = vld [vmem:[%s4190_s29 + $0x138] sm:$0xff] }
  0xa6   : > { %v1150_v37 = vmax.f32 %v1148_v19, %v1149_v29  ;;  %v1156_v38 = vrot.slane %v1155_v30, 1  ;;  %v1162_v39 = vmax.f32 %v1160_v21, %v1161_v31  ;;  %v1912_v40 = vsel %vm1871_vm2, %v1143_v28, %v1911_v26 }
  0xa7   : > { %v1168_v41 = vrot.slane %v1167_v32, 2  ;;  %v1175_v42 = vrot.slane %v1174_v33, 2  ;;  %v1070_v45 = vrot.slane %v1069_v35, 2  ;;  %v1075_v46 = vrot.slane %v1074_v36, 4 }
  0xa8   : > { %v1157_v47 = vmax.f32 %v1155_v30, %v1156_v38  ;;  %v1163_v48 = vrot.slane %v1162_v39, 1  ;;  %v1913_v49 = vsel %vm1873_vm3, %v1150_v37, %v1912_v40  ;;  %v1081_v50 = vsel %vm842_vm0, %v748_v34, -inf  ;;  %v770_v34 = vld [vmem:[%s4190_s29 + $0x1c0] sm:$0xff] }
  0xa9   : > { %v1169_v51 = vmax.f32 %v1167_v32, %v1168_v41  ;;  %v1176_v52 = vmax.f32 %v1174_v33, %v1175_v42  ;;  %v1071_v55 = vmax.f32 %v1069_v35, %v1070_v45  ;;  %v1076_v56 = vmax.f32 %v1074_v36, %v1075_v46 }
  0xaa   : > { %v1164_v57 = vmax.f32 %v1162_v39, %v1163_v48  ;;  %v1914_v58 = vsel %vm1875_vm4, %v1157_v47, %v1913_v49  ;;  %v1082_v59 = vrot.slane %v1081_v50, 4  ;;  %v1088_v60 = vsel %vm842_vm0, %v749_v44, -inf  ;;  %v771_v44 = vld [vmem:[%s4190_s29 + $0x1c8] sm:$0xff] }
  0xab   : > { %v1170_v61 = vrot.slane %v1169_v51, 1  ;;  %v1177_v62 = vrot.slane %v1176_v52, 1  ;;  %v1072_v1 = vrot.slane %v1071_v55, 1  ;;  %v1077_v2 = vrot.slane %v1076_v56, 2 }
  0xac   : > { %v1915_v3 = vsel %vm1877_vm5, %v1164_v57, %v1914_v58  ;;  %v1083_v5 = vmax.f32 %v1081_v50, %v1082_v59  ;;  %v1089_v6 = vrot.slane %v1088_v60, 4  ;;  %v1095_v7 = vsel %vm842_vm0, %v750_v54, -inf }
  0xad   : > { %v1171_v8 = vmax.f32 %v1169_v51, %v1170_v61  ;;  %v1178_v9 = vmax.f32 %v1176_v52, %v1177_v62  ;;  %v1073_v10 = vmax.f32 %v1071_v55, %v1072_v1  ;;  %v1078_v11 = vmax.f32 %v1076_v56, %v1077_v2  ;;  %v772_v52 = vld [vmem:[%s4190_s29 + $0x1d0] sm:$0xff]  ;;  %v773_v61 = vld [vmem:[%s4190_s29 + $0x1d8] sm:$0xff] }
  0xae   : > { %v1084_v12 = vrot.slane %v1083_v5, 2  ;;  %v1090_v13 = vmax.f32 %v1088_v60, %v1089_v6  ;;  %v1096_v14 = vrot.slane %v1095_v7, 4  ;;  %v1102_v15 = vsel %vm842_vm0, %v751_v0, -inf  ;;  %v774_v6 = vld [vmem:[%s4190_s29 + $0x1e0] sm:$0xff] }
  0xaf   : > { %v1916_v16 = vsel %vm1879_vm6, %v1171_v8, %v1915_v3  ;;  %v1079_v18 = vrot.slane %v1078_v11, 1  ;;  %v1103_v19 = vrot.slane %v1102_v15, 4  ;;  %v1109_v20 = vsel %vm842_vm0, %v752_v4, -inf }
  0xb0   : > { %v4346_v21 = vsel %vm1881_vm7, %v1178_v9, %v1916_v16  ;;  %v1085_v22 = vmax.f32 %v1083_v5, %v1084_v12  ;;  %v1091_v23 = vrot.slane %v1090_v13, 2  ;;  %v1097_v24 = vmax.f32 %v1095_v7, %v1096_v14  ;;  %v775_v7 = vld [vmem:[%s4190_s29 + $0x1e8] sm:$0xff] }
  0xb1   : > { %v2020_v26 = vsel %vm2004_vm9, %v4346_v21, -inf  ;;  %v1080_v27 = vmax.f32 %v1078_v11, %v1079_v18  ;;  %v1104_v28 = vmax.f32 %v1102_v15, %v1103_v19  ;;  %v1110_v29 = vrot.slane %v1109_v20, 4  ;;  %v776_v15 = vld [vmem:[%s4190_s29 + $0x1f0] sm:$0xff] }
  0xb2   : > { %2021 = vmax.xlane.f32.xlu1 %v2020_v26  ;;  %v1086_v30 = vrot.slane %v1085_v22, 1  ;;  %v1092_v31 = vmax.f32 %v1090_v13, %v1091_v23  ;;  %v1098_v32 = vrot.slane %v1097_v24, 2  ;;  %v1116_v33 = vsel %vm842_vm0, %v753_v17, -inf }
  0xb3   : > { %v1105_v35 = vrot.slane %v1104_v28, 2  ;;  %v1111_v36 = vmax.f32 %v1109_v20, %v1110_v29  ;;  %v1117_v37 = vrot.slane %v1116_v33, 4  ;;  %v1904_v38 = vsel %vm1869_vm1, %v1080_v27, %v1073_v10 }
  0xb4   : > { %v1087_v39 = vmax.f32 %v1085_v22, %v1086_v30  ;;  %v1093_v40 = vrot.slane %v1092_v31, 1  ;;  %v1099_v41 = vmax.f32 %v1097_v24, %v1098_v32  ;;  %v2535_v42 = vsel %vm2519_vm8, %v4346_v21, -inf }
  0xb5   : > { %v1106_v45 = vmax.f32 %v1104_v28, %v1105_v35  ;;  %v1112_v46 = vrot.slane %v1111_v36, 2  ;;  %v1118_v47 = vmax.f32 %v1116_v33, %v1117_v37  ;;  %v1235_v48 = vsel %vm842_vm0, %v770_v34, -inf  ;;  %v762_v35 = vld [vmem:[%s4190_s29 + $0x180] sm:$0xff] }
  0xb6   : > { %v1094_v49 = vmax.f32 %v1092_v31, %v1093_v40  ;;  %v1100_v50 = vrot.slane %v1099_v41, 1  ;;  %v1905_v51 = vsel %vm1871_vm2, %v1087_v39, %v1904_v38  ;;  %2536 = vmax.xlane.f32.xlu1 %v2535_v42  ;;  %v1236_v54 = vrot.slane %v1235_v48, 4  ;;  %v777_v31 = vld [vmem:[%s4190_s29 + $0x1f8] sm:$0xff] }
  0xb7   : > { %v1107_v55 = vrot.slane %v1106_v45, 1  ;;  %v1113_v56 = vmax.f32 %v1111_v36, %v1112_v46  ;;  %v1119_v57 = vrot.slane %v1118_v47, 2  ;;  %v1242_v58 = vsel %vm842_vm0, %v771_v44, -inf }
  0xb8   : > { %v1101_v59 = vmax.f32 %v1099_v41, %v1100_v50  ;;  %v1906_v60 = vsel %vm1873_vm3, %v1094_v49, %v1905_v51  ;;  %v1237_v62 = vmax.f32 %v1235_v48, %v1236_v54  ;;  %v1243_v0 = vrot.slane %v1242_v58, 4  ;;  %v763_v54 = vld [vmem:[%s4190_s29 + $0x188] sm:$0xff] }
  0xb9   : > { %v1108_v1 = vmax.f32 %v1106_v45, %v1107_v55  ;;  %v1114_v2 = vrot.slane %v1113_v56, 1  ;;  %v1120_v3 = vmax.f32 %v1118_v47, %v1119_v57  ;;  %v1249_v4 = vsel %vm842_vm0, %v772_v52, -inf }
  0xba   : > { %v1907_v5 = vsel %vm1875_vm4, %v1101_v59, %v1906_v60  ;;  %v1238_v8 = vrot.slane %v1237_v62, 2  ;;  %v1244_v9 = vmax.f32 %v1242_v58, %v1243_v0  ;;  %v1250_v10 = vrot.slane %v1249_v4, 4 }
  0xbb   : > { %v1115_v11 = vmax.f32 %v1113_v56, %v1114_v2  ;;  %v1121_v12 = vrot.slane %v1120_v3, 1  ;;  %v1908_v13 = vsel %vm1877_vm5, %v1108_v1, %v1907_v5  ;;  %v1256_v14 = vsel %vm842_vm0, %v773_v61, -inf  ;;  %v764_v2 = vld [vmem:[%s4190_s29 + $0x190] sm:$0xff] }
  0xbc   : > { %v1239_v16 = vmax.f32 %v1237_v62, %v1238_v8  ;;  %v1245_v17 = vrot.slane %v1244_v9, 2  ;;  %v1251_v18 = vmax.f32 %v1249_v4, %v1250_v10  ;;  %v1257_v19 = vrot.slane %v1256_v14, 4 }
  0xbd   : > { %v1122_v20 = vmax.f32 %v1120_v3, %v1121_v12  ;;  %v1909_v22 = vsel %vm1879_vm6, %v1115_v11, %v1908_v13  ;;  %v1263_v23 = vsel %vm842_vm0, %v774_v6, -inf  ;;  %v1270_v24 = vsel %vm842_vm0, %v775_v7, -inf  ;;  %v765_v11 = vld [vmem:[%s4190_s29 + $0x198] sm:$0xff]  ;;  %v766_v12 = vld [vmem:[%s4190_s29 + $0x1a0] sm:$0xff] }
  0xbe   : > { %v1240_v26 = vrot.slane %v1239_v16, 1  ;;  %v1246_v27 = vmax.f32 %v1244_v9, %v1245_v17  ;;  %v1252_v28 = vrot.slane %v1251_v18, 2  ;;  %v1258_v29 = vmax.f32 %v1256_v14, %v1257_v19 }
  0xbf   : > { %v4373_v30 = vsel %vm1881_vm7, %v1122_v20, %v1909_v22  ;;  %v1264_v32 = vrot.slane %v1263_v23, 4  ;;  %v1271_v33 = vrot.slane %v1270_v24, 4  ;;  %v1277_v34 = vsel %vm842_vm0, %v776_v15, -inf }
  0xc0   : > { %v2017_v36 = vsel %vm2004_vm9, %v4373_v30, -inf  ;;  %v2532_v37 = vsel %vm2519_vm8, %v4373_v30, -inf  ;;  %v1241_v38 = vmax.f32 %v1239_v16, %v1240_v26  ;;  %v1247_v39 = vrot.slane %v1246_v27, 1  ;;  %v767_v26 = vld [vmem:[%s4190_s29 + $0x1a8] sm:$0xff] }
  0xc1   : > { %2018 = vmax.xlane.f32.xlu0 %v2017_v36  ;;  %v1253_v40 = vmax.f32 %v1251_v18, %v1252_v28  ;;  %v1259_v41 = vrot.slane %v1258_v29, 2  ;;  %v1265_v42 = vmax.f32 %v1263_v23, %v1264_v32  ;;  %v1272_v44 = vmax.f32 %v1270_v24, %v1271_v33  ;;  %v769_v36 = vld [vmem:[%s4190_s29 + $0x1b8] sm:$0xff] }
  0xc2   : > { %v1248_v45 = vmax.f32 %v1246_v27, %v1247_v39  ;;  %v1278_v46 = vrot.slane %v1277_v34, 4  ;;  %v1284_v47 = vsel %vm842_vm0, %v777_v31, -inf  ;;  %v1179_v48 = vsel %vm842_vm0, %v762_v35, -inf  ;;  %v768_v35 = vld [vmem:[%s4190_s29 + $0x1b0] sm:$0xff] }
  0xc3   : > { %v1254_v49 = vrot.slane %v1253_v40, 1  ;;  %v1260_v50 = vmax.f32 %v1258_v29, %v1259_v41  ;;  %v1266_v51 = vrot.slane %v1265_v42, 2  ;;  %v1273_v52 = vrot.slane %v1272_v44, 2 }
  0xc4   : > { %v1279_v55 = vmax.f32 %v1277_v34, %v1278_v46  ;;  %v1285_v56 = vrot.slane %v1284_v47, 4  ;;  %v1925_v57 = vsel %vm1869_vm1, %v1248_v45, %v1241_v38  ;;  %v1180_v58 = vrot.slane %v1179_v48, 4 }
  0xc5   : > { %2533 = vmax.xlane.f32.xlu0 %v2532_v37  ;;  %v1255_v59 = vmax.f32 %v1253_v40, %v1254_v49  ;;  %v1261_v60 = vrot.slane %v1260_v50, 1  ;;  %v1267_v61 = vmax.f32 %v1265_v42, %v1266_v51  ;;  %v1274_v62 = vmax.f32 %v1272_v44, %v1273_v52 }
  0xc6   : > { %v1280_v0 = vrot.slane %v1279_v55, 2  ;;  %v1286_v1 = vmax.f32 %v1284_v47, %v1285_v56  ;;  %v1181_v3 = vmax.f32 %v1179_v48, %v1180_v58  ;;  %v1186_v4 = vsel %vm842_vm0, %v763_v54, -inf }
  0xc7   : > { %v1262_v5 = vmax.f32 %v1260_v50, %v1261_v60  ;;  %v1268_v6 = vrot.slane %v1267_v61, 1  ;;  %v1275_v7 = vrot.slane %v1274_v62, 1  ;;  %v1926_v8 = vsel %vm1871_vm2, %v1255_v59, %v1925_v57 }
  0xc8   : > { %v1281_v9 = vmax.f32 %v1279_v55, %v1280_v0  ;;  %v1287_v10 = vrot.slane %v1286_v1, 2  ;;  %v1182_v13 = vrot.slane %v1181_v3, 2  ;;  %v1187_v14 = vrot.slane %v1186_v4, 4  ;;  %v786_v0 = vld [vmem:[%s4190_s29 + $0x240] sm:$0xff] }
  0xc9   : > { %v1269_v15 = vmax.f32 %v1267_v61, %v1268_v6  ;;  %v1276_v16 = vmax.f32 %v1274_v62, %v1275_v7  ;;  %v1927_v17 = vsel %vm1873_vm3, %v1262_v5, %v1926_v8  ;;  %v1193_v18 = vsel %vm842_vm0, %v764_v2, -inf }
  0xca   : > { %v1282_v19 = vrot.slane %v1281_v9, 1  ;;  %v1288_v20 = vmax.f32 %v1286_v1, %v1287_v10  ;;  %v1183_v22 = vmax.f32 %v1181_v3, %v1182_v13  ;;  %v1188_v23 = vmax.f32 %v1186_v4, %v1187_v14 }
  0xcb   : > { %v1928_v24 = vsel %vm1875_vm4, %v1269_v15, %v1927_v17  ;;  %v1194_v27 = vrot.slane %v1193_v18, 4  ;;  %v1200_v28 = vsel %vm842_vm0, %v765_v11, -inf  ;;  %v1207_v29 = vsel %vm842_vm0, %v766_v12, -inf }
  0xcc   : > { %v1283_v31 = vmax.f32 %v1281_v9, %v1282_v19  ;;  %v1289_v32 = vrot.slane %v1288_v20, 1  ;;  %v1929_v33 = vsel %vm1877_vm5, %v1276_v16, %v1928_v24  ;;  %v1184_v34 = vrot.slane %v1183_v22, 1  ;;  %v787_v9 = vld [vmem:[%s4190_s29 + $0x248] sm:$0xff] }
  0xcd   : > { %v1189_v37 = vrot.slane %v1188_v23, 2  ;;  %v1195_v38 = vmax.f32 %v1193_v18, %v1194_v27  ;;  %v1201_v39 = vrot.slane %v1200_v28, 4  ;;  %v1208_v40 = vrot.slane %v1207_v29, 4  ;;  %v788_v18 = vld [vmem:[%s4190_s29 + $0x250] sm:$0xff] }
  0xce   : > { %v1290_v41 = vmax.f32 %v1288_v20, %v1289_v32  ;;  %v1930_v42 = vsel %vm1879_vm6, %v1283_v31, %v1929_v33  ;;  %v1185_v44 = vmax.f32 %v1183_v22, %v1184_v34  ;;  %v1214_v45 = vsel %vm842_vm0, %v767_v26, -inf }
  0xcf   : > { %v1190_v46 = vmax.f32 %v1188_v23, %v1189_v37  ;;  %v1196_v47 = vrot.slane %v1195_v38, 2  ;;  %v1202_v48 = vmax.f32 %v1200_v28, %v1201_v39  ;;  %v1209_v49 = vmax.f32 %v1207_v29, %v1208_v40  ;;  %v789_v29 = vld [vmem:[%s4190_s29 + $0x258] sm:$0xff]  ;;  %v790_v39 = vld [vmem:[%s4190_s29 + $0x260] sm:$0xff]  ;;  %v791_v40 = vld [vmem:[%s4190_s29 + $0x268] sm:$0xff] }
  0xd0   : > { %v4403_v50 = vsel %vm1881_vm7, %v1290_v41, %v1930_v42  ;;  %v1215_v51 = vrot.slane %v1214_v45, 4  ;;  %v1221_v52 = vsel %vm842_vm0, %v768_v35, -inf  ;;  %v1228_v54 = vsel %vm842_vm0, %v769_v36, -inf }
  0xd1   : > { %v2026_v55 = vsel %vm2004_vm9, %v4403_v50, -inf  ;;  %v1191_v56 = vrot.slane %v1190_v46, 1  ;;  %v1197_v57 = vmax.f32 %v1195_v38, %v1196_v47  ;;  %v1203_v58 = vrot.slane %v1202_v48, 2 }
  0xd2   : > { %2027 = vmax.xlane.f32.xlu1 %v2026_v55  ;;  %v1210_v59 = vrot.slane %v1209_v49, 2  ;;  %v1216_v60 = vmax.f32 %v1214_v45, %v1215_v51  ;;  %v1222_v61 = vrot.slane %v1221_v52, 4  ;;  %v1229_v62 = vrot.slane %v1228_v54, 4 }
  0xd3   : > { %v1192_v1 = vmax.f32 %v1190_v46, %v1191_v56  ;;  %v1198_v2 = vrot.slane %v1197_v57, 1  ;;  %v1204_v3 = vmax.f32 %v1202_v48, %v1203_v58  ;;  %v2541_v4 = vsel %vm2519_vm8, %v4403_v50, -inf }
  0xd4   : > { %v1211_v5 = vmax.f32 %v1209_v49, %v1210_v59  ;;  %v1217_v6 = vrot.slane %v1216_v60, 2  ;;  %v1223_v7 = vmax.f32 %v1221_v52, %v1222_v61  ;;  %v1230_v8 = vmax.f32 %v1228_v54, %v1229_v62  ;;  %v792_v61 = vld [vmem:[%s4190_s29 + $0x270] sm:$0xff]  ;;  %v793_v62 = vld [vmem:[%s4190_s29 + $0x278] sm:$0xff] }
  0xd5   : > { %v1199_v10 = vmax.f32 %v1197_v57, %v1198_v2  ;;  %v1205_v11 = vrot.slane %v1204_v3, 1  ;;  %v1918_v12 = vsel %vm1869_vm1, %v1192_v1, %v1185_v44  ;;  %v1347_v13 = vsel %vm842_vm0, %v786_v0, -inf }
  0xd6   : > { %v1212_v14 = vrot.slane %v1211_v5, 1  ;;  %v1218_v15 = vmax.f32 %v1216_v60, %v1217_v6  ;;  %v1224_v16 = vrot.slane %v1223_v7, 2  ;;  %v1231_v17 = vrot.slane %v1230_v8, 2  ;;  %2542 = vmax.xlane.f32.xlu1 %v2541_v4 }
  0xd7   : > { %v1206_v19 = vmax.f32 %v1204_v3, %v1205_v11  ;;  %v1919_v20 = vsel %vm1871_vm2, %v1199_v10, %v1918_v12  ;;  %v1348_v22 = vrot.slane %v1347_v13, 4  ;;  %v1354_v23 = vsel %vm842_vm0, %v787_v9, -inf  ;;  %v778_v11 = vld [vmem:[%s4190_s29 + $0x200] sm:$0xff] }
  0xd8   : > { %v1213_v24 = vmax.f32 %v1211_v5, %v1212_v14  ;;  %v1219_v26 = vrot.slane %v1218_v15, 1  ;;  %v1225_v27 = vmax.f32 %v1223_v7, %v1224_v16  ;;  %v1232_v28 = vmax.f32 %v1230_v8, %v1231_v17 }
  0xd9   : > { %v1920_v31 = vsel %vm1873_vm3, %v1206_v19, %v1919_v20  ;;  %v1349_v32 = vmax.f32 %v1347_v13, %v1348_v22  ;;  %v1355_v33 = vrot.slane %v1354_v23, 4  ;;  %v1361_v34 = vsel %vm842_vm0, %v788_v18, -inf }
  0xda   : > { %v1220_v35 = vmax.f32 %v1218_v15, %v1219_v26  ;;  %v1226_v36 = vrot.slane %v1225_v27, 1  ;;  %v1233_v37 = vrot.slane %v1232_v28, 1  ;;  %v1921_v38 = vsel %vm1875_vm4, %v1213_v24, %v1920_v31  ;;  %v779_v24 = vld [vmem:[%s4190_s29 + $0x208] sm:$0xff] }
  0xdb   : > { %v1350_v41 = vrot.slane %v1349_v32, 2  ;;  %v1356_v42 = vmax.f32 %v1354_v23, %v1355_v33  ;;  %v1362_v44 = vrot.slane %v1361_v34, 4  ;;  %v1368_v45 = vsel %vm842_vm0, %v789_v29, -inf }
  0xdc   : > { %v1227_v46 = vmax.f32 %v1225_v27, %v1226_v36  ;;  %v1234_v47 = vmax.f32 %v1232_v28, %v1233_v37  ;;  %v1922_v48 = vsel %vm1877_vm5, %v1220_v35, %v1921_v38  ;;  %v1369_v49 = vrot.slane %v1368_v45, 4  ;;  %v780_v35 = vld [vmem:[%s4190_s29 + $0x210] sm:$0xff] }
  0xdd   : > { %v1351_v51 = vmax.f32 %v1349_v32, %v1350_v41  ;;  %v1357_v52 = vrot.slane %v1356_v42, 2  ;;  %v1363_v54 = vmax.f32 %v1361_v34, %v1362_v44  ;;  %v1375_v55 = vsel %vm842_vm0, %v790_v39, -inf }
  0xde   : > { %v1923_v56 = vsel %vm1879_vm6, %v1227_v46, %v1922_v48  ;;  %v1370_v57 = vmax.f32 %v1368_v45, %v1369_v49  ;;  %v1376_v58 = vrot.slane %v1375_v55, 4  ;;  %v1382_v59 = vsel %vm842_vm0, %v791_v40, -inf  ;;  %v781_v45 = vld [vmem:[%s4190_s29 + $0x218] sm:$0xff] }
  0xdf   : > { %v4430_v60 = vsel %vm1881_vm7, %v1234_v47, %v1923_v56  ;;  %v1352_v0 = vrot.slane %v1351_v51, 1  ;;  %v1358_v1 = vmax.f32 %v1356_v42, %v1357_v52  ;;  %v1364_v2 = vrot.slane %v1363_v54, 2 }
  0xe0   : > { %v2023_v3 = vsel %vm2004_vm9, %v4430_v60, -inf  ;;  %v2538_v4 = vsel %vm2519_vm8, %v4430_v60, -inf  ;;  %v1371_v5 = vrot.slane %v1370_v57, 2  ;;  %v1377_v6 = vmax.f32 %v1375_v55, %v1376_v58  ;;  %v782_v55 = vld [vmem:[%s4190_s29 + $0x220] sm:$0xff] }
  0xe1   : > { %2024 = vmax.xlane.f32.xlu0 %v2023_v3  ;;  %v1353_v7 = vmax.f32 %v1351_v51, %v1352_v0  ;;  %v1359_v8 = vrot.slane %v1358_v1, 1  ;;  %v1365_v9 = vmax.f32 %v1363_v54, %v1364_v2  ;;  %v1383_v10 = vrot.slane %v1382_v59, 4 }
  0xe2   : > { %v1372_v12 = vmax.f32 %v1370_v57, %v1371_v5  ;;  %v1378_v13 = vrot.slane %v1377_v6, 2  ;;  %v1389_v14 = vsel %vm842_vm0, %v792_v61, -inf  ;;  %v1396_v15 = vsel %vm842_vm0, %v793_v62, -inf }
  0xe3   : > { %v1360_v16 = vmax.f32 %v1358_v1, %v1359_v8  ;;  %v1366_v17 = vrot.slane %v1365_v9, 1  ;;  %v1384_v18 = vmax.f32 %v1382_v59, %v1383_v10  ;;  %v1390_v19 = vrot.slane %v1389_v14, 4  ;;  %v783_v1 = vld [vmem:[%s4190_s29 + $0x228] sm:$0xff] }
  0xe4   : > { %v1373_v20 = vrot.slane %v1372_v12, 1  ;;  %v1379_v22 = vmax.f32 %v1377_v6, %v1378_v13  ;;  %v1397_v23 = vrot.slane %v1396_v15, 4  ;;  %v1291_v26 = vsel %vm842_vm0, %v778_v11, -inf }
  0xe5   : > { %2539 = vmax.xlane.f32.xlu0 %v2538_v4  ;;  %v1367_v27 = vmax.f32 %v1365_v9, %v1366_v17  ;;  %v1385_v28 = vrot.slane %v1384_v18, 2  ;;  %v1391_v29 = vmax.f32 %v1389_v14, %v1390_v19  ;;  %v1939_v31 = vsel %vm1869_vm1, %v1360_v16, %v1353_v7  ;;  %v784_v14 = vld [vmem:[%s4190_s29 + $0x230] sm:$0xff] }
  0xe6   : > { %v1374_v32 = vmax.f32 %v1372_v12, %v1373_v20  ;;  %v1380_v33 = vrot.slane %v1379_v22, 1  ;;  %v1398_v34 = vmax.f32 %v1396_v15, %v1397_v23  ;;  %v1292_v36 = vrot.slane %v1291_v26, 4  ;;  %v785_v15 = vld [vmem:[%s4190_s29 + $0x238] sm:$0xff] }
  0xe7   : > { %v1386_v37 = vmax.f32 %v1384_v18, %v1385_v28  ;;  %v1392_v38 = vrot.slane %v1391_v29, 2  ;;  %v1940_v39 = vsel %vm1871_vm2, %v1367_v27, %v1939_v31  ;;  %v1298_v40 = vsel %vm842_vm0, %v779_v24, -inf }
  0xe8   : > { %v1381_v41 = vmax.f32 %v1379_v22, %v1380_v33  ;;  %v1399_v42 = vrot.slane %v1398_v34, 2  ;;  %v1941_v44 = vsel %vm1873_vm3, %v1374_v32, %v1940_v39  ;;  %v1293_v46 = vmax.f32 %v1291_v26, %v1292_v36 }
  0xe9   : > { %v1387_v47 = vrot.slane %v1386_v37, 1  ;;  %v1393_v48 = vmax.f32 %v1391_v29, %v1392_v38  ;;  %v1299_v49 = vrot.slane %v1298_v40, 4  ;;  %v1305_v51 = vsel %vm842_vm0, %v780_v35, -inf  ;;  %v802_v38 = vld [vmem:[%s4190_s29 + $0x2c0] sm:$0xff] }
  0xea   : > { %v1400_v52 = vmax.f32 %v1398_v34, %v1399_v42  ;;  %v1942_v54 = vsel %vm1875_vm4, %v1381_v41, %v1941_v44  ;;  %v1294_v56 = vrot.slane %v1293_v46, 2  ;;  %v1306_v57 = vrot.slane %v1305_v51, 4 }
  0xeb   : > { %v1388_v58 = vmax.f32 %v1386_v37, %v1387_v47  ;;  %v1394_v59 = vrot.slane %v1393_v48, 1  ;;  %v1300_v61 = vmax.f32 %v1298_v40, %v1299_v49  ;;  %v1312_v62 = vsel %vm842_vm0, %v781_v45, -inf  ;;  %v804_v49 = vld [vmem:[%s4190_s29 + $0x2d0] sm:$0xff] }
  0xec   : > { %v1401_v0 = vrot.slane %v1400_v52, 1  ;;  %v1295_v2 = vmax.f32 %v1293_v46, %v1294_v56  ;;  %v1307_v3 = vmax.f32 %v1305_v51, %v1306_v57  ;;  %v1313_v4 = vrot.slane %v1312_v62, 4 }
  0xed   : > { %v1395_v5 = vmax.f32 %v1393_v48, %v1394_v59  ;;  %v1943_v6 = vsel %vm1877_vm5, %v1388_v58, %v1942_v54  ;;  %v1301_v7 = vrot.slane %v1300_v61, 2  ;;  %v1319_v8 = vsel %vm842_vm0, %v782_v55, -inf  ;;  %v803_v48 = vld [vmem:[%s4190_s29 + $0x2c8] sm:$0xff]  ;;  %v805_v59 = vld [vmem:[%s4190_s29 + $0x2d8] sm:$0xff] }
  0xee   : > { %v1402_v9 = vmax.f32 %v1400_v52, %v1401_v0  ;;  %v1296_v10 = vrot.slane %v1295_v2, 1  ;;  %v1308_v11 = vrot.slane %v1307_v3, 2  ;;  %v1314_v12 = vmax.f32 %v1312_v62, %v1313_v4 }
  0xef   : > { %v1944_v13 = vsel %vm1879_vm6, %v1395_v5, %v1943_v6  ;;  %v1302_v16 = vmax.f32 %v1300_v61, %v1301_v7  ;;  %v1320_v17 = vrot.slane %v1319_v8, 4  ;;  %v1326_v18 = vsel %vm842_vm0, %v783_v1, -inf }
  0xf0   : > { %v4461_v19 = vsel %vm1881_vm7, %v1402_v9, %v1944_v13  ;;  %v1297_v20 = vmax.f32 %v1295_v2, %v1296_v10  ;;  %v1309_v22 = vmax.f32 %v1307_v3, %v1308_v11  ;;  %v1315_v23 = vrot.slane %v1314_v12, 2 }
  0xf1   : > { %v2032_v24 = vsel %vm2004_vm9, %v4461_v19, -inf  ;;  %v1303_v26 = vrot.slane %v1302_v16, 1  ;;  %v1321_v27 = vmax.f32 %v1319_v8, %v1320_v17  ;;  %v1327_v28 = vrot.slane %v1326_v18, 4  ;;  %v806_v8 = vld [vmem:[%s4190_s29 + $0x2e0] sm:$0xff]  ;;  %v807_v17 = vld [vmem:[%s4190_s29 + $0x2e8] sm:$0xff] }
  0xf2   : > { %2033 = vmax.xlane.f32.xlu1 %v2032_v24  ;;  %v1310_v29 = vrot.slane %v1309_v22, 1  ;;  %v1316_v31 = vmax.f32 %v1314_v12, %v1315_v23  ;;  %v1333_v32 = vsel %vm842_vm0, %v784_v14, -inf  ;;  %v1340_v33 = vsel %vm842_vm0, %v785_v15, -inf }
  0xf3   : > { %v1304_v34 = vmax.f32 %v1302_v16, %v1303_v26  ;;  %v1322_v35 = vrot.slane %v1321_v27, 2  ;;  %v1328_v36 = vmax.f32 %v1326_v18, %v1327_v28  ;;  %v1334_v37 = vrot.slane %v1333_v32, 4 }
  0xf4   : > { %v1311_v39 = vmax.f32 %v1309_v22, %v1310_v29  ;;  %v1317_v40 = vrot.slane %v1316_v31, 1  ;;  %v1341_v41 = vrot.slane %v1340_v33, 4  ;;  %v2547_v42 = vsel %vm2519_vm8, %v4461_v19, -inf }
  0xf5   : > { %v1323_v44 = vmax.f32 %v1321_v27, %v1322_v35  ;;  %v1329_v45 = vrot.slane %v1328_v36, 2  ;;  %v1335_v46 = vmax.f32 %v1333_v32, %v1334_v37  ;;  %v1932_v47 = vsel %vm1869_vm1, %v1304_v34, %v1297_v20 }
  0xf6   : > { %v1318_v51 = vmax.f32 %v1316_v31, %v1317_v40  ;;  %v1342_v52 = vmax.f32 %v1340_v33, %v1341_v41  ;;  %v1933_v54 = vsel %vm1871_vm2, %v1311_v39, %v1932_v47  ;;  %2548 = vmax.xlane.f32.xlu1 %v2547_v42  ;;  %v1459_v55 = vsel %vm842_vm0, %v802_v38, -inf  ;;  %v808_v38 = vld [vmem:[%s4190_s29 + $0x2f0] sm:$0xff]  ;;  %v809_v39 = vld [vmem:[%s4190_s29 + $0x2f8] sm:$0xff] }
  0xf7   : > { %v1324_v56 = vrot.slane %v1323_v44, 1  ;;  %v1330_v57 = vmax.f32 %v1328_v36, %v1329_v45  ;;  %v1336_v58 = vrot.slane %v1335_v46, 2  ;;  %v1460_v61 = vrot.slane %v1459_v55, 4 }
  0xf8   : > { %v1343_v62 = vrot.slane %v1342_v52, 2  ;;  %v1934_v0 = vsel %vm1873_vm3, %v1318_v51, %v1933_v54  ;;  %v1466_v1 = vsel %vm842_vm0, %v803_v48, -inf  ;;  %v1473_v2 = vsel %vm842_vm0, %v804_v49, -inf }
  0xf9   : > { %v1325_v3 = vmax.f32 %v1323_v44, %v1324_v56  ;;  %v1331_v4 = vrot.slane %v1330_v57, 1  ;;  %v1337_v5 = vmax.f32 %v1335_v46, %v1336_v58  ;;  %v1461_v6 = vmax.f32 %v1459_v55, %v1460_v61  ;;  %v794_v44 = vld [vmem:[%s4190_s29 + $0x280] sm:$0xff]  ;;  %v795_v58 = vld [vmem:[%s4190_s29 + $0x288] sm:$0xff] }
  0xfa   : > { %v1344_v7 = vmax.f32 %v1342_v52, %v1343_v62  ;;  %v1467_v9 = vrot.slane %v1466_v1, 4  ;;  %v1474_v10 = vrot.slane %v1473_v2, 4  ;;  %v1480_v11 = vsel %vm842_vm0, %v805_v59, -inf }
  0xfb   : > { %v1332_v12 = vmax.f32 %v1330_v57, %v1331_v4  ;;  %v1338_v13 = vrot.slane %v1337_v5, 1  ;;  %v1935_v14 = vsel %vm1875_vm4, %v1325_v3, %v1934_v0  ;;  %v1462_v15 = vrot.slane %v1461_v6, 2 }
  0xfc   : > { %v1345_v16 = vrot.slane %v1344_v7, 1  ;;  %v1468_v18 = vmax.f32 %v1466_v1, %v1467_v9  ;;  %v1475_v20 = vmax.f32 %v1473_v2, %v1474_v10  ;;  %v1481_v22 = vrot.slane %v1480_v11, 4  ;;  %v796_v9 = vld [vmem:[%s4190_s29 + $0x290] sm:$0xff] }
  0xfd   : > { %v1339_v23 = vmax.f32 %v1337_v5, %v1338_v13  ;;  %v1936_v24 = vsel %vm1877_vm5, %v1332_v12, %v1935_v14  ;;  %v1463_v26 = vmax.f32 %v1461_v6, %v1462_v15  ;;  %v1487_v27 = vsel %vm842_vm0, %v806_v8, -inf }
  0xfe   : > { %v1346_v28 = vmax.f32 %v1344_v7, %v1345_v16  ;;  %v1469_v29 = vrot.slane %v1468_v18, 2  ;;  %v1476_v31 = vrot.slane %v1475_v20, 2  ;;  %v1482_v32 = vmax.f32 %v1480_v11, %v1481_v22 }
  0xff   : > { %v1937_v33 = vsel %vm1879_vm6, %v1339_v23, %v1936_v24  ;;  %v1464_v34 = vrot.slane %v1463_v26, 1  ;;  %v1488_v35 = vrot.slane %v1487_v27, 4  ;;  %v1494_v36 = vsel %vm842_vm0, %v807_v17, -inf  ;;  %v797_v17 = vld [vmem:[%s4190_s29 + $0x298] sm:$0xff] }
 0x100   : > { %v4488_v37 = vsel %vm1881_vm7, %v1346_v28, %v1937_v33  ;;  %v1470_v40 = vmax.f32 %v1468_v18, %v1469_v29  ;;  %v1477_v41 = vmax.f32 %v1475_v20, %v1476_v31  ;;  %v1483_v42 = vrot.slane %v1482_v32, 2  ;;  %v798_v28 = vld [vmem:[%s4190_s29 + $0x2a0] sm:$0xff] }
 0x101   : > { %v2029_v45 = vsel %vm2004_vm9, %v4488_v37, -inf  ;;  %v2544_v46 = vsel %vm2519_vm8, %v4488_v37, -inf  ;;  %v1465_v47 = vmax.f32 %v1463_v26, %v1464_v34  ;;  %v1489_v48 = vmax.f32 %v1487_v27, %v1488_v35 }
 0x102   : > { %2030 = vmax.xlane.f32.xlu0 %v2029_v45  ;;  %v1471_v49 = vrot.slane %v1470_v40, 1  ;;  %v1478_v51 = vrot.slane %v1477_v41, 1  ;;  %v1484_v52 = vmax.f32 %v1482_v32, %v1483_v42  ;;  %v1495_v54 = vrot.slane %v1494_v36, 4  ;;  %v799_v45 = vld [vmem:[%s4190_s29 + $0x2a8] sm:$0xff] }
 0x103   : > { %v1490_v55 = vrot.slane %v1489_v48, 2  ;;  %v1501_v56 = vsel %vm842_vm0, %v808_v38, -inf  ;;  %v1508_v57 = vsel %vm842_vm0, %v809_v39, -inf  ;;  %v1403_v59 = vsel %vm842_vm0, %v794_v44, -inf }
 0x104   : > { %v1472_v61 = vmax.f32 %v1470_v40, %v1471_v49  ;;  %v1479_v62 = vmax.f32 %v1477_v41, %v1478_v51  ;;  %v1485_v0 = vrot.slane %v1484_v52, 1  ;;  %v1496_v1 = vmax.f32 %v1494_v36, %v1495_v54 }
 0x105   : > { %v1491_v2 = vmax.f32 %v1489_v48, %v1490_v55  ;;  %v1502_v3 = vrot.slane %v1501_v56, 4  ;;  %v1509_v4 = vrot.slane %v1508_v57, 4  ;;  %v1404_v5 = vrot.slane %v1403_v59, 4 }
 0x106   : > { %2545 = vmax.xlane.f32.xlu0 %v2544_v46  ;;  %v1486_v6 = vmax.f32 %v1484_v52, %v1485_v0  ;;  %v1497_v7 = vrot.slane %v1496_v1, 2  ;;  %v1953_v8 = vsel %vm1869_vm1, %v1472_v61, %v1465_v47  ;;  %v1410_v10 = vsel %vm842_vm0, %v795_v58, -inf }
 0x107   : > { %v1492_v11 = vrot.slane %v1491_v2, 1  ;;  %v1503_v12 = vmax.f32 %v1501_v56, %v1502_v3  ;;  %v1510_v13 = vmax.f32 %v1508_v57, %v1509_v4  ;;  %v1954_v14 = vsel %vm1871_vm2, %v1479_v62, %v1953_v8  ;;  %v800_v56 = vld [vmem:[%s4190_s29 + $0x2b0] sm:$0xff] }
 0x108   : > { %v1498_v15 = vmax.f32 %v1496_v1, %v1497_v7  ;;  %v1955_v16 = vsel %vm1873_vm3, %v1486_v6, %v1954_v14  ;;  %v1405_v18 = vmax.f32 %v1403_v59, %v1404_v5  ;;  %v1411_v20 = vrot.slane %v1410_v10, 4  ;;  %v818_v14 = vld [vmem:[%s4190_s29 + $0x340] sm:$0xff] }
 0x109   : > { %v1493_v22 = vmax.f32 %v1491_v2, %v1492_v11  ;;  %v1504_v23 = vrot.slane %v1503_v12, 2  ;;  %v1511_v24 = vrot.slane %v1510_v13, 2  ;;  %v1417_v26 = vsel %vm842_vm0, %v796_v9, -inf  ;;  %v801_v2 = vld [vmem:[%s4190_s29 + $0x2b8] sm:$0xff] }
 0x10a   : > { %v1499_v27 = vrot.slane %v1498_v15, 1  ;;  %v1406_v29 = vrot.slane %v1405_v18, 2  ;;  %v1412_v31 = vmax.f32 %v1410_v10, %v1411_v20  ;;  %v1418_v32 = vrot.slane %v1417_v26, 4 }
 0x10b   : > { %v1505_v33 = vmax.f32 %v1503_v12, %v1504_v23  ;;  %v1512_v34 = vmax.f32 %v1510_v13, %v1511_v24  ;;  %v1956_v35 = vsel %vm1875_vm4, %v1493_v22, %v1955_v16  ;;  %v1424_v36 = vsel %vm842_vm0, %v797_v17, -inf }
 0x10c   : > { %v1500_v38 = vmax.f32 %v1498_v15, %v1499_v27  ;;  %v1407_v39 = vmax.f32 %v1405_v18, %v1406_v29  ;;  %v1413_v40 = vrot.slane %v1412_v31, 2  ;;  %v1419_v41 = vmax.f32 %v1417_v26, %v1418_v32  ;;  %v819_v26 = vld [vmem:[%s4190_s29 + $0x348] sm:$0xff]  ;;  %v820_v27 = vld [vmem:[%s4190_s29 + $0x350] sm:$0xff] }
 0x10d   : > { %v1506_v42 = vrot.slane %v1505_v33, 1  ;;  %v1513_v44 = vrot.slane %v1512_v34, 1  ;;  %v1425_v46 = vrot.slane %v1424_v36, 4  ;;  %v1431_v47 = vsel %vm842_vm0, %v798_v28, -inf }
 0x10e   : > { %v1957_v48 = vsel %vm1877_vm5, %v1500_v38, %v1956_v35  ;;  %v1408_v49 = vrot.slane %v1407_v39, 1  ;;  %v1414_v51 = vmax.f32 %v1412_v31, %v1413_v40  ;;  %v1420_v52 = vrot.slane %v1419_v41, 2 }
 0x10f   : > { %v1507_v54 = vmax.f32 %v1505_v33, %v1506_v42  ;;  %v1514_v55 = vmax.f32 %v1512_v34, %v1513_v44  ;;  %v1426_v57 = vmax.f32 %v1424_v36, %v1425_v46  ;;  %v1432_v58 = vrot.slane %v1431_v47, 4 }
 0x110   : > { %v1409_v59 = vmax.f32 %v1407_v39, %v1408_v49  ;;  %v1415_v61 = vrot.slane %v1414_v51, 1  ;;  %v1421_v62 = vmax.f32 %v1419_v41, %v1420_v52  ;;  %v1438_v0 = vsel %vm842_vm0, %v799_v45, -inf  ;;  %v821_v39 = vld [vmem:[%s4190_s29 + $0x358] sm:$0xff]  ;;  %v822_v49 = vld [vmem:[%s4190_s29 + $0x360] sm:$0xff] }
 0x111   : > { %v1958_v1 = vsel %vm1879_vm6, %v1507_v54, %v1957_v48  ;;  %v1427_v3 = vrot.slane %v1426_v57, 2  ;;  %v1433_v4 = vmax.f32 %v1431_v47, %v1432_v58  ;;  %v1439_v5 = vrot.slane %v1438_v0, 4 }
 0x112   : > { %v4519_v6 = vsel %vm1881_vm7, %v1514_v55, %v1958_v1  ;;  %v1416_v7 = vmax.f32 %v1414_v51, %v1415_v61  ;;  %v1422_v8 = vrot.slane %v1421_v62, 1  ;;  %v1445_v9 = vsel %vm842_vm0, %v800_v56, -inf  ;;  %v823_v61 = vld [vmem:[%s4190_s29 + $0x368] sm:$0xff] }
 0x113   : > { %v2038_v10 = vsel %vm2004_vm9, %v4519_v6, -inf  ;;  %v1428_v11 = vmax.f32 %v1426_v57, %v1427_v3  ;;  %v1434_v12 = vrot.slane %v1433_v4, 2  ;;  %v1440_v13 = vmax.f32 %v1438_v0, %v1439_v5 }
 0x114   : > { %2039 = vmax.xlane.f32.xlu1 %v2038_v10  ;;  %v1423_v15 = vmax.f32 %v1421_v62, %v1422_v8  ;;  %v1446_v16 = vrot.slane %v1445_v9, 4  ;;  %v1452_v17 = vsel %vm842_vm0, %v801_v2, -inf  ;;  %v1946_v18 = vsel %vm1869_vm1, %v1416_v7, %v1409_v59 }
 0x115   : > { %v1429_v20 = vrot.slane %v1428_v11, 1  ;;  %v1435_v22 = vmax.f32 %v1433_v4, %v1434_v12  ;;  %v1441_v23 = vrot.slane %v1440_v13, 2  ;;  %v1453_v24 = vrot.slane %v1452_v17, 4 }
 0x116   : > { %v1447_v28 = vmax.f32 %v1445_v9, %v1446_v16  ;;  %v1947_v29 = vsel %vm1871_vm2, %v1423_v15, %v1946_v18  ;;  %v2553_v31 = vsel %vm2519_vm8, %v4519_v6, -inf  ;;  %v1571_v32 = vsel %vm842_vm0, %v818_v14, -inf }
 0x117   : > { %v1430_v33 = vmax.f32 %v1428_v11, %v1429_v20  ;;  %v1436_v34 = vrot.slane %v1435_v22, 1  ;;  %v1442_v35 = vmax.f32 %v1440_v13, %v1441_v23  ;;  %v1454_v36 = vmax.f32 %v1452_v17, %v1453_v24  ;;  %v825_v23 = vld [vmem:[%s4190_s29 + $0x378] sm:$0xff] }
 0x118   : > { %v1448_v38 = vrot.slane %v1447_v28, 2  ;;  %2554 = vmax.xlane.f32.xlu1 %v2553_v31  ;;  %v1572_v40 = vrot.slane %v1571_v32, 4  ;;  %v1578_v41 = vsel %vm842_vm0, %v819_v26, -inf  ;;  %v1585_v42 = vsel %vm842_vm0, %v820_v27, -inf }
 0x119   : > { %v1437_v44 = vmax.f32 %v1435_v22, %v1436_v34  ;;  %v1443_v45 = vrot.slane %v1442_v35, 1  ;;  %v1455_v46 = vrot.slane %v1454_v36, 2  ;;  %v1948_v47 = vsel %vm1873_vm3, %v1430_v33, %v1947_v29  ;;  %v824_v22 = vld [vmem:[%s4190_s29 + $0x370] sm:$0xff] }
 0x11a   : > { %v1449_v48 = vmax.f32 %v1447_v28, %v1448_v38  ;;  %v1573_v51 = vmax.f32 %v1571_v32, %v1572_v40  ;;  %v1579_v52 = vrot.slane %v1578_v41, 4  ;;  %v1586_v54 = vrot.slane %v1585_v42, 4  ;;  %v810_v28 = vld [vmem:[%s4190_s29 + $0x300] sm:$0xff] }
 0x11b   : > { %v1444_v55 = vmax.f32 %v1442_v35, %v1443_v45  ;;  %v1456_v56 = vmax.f32 %v1454_v36, %v1455_v46  ;;  %v1949_v57 = vsel %vm1875_vm4, %v1437_v44, %v1948_v47  ;;  %v1592_v58 = vsel %vm842_vm0, %v821_v39, -inf }
 0x11c   : > { %v1450_v59 = vrot.slane %v1449_v48, 1  ;;  %v1574_v62 = vrot.slane %v1573_v51, 2  ;;  %v1580_v0 = vmax.f32 %v1578_v41, %v1579_v52  ;;  %v1587_v1 = vmax.f32 %v1585_v42, %v1586_v54 }
 0x11d   : > { %v1457_v2 = vrot.slane %v1456_v56, 1  ;;  %v1950_v3 = vsel %vm1877_vm5, %v1444_v55, %v1949_v57  ;;  %v1593_v4 = vrot.slane %v1592_v58, 4  ;;  %v1599_v5 = vsel %vm842_vm0, %v822_v49, -inf }
 0x11e   : > { %v1451_v7 = vmax.f32 %v1449_v48, %v1450_v59  ;;  %v1575_v8 = vmax.f32 %v1573_v51, %v1574_v62  ;;  %v1581_v9 = vrot.slane %v1580_v0, 2  ;;  %v1588_v10 = vrot.slane %v1587_v1, 2  ;;  %v811_v48 = vld [vmem:[%s4190_s29 + $0x308] sm:$0xff]  ;;  %v812_v59 = vld [vmem:[%s4190_s29 + $0x310] sm:$0xff] }
 0x11f   : > { %v1458_v11 = vmax.f32 %v1456_v56, %v1457_v2  ;;  %v1594_v12 = vmax.f32 %v1592_v58, %v1593_v4  ;;  %v1600_v13 = vrot.slane %v1599_v5, 4  ;;  %v1606_v14 = vsel %vm842_vm0, %v823_v61, -inf }
 0x120   : > { %v1951_v15 = vsel %vm1879_vm6, %v1451_v7, %v1950_v3  ;;  %v1576_v16 = vrot.slane %v1575_v8, 1  ;;  %v1582_v17 = vmax.f32 %v1580_v0, %v1581_v9  ;;  %v1589_v18 = vmax.f32 %v1587_v1, %v1588_v10 }
 0x121   : > { %v4546_v20 = vsel %vm1881_vm7, %v1458_v11, %v1951_v15  ;;  %v1595_v24 = vrot.slane %v1594_v12, 2  ;;  %v1601_v26 = vmax.f32 %v1599_v5, %v1600_v13  ;;  %v1607_v27 = vrot.slane %v1606_v14, 4  ;;  %v813_v5 = vld [vmem:[%s4190_s29 + $0x318] sm:$0xff] }
 0x122   : > { %v2035_v29 = vsel %vm2004_vm9, %v4546_v20, -inf  ;;  %v2550_v31 = vsel %vm2519_vm8, %v4546_v20, -inf  ;;  %v1577_v32 = vmax.f32 %v1575_v8, %v1576_v16  ;;  %v1583_v33 = vrot.slane %v1582_v17, 1 }
 0x123   : > { %2036 = vmax.xlane.f32.xlu0 %v2035_v29  ;;  %v1590_v34 = vrot.slane %v1589_v18, 1  ;;  %v1596_v35 = vmax.f32 %v1594_v12, %v1595_v24  ;;  %v1602_v36 = vrot.slane %v1601_v26, 2  ;;  %v1608_v38 = vmax.f32 %v1606_v14, %v1607_v27  ;;  %v814_v14 = vld [vmem:[%s4190_s29 + $0x320] sm:$0xff] }
 0x124   : > { %v1584_v39 = vmax.f32 %v1582_v17, %v1583_v33  ;;  %v1613_v40 = vsel %vm842_vm0, %v824_v22, -inf  ;;  %v1620_v41 = vsel %vm842_vm0, %v825_v23, -inf  ;;  %v1515_v42 = vsel %vm842_vm0, %v810_v28, -inf }
 0x125   : > { %v1591_v44 = vmax.f32 %v1589_v18, %v1590_v34  ;;  %v1597_v45 = vrot.slane %v1596_v35, 1  ;;  %v1603_v46 = vmax.f32 %v1601_v26, %v1602_v36  ;;  %v1609_v47 = vrot.slane %v1608_v38, 2  ;;  %v815_v26 = vld [vmem:[%s4190_s29 + $0x328] sm:$0xff]  ;;  %v817_v36 = vld [vmem:[%s4190_s29 + $0x338] sm:$0xff] }
 0x126   : > { %v1614_v49 = vrot.slane %v1613_v40, 4  ;;  %v1621_v51 = vrot.slane %v1620_v41, 4  ;;  %v1967_v52 = vsel %vm1869_vm1, %v1584_v39, %v1577_v32  ;;  %v1516_v54 = vrot.slane %v1515_v42, 4 }
 0x127   : > { %2551 = vmax.xlane.f32.xlu0 %v2550_v31  ;;  %v1598_v55 = vmax.f32 %v1596_v35, %v1597_v45  ;;  %v1604_v56 = vrot.slane %v1603_v46, 1  ;;  %v1610_v57 = vmax.f32 %v1608_v38, %v1609_v47  ;;  %v1968_v58 = vsel %vm1871_vm2, %v1591_v44, %v1967_v52  ;;  %v816_v35 = vld [vmem:[%s4190_s29 + $0x330] sm:$0xff] }
 0x128   : > { %v1615_v61 = vmax.f32 %v1613_v40, %v1614_v49  ;;  %v1622_v62 = vmax.f32 %v1620_v41, %v1621_v51  ;;  %v1517_v0 = vmax.f32 %v1515_v42, %v1516_v54  ;;  %v1522_v1 = vsel %vm842_vm0, %v811_v48, -inf }
 0x129   : > { %v1605_v2 = vmax.f32 %v1603_v46, %v1604_v56  ;;  %v1611_v3 = vrot.slane %v1610_v57, 1  ;;  %v1969_v4 = vsel %vm1873_vm3, %v1598_v55, %v1968_v58  ;;  %v1523_v7 = vrot.slane %v1522_v1, 4 }
 0x12a   : > { %v1616_v8 = vrot.slane %v1615_v61, 2  ;;  %v1623_v9 = vrot.slane %v1622_v62, 2  ;;  %v1518_v10 = vrot.slane %v1517_v0, 2  ;;  %v1529_v11 = vsel %vm842_vm0, %v812_v59, -inf }
 0x12b   : > { %v1612_v12 = vmax.f32 %v1610_v57, %v1611_v3  ;;  %v1970_v13 = vsel %vm1875_vm4, %v1605_v2, %v1969_v4  ;;  %v1524_v15 = vmax.f32 %v1522_v1, %v1523_v7  ;;  %v1530_v16 = vrot.slane %v1529_v11, 4  ;;  %v834_v3 = vld [vmem:[%s4190_s29 + $0x3c0] sm:$0xff] }
 0x12c   : > { %v1617_v17 = vmax.f32 %v1615_v61, %v1616_v8  ;;  %v1624_v18 = vmax.f32 %v1622_v62, %v1623_v9  ;;  %v1519_v22 = vmax.f32 %v1517_v0, %v1518_v10  ;;  %v1536_v23 = vsel %vm842_vm0, %v813_v5, -inf }
 0x12d   : > { %v1971_v24 = vsel %vm1877_vm5, %v1612_v12, %v1970_v13  ;;  %v1525_v27 = vrot.slane %v1524_v15, 2  ;;  %v1531_v28 = vmax.f32 %v1529_v11, %v1530_v16  ;;  %v1537_v29 = vrot.slane %v1536_v23, 4  ;;  %v835_v13 = vld [vmem:[%s4190_s29 + $0x3c8] sm:$0xff] }
 0x12e   : > { %v1618_v31 = vrot.slane %v1617_v17, 1  ;;  %v1625_v32 = vrot.slane %v1624_v18, 1  ;;  %v1520_v33 = vrot.slane %v1519_v22, 1  ;;  %v1543_v34 = vsel %vm842_vm0, %v814_v14, -inf  ;;  %v836_v14 = vld [vmem:[%s4190_s29 + $0x3d0] sm:$0xff] }
 0x12f   : > { %v1526_v38 = vmax.f32 %v1524_v15, %v1525_v27  ;;  %v1532_v39 = vrot.slane %v1531_v28, 2  ;;  %v1538_v40 = vmax.f32 %v1536_v23, %v1537_v29  ;;  %v1544_v41 = vrot.slane %v1543_v34, 4 }
 0x130   : > { %v1619_v42 = vmax.f32 %v1617_v17, %v1618_v31  ;;  %v1626_v44 = vmax.f32 %v1624_v18, %v1625_v32  ;;  %v1521_v45 = vmax.f32 %v1519_v22, %v1520_v33  ;;  %v1550_v46 = vsel %vm842_vm0, %v815_v26, -inf  ;;  %v837_v26 = vld [vmem:[%s4190_s29 + $0x3d8] sm:$0xff] }
 0x131   : > { %v1527_v47 = vrot.slane %v1526_v38, 1  ;;  %v1533_v48 = vmax.f32 %v1531_v28, %v1532_v39  ;;  %v1539_v49 = vrot.slane %v1538_v40, 2  ;;  %v1545_v51 = vmax.f32 %v1543_v34, %v1544_v41  ;;  %v838_v39 = vld [vmem:[%s4190_s29 + $0x3e0] sm:$0xff] }
 0x132   : > { %v1972_v52 = vsel %vm1879_vm6, %v1619_v42, %v1971_v24  ;;  %v1551_v54 = vrot.slane %v1550_v46, 4  ;;  %v1557_v55 = vsel %vm842_vm0, %v816_v35, -inf  ;;  %v1564_v56 = vsel %vm842_vm0, %v817_v36, -inf }
 0x133   : > { %v4579_v57 = vsel %vm1881_vm7, %v1626_v44, %v1972_v52  ;;  %v1528_v58 = vmax.f32 %v1526_v38, %v1527_v47  ;;  %v1534_v59 = vrot.slane %v1533_v48, 1  ;;  %v1540_v61 = vmax.f32 %v1538_v40, %v1539_v49  ;;  %v839_v49 = vld [vmem:[%s4190_s29 + $0x3e8] sm:$0xff] }
 0x134   : > { %v2044_v62 = vsel %vm2004_vm9, %v4579_v57, -inf  ;;  %v1546_v0 = vrot.slane %v1545_v51, 2  ;;  %v1552_v1 = vmax.f32 %v1550_v46, %v1551_v54  ;;  %v1558_v2 = vrot.slane %v1557_v55, 4 }
 0x135   : > { %2045 = vmax.xlane.f32.xlu1 %v2044_v62  ;;  %v1535_v4 = vmax.f32 %v1533_v48, %v1534_v59  ;;  %v1541_v5 = vrot.slane %v1540_v61, 1  ;;  %v1565_v7 = vrot.slane %v1564_v56, 4  ;;  %v1960_v8 = vsel %vm1869_vm1, %v1528_v58, %v1521_v45 }
 0x136   : > { %v1547_v9 = vmax.f32 %v1545_v51, %v1546_v0  ;;  %v1553_v10 = vrot.slane %v1552_v1, 2  ;;  %v1559_v11 = vmax.f32 %v1557_v55, %v1558_v2  ;;  %v2559_v12 = vsel %vm2519_vm8, %v4579_v57, -inf }
 0x137   : > { %v1542_v15 = vmax.f32 %v1540_v61, %v1541_v5  ;;  %v1566_v16 = vmax.f32 %v1564_v56, %v1565_v7  ;;  %v1961_v17 = vsel %vm1871_vm2, %v1535_v4, %v1960_v8  ;;  %v1683_v18 = vsel %vm842_vm0, %v834_v3, -inf  ;;  %v840_v8 = vld [vmem:[%s4190_s29 + $0x3f0] sm:$0xff] }
 0x138   : > { %v1548_v22 = vrot.slane %v1547_v9, 1  ;;  %v1554_v23 = vmax.f32 %v1552_v1, %v1553_v10  ;;  %v1560_v24 = vrot.slane %v1559_v11, 2  ;;  %v1684_v27 = vrot.slane %v1683_v18, 4 }
 0x139   : > { %v1567_v28 = vrot.slane %v1566_v16, 2  ;;  %v1962_v29 = vsel %vm1873_vm3, %v1542_v15, %v1961_v17  ;;  %2560 = vmax.xlane.f32.xlu1 %v2559_v12  ;;  %v1690_v31 = vsel %vm842_vm0, %v835_v13, -inf  ;;  %v1697_v32 = vsel %vm842_vm0, %v836_v14, -inf  ;;  %v826_v13 = vld [vmem:[%s4190_s29 + $0x380] sm:$0xff] }
 0x13a   : > { %v1549_v33 = vmax.f32 %v1547_v9, %v1548_v22  ;;  %v1555_v34 = vrot.slane %v1554_v23, 1  ;;  %v1561_v35 = vmax.f32 %v1559_v11, %v1560_v24  ;;  %v1685_v36 = vmax.f32 %v1683_v18, %v1684_v27  ;;  %v841_v9 = vld [vmem:[%s4190_s29 + $0x3f8] sm:$0xff] }
 0x13b   : > { %v1568_v38 = vmax.f32 %v1566_v16, %v1567_v28  ;;  %v1691_v40 = vrot.slane %v1690_v31, 4  ;;  %v1698_v41 = vrot.slane %v1697_v32, 4  ;;  %v1704_v42 = vsel %vm842_vm0, %v837_v26, -inf }
 0x13c   : > { %v1556_v44 = vmax.f32 %v1554_v23, %v1555_v34  ;;  %v1562_v45 = vrot.slane %v1561_v35, 1  ;;  %v1963_v46 = vsel %vm1875_vm4, %v1549_v33, %v1962_v29  ;;  %v1686_v47 = vrot.slane %v1685_v36, 2  ;;  %v827_v29 = vld [vmem:[%s4190_s29 + $0x388] sm:$0xff] }
 0x13d   : > { %v1569_v48 = vrot.slane %v1568_v38, 1  ;;  %v1692_v51 = vmax.f32 %v1690_v31, %v1691_v40  ;;  %v1699_v52 = vmax.f32 %v1697_v32, %v1698_v41  ;;  %v1705_v54 = vrot.slane %v1704_v42, 4  ;;  %v4617_v41 = vpop.xlane.xlu1 %2521 }
 0x13e   : > { %v1563_v55 = vmax.f32 %v1561_v35, %v1562_v45  ;;  %v1964_v56 = vsel %vm1877_vm5, %v1556_v44, %v1963_v46  ;;  %v1687_v58 = vmax.f32 %v1685_v36, %v1686_v47  ;;  %v1711_v59 = vsel %vm842_vm0, %v838_v39, -inf  ;;  %v828_v46 = vld [vmem:[%s4190_s29 + $0x390] sm:$0xff] }
 0x13f   : > { %v1570_v61 = vmax.f32 %v1568_v38, %v1569_v48  ;;  %v1693_v62 = vrot.slane %v1692_v51, 2  ;;  %v1700_v0 = vrot.slane %v1699_v52, 2  ;;  %v1706_v1 = vmax.f32 %v1704_v42, %v1705_v54 }
 0x140   : > { %v1965_v2 = vsel %vm1879_vm6, %v1563_v55, %v1964_v56  ;;  %v1688_v3 = vrot.slane %v1687_v58, 1  ;;  %v1712_v4 = vrot.slane %v1711_v59, 4  ;;  %v1718_v5 = vsel %vm842_vm0, %v839_v49, -inf  ;;  %v829_v56 = vld [vmem:[%s4190_s29 + $0x398] sm:$0xff] }
 0x141   : > { %v4604_v7 = vsel %vm1881_vm7, %v1570_v61, %v1965_v2  ;;  %v1694_v10 = vmax.f32 %v1692_v51, %v1693_v62  ;;  %v1701_v11 = vmax.f32 %v1699_v52, %v1700_v0  ;;  %v1707_v12 = vrot.slane %v1706_v1, 2  ;;  %v4626_v2 = vpop.xlane.xlu0 %2006 }
 0x142   : > { %v2041_v14 = vsel %vm2004_vm9, %v4604_v7, -inf  ;;  %v2556_v15 = vsel %vm2519_vm8, %v4604_v7, -inf  ;;  %v1689_v16 = vmax.f32 %v1687_v58, %v1688_v3  ;;  %v1713_v17 = vmax.f32 %v1711_v59, %v1712_v4  ;;  %v830_v4 = vld [vmem:[%s4190_s29 + $0x3a0] sm:$0xff] }
 0x143   : > { %2042 = vmax.xlane.f32.xlu0 %v2041_v14  ;;  %v1695_v18 = vrot.slane %v1694_v10, 1  ;;  %v1702_v22 = vrot.slane %v1701_v11, 1  ;;  %v1708_v23 = vmax.f32 %v1706_v1, %v1707_v12  ;;  %v1719_v24 = vrot.slane %v1718_v5, 4  ;;  %v4631_v14 = vpop.xlane.xlu1 %2524 }
 0x144   : > { %v1714_v26 = vrot.slane %v1713_v17, 2  ;;  %v1725_v27 = vsel %vm842_vm0, %v840_v8, -inf  ;;  %v1732_v28 = vsel %vm842_vm0, %v841_v9, -inf  ;;  %v1627_v31 = vsel %vm842_vm0, %v826_v13, -inf }
 0x145   : > { %v1696_v32 = vmax.f32 %v1694_v10, %v1695_v18  ;;  %v1703_v33 = vmax.f32 %v1701_v11, %v1702_v22  ;;  %v1709_v34 = vrot.slane %v1708_v23, 1  ;;  %v1720_v35 = vmax.f32 %v1718_v5, %v1719_v24  ;;  %v831_v24 = vld [vmem:[%s4190_s29 + $0x3a8] sm:$0xff] }
 0x146   : > { %v1715_v36 = vmax.f32 %v1713_v17, %v1714_v26  ;;  %v1726_v38 = vrot.slane %v1725_v27, 4  ;;  %v1733_v39 = vrot.slane %v1732_v28, 4  ;;  %v1628_v40 = vrot.slane %v1627_v31, 4 }
 0x147   : > { %2557 = vmax.xlane.f32.xlu0 %v2556_v15  ;;  %v1710_v42 = vmax.f32 %v1708_v23, %v1709_v34  ;;  %v1721_v44 = vrot.slane %v1720_v35, 2  ;;  %v1981_v45 = vsel %vm1869_vm1, %v1696_v32, %v1689_v16  ;;  %v1634_v47 = vsel %vm842_vm0, %v827_v29, -inf }
 0x148   : > { %v1716_v48 = vrot.slane %v1715_v36, 1  ;;  %v1727_v49 = vmax.f32 %v1725_v27, %v1726_v38  ;;  %v1734_v51 = vmax.f32 %v1732_v28, %v1733_v39  ;;  %v1982_v52 = vsel %vm1871_vm2, %v1703_v33, %v1981_v45  ;;  %v4637_v39 = vpop.xlane.xlu0 %2009 }
 0x149   : > { %v1722_v54 = vmax.f32 %v1720_v35, %v1721_v44  ;;  %v1983_v55 = vsel %vm1873_vm3, %v1710_v42, %v1982_v52  ;;  %v1629_v58 = vmax.f32 %v1627_v31, %v1628_v40  ;;  %v1635_v59 = vrot.slane %v1634_v47, 4  ;;  %v832_v35 = vld [vmem:[%s4190_s29 + $0x3b0] sm:$0xff]  ;;  %v4642_v52 = vpop.xlane.xlu1 %2015 }
 0x14a   : > { %v1717_v61 = vmax.f32 %v1715_v36, %v1716_v48  ;;  %v1728_v62 = vrot.slane %v1727_v49, 2  ;;  %v1735_v0 = vrot.slane %v1734_v51, 2  ;;  %v1641_v1 = vsel %vm842_vm0, %v828_v46, -inf }
 0x14b   : > { %v1723_v3 = vrot.slane %v1722_v54, 1  ;;  %v1630_v5 = vrot.slane %v1629_v58, 2  ;;  %v1636_v8 = vmax.f32 %v1634_v47, %v1635_v59  ;;  %v1642_v9 = vrot.slane %v1641_v1, 4  ;;  %v833_v47 = vld [vmem:[%s4190_s29 + $0x3b8] sm:$0xff] }
 0x14c   : > { %v1729_v10 = vmax.f32 %v1727_v49, %v1728_v62  ;;  %v1736_v11 = vmax.f32 %v1734_v51, %v1735_v0  ;;  %v1984_v12 = vsel %vm1875_vm4, %v1717_v61, %v1983_v55  ;;  %v1648_v13 = vsel %vm842_vm0, %v829_v56, -inf }
 0x14d   : > { %v1724_v15 = vmax.f32 %v1722_v54, %v1723_v3  ;;  %v1631_v16 = vmax.f32 %v1629_v58, %v1630_v5  ;;  %v1637_v17 = vrot.slane %v1636_v8, 2  ;;  %v1643_v18 = vmax.f32 %v1641_v1, %v1642_v9 }
 0x14e   : > { %v1730_v22 = vrot.slane %v1729_v10, 1  ;;  %v1737_v23 = vrot.slane %v1736_v11, 1  ;;  %v1649_v26 = vrot.slane %v1648_v13, 4  ;;  %v1655_v27 = vsel %vm842_vm0, %v830_v4, -inf }
 0x14f   : > { %v1985_v28 = vsel %vm1877_vm5, %v1724_v15, %v1984_v12  ;;  %v1632_v29 = vrot.slane %v1631_v16, 1  ;;  %v1638_v31 = vmax.f32 %v1636_v8, %v1637_v17  ;;  %v1644_v32 = vrot.slane %v1643_v18, 2  ;;  %v2013_v12 = vpop.xlane.xlu0 %2012 }
 0x150   : > { %v1731_v33 = vmax.f32 %v1729_v10, %v1730_v22  ;;  %v1738_v34 = vmax.f32 %v1736_v11, %v1737_v23  ;;  %v1650_v36 = vmax.f32 %v1648_v13, %v1649_v26  ;;  %v1656_v38 = vrot.slane %v1655_v27, 4 }
 0x151   : > { %v1633_v40 = vmax.f32 %v1631_v16, %v1632_v29  ;;  %v1639_v42 = vrot.slane %v1638_v31, 1  ;;  %v1645_v44 = vmax.f32 %v1643_v18, %v1644_v32  ;;  %v1662_v45 = vsel %vm842_vm0, %v831_v24, -inf  ;;  %v2531_v24 = vpop.xlane.xlu1 %2530 }
 0x152   : > { %v1986_v46 = vsel %vm1879_vm6, %v1731_v33, %v1985_v28  ;;  %v1651_v48 = vrot.slane %v1650_v36, 2  ;;  %v1657_v49 = vmax.f32 %v1655_v27, %v1656_v38  ;;  %v1663_v51 = vrot.slane %v1662_v45, 4 }
 0x153   : > { %v4645_v54 = vsel %vm1881_vm7, %v1738_v34, %v1986_v46  ;;  %v1640_v55 = vmax.f32 %v1638_v31, %v1639_v42  ;;  %v1646_v56 = vrot.slane %v1645_v44, 1  ;;  %v1669_v58 = vsel %vm842_vm0, %v832_v35, -inf  ;;  %v2528_v38 = vpop.xlane.xlu0 %2527 }
 0x154   : > { %v2050_v59 = vsel %vm2004_vm9, %v4645_v54, -inf  ;;  %v1652_v61 = vmax.f32 %v1650_v36, %v1651_v48  ;;  %v1658_v62 = vrot.slane %v1657_v49, 2  ;;  %v1664_v0 = vmax.f32 %v1662_v45, %v1663_v51 }
 0x155   : > { %2051 = vmax.xlane.f32.xlu1 %v2050_v59  ;;  %v1647_v1 = vmax.f32 %v1645_v44, %v1646_v56  ;;  %v1670_v3 = vrot.slane %v1669_v58, 4  ;;  %v1676_v4 = vsel %vm842_vm0, %v833_v47, -inf  ;;  %v1974_v5 = vsel %vm1869_vm1, %v1640_v55, %v1633_v40  ;;  %v2022_v46 = vpop.xlane.xlu1 %2021 }
 0x156   : > { %v1653_v8 = vrot.slane %v1652_v61, 1  ;;  %v1659_v9 = vmax.f32 %v1657_v49, %v1658_v62  ;;  %v1665_v10 = vrot.slane %v1664_v0, 2  ;;  %v1677_v11 = vrot.slane %v1676_v4, 4 }
 0x157   : > { %v1671_v13 = vmax.f32 %v1669_v58, %v1670_v3  ;;  %v1975_v15 = vsel %vm1871_vm2, %v1647_v1, %v1974_v5  ;;  %v2565_v16 = vsel %vm2519_vm8, %v4645_v54, -inf  ;;  %v2136_v27 = vsel %vm2132_vm10, %v4258_v43, -inf  ;;  %v2019_v56 = vpop.xlane.xlu0 %2018 }
 0x158   : > { %v1654_v17 = vmax.f32 %v1652_v61, %v1653_v8  ;;  %v1660_v18 = vrot.slane %v1659_v9, 1  ;;  %v1666_v22 = vmax.f32 %v1664_v0, %v1665_v10  ;;  %v1678_v23 = vmax.f32 %v1676_v4, %v1677_v11 }
 0x159   : > { %v1672_v26 = vrot.slane %v1671_v13, 2  ;;  %2566 = vmax.xlane.f32.xlu1 %v2565_v16  ;;  %v2652_v45 = vsel %vm2648_vm11, %v4258_v43, -inf  ;;  %v2142_v55 = vsel %vm2132_vm10, %v4285_v53, -inf  ;;  %v2537_v59 = vpop.xlane.xlu1 %2536  ;;  %v2658_v62 = vsel %vm2648_vm11, %v4285_v53, -inf }
 0x15a   : > { %v1661_v28 = vmax.f32 %v1659_v9, %v1660_v18  ;;  %v1667_v29 = vrot.slane %v1666_v22, 1  ;;  %v1679_v31 = vrot.slane %v1678_v23, 2  ;;  %v1976_v32 = vsel %vm1873_vm3, %v1654_v17, %v1975_v15 }
 0x15b   : > { %v1673_v33 = vmax.f32 %v1671_v13, %v1672_v26  ;;  %v2534_v0 = vpop.xlane.xlu0 %2533  ;;  %v2133_v1 = vsel %vm2132_vm10, %v4227_v25, -inf  ;;  %v3681_v3 = vpack.c.bf16 %v4631_v14, %v4617_v41  ;;  %v3553_v4 = vpack.c.bf16 %v4637_v39, %v4626_v2  ;;  %v2053_v26 = vld [vmem:[%s4935_s1] sm:$0xff] }
 0x15c   : > { %v1668_v34 = vmax.f32 %v1666_v22, %v1667_v29  ;;  %v1680_v35 = vmax.f32 %v1678_v23, %v1679_v31  ;;  %v1977_v36 = vsel %vm1875_vm4, %v1661_v28, %v1976_v32  ;;  %v2148_v5 = vsel %vm2132_vm10, %v4346_v21, -inf  ;;  %3305 = vmatprep.mubr.f32.mxu1 %v2053_v26  ;;  %v3117_v29 = vld [vmem:[%s4935_s1 + $0x40] sm:$0xff] }
 0x15d   : > { %v1674_v40 = vrot.slane %v1673_v33, 1  ;;  %2137 = vmax.xlane.f32.xlu1 %v2136_v27  ;;  %v3557_v8 = vpack.c.bf16 %v4642_v52, %v2013_v12  ;;  %v3685_v9 = vpack.c.bf16 %v2531_v24, %v2528_v38  ;;  %3682 = vmatprep.subr.bf16.mxu0 %v3681_v3  ;;  %v2649_v11 = vsel %vm2648_vm11, %v4227_v25, -inf }
 0x15e   : > { %v1681_v42 = vrot.slane %v1680_v35, 1  ;;  %v1978_v44 = vsel %vm1877_vm5, %v1668_v34, %v1977_v36  ;;  %3554 = vmatprep.subr.bf16.mxu1 %v3553_v4  ;;  %3684 = vmatpush3.bf16.msra.mxu0 %v3681_v3  ;;  %v2664_v41 = vsel %vm2648_vm11, %v4346_v21, -inf  ;;  %v3561_v2 = vpack.c.bf16 %v2022_v46, %v2019_v56 }
 0x15f   : > { %v1675_v47 = vmax.f32 %v1673_v33, %v1674_v40  ;;  %v2028_v10 = vpop.xlane.xlu1 %2027  ;;  %3556 = vmatpush3.bf16.msra.mxu1 %v3553_v4  ;;  %3686 = vmatprep.subr.bf16.mxu0 %v3685_v9  ;;  %v3689_v14 = vpack.c.bf16 %v2537_v59, %v2534_v0  ;;  %v2139_v12 = vsel %vm2132_vm10, %v4313_v63, -inf  ;;  %v2154_v13 = vsel %vm2132_vm10, %v4403_v50, -inf }
 0x160   : > { %v1682_v48 = vmax.f32 %v1680_v35, %v1681_v42  ;;  %3558 = vmatprep.subr.bf16.mxu1 %v3557_v8  ;;  %v2655_v18 = vsel %vm2648_vm11, %v4313_v63, -inf  ;;  %v2670_v22 = vsel %vm2648_vm11, %v4403_v50, -inf  ;;  %v2145_v23 = vsel %vm2132_vm10, %v4373_v30, -inf  ;;  %3445 = vmatprep.mubr.f32.mxu0 %v3117_v29 }
 0x161   : > { %v1979_v49 = vsel %vm1879_vm6, %v1675_v47, %v1978_v44  ;;  %2653 = vmax.xlane.f32.xlu1 %v2652_v45  ;;  %v2160_v24 = vsel %vm2132_vm10, %v4461_v19, -inf  ;;  %v2661_v27 = vsel %vm2648_vm11, %v4373_v30, -inf  ;;  %v2676_v28 = vsel %vm2648_vm11, %v4461_v19, -inf }
 0x162   : > { %v4664_v51 = vsel %vm1881_vm7, %v1682_v48, %v1979_v49  ;;  %3688 = vmatpush3.bf16.msra.mxu0 %v3685_v9  ;;  %v2151_v31 = vsel %vm2132_vm10, %v4430_v60, -inf  ;;  %v2166_v32 = vsel %vm2132_vm10, %v4519_v6, -inf  ;;  %v2667_v33 = vsel %vm2648_vm11, %v4430_v60, -inf }
 0x163   : > { %v2047_v58 = vsel %vm2004_vm9, %v4664_v51, -inf  ;;  %v2562_v61 = vsel %vm2519_vm8, %v4664_v51, -inf  ;;  %v2543_v52 = vpop.xlane.xlu1 %2542  ;;  %3560 = vmatpush3.bf16.msra.mxu1 %v3557_v8  ;;  %3690 = vmatprep.subr.bf16.mxu0 %v3689_v14  ;;  %v2682_v34 = vsel %vm2648_vm11, %v4519_v6, -inf  ;;  %v2157_v35 = vsel %vm2132_vm10, %v4488_v37, -inf }
 0x164   : > { %2048 = vmax.xlane.f32.xlu0 %v2047_v58  ;;  %3562 = vmatprep.subr.bf16.mxu1 %v3561_v2  ;;  %v2172_v36 = vsel %vm2132_vm10, %v4579_v57, -inf  ;;  %v2673_v40 = vsel %vm2648_vm11, %v4488_v37, -inf  ;;  %v2688_v42 = vsel %vm2648_vm11, %v4579_v57, -inf  ;;  %v2163_v46 = vsel %vm2132_vm10, %v4546_v20, -inf }
 0x165   : > { %2143 = vmax.xlane.f32.xlu1 %v2142_v55  ;;  %v2178_v48 = vsel %vm2132_vm10, %v4645_v54, -inf  ;;  %v2679_v56 = vsel %vm2648_vm11, %v4546_v20, -inf  ;;  %v2694_v58 = vsel %vm2648_vm11, %v4645_v54, -inf  ;;  %v2169_v59 = vsel %vm2132_vm10, %v4604_v7, -inf }
 0x166   : > { %3692 = vmatpush3.bf16.msra.mxu0 %v3689_v14  ;;  %v2781_v0 = vsel %vm2777_vm13, %v4258_v43, -inf  ;;  %v2271_v3 = vsel %vm2261_vm12, %v4285_v53, -inf  ;;  %v2691_v4 = vsel %vm2648_vm11, %v4664_v51, -inf  ;;  %v2262_v8 = vsel %vm2261_vm12, %v4227_v25, -inf }
 0x167   : > { %3564 = vmatpush3.bf16.msra.mxu1 %v3561_v2  ;;  %v2277_v9 = vsel %vm2261_vm12, %v4346_v21, -inf  ;;  %v2268_v14 = vsel %vm2261_vm12, %v4313_v63, -inf  ;;  %v2280_v26 = vsel %vm2261_vm12, %v4430_v60, -inf  ;;  %v2811_v29 = vsel %vm2777_vm13, %v4519_v6, -inf }
 0x168   : > { %2563 = vmax.xlane.f32.xlu0 %v2562_v61  ;;  %v2265_v61 = vsel %vm2261_vm12, %v4258_v43, -inf  ;;  %vm2906_vm15 = vcmask 523712   ;;  %vm3037_vm0 = vcmask 6144   ;;  %vm3035_vm1 = vcmask 7168  }
 0x169   : > { %2659 = vmax.xlane.f32.xlu1 %v2658_v62  ;;  %v2685_v62 = vsel %vm2648_vm11, %v4604_v7, -inf }
 0x16c   : > { %2134 = vmax.xlane.f32.xlu0 %v2133_v1  ;;  %v2175_v1 = vsel %vm2132_vm10, %v4664_v51, -inf }
 0x16d   : > { %2149 = vmax.xlane.f32.xlu1 %v2148_v5  ;;  %v2787_v5 = vsel %vm2777_vm13, %v4285_v53, -inf }
 0x16e   : > { %v2025_v39 = vpop.xlane.xlu0 %2024 }
 0x16f   : > { %v3565_v15 = vpack.c.bf16 %v2028_v10, %v2025_v39 }
 0x170   : > { %2650 = vmax.xlane.f32.xlu0 %v2649_v11  ;;  %v2778_v11 = vsel %vm2777_vm13, %v4227_v25, -inf }
 0x171   : > { %2665 = vmax.xlane.f32.xlu1 %v2664_v41  ;;  %3566 = vmatprep.subr.bf16.mxu1 %v3565_v15  ;;  %v2793_v41 = vsel %vm2777_vm13, %v4346_v21, -inf }
 0x172   : > { %v2540_v16 = vpop.xlane.xlu0 %2539  ;;  %3568 = vmatpush3.bf16.msra.mxu1 %v3565_v15  ;;  %v2784_v15 = vsel %vm2777_vm13, %v4313_v63, -inf }
 0x173   : > { %v3693_v17 = vpack.c.bf16 %v2543_v52, %v2540_v16  ;;  %v2283_v52 = vsel %vm2261_vm12, %v4403_v50, -inf }
 0x174   : > { %2140 = vmax.xlane.f32.xlu0 %v2139_v12 }
 0x175   : > { %2155 = vmax.xlane.f32.xlu1 %v2154_v13  ;;  %3694 = vmatprep.subr.bf16.mxu0 %v3693_v17 }
 0x176   : > { %3696 = vmatpush3.bf16.msra.mxu0 %v3693_v17  ;;  %v2799_v17 = vsel %vm2777_vm13, %v4403_v50, -inf }
 0x178   : > { %2656 = vmax.xlane.f32.xlu0 %v2655_v18  ;;  %v2274_v18 = vsel %vm2261_vm12, %v4373_v30, -inf }
 0x179   : > { %2671 = vmax.xlane.f32.xlu1 %v2670_v22  ;;  %v2289_v22 = vsel %vm2261_vm12, %v4461_v19, -inf }
 0x17c   : > { %2146 = vmax.xlane.f32.xlu0 %v2145_v23  ;;  %v2790_v23 = vsel %vm2777_vm13, %v4373_v30, -inf }
 0x17d   : > { %2161 = vmax.xlane.f32.xlu1 %v2160_v24  ;;  %v2805_v24 = vsel %vm2777_vm13, %v4461_v19, -inf }
 0x17f   : > { %v2034_v38 = vpop.xlane.xlu1 %2033 }
 0x180   : > { %2662 = vmax.xlane.f32.xlu0 %v2661_v27  ;;  %v2295_v27 = vsel %vm2261_vm12, %v4519_v6, -inf }
 0x181   : > { %2677 = vmax.xlane.f32.xlu1 %v2676_v28  ;;  %v2796_v28 = vsel %vm2777_vm13, %v4430_v60, -inf }
 0x183   : > { %v2549_v47 = vpop.xlane.xlu1 %2548 }
 0x184   : > { %2152 = vmax.xlane.f32.xlu0 %v2151_v31  ;;  %v2286_v31 = vsel %vm2261_vm12, %v4488_v37, -inf }
 0x185   : > { %2167 = vmax.xlane.f32.xlu1 %v2166_v32  ;;  %v2301_v32 = vsel %vm2261_vm12, %v4579_v57, -inf }
 0x188   : > { %2668 = vmax.xlane.f32.xlu0 %v2667_v33 }
 0x189   : > { %2683 = vmax.xlane.f32.xlu1 %v2682_v34  ;;  %v2802_v34 = vsel %vm2777_vm13, %v4488_v37, -inf }
 0x18c   : > { %2158 = vmax.xlane.f32.xlu0 %v2157_v35  ;;  %v2817_v35 = vsel %vm2777_vm13, %v4579_v57, -inf }
 0x18d   : > { %2173 = vmax.xlane.f32.xlu1 %v2172_v36 }
 0x18f   : > { %v2031_v44 = vpop.xlane.xlu0 %2030 }
 0x190   : > { %2674 = vmax.xlane.f32.xlu0 %v2673_v40  ;;  %v3569_v45 = vpack.c.bf16 %v2034_v38, %v2031_v44  ;;  %v2292_v38 = vsel %vm2261_vm12, %v4546_v20, -inf }
 0x191   : > { %2689 = vmax.xlane.f32.xlu1 %v2688_v42  ;;  %v2307_v42 = vsel %vm2261_vm12, %v4645_v54, -inf }
 0x192   : > { %3570 = vmatprep.subr.bf16.mxu1 %v3569_v45 }
 0x193   : > { %3572 = vmatpush3.bf16.msra.mxu1 %v3569_v45  ;;  %v2546_v49 = vpop.xlane.xlu0 %2545 }
 0x194   : > { %2164 = vmax.xlane.f32.xlu0 %v2163_v46  ;;  %v3697_v55 = vpack.c.bf16 %v2549_v47, %v2546_v49  ;;  %v2808_v46 = vsel %vm2777_vm13, %v4546_v20, -inf  ;;  %v2298_v49 = vsel %vm2261_vm12, %v4604_v7, -inf }
 0x195   : > { %2179 = vmax.xlane.f32.xlu1 %v2178_v48  ;;  %v2823_v48 = vsel %vm2777_vm13, %v4645_v54, -inf }
 0x196   : > { %3698 = vmatprep.subr.bf16.mxu0 %v3697_v55 }
 0x197   : > { %3700 = vmatpush3.bf16.msra.mxu0 %v3697_v55  ;;  %v2394_v55 = vsel %vm2390_vm14, %v4258_v43, -inf }
 0x198   : > { %2680 = vmax.xlane.f32.xlu0 %v2679_v56  ;;  %v2814_v56 = vsel %vm2777_vm13, %v4604_v7, -inf }
 0x199   : > { %2695 = vmax.xlane.f32.xlu1 %v2694_v58  ;;  %v2910_v58 = vsel %vm2906_vm15, %v4258_v43, -inf  ;;  %v2391_v43 = vsel %vm2390_vm14, %v4227_v25, -inf }
 0x19c   : > { %2170 = vmax.xlane.f32.xlu0 %v2169_v59  ;;  %v2304_v59 = vsel %vm2261_vm12, %v4664_v51, -inf }
 0x19d   : > { %2266 = vmax.xlane.f32.xlu1 %v2265_v61 }
 0x1a0   : > { %2686 = vmax.xlane.f32.xlu0 %v2685_v62  ;;  %v2400_v62 = vsel %vm2390_vm14, %v4285_v53, -inf }
 0x1a1   : > { %2782 = vmax.xlane.f32.xlu1 %v2781_v0  ;;  %v2040_v10 = vpop.xlane.xlu1 %2039  ;;  %v2820_v0 = vsel %vm2777_vm13, %v4664_v51, -inf }
 0x1a4   : > { %2176 = vmax.xlane.f32.xlu0 %v2175_v1 }
 0x1a5   : > { %2272 = vmax.xlane.f32.xlu1 %v2271_v3  ;;  %v2555_v12 = vpop.xlane.xlu1 %2554  ;;  %v2916_v3 = vsel %vm2906_vm15, %v4285_v53, -inf }
 0x1a8   : > { %2692 = vmax.xlane.f32.xlu0 %v2691_v4 }
 0x1a9   : > { %2788 = vmax.xlane.f32.xlu1 %v2787_v5  ;;  %v2406_v5 = vsel %vm2390_vm14, %v4346_v21, -inf }
 0x1ac   : > { %2263 = vmax.xlane.f32.xlu0 %v2262_v8  ;;  %v2907_v8 = vsel %vm2906_vm15, %v4227_v25, -inf }
 0x1ad   : > { %2278 = vmax.xlane.f32.xlu1 %v2277_v9 }
 0x1b0   : > { %2779 = vmax.xlane.f32.xlu0 %v2778_v11  ;;  %v2037_v2 = vpop.xlane.xlu0 %2036  ;;  %v2397_v11 = vsel %vm2390_vm14, %v4313_v63, -inf }
 0x1b1   : > { %2794 = vmax.xlane.f32.xlu1 %v2793_v41  ;;  %v3573_v39 = vpack.c.bf16 %v2040_v10, %v2037_v2  ;;  %v2922_v10 = vsel %vm2906_vm15, %v4346_v21, -inf }
 0x1b3   : > { %3574 = vmatprep.subr.bf16.mxu1 %v3573_v39 }
 0x1b4   : > { %2269 = vmax.xlane.f32.xlu0 %v2268_v14  ;;  %3576 = vmatpush3.bf16.msra.mxu1 %v3573_v39  ;;  %v2552_v13 = vpop.xlane.xlu0 %2551  ;;  %v2412_v14 = vsel %vm2390_vm14, %v4403_v50, -inf  ;;  %v2913_v39 = vsel %vm2906_vm15, %v4313_v63, -inf  ;;  %v2403_v63 = vsel %vm2390_vm14, %v4373_v30, -inf }
 0x1b5   : > { %2284 = vmax.xlane.f32.xlu1 %v2283_v52  ;;  %v3701_v16 = vpack.c.bf16 %v2555_v12, %v2552_v13  ;;  %v2054_v52 = vld [vmem:[%s4935_s1 + $0x8] sm:$0x7f]  ;;  %v2928_v13 = vsel %vm2906_vm15, %v4403_v50, -inf  ;;  %v2418_v50 = vsel %vm2390_vm14, %v4461_v19, -inf }
 0x1b7   : > { %3702 = vmatprep.subr.bf16.mxu0 %v3701_v16 }
 0x1b8   : > { %2785 = vmax.xlane.f32.xlu0 %v2784_v15  ;;  %3704 = vmatpush3.bf16.msra.mxu0 %v3701_v16  ;;  %v3111_v15 = vld [vmem:[%s4935_s1 + $0x10] sm:$0xff] }
 0x1b9   : > { %2800 = vmax.xlane.f32.xlu1 %v2799_v17 }
 0x1bc   : > { %2275 = vmax.xlane.f32.xlu0 %v2274_v18  ;;  %v3118_v18 = vld [vmem:[%s4935_s1 + $0x48] sm:$0x7f] }
 0x1bd   : > { %2290 = vmax.xlane.f32.xlu1 %v2289_v22 }
 0x1c0   : > { %2791 = vmax.xlane.f32.xlu0 %v2790_v23  ;;  %v3119_v23 = vld [vmem:[%s4935_s1 + $0x50] sm:$0xff] }
 0x1c1   : > { %2806 = vmax.xlane.f32.xlu1 %v2805_v24 }
 0x1c2   : > { %v2046_v33 = vpop.xlane.xlu1 %2045 }
 0x1c4   : > { %2281 = vmax.xlane.f32.xlu0 %v2280_v26  ;;  %v2919_v26 = vsel %vm2906_vm15, %v4373_v30, -inf  ;;  %v2424_v30 = vsel %vm2390_vm14, %v4519_v6, -inf }
 0x1c5   : > { %2296 = vmax.xlane.f32.xlu1 %v2295_v27 }
 0x1c6   : > { %v2561_v44 = vpop.xlane.xlu1 %2560 }
 0x1c8   : > { %2797 = vmax.xlane.f32.xlu0 %v2796_v28 }
 0x1c9   : > { %2812 = vmax.xlane.f32.xlu1 %v2811_v29  ;;  %v2934_v29 = vsel %vm2906_vm15, %v4461_v19, -inf  ;;  %v2925_v19 = vsel %vm2906_vm15, %v4430_v60, -inf }
 0x1cc   : > { %2287 = vmax.xlane.f32.xlu0 %v2286_v31 }
 0x1cd   : > { %2302 = vmax.xlane.f32.xlu1 %v2301_v32  ;;  %v2409_v32 = vsel %vm2390_vm14, %v4430_v60, -inf }
 0x1d0   : > { %2803 = vmax.xlane.f32.xlu0 %v2802_v34  ;;  %v2043_v36 = vpop.xlane.xlu0 %2042 }
 0x1d1   : > { %2818 = vmax.xlane.f32.xlu1 %v2817_v35  ;;  %v3577_v40 = vpack.c.bf16 %v2046_v33, %v2043_v36 }
 0x1d3   : > { %3578 = vmatprep.subr.bf16.mxu1 %v3577_v40 }
 0x1d4   : > { %2293 = vmax.xlane.f32.xlu0 %v2292_v38  ;;  %3580 = vmatpush3.bf16.msra.mxu1 %v3577_v40  ;;  %v2558_v45 = vpop.xlane.xlu0 %2557  ;;  %v2940_v40 = vsel %vm2906_vm15, %v4519_v6, -inf  ;;  %v2931_v6 = vsel %vm2906_vm15, %v4488_v37, -inf }
 0x1d5   : > { %2308 = vmax.xlane.f32.xlu1 %v2307_v42  ;;  %v3705_v47 = vpack.c.bf16 %v2561_v44, %v2558_v45  ;;  %v2415_v44 = vsel %vm2390_vm14, %v4488_v37, -inf }
 0x1d7   : > { %3706 = vmatprep.subr.bf16.mxu0 %v3705_v47 }
 0x1d8   : > { %2809 = vmax.xlane.f32.xlu0 %v2808_v46  ;;  %3708 = vmatpush3.bf16.msra.mxu0 %v3705_v47  ;;  %v2430_v47 = vsel %vm2390_vm14, %v4579_v57, -inf }
 0x1d9   : > { %2824 = vmax.xlane.f32.xlu1 %v2823_v48 }
 0x1dc   : > { %2299 = vmax.xlane.f32.xlu0 %v2298_v49 }
 0x1dd   : > { %2395 = vmax.xlane.f32.xlu1 %v2394_v55  ;;  %v2946_v55 = vsel %vm2906_vm15, %v4579_v57, -inf  ;;  %v2937_v57 = vsel %vm2906_vm15, %v4546_v20, -inf }
 0x1e0   : > { %2815 = vmax.xlane.f32.xlu0 %v2814_v56 }
 0x1e1   : > { %2911 = vmax.xlane.f32.xlu1 %v2910_v58  ;;  %v2421_v58 = vsel %vm2390_vm14, %v4546_v20, -inf }
 0x1e2   : > { %v2052_v61 = vpop.xlane.xlu1 %2051 }
 0x1e4   : > { %2305 = vmax.xlane.f32.xlu0 %v2304_v59 }
 0x1e5   : > { %2401 = vmax.xlane.f32.xlu1 %v2400_v62  ;;  %v2436_v62 = vsel %vm2390_vm14, %v4645_v54, -inf }
 0x1e6   : > { %v2567_v1 = vpop.xlane.xlu1 %2566 }
 0x1e8   : > { %2821 = vmax.xlane.f32.xlu0 %v2820_v0 }
 0x1e9   : > { %2917 = vmax.xlane.f32.xlu1 %v2916_v3  ;;  %v2952_v3 = vsel %vm2906_vm15, %v4645_v54, -inf }
 0x1ea   : > { %v2138_v4 = vpop.xlane.xlu1 %2137 }
 0x1ec   : > { %2392 = vmax.xlane.f32.xlu0 %v2391_v43 }
 0x1ed   : > { %2407 = vmax.xlane.f32.xlu1 %v2406_v5 }
 0x1ee   : > { %v2654_v9 = vpop.xlane.xlu1 %2653 }
 0x1f0   : > { %2908 = vmax.xlane.f32.xlu0 %v2907_v8 }
 0x1f1   : > { %v2049_v53 = vpop.xlane.xlu0 %2048  ;;  %2923 = vmax.xlane.f32.xlu1 %v2922_v10 }
 0x1f2   : > { %v3581_v41 = vpack.c.bf16 %v2052_v61, %v2049_v53  ;;  %v2144_v2 = vpop.xlane.xlu1 %2143 }
 0x1f4   : > { %2398 = vmax.xlane.f32.xlu0 %v2397_v11  ;;  %3582 = vmatprep.subr.bf16.mxu1 %v3581_v41  ;;  %v2433_v11 = vsel %vm2390_vm14, %v4664_v51, -inf }
 0x1f5   : > { %3584 = vmatpush3.bf16.msra.mxu1 %v3581_v41  ;;  %v2564_v25 = vpop.xlane.xlu0 %2563  ;;  %2413 = vmax.xlane.f32.xlu1 %v2412_v14 }
 0x1f6   : > { %v3709_v21 = vpack.c.bf16 %v2567_v1, %v2564_v25  ;;  %v2660_v12 = vpop.xlane.xlu1 %2659  ;;  %v2949_v25 = vsel %vm2906_vm15, %v4664_v51, -inf }
 0x1f8   : > { %2914 = vmax.xlane.f32.xlu0 %v2913_v39  ;;  %3710 = vmatprep.subr.bf16.mxu0 %v3709_v21 }
 0x1f9   : > { %3712 = vmatpush3.bf16.msra.mxu0 %v3709_v21  ;;  %v2135_v16 = vpop.xlane.xlu0 %2134  ;;  %3306 = vmatmul.mubr.f32.vlgmr.msra.gmra.mrb[0].mxu1 %v2054_v52 }
 0x1fa   : > { %v3585_v17 = vpack.c.bf16 %v2138_v4, %v2135_v16  ;;  %2929 = vmax.xlane.f32.xlu1 %v2928_v13  ;;  %v2150_v22 = vpop.xlane.xlu1 %2149  ;;  %3340 = vmatprep.mubr.f32.mxu1 %v3111_v15  ;;  %v2427_v4 = vsel %vm2390_vm14, %v4604_v7, -inf }
 0x1fc   : > { %2404 = vmax.xlane.f32.xlu0 %v2403_v63  ;;  %3586 = vmatprep.subr.bf16.mxu1 %v3585_v17 }
 0x1fd   : > { %3588 = vmatpush3.bf16.msra.mxu1 %v3585_v17  ;;  %v2651_v24 = vpop.xlane.xlu0 %2650  ;;  %3446 = vmatmul.mubr.f32.vlgmr.msra.gmra.mrb[0].mxu0 %v3118_v18 }
 0x1fe   : > { %v3713_v27 = vpack.c.bf16 %v2654_v9, %v2651_v24  ;;  %2419 = vmax.xlane.f32.xlu1 %v2418_v50  ;;  %v2666_v28 = vpop.xlane.xlu1 %2665  ;;  %3480 = vmatprep.mubr.f32.mxu0 %v3119_v23  ;;  %v2943_v9 = vsel %vm2906_vm15, %v4604_v7, -inf  ;;  %v3113_v24 = vld [vmem:[%s4935_s1 + $0x20] sm:$0xff] }
 0x200   : > { %2920 = vmax.xlane.f32.xlu0 %v2919_v26  ;;  %3714 = vmatprep.subr.bf16.mxu0 %v3713_v27 }
 0x201   : > { %3716 = vmatpush3.bf16.msra.mxu0 %v3713_v27  ;;  %v2141_v31 = vpop.xlane.xlu0 %2140  ;;  %v3120_v27 = vld [vmem:[%s4935_s1 + $0x58] sm:$0x7f] }
 0x202   : > { %v3589_v33 = vpack.c.bf16 %v2144_v2, %v2141_v31  ;;  %2935 = vmax.xlane.f32.xlu1 %v2934_v29  ;;  %v2156_v34 = vpop.xlane.xlu1 %2155  ;;  %v3121_v31 = vld [vmem:[%s4935_s1 + $0x60] sm:$0xff] }
 0x204   : > { %2410 = vmax.xlane.f32.xlu0 %v2409_v32  ;;  %3590 = vmatprep.subr.bf16.mxu1 %v3589_v33 }
 0x205   : > { %3592 = vmatpush3.bf16.msra.mxu1 %v3589_v33  ;;  %v2657_v35 = vpop.xlane.xlu0 %2656 }
 0x206   : > { %v3717_v36 = vpack.c.bf16 %v2660_v12, %v2657_v35  ;;  %2425 = vmax.xlane.f32.xlu1 %v2424_v30  ;;  %v2672_v38 = vpop.xlane.xlu1 %2671 }
 0x208   : > { %2926 = vmax.xlane.f32.xlu0 %v2925_v19  ;;  %3718 = vmatprep.subr.bf16.mxu0 %v3717_v36 }
 0x209   : > { %3720 = vmatpush3.bf16.msra.mxu0 %v3717_v36  ;;  %v2147_v42 = vpop.xlane.xlu0 %2146 }
 0x20a   : > { %v3593_v45 = vpack.c.bf16 %v2150_v22, %v2147_v42  ;;  %2941 = vmax.xlane.f32.xlu1 %v2940_v40  ;;  %v2162_v46 = vpop.xlane.xlu1 %2161  ;;  %v3112_v22 = vld [vmem:[%s4935_s1 + $0x18] sm:$0x7f] }
 0x20c   : > { %2416 = vmax.xlane.f32.xlu0 %v2415_v44  ;;  %3594 = vmatprep.subr.bf16.mxu1 %v3593_v45 }
 0x20d   : > { %3596 = vmatpush3.bf16.msra.mxu1 %v3593_v45  ;;  %v2663_v60 = vpop.xlane.xlu0 %2662 }
 0x20e   : > { %v3721_v48 = vpack.c.bf16 %v2666_v28, %v2663_v60  ;;  %2431 = vmax.xlane.f32.xlu1 %v2430_v47  ;;  %v2678_v49 = vpop.xlane.xlu1 %2677 }
 0x210   : > { %2932 = vmax.xlane.f32.xlu0 %v2931_v6  ;;  %3722 = vmatprep.subr.bf16.mxu0 %v3721_v48 }
 0x211   : > { %3724 = vmatpush3.bf16.msra.mxu0 %v3721_v48  ;;  %v2153_v56 = vpop.xlane.xlu0 %2152 }
 0x212   : > { %v3597_v59 = vpack.c.bf16 %v2156_v34, %v2153_v56  ;;  %2947 = vmax.xlane.f32.xlu1 %v2946_v55  ;;  %v2168_v61 = vpop.xlane.xlu1 %2167 }
 0x214   : > { %2422 = vmax.xlane.f32.xlu0 %v2421_v58  ;;  %3598 = vmatprep.subr.bf16.mxu1 %v3597_v59 }
 0x215   : > { %3600 = vmatpush3.bf16.msra.mxu1 %v3597_v59  ;;  %v2669_v37 = vpop.xlane.xlu0 %2668 }
 0x216   : > { %v3725_v0 = vpack.c.bf16 %v2672_v38, %v2669_v37  ;;  %2437 = vmax.xlane.f32.xlu1 %v2436_v62  ;;  %v2684_v1 = vpop.xlane.xlu1 %2683 }
 0x218   : > { %2938 = vmax.xlane.f32.xlu0 %v2937_v57  ;;  %3726 = vmatprep.subr.bf16.mxu0 %v3725_v0 }
 0x219   : > { %3728 = vmatpush3.bf16.msra.mxu0 %v3725_v0  ;;  %v2159_v43 = vpop.xlane.xlu0 %2158 }
 0x21a   : > { %v3601_v5 = vpack.c.bf16 %v2162_v46, %v2159_v43  ;;  %2953 = vmax.xlane.f32.xlu1 %v2952_v3  ;;  %v2174_v8 = vpop.xlane.xlu1 %2173 }
 0x21c   : > { %2428 = vmax.xlane.f32.xlu0 %v2427_v4  ;;  %3602 = vmatprep.subr.bf16.mxu1 %v3601_v5 }
 0x21d   : > { %3604 = vmatpush3.bf16.msra.mxu1 %v3601_v5  ;;  %v2675_v20 = vpop.xlane.xlu0 %2674 }
 0x21e   : > { %v3729_v10 = vpack.c.bf16 %v2678_v49, %v2675_v20  ;;  %v2690_v53 = vpop.xlane.xlu1 %2689 }
 0x220   : > { %2944 = vmax.xlane.f32.xlu0 %v2943_v9  ;;  %3730 = vmatprep.subr.bf16.mxu0 %v3729_v10 }
 0x221   : > { %3732 = vmatpush3.bf16.msra.mxu0 %v3729_v10  ;;  %v2165_v54 = vpop.xlane.xlu0 %2164 }
 0x222   : > { %v3605_v41 = vpack.c.bf16 %v2168_v61, %v2165_v54  ;;  %v2180_v2 = vpop.xlane.xlu1 %2179 }
 0x224   : > { %2434 = vmax.xlane.f32.xlu0 %v2433_v11  ;;  %3606 = vmatprep.subr.bf16.mxu1 %v3605_v41 }
 0x225   : > { %3608 = vmatpush3.bf16.msra.mxu1 %v3605_v41  ;;  %v2681_v14 = vpop.xlane.xlu0 %2680 }
 0x226   : > { %v3733_v39 = vpack.c.bf16 %v2684_v1, %v2681_v14  ;;  %v2696_v7 = vpop.xlane.xlu1 %2695 }
 0x228   : > { %2950 = vmax.xlane.f32.xlu0 %v2949_v25  ;;  %3734 = vmatprep.subr.bf16.mxu0 %v3733_v39 }
 0x229   : > { %3736 = vmatpush3.bf16.msra.mxu0 %v3733_v39  ;;  %v2171_v21 = vpop.xlane.xlu0 %2170  ;;  %v3114_v39 = vld [vmem:[%s4935_s1 + $0x28] sm:$0x7f] }
 0x22a   : > { %v3609_v52 = vpack.c.bf16 %v2174_v8, %v2171_v21  ;;  %v2267_v12 = vpop.xlane.xlu1 %2266 }
 0x22c   : > { %3610 = vmatprep.subr.bf16.mxu1 %v3609_v52 }
 0x22d   : > { %3612 = vmatpush3.bf16.msra.mxu1 %v3609_v52  ;;  %v2687_v13 = vpop.xlane.xlu0 %2686  ;;  %v3115_v52 = vld [vmem:[%s4935_s1 + $0x30] sm:$0xff] }
 0x22e   : > { %v3737_v15 = vpack.c.bf16 %v2690_v53, %v2687_v13  ;;  %v2783_v16 = vpop.xlane.xlu1 %2782  ;;  %v3122_v13 = vld [vmem:[%s4935_s1 + $0x68] sm:$0x7f] }
 0x230   : > { %3738 = vmatprep.subr.bf16.mxu0 %v3737_v15 }
 0x231   : > { %3740 = vmatpush3.bf16.msra.mxu0 %v3737_v15  ;;  %v2177_v63 = vpop.xlane.xlu0 %2176 }
 0x232   : > { %v3613_v17 = vpack.c.bf16 %v2180_v2, %v2177_v63  ;;  %v2273_v18 = vpop.xlane.xlu1 %2272  ;;  %v3123_v63 = vld [vmem:[%s4935_s1 + $0x70] sm:$0xff] }
 0x234   : > { %3614 = vmatprep.subr.bf16.mxu1 %v3613_v17 }
 0x235   : > { %3616 = vmatpush3.bf16.msra.mxu1 %v3613_v17  ;;  %v2693_v51 = vpop.xlane.xlu0 %2692 }
 0x236   : > { %v3741_v50 = vpack.c.bf16 %v2696_v7, %v2693_v51  ;;  %v2789_v23 = vpop.xlane.xlu1 %2788 }
 0x238   : > { %3742 = vmatprep.subr.bf16.mxu0 %v3741_v50  ;;  %3341 = vmatmul.mubr.f32.vlgmr.msra.gmra.mrb[0].mxu1 %v3112_v22 }
 0x239   : > { %3744 = vmatpush3.bf16.msra.mxu0 %v3741_v50  ;;  %v2264_v26 = vpop.xlane.xlu0 %2263  ;;  %3375 = vmatprep.mubr.f32.mxu1 %v3113_v24 }
 0x23a   : > { %v3617_v28 = vpack.c.bf16 %v2267_v12, %v2264_v26  ;;  %v2279_v29 = vpop.xlane.xlu1 %2278 }
 0x23c   : > { %3618 = vmatprep.subr.bf16.mxu1 %v3617_v28  ;;  %3481 = vmatmul.mubr.f32.vlgmr.msra.gmra.mrb[0].mxu0 %v3120_v27 }
 0x23d   : > { %3620 = vmatpush3.bf16.msra.mxu1 %v3617_v28  ;;  %v2780_v32 = vpop.xlane.xlu0 %2779  ;;  %3515 = vmatprep.mubr.f32.mxu0 %v3121_v31 }
 0x23e   : > { %v3745_v33 = vpack.c.bf16 %v2783_v16, %v2780_v32  ;;  %v2795_v34 = vpop.xlane.xlu1 %2794 }
 0x240   : > { %3746 = vmatprep.subr.bf16.mxu0 %v3745_v33 }
 0x241   : > { %3748 = vmatpush3.bf16.msra.mxu0 %v3745_v33  ;;  %v2270_v30 = vpop.xlane.xlu0 %2269 }
 0x242   : > { %v3621_v35 = vpack.c.bf16 %v2273_v18, %v2270_v30  ;;  %v2285_v19 = vpop.xlane.xlu1 %2284 }
 0x244   : > { %3622 = vmatprep.subr.bf16.mxu1 %v3621_v35 }
 0x245   : > { %3624 = vmatpush3.bf16.msra.mxu1 %v3621_v35  ;;  %v2786_v36 = vpop.xlane.xlu0 %2785 }
 0x246   : > { %v3749_v38 = vpack.c.bf16 %v2789_v23, %v2786_v36  ;;  %v2801_v40 = vpop.xlane.xlu1 %2800 }
 0x248   : > { %3750 = vmatprep.subr.bf16.mxu0 %v3749_v38 }
 0x249   : > { %3752 = vmatpush3.bf16.msra.mxu0 %v3749_v38  ;;  %v2276_v42 = vpop.xlane.xlu0 %2275 }
 0x24a   : > { %v3625_v44 = vpack.c.bf16 %v2279_v29, %v2276_v42  ;;  %v2291_v45 = vpop.xlane.xlu1 %2290 }
 0x24c   : > { %3626 = vmatprep.subr.bf16.mxu1 %v3625_v44 }
 0x24d   : > { %3628 = vmatpush3.bf16.msra.mxu1 %v3625_v44  ;;  %v2792_v46 = vpop.xlane.xlu0 %2791 }
 0x24e   : > { %v3753_v47 = vpack.c.bf16 %v2795_v34, %v2792_v46  ;;  %v2807_v60 = vpop.xlane.xlu1 %2806 }
 0x250   : > { %3754 = vmatprep.subr.bf16.mxu0 %v3753_v47 }
 0x251   : > { %3756 = vmatpush3.bf16.msra.mxu0 %v3753_v47  ;;  %v2282_v6 = vpop.xlane.xlu0 %2281 }
 0x252   : > { %v3629_v48 = vpack.c.bf16 %v2285_v19, %v2282_v6  ;;  %v2297_v49 = vpop.xlane.xlu1 %2296 }
 0x254   : > { %3630 = vmatprep.subr.bf16.mxu1 %v3629_v48 }
 0x255   : > { %3632 = vmatpush3.bf16.msra.mxu1 %v3629_v48  ;;  %v2798_v55 = vpop.xlane.xlu0 %2797 }
 0x256   : > { %v3757_v56 = vpack.c.bf16 %v2801_v40, %v2798_v55  ;;  %v2813_v58 = vpop.xlane.xlu1 %2812 }
 0x258   : > { %3758 = vmatprep.subr.bf16.mxu0 %v3757_v56 }
 0x259   : > { %3760 = vmatpush3.bf16.msra.mxu0 %v3757_v56  ;;  %v2288_v59 = vpop.xlane.xlu0 %2287 }
 0x25a   : > { %v3633_v61 = vpack.c.bf16 %v2291_v45, %v2288_v59  ;;  %v2303_v62 = vpop.xlane.xlu1 %2302 }
 0x25c   : > { %3634 = vmatprep.subr.bf16.mxu1 %v3633_v61 }
 0x25d   : > { %3636 = vmatpush3.bf16.msra.mxu1 %v3633_v61  ;;  %v2804_v37 = vpop.xlane.xlu0 %2803 }
 0x25e   : > { %v3761_v57 = vpack.c.bf16 %v2807_v60, %v2804_v37  ;;  %v2819_v0 = vpop.xlane.xlu1 %2818 }
 0x260   : > { %3762 = vmatprep.subr.bf16.mxu0 %v3761_v57 }
 0x261   : > { %3764 = vmatpush3.bf16.msra.mxu0 %v3761_v57  ;;  %v2294_v1 = vpop.xlane.xlu0 %2293 }
 0x262   : > { %v3637_v3 = vpack.c.bf16 %v2297_v49, %v2294_v1  ;;  %v2309_v43 = vpop.xlane.xlu1 %2308 }
 0x264   : > { %3638 = vmatprep.subr.bf16.mxu1 %v3637_v3 }
 0x265   : > { %3640 = vmatpush3.bf16.msra.mxu1 %v3637_v3  ;;  %v2810_v4 = vpop.xlane.xlu0 %2809  ;;  %v3116_v3 = vld [vmem:[%s4935_s1 + $0x38] sm:$0x7f] }
 0x266   : > { %v3765_v5 = vpack.c.bf16 %v2813_v58, %v2810_v4  ;;  %v2825_v8 = vpop.xlane.xlu1 %2824  ;;  %v3124_v4 = vld [vmem:[%s4935_s1 + $0x78] sm:$0x7f] }
 0x268   : > { %3766 = vmatprep.subr.bf16.mxu0 %v3765_v5 }
 0x269   : > { %3768 = vmatpush3.bf16.msra.mxu0 %v3765_v5  ;;  %v2300_v20 = vpop.xlane.xlu0 %2299  ;;  %v1740_v5 = vld [vmem:[%s4936_s2 + $0x8] sm:$0x7f] }
 0x26a   : > { %v3641_v9 = vpack.c.bf16 %v2303_v62, %v2300_v20  ;;  %v2396_v10 = vpop.xlane.xlu1 %2395  ;;  %v1739_v20 = vld [vmem:[%s4936_s2] sm:$0xff] }
 0x26c   : > { %3642 = vmatprep.subr.bf16.mxu1 %v3641_v9 }
 0x26d   : > { %3644 = vmatpush3.bf16.msra.mxu1 %v3641_v9  ;;  %v2816_v53 = vpop.xlane.xlu0 %2815 }
 0x26e   : > { %v3769_v54 = vpack.c.bf16 %v2819_v0, %v2816_v53  ;;  %v2912_v11 = vpop.xlane.xlu1 %2911 }
 0x270   : > { %3770 = vmatprep.subr.bf16.mxu0 %v3769_v54 }
 0x271   : > { %3772 = vmatpush3.bf16.msra.mxu0 %v3769_v54  ;;  %v2306_v41 = vpop.xlane.xlu0 %2305 }
 0x272   : > { %v3645_v2 = vpack.c.bf16 %v2309_v43, %v2306_v41  ;;  %v2402_v14 = vpop.xlane.xlu1 %2401 }
 0x274   : > { %3646 = vmatprep.subr.bf16.mxu1 %v3645_v2 }
 0x275   : > { %3648 = vmatpush3.bf16.msra.mxu1 %v3645_v2  ;;  %v2822_v25 = vpop.xlane.xlu0 %2821 }
 0x276   : > { %v3773_v7 = vpack.c.bf16 %v2825_v8, %v2822_v25  ;;  %v2918_v21 = vpop.xlane.xlu1 %2917 }
 0x278   : > { %3774 = vmatprep.subr.bf16.mxu0 %v3773_v7  ;;  %3376 = vmatmul.mubr.f32.vlgmr.msra.gmra.mrb[0].mxu1 %v3114_v39 }
 0x279   : > { %3776 = vmatpush3.bf16.msra.mxu0 %v3773_v7  ;;  %v2393_v12 = vpop.xlane.xlu0 %2392  ;;  %3410 = vmatprep.mubr.f32.mxu1 %v3115_v52 }
 0x27a   : > { %v3649_v15 = vpack.c.bf16 %v2396_v10, %v2393_v12  ;;  %v2408_v16 = vpop.xlane.xlu1 %2407 }
 0x27c   : > { %3650 = vmatprep.subr.bf16.mxu1 %v3649_v15  ;;  %3516 = vmatmul.mubr.f32.vlgmr.msra.gmra.mrb[0].mxu0 %v3122_v13 }
 0x27d   : > { %3652 = vmatpush3.bf16.msra.mxu1 %v3649_v15  ;;  %v2909_v17 = vpop.xlane.xlu0 %2908  ;;  %3550 = vmatprep.mubr.f32.mxu0 %v3123_v63 }
 0x27e   : > { %v3777_v18 = vpack.c.bf16 %v2912_v11, %v2909_v17  ;;  %v2924_v51 = vpop.xlane.xlu1 %2923 }
 0x280   : > { %3778 = vmatprep.subr.bf16.mxu0 %v3777_v18 }
 0x281   : > { %3780 = vmatpush3.bf16.msra.mxu0 %v3777_v18  ;;  %v2399_v22 = vpop.xlane.xlu0 %2398 }
 0x282   : > { %v3653_v50 = vpack.c.bf16 %v2402_v14, %v2399_v22  ;;  %v2414_v23 = vpop.xlane.xlu1 %2413 }
 0x284   : > { %3654 = vmatprep.subr.bf16.mxu1 %v3653_v50 }
 0x285   : > { %3656 = vmatpush3.bf16.msra.mxu1 %v3653_v50  ;;  %v2915_v24 = vpop.xlane.xlu0 %2914 }
 0x286   : > { %v3781_v26 = vpack.c.bf16 %v2918_v21, %v2915_v24 }
 0x287   : > { %v2930_v27 = vpop.xlane.xlu1 %2929 }
 0x288   : > { %3782 = vmatprep.subr.bf16.mxu0 %v3781_v26 }
 0x289   : > { %3784 = vmatpush3.bf16.msra.mxu0 %v3781_v26  ;;  %v2405_v28 = vpop.xlane.xlu0 %2404 }
 0x28a   : > { %v3657_v29 = vpack.c.bf16 %v2408_v16, %v2405_v28 }
 0x28b   : > { %v2420_v31 = vpop.xlane.xlu1 %2419 }
 0x28c   : > { %3658 = vmatprep.subr.bf16.mxu1 %v3657_v29 }
 0x28d   : > { %3660 = vmatpush3.bf16.msra.mxu1 %v3657_v29  ;;  %v2921_v32 = vpop.xlane.xlu0 %2920 }
 0x28e   : > { %v3785_v33 = vpack.c.bf16 %v2924_v51, %v2921_v32 }
 0x28f   : > { %v2936_v34 = vpop.xlane.xlu1 %2935 }
 0x290   : > { %3786 = vmatprep.subr.bf16.mxu0 %v3785_v33 }
 0x291   : > { %3788 = vmatpush3.bf16.msra.mxu0 %v3785_v33  ;;  %v2411_v30 = vpop.xlane.xlu0 %2410 }
 0x292   : > { %v3661_v35 = vpack.c.bf16 %v2414_v23, %v2411_v30 }
 0x293   : > { %v2426_v36 = vpop.xlane.xlu1 %2425 }
 0x294   : > { %3662 = vmatprep.subr.bf16.mxu1 %v3661_v35 }
 0x295   : > { %3664 = vmatpush3.bf16.msra.mxu1 %v3661_v35  ;;  %v2927_v19 = vpop.xlane.xlu0 %2926 }
 0x296   : > { %v3789_v38 = vpack.c.bf16 %v2930_v27, %v2927_v19 }
 0x297   : > { %v2942_v44 = vpop.xlane.xlu1 %2941 }
 0x298   : > { %3790 = vmatprep.subr.bf16.mxu0 %v3789_v38 }
 0x299   : > { %3792 = vmatpush3.bf16.msra.mxu0 %v3789_v38  ;;  %v2417_v40 = vpop.xlane.xlu0 %2416 }
 0x29a   : > { %v3665_v42 = vpack.c.bf16 %v2420_v31, %v2417_v40 }
 0x29b   : > { %v2432_v60 = vpop.xlane.xlu1 %2431 }
 0x29c   : > { %3666 = vmatprep.subr.bf16.mxu1 %v3665_v42 }
 0x29d   : > { %3668 = vmatpush3.bf16.msra.mxu1 %v3665_v42  ;;  %v2933_v45 = vpop.xlane.xlu0 %2932 }
 0x29e   : > { %v3793_v46 = vpack.c.bf16 %v2936_v34, %v2933_v45 }
 0x29f   : > { %v2948_v55 = vpop.xlane.xlu1 %2947 }
 0x2a0   : > { %3794 = vmatprep.subr.bf16.mxu0 %v3793_v46 }
 0x2a1   : > { %3796 = vmatpush3.bf16.msra.mxu0 %v3793_v46  ;;  %v2423_v47 = vpop.xlane.xlu0 %2422 }
 0x2a2   : > { %v3669_v6 = vpack.c.bf16 %v2426_v36, %v2423_v47 }
 0x2a3   : > { %v2438_v61 = vpop.xlane.xlu1 %2437 }
 0x2a4   : > { %3670 = vmatprep.subr.bf16.mxu1 %v3669_v6 }
 0x2a5   : > { %3672 = vmatpush3.bf16.msra.mxu1 %v3669_v6  ;;  %v2939_v48 = vpop.xlane.xlu0 %2938 }
 0x2a6   : > { %v3797_v49 = vpack.c.bf16 %v2942_v44, %v2939_v48 }
 0x2a7   : > { %v2954_v0 = vpop.xlane.xlu1 %2953 }
 0x2a8   : > { %3798 = vmatprep.subr.bf16.mxu0 %v3797_v49 }
 0x2a9   : > { %3800 = vmatpush3.bf16.msra.mxu0 %v3797_v49  ;;  %v2429_v56 = vpop.xlane.xlu0 %2428 }
 0x2aa   : > { %v3673_v58 = vpack.c.bf16 %v2432_v60, %v2429_v56 }
 0x2ac   : > { %3674 = vmatprep.subr.bf16.mxu1 %v3673_v58 }
 0x2ad   : > { %3676 = vmatpush3.bf16.msra.mxu1 %v3673_v58  ;;  %v2945_v59 = vpop.xlane.xlu0 %2944 }
 0x2ae   : > { %v3801_v62 = vpack.c.bf16 %v2948_v55, %v2945_v59 }
 0x2b0   : > { %3802 = vmatprep.subr.bf16.mxu0 %v3801_v62 }
 0x2b1   : > { %3804 = vmatpush3.bf16.msra.mxu0 %v3801_v62  ;;  %v2435_v37 = vpop.xlane.xlu0 %2434 }
 0x2b2   : > { %v3677_v57 = vpack.c.bf16 %v2438_v61, %v2435_v37 }
 0x2b4   : > { %3678 = vmatprep.subr.bf16.mxu1 %v3677_v57 }
 0x2b5   : > { %3680 = vmatpush3.bf16.msra.mxu1 %v3677_v57  ;;  %v2951_v1 = vpop.xlane.xlu0 %2950 }
 0x2b6   : > { %v3805_v43 = vpack.c.bf16 %v2954_v0, %v2951_v1 }
 0x2b8   : > { %3411 = vmatmul.mubr.f32.vlgmr.msra.gmra.mrb[0].mxu1 %v3116_v3  ;;  %3806 = vmatprep.subr.bf16.mxu0 %v3805_v43 }
 0x2b9   : > { %3808 = vmatpush3.bf16.msra.mxu0 %v3805_v43 }
 0x2bc   : > { %3551 = vmatmul.mubr.f32.vlgmr.msra.gmra.mrb[0].mxu0 %v3124_v4 }
 0x38b   : > { %v3412_v8 = vpop.f32.mrb[0].mxu1 }
 0x38c   : > { %v2508_v9 = vpop.f32.mrb[1].mxu1  ;;  %v3809_v10 = vadd.f32 %v3412_v8, %v1740_v5 }
 0x38d   : > { %v3811_v53 = vadd.f32 %v2508_v9, %v1739_v20 }
 0x38f   : > { %v3552_v54 = vpop.f32.mrb[0].mxu0 }
 0x390   : > { %v3810_v11 = vadd.f32 %v3809_v10, %v3552_v54  ;;  %v3024_v41 = vpop.f32.mrb[1].mxu0 }
 0x391   : > { %v3812_v2 = vadd.f32 %v3811_v53, %v3024_v41 }
 0x392   : > { %3038 = vst.msk [vmem:[%s713_s25 + $0x8] sm:$0x7f] %vm3037_vm0, %v3810_v11 }
 0x393   : > { %3036 = vst.msk [vmem:[%s713_s25] sm:$0xff] %vm3035_vm1, %v3812_v2 }
 0x394 PF: > { %p10_p9 = scmp.ge.s32.totalorder %s3910_s16, 4   ;;  %s4938_s12 = smov %s3867_s13 }
 0x395   : > { %s4939_s13 = smov %s3919_s19  ;;  %s4940_s14 = smov %s3910_s16 }
 0x396   :  { %12 = sbr.rel (!%p10_p9) target bundleno = 2 (0x2), region = 112 }

</bundles_post_ra>
